<compile_context>
chip_gen: v7x
topology: tpu7x:2x2x1
jax: 0.10.0
libtpu: 0.0.40
codegen_flags: <defaults>
</compile_context>

<pallas_src>
import numpy as np
import jax
import jax.numpy as jnp
from jax.experimental import pallas as pl
from jax.experimental.pallas import tpu as pltpu


OUT_PAD = 128  # lane-dense classifier output width (sliced back in the wrapper)


# ---------------------------------------------------------------------------
# Fused Pallas kernel (tree recursion + classifier)
# ---------------------------------------------------------------------------
def _make_rntn_kernel(n_levels, l_pad, hidden, n_pad):
    H = hidden

    def kernel(lvl_node_ref, lvl_left_ref, lvl_right_ref,   # SMEM int32 (n_levels*l_pad,)
               init_states_ref,                             # (n_pad, 1, H) leaf-filled
               vb_ref,                                      # (2H, 2H*H)
               e_ref,                                       # (2H, 2H*H)
               s_ref,                                       # (2H*H, H)
               w_ref,                                       # (2H, H)
               b_ref,                                       # (1, H)
               wout_ref,                                    # (H, OUT_PAD)
               bout_ref,                                    # (1, OUT_PAD)
               out_ref,                                     # (n_pad, OUT_PAD)
               states_scr,                                  # VMEM (n_pad, 1, H)
               c_scr,                                       # VMEM (l_pad, 2H)
               flat_scr):                                   # VMEM (n_pad, H)
        # Leaves were embedded + scattered in the wrapper: one bulk copy here.
        states_scr[...] = init_states_ref[...]

        vb = vb_ref[...]
        ee = e_ref[...]
        s_mat = s_ref[...]
        w = w_ref[...]
        bias = b_ref[...]                                   # (1, H)

        # Level-batched internal-node updates (static loops -> fully unrolled).
        for d in range(n_levels):
            base = d * l_pad
            # Gather children states of this level into a contiguous (l_pad, 2H) block.
            for sl in range(l_pad):
                li = lvl_left_ref[base + sl]
                ri = lvl_right_ref[base + sl]
                c_scr[pl.ds(sl, 1), pl.ds(0, H)] = states_scr[li]
                c_scr[pl.ds(sl, 1), pl.ds(H, H)] = states_scr[ri]

            c = c_scr[...]                                  # (l_pad, 2H)
            # t[x, b*H + j]  = sum_a c[x,a] * V[j,a,b]
            t = jnp.dot(c, vb, preferred_element_type=jnp.float32)
            # ce[x, b*H + j] = c[x, b]
            ce = jnp.dot(c, ee, preferred_element_type=jnp.float32)
            # xvx[x, j] = sum_b c[x,b] * sum_a c[x,a] V[j,a,b] = c V[j] c^T
            xvx = jnp.dot(t * ce, s_mat, preferred_element_type=jnp.float32)
            wx = jnp.dot(c, w, preferred_element_type=jnp.float32)
            h = jnp.tanh(xvx + wx + bias)                   # (l_pad, H)

            # Scatter results back to per-node states (padded slots -> dummy row).
            for sl in range(l_pad):
                ni = lvl_node_ref[base + sl]
                states_scr[ni] = h[sl:sl + 1, :]

        # Fused classifier epilogue: dense (n_pad, H) block -> log_softmax.
        for i in range(n_pad):
            flat_scr[pl.ds(i, 1), :] = states_scr[i]
        logits = (jnp.dot(flat_scr[...], wout_ref[...],
                          preferred_element_type=jnp.float32) + bout_ref[...])
        m = jnp.max(logits, axis=1, keepdims=True)
        z = logits - m
        lse = jnp.log(jnp.sum(jnp.exp(z), axis=1, keepdims=True))
        out_ref[...] = z - lse

    return kernel


# ---------------------------------------------------------------------------
# Wrapper: host-side level scheduling + parameter flattening + one pallas_call
# ---------------------------------------------------------------------------
def rntn_forward_pallas(meta, params, hidden_size, output_size):
    is_leaf, word, left, right = [np.asarray(m, np.int32) for m in meta]
    embed, V_stack, W, b, WoutT, bout = params
    H = hidden_size
    N = int(is_leaf.shape[0])
    N_pad = N + 1                       # extra dummy row for padded schedule slots

    # --- host-side depth-level schedule (post-order => children before parent)
    level = np.zeros(N, np.int64)
    for i in range(N):
        if is_leaf[i] == 0:
            level[i] = 1 + max(level[left[i]], level[right[i]])
    n_levels = int(level.max())
    if n_levels == 0:                   # degenerate single-leaf tree
        n_levels, widths = 1, [0]
    else:
        widths = [int(np.sum(level == d)) for d in range(1, n_levels + 1)]
    l_pad = max(8, -(-max(widths) // 8) * 8)      # round level width up to 8

    dummy = N
    lvl_node = np.full((n_levels, l_pad), dummy, np.int32)
    lvl_left = np.full((n_levels, l_pad), dummy, np.int32)
    lvl_right = np.full((n_levels, l_pad), dummy, np.int32)
    for d in range(1, n_levels + 1):
        idxs = np.where(level == d)[0]
        lvl_node[d - 1, :len(idxs)] = idxs
        lvl_left[d - 1, :len(idxs)] = left[idxs]
        lvl_right[d - 1, :len(idxs)] = right[idxs]

    # --- leaves hoisted out of the kernel: one vectorized gather + scatter ---
    leaf_pos = np.where(is_leaf == 1)[0]
    leaf_words = word[leaf_pos]
    init_states = jnp.zeros((N_pad, 1, H), jnp.float32)
    init_states = init_states.at[jnp.asarray(leaf_pos)].set(
        embed[jnp.asarray(leaf_words)][:, None, :])

    # --- flattened bilinear-form weights ---
    # Vb[a, b*H + j] = V[j, a, b]
    Vb = jnp.transpose(V_stack, (1, 2, 0)).reshape(2 * H, 2 * H * H)
    # E[a, b*H + j] = (a == b)    -> c @ E replicates c[b] over j
    E = jnp.repeat(jnp.eye(2 * H, dtype=jnp.float32), H, axis=1)
    # S[b*H + j, j'] = (j == j')  -> strided lane-sum via matmul
    S = jnp.tile(jnp.eye(H, dtype=jnp.float32), (2 * H, 1))

    # --- lane-dense classifier weights (padded to 128 output lanes) ---
    WoutT_pad = jnp.zeros((H, OUT_PAD), jnp.float32).at[:, :output_size].set(WoutT)
    bout_pad = (jnp.full((1, OUT_PAD), -1e30, jnp.float32)
                .at[:, :output_size].set(bout))

    smem = pl.BlockSpec(memory_space=pltpu.MemorySpace.SMEM)
    vmem = pl.BlockSpec(memory_space=pltpu.MemorySpace.VMEM)

    kernel = _make_rntn_kernel(n_levels, l_pad, H, N_pad)
    out = pl.pallas_call(
        kernel,
        out_shape=jax.ShapeDtypeStruct((N_pad, OUT_PAD), jnp.float32),
        in_specs=[smem, smem, smem] + [vmem] * 8,
        out_specs=vmem,
        scratch_shapes=[
            pltpu.VMEM((N_pad, 1, H), jnp.float32),   # per-node hidden states
            pltpu.VMEM((l_pad, 2 * H), jnp.float32),  # level-batched child block
            pltpu.VMEM((N_pad, H), jnp.float32),      # dense states for classifier
        ],
    )(jnp.asarray(lvl_node.reshape(-1)),
      jnp.asarray(lvl_left.reshape(-1)),
      jnp.asarray(lvl_right.reshape(-1)),
      init_states, Vb, E, S, W, b, WoutT_pad, bout_pad)

    return out[:N, :output_size]


# ---------------------------------------------------------------------------
# Host-side tree linearization (post-order == tree_propagation insertion order)
# ---------------------------------------------------------------------------
def build_tree_postorder(num_leaves, vocab):
    is_leaf, word, left, right = [], [], [], []
    leaf_ctr = [0]

    def build(n):
        if n == 1:
            idx = len(is_leaf)
            is_leaf.append(1)
            word.append(leaf_ctr[0] % vocab)
            left.append(0)
            right.append(0)
            leaf_ctr[0] += 1
            return idx
        li = build(n // 2)
        ri = build(n - n // 2)
        idx = len(is_leaf)
        is_leaf.append(0)
        word.append(0)
        left.append(li)
        right.append(ri)
        return idx

    build(num_leaves)
    return (np.array(is_leaf, np.int32), np.array(word, np.int32),
            np.array(left, np.int32), np.array(right, np.int32))


# ---------------------------------------------------------------------------
# Pure numpy (float64) reference, mirrors the PyTorch math exactly
# ---------------------------------------------------------------------------
def rntn_forward_reference(meta, params):
    is_leaf, word, left, right = [np.asarray(x) for x in meta]
    embed, V_stack, W, b, WoutT, bout = [np.asarray(p, np.float64) for p in params]
    states = []
    for i in range(len(is_leaf)):
        if is_leaf[i] == 1:
            cur = embed[word[i]][None, :]
        else:
            c = np.concatenate([states[left[i]], states[right[i]]], axis=1)   # (1, 2H)
            xvx = np.einsum('xa,jab,xb->xj', c, V_stack, c)                   # (1, H)
            cur = np.tanh(xvx + c @ W + b)
        states.append(cur)
    st = np.concatenate(states, axis=0)
    logits = st @ WoutT + bout
    m = logits.max(axis=1, keepdims=True)
    z = logits - m
    return z - np.log(np.exp(z).sum(axis=1, keepdims=True))


if __name__ == "__main__":
    HIDDEN = 32
    OUTPUT = 5
    VOCAB = 16
    NUM_LEAVES = 8   # -> 15 tree nodes (post-order)

    meta_np = build_tree_postorder(NUM_LEAVES, VOCAB)

    key = jax.random.PRNGKey(0)
    ks = jax.random.split(key, 6)
    embed = 0.5 * jax.random.normal(ks[0], (VOCAB, HIDDEN), jnp.float32)
    V_stack = 0.1 * jax.random.normal(ks[1], (HIDDEN, 2 * HIDDEN, 2 * HIDDEN), jnp.float32)
    W = 0.3 * jax.random.normal(ks[2], (2 * HIDDEN, HIDDEN), jnp.float32)
    b = 0.1 * jax.random.normal(ks[3], (1, HIDDEN), jnp.float32)
    WoutT = 0.3 * jax.random.normal(ks[4], (HIDDEN, OUTPUT), jnp.float32)   # = W_out.weight.T
    bout = 0.1 * jax.random.normal(ks[5], (1, OUTPUT), jnp.float32)
    params = (embed, V_stack, W, b, WoutT, bout)

    out = rntn_forward_pallas(meta_np, params, HIDDEN, OUTPUT)
    out = jax.block_until_ready(out)

    ref = rntn_forward_reference(meta_np, params)
    assert out.shape == ref.shape, (out.shape, ref.shape)
    max_err = float(np.max(np.abs(np.asarray(out, np.float64) - ref)))
    assert max_err < 2e-2, f"max abs error too large: {max_err}"
    print("KERNEL_OK")
</pallas_src>

<mosaic_0001>
module attributes {stable_mosaic.version = 11 : i64} {
  func.func @kernel(%arg0: memref<24xi32, #tpu.memory_space<smem>>, %arg1: memref<24xi32, #tpu.memory_space<smem>>, %arg2: memref<24xi32, #tpu.memory_space<smem>>, %arg3: memref<16x1x32xf32, #tpu.memory_space<vmem>>, %arg4: memref<64x2048xf32, #tpu.memory_space<vmem>>, %arg5: memref<64x2048xf32, #tpu.memory_space<vmem>>, %arg6: memref<2048x32xf32, #tpu.memory_space<vmem>>, %arg7: memref<64x32xf32, #tpu.memory_space<vmem>>, %arg8: memref<1x32xf32, #tpu.memory_space<vmem>>, %arg9: memref<32x128xf32, #tpu.memory_space<vmem>>, %arg10: memref<1x128xf32, #tpu.memory_space<vmem>>, %arg11: memref<16x128xf32, #tpu.memory_space<vmem>>, %arg12: memref<16x1x32xf32, #tpu.memory_space<vmem>>, %arg13: memref<8x64xf32, #tpu.memory_space<vmem>>, %arg14: memref<16x32xf32, #tpu.memory_space<vmem>>) attributes {dimension_semantics = [], scalar_prefetch = 0 : i64, scratch_operands = 3 : i64, tpu.core_type = #tpu.core_type<tc>} {
    %c0 = arith.constant 0 : index
    %c0_0 = arith.constant 0 : index
    %c0_1 = arith.constant 0 : index
    %0 = vector.load %arg3[%c0, %c0_0, %c0_1] : memref<16x1x32xf32, #tpu.memory_space<vmem>>, vector<16x1x32xf32>
    %c0_2 = arith.constant 0 : index
    %c0_3 = arith.constant 0 : index
    %c0_4 = arith.constant 0 : index
    %1 = vector.load %arg12[%c0_2, %c0_3, %c0_4] : memref<16x1x32xf32, #tpu.memory_space<vmem>>, vector<16x1x32xf32>
    tpu.vector_store %arg12[%c0_2, %c0_3, %c0_4], %0 {strides = array<i32>} : memref<16x1x32xf32, #tpu.memory_space<vmem>>, vector<16x1x32xf32>,
    %c0_5 = arith.constant 0 : index
    %c0_6 = arith.constant 0 : index
    %2 = vector.load %arg4[%c0_5, %c0_6] : memref<64x2048xf32, #tpu.memory_space<vmem>>, vector<64x2048xf32>
    %c0_7 = arith.constant 0 : index
    %c0_8 = arith.constant 0 : index
    %3 = vector.load %arg5[%c0_7, %c0_8] : memref<64x2048xf32, #tpu.memory_space<vmem>>, vector<64x2048xf32>
    %c0_9 = arith.constant 0 : index
    %c0_10 = arith.constant 0 : index
    %4 = vector.load %arg6[%c0_9, %c0_10] : memref<2048x32xf32, #tpu.memory_space<vmem>>, vector<2048x32xf32>
    %c0_11 = arith.constant 0 : index
    %c0_12 = arith.constant 0 : index
    %5 = vector.load %arg7[%c0_11, %c0_12] : memref<64x32xf32, #tpu.memory_space<vmem>>, vector<64x32xf32>
    %c0_13 = arith.constant 0 : index
    %c0_14 = arith.constant 0 : index
    %6 = vector.load %arg8[%c0_13, %c0_14] : memref<1x32xf32, #tpu.memory_space<vmem>>, vector<1x32xf32>
    %c0_15 = arith.constant 0 : index
    %7 = memref.load %arg1[%c0_15] : memref<24xi32, #tpu.memory_space<smem>>
    %c0_16 = arith.constant 0 : index
    %8 = memref.load %arg2[%c0_16] : memref<24xi32, #tpu.memory_space<smem>>
    %9 = arith.index_cast %7 : i32 to index
    %c0_17 = arith.constant 0 : index
    %c0_18 = arith.constant 0 : index
    %10 = vector.load %arg12[%9, %c0_17, %c0_18] : memref<16x1x32xf32, #tpu.memory_space<vmem>>, vector<1x1x32xf32>
    %11 = vector.shape_cast %10 : vector<1x1x32xf32> to vector<1x32xf32>
    %c0_19 = arith.constant 0 : index
    %c0_20 = arith.constant 0 : index
    %12 = vector.load %arg13[%c0_19, %c0_20] : memref<8x64xf32, #tpu.memory_space<vmem>>, vector<1x32xf32>
    tpu.vector_store %arg13[%c0_19, %c0_20], %11 {strides = array<i32>} : memref<8x64xf32, #tpu.memory_space<vmem>>, vector<1x32xf32>,
    %13 = arith.index_cast %8 : i32 to index
    %c0_21 = arith.constant 0 : index
    %c0_22 = arith.constant 0 : index
    %14 = vector.load %arg12[%13, %c0_21, %c0_22] : memref<16x1x32xf32, #tpu.memory_space<vmem>>, vector<1x1x32xf32>
    %15 = vector.shape_cast %14 : vector<1x1x32xf32> to vector<1x32xf32>
    %c0_23 = arith.constant 0 : index
    %c32 = arith.constant 32 : index
    %16 = vector.load %arg13[%c0_23, %c32] : memref<8x64xf32, #tpu.memory_space<vmem>>, vector<1x32xf32>
    tpu.vector_store %arg13[%c0_23, %c32], %15 {strides = array<i32>} : memref<8x64xf32, #tpu.memory_space<vmem>>, vector<1x32xf32>,
    %c1 = arith.constant 1 : index
    %17 = memref.load %arg1[%c1] : memref<24xi32, #tpu.memory_space<smem>>
    %c1_24 = arith.constant 1 : index
    %18 = memref.load %arg2[%c1_24] : memref<24xi32, #tpu.memory_space<smem>>
    %19 = arith.index_cast %17 : i32 to index
    %c0_25 = arith.constant 0 : index
    %c0_26 = arith.constant 0 : index
    %20 = vector.load %arg12[%19, %c0_25, %c0_26] : memref<16x1x32xf32, #tpu.memory_space<vmem>>, vector<1x1x32xf32>
    %21 = vector.shape_cast %20 : vector<1x1x32xf32> to vector<1x32xf32>
    %c1_27 = arith.constant 1 : index
    %c0_28 = arith.constant 0 : index
    %22 = vector.load %arg13[%c1_27, %c0_28] : memref<8x64xf32, #tpu.memory_space<vmem>>, vector<1x32xf32>
    tpu.vector_store %arg13[%c1_27, %c0_28], %21 {strides = array<i32>} : memref<8x64xf32, #tpu.memory_space<vmem>>, vector<1x32xf32>,
    %23 = arith.index_cast %18 : i32 to index
    %c0_29 = arith.constant 0 : index
    %c0_30 = arith.constant 0 : index
    %24 = vector.load %arg12[%23, %c0_29, %c0_30] : memref<16x1x32xf32, #tpu.memory_space<vmem>>, vector<1x1x32xf32>
    %25 = vector.shape_cast %24 : vector<1x1x32xf32> to vector<1x32xf32>
    %c1_31 = arith.constant 1 : index
    %c32_32 = arith.constant 32 : index
    %26 = vector.load %arg13[%c1_31, %c32_32] : memref<8x64xf32, #tpu.memory_space<vmem>>, vector<1x32xf32>
    tpu.vector_store %arg13[%c1_31, %c32_32], %25 {strides = array<i32>} : memref<8x64xf32, #tpu.memory_space<vmem>>, vector<1x32xf32>,
    %c2 = arith.constant 2 : index
    %27 = memref.load %arg1[%c2] : memref<24xi32, #tpu.memory_space<smem>>
    %c2_33 = arith.constant 2 : index
    %28 = memref.load %arg2[%c2_33] : memref<24xi32, #tpu.memory_space<smem>>
    %29 = arith.index_cast %27 : i32 to index
    %c0_34 = arith.constant 0 : index
    %c0_35 = arith.constant 0 : index
    %30 = vector.load %arg12[%29, %c0_34, %c0_35] : memref<16x1x32xf32, #tpu.memory_space<vmem>>, vector<1x1x32xf32>
    %31 = vector.shape_cast %30 : vector<1x1x32xf32> to vector<1x32xf32>
    %c2_36 = arith.constant 2 : index
    %c0_37 = arith.constant 0 : index
    %32 = vector.load %arg13[%c2_36, %c0_37] : memref<8x64xf32, #tpu.memory_space<vmem>>, vector<1x32xf32>
    tpu.vector_store %arg13[%c2_36, %c0_37], %31 {strides = array<i32>} : memref<8x64xf32, #tpu.memory_space<vmem>>, vector<1x32xf32>,
    %33 = arith.index_cast %28 : i32 to index
    %c0_38 = arith.constant 0 : index
    %c0_39 = arith.constant 0 : index
    %34 = vector.load %arg12[%33, %c0_38, %c0_39] : memref<16x1x32xf32, #tpu.memory_space<vmem>>, vector<1x1x32xf32>
    %35 = vector.shape_cast %34 : vector<1x1x32xf32> to vector<1x32xf32>
    %c2_40 = arith.constant 2 : index
    %c32_41 = arith.constant 32 : index
    %36 = vector.load %arg13[%c2_40, %c32_41] : memref<8x64xf32, #tpu.memory_space<vmem>>, vector<1x32xf32>
    tpu.vector_store %arg13[%c2_40, %c32_41], %35 {strides = array<i32>} : memref<8x64xf32, #tpu.memory_space<vmem>>, vector<1x32xf32>,
    %c3 = arith.constant 3 : index
    %37 = memref.load %arg1[%c3] : memref<24xi32, #tpu.memory_space<smem>>
    %c3_42 = arith.constant 3 : index
    %38 = memref.load %arg2[%c3_42] : memref<24xi32, #tpu.memory_space<smem>>
    %39 = arith.index_cast %37 : i32 to index
    %c0_43 = arith.constant 0 : index
    %c0_44 = arith.constant 0 : index
    %40 = vector.load %arg12[%39, %c0_43, %c0_44] : memref<16x1x32xf32, #tpu.memory_space<vmem>>, vector<1x1x32xf32>
    %41 = vector.shape_cast %40 : vector<1x1x32xf32> to vector<1x32xf32>
    %c3_45 = arith.constant 3 : index
    %c0_46 = arith.constant 0 : index
    %42 = vector.load %arg13[%c3_45, %c0_46] : memref<8x64xf32, #tpu.memory_space<vmem>>, vector<1x32xf32>
    tpu.vector_store %arg13[%c3_45, %c0_46], %41 {strides = array<i32>} : memref<8x64xf32, #tpu.memory_space<vmem>>, vector<1x32xf32>,
    %43 = arith.index_cast %38 : i32 to index
    %c0_47 = arith.constant 0 : index
    %c0_48 = arith.constant 0 : index
    %44 = vector.load %arg12[%43, %c0_47, %c0_48] : memref<16x1x32xf32, #tpu.memory_space<vmem>>, vector<1x1x32xf32>
    %45 = vector.shape_cast %44 : vector<1x1x32xf32> to vector<1x32xf32>
    %c3_49 = arith.constant 3 : index
    %c32_50 = arith.constant 32 : index
    %46 = vector.load %arg13[%c3_49, %c32_50] : memref<8x64xf32, #tpu.memory_space<vmem>>, vector<1x32xf32>
    tpu.vector_store %arg13[%c3_49, %c32_50], %45 {strides = array<i32>} : memref<8x64xf32, #tpu.memory_space<vmem>>, vector<1x32xf32>,
    %c4 = arith.constant 4 : index
    %47 = memref.load %arg1[%c4] : memref<24xi32, #tpu.memory_space<smem>>
    %c4_51 = arith.constant 4 : index
    %48 = memref.load %arg2[%c4_51] : memref<24xi32, #tpu.memory_space<smem>>
    %49 = arith.index_cast %47 : i32 to index
    %c0_52 = arith.constant 0 : index
    %c0_53 = arith.constant 0 : index
    %50 = vector.load %arg12[%49, %c0_52, %c0_53] : memref<16x1x32xf32, #tpu.memory_space<vmem>>, vector<1x1x32xf32>
    %51 = vector.shape_cast %50 : vector<1x1x32xf32> to vector<1x32xf32>
    %c4_54 = arith.constant 4 : index
    %c0_55 = arith.constant 0 : index
    %52 = vector.load %arg13[%c4_54, %c0_55] : memref<8x64xf32, #tpu.memory_space<vmem>>, vector<1x32xf32>
    tpu.vector_store %arg13[%c4_54, %c0_55], %51 {strides = array<i32>} : memref<8x64xf32, #tpu.memory_space<vmem>>, vector<1x32xf32>,
    %53 = arith.index_cast %48 : i32 to index
    %c0_56 = arith.constant 0 : index
    %c0_57 = arith.constant 0 : index
    %54 = vector.load %arg12[%53, %c0_56, %c0_57] : memref<16x1x32xf32, #tpu.memory_space<vmem>>, vector<1x1x32xf32>
    %55 = vector.shape_cast %54 : vector<1x1x32xf32> to vector<1x32xf32>
    %c4_58 = arith.constant 4 : index
    %c32_59 = arith.constant 32 : index
    %56 = vector.load %arg13[%c4_58, %c32_59] : memref<8x64xf32, #tpu.memory_space<vmem>>, vector<1x32xf32>
    tpu.vector_store %arg13[%c4_58, %c32_59], %55 {strides = array<i32>} : memref<8x64xf32, #tpu.memory_space<vmem>>, vector<1x32xf32>,
    %c5 = arith.constant 5 : index
    %57 = memref.load %arg1[%c5] : memref<24xi32, #tpu.memory_space<smem>>
    %c5_60 = arith.constant 5 : index
    %58 = memref.load %arg2[%c5_60] : memref<24xi32, #tpu.memory_space<smem>>
    %59 = arith.index_cast %57 : i32 to index
    %c0_61 = arith.constant 0 : index
    %c0_62 = arith.constant 0 : index
    %60 = vector.load %arg12[%59, %c0_61, %c0_62] : memref<16x1x32xf32, #tpu.memory_space<vmem>>, vector<1x1x32xf32>
    %61 = vector.shape_cast %60 : vector<1x1x32xf32> to vector<1x32xf32>
    %c5_63 = arith.constant 5 : index
    %c0_64 = arith.constant 0 : index
    %62 = vector.load %arg13[%c5_63, %c0_64] : memref<8x64xf32, #tpu.memory_space<vmem>>, vector<1x32xf32>
    tpu.vector_store %arg13[%c5_63, %c0_64], %61 {strides = array<i32>} : memref<8x64xf32, #tpu.memory_space<vmem>>, vector<1x32xf32>,
    %63 = arith.index_cast %58 : i32 to index
    %c0_65 = arith.constant 0 : index
    %c0_66 = arith.constant 0 : index
    %64 = vector.load %arg12[%63, %c0_65, %c0_66] : memref<16x1x32xf32, #tpu.memory_space<vmem>>, vector<1x1x32xf32>
    %65 = vector.shape_cast %64 : vector<1x1x32xf32> to vector<1x32xf32>
    %c5_67 = arith.constant 5 : index
    %c32_68 = arith.constant 32 : index
    %66 = vector.load %arg13[%c5_67, %c32_68] : memref<8x64xf32, #tpu.memory_space<vmem>>, vector<1x32xf32>
    tpu.vector_store %arg13[%c5_67, %c32_68], %65 {strides = array<i32>} : memref<8x64xf32, #tpu.memory_space<vmem>>, vector<1x32xf32>,
    %c6 = arith.constant 6 : index
    %67 = memref.load %arg1[%c6] : memref<24xi32, #tpu.memory_space<smem>>
    %c6_69 = arith.constant 6 : index
    %68 = memref.load %arg2[%c6_69] : memref<24xi32, #tpu.memory_space<smem>>
    %69 = arith.index_cast %67 : i32 to index
    %c0_70 = arith.constant 0 : index
    %c0_71 = arith.constant 0 : index
    %70 = vector.load %arg12[%69, %c0_70, %c0_71] : memref<16x1x32xf32, #tpu.memory_space<vmem>>, vector<1x1x32xf32>
    %71 = vector.shape_cast %70 : vector<1x1x32xf32> to vector<1x32xf32>
    %c6_72 = arith.constant 6 : index
    %c0_73 = arith.constant 0 : index
    %72 = vector.load %arg13[%c6_72, %c0_73] : memref<8x64xf32, #tpu.memory_space<vmem>>, vector<1x32xf32>
    tpu.vector_store %arg13[%c6_72, %c0_73], %71 {strides = array<i32>} : memref<8x64xf32, #tpu.memory_space<vmem>>, vector<1x32xf32>,
    %73 = arith.index_cast %68 : i32 to index
    %c0_74 = arith.constant 0 : index
    %c0_75 = arith.constant 0 : index
    %74 = vector.load %arg12[%73, %c0_74, %c0_75] : memref<16x1x32xf32, #tpu.memory_space<vmem>>, vector<1x1x32xf32>
    %75 = vector.shape_cast %74 : vector<1x1x32xf32> to vector<1x32xf32>
    %c6_76 = arith.constant 6 : index
    %c32_77 = arith.constant 32 : index
    %76 = vector.load %arg13[%c6_76, %c32_77] : memref<8x64xf32, #tpu.memory_space<vmem>>, vector<1x32xf32>
    tpu.vector_store %arg13[%c6_76, %c32_77], %75 {strides = array<i32>} : memref<8x64xf32, #tpu.memory_space<vmem>>, vector<1x32xf32>,
    %c7 = arith.constant 7 : index
    %77 = memref.load %arg1[%c7] : memref<24xi32, #tpu.memory_space<smem>>
    %c7_78 = arith.constant 7 : index
    %78 = memref.load %arg2[%c7_78] : memref<24xi32, #tpu.memory_space<smem>>
    %79 = arith.index_cast %77 : i32 to index
    %c0_79 = arith.constant 0 : index
    %c0_80 = arith.constant 0 : index
    %80 = vector.load %arg12[%79, %c0_79, %c0_80] : memref<16x1x32xf32, #tpu.memory_space<vmem>>, vector<1x1x32xf32>
    %81 = vector.shape_cast %80 : vector<1x1x32xf32> to vector<1x32xf32>
    %c7_81 = arith.constant 7 : index
    %c0_82 = arith.constant 0 : index
    %82 = vector.load %arg13[%c7_81, %c0_82] : memref<8x64xf32, #tpu.memory_space<vmem>>, vector<1x32xf32>
    tpu.vector_store %arg13[%c7_81, %c0_82], %81 {strides = array<i32>} : memref<8x64xf32, #tpu.memory_space<vmem>>, vector<1x32xf32>,
    %83 = arith.index_cast %78 : i32 to index
    %c0_83 = arith.constant 0 : index
    %c0_84 = arith.constant 0 : index
    %84 = vector.load %arg12[%83, %c0_83, %c0_84] : memref<16x1x32xf32, #tpu.memory_space<vmem>>, vector<1x1x32xf32>
    %85 = vector.shape_cast %84 : vector<1x1x32xf32> to vector<1x32xf32>
    %c7_85 = arith.constant 7 : index
    %c32_86 = arith.constant 32 : index
    %86 = vector.load %arg13[%c7_85, %c32_86] : memref<8x64xf32, #tpu.memory_space<vmem>>, vector<1x32xf32>
    tpu.vector_store %arg13[%c7_85, %c32_86], %85 {strides = array<i32>} : memref<8x64xf32, #tpu.memory_space<vmem>>, vector<1x32xf32>,
    %c0_87 = arith.constant 0 : index
    %c0_88 = arith.constant 0 : index
    %87 = vector.load %arg13[%c0_87, %c0_88] : memref<8x64xf32, #tpu.memory_space<vmem>>, vector<8x64xf32>
    %cst = arith.constant dense<0.000000e+00> : vector<8x2048xf32>
    %88 = tpu.matmul %87, %2, %cst {dimension_numbers = #tpu.dot_dimension_numbers<[1], [0], [0], [1], [0, 0, 1, 1], [], []>} : vector<8x64xf32>, vector<64x2048xf32>, vector<8x2048xf32> -> vector<8x2048xf32>
    %cst_89 = arith.constant dense<0.000000e+00> : vector<8x2048xf32>
    %89 = tpu.matmul %87, %3, %cst_89 {dimension_numbers = #tpu.dot_dimension_numbers<[1], [0], [0], [1], [0, 0, 1, 1], [], []>} : vector<8x64xf32>, vector<64x2048xf32>, vector<8x2048xf32> -> vector<8x2048xf32>
    %90 = arith.mulf %88, %89 : vector<8x2048xf32>
    %cst_90 = arith.constant dense<0.000000e+00> : vector<8x32xf32>
    %91 = tpu.matmul %90, %4, %cst_90 {dimension_numbers = #tpu.dot_dimension_numbers<[1], [0], [0], [1], [0, 0, 1, 1], [], []>} : vector<8x2048xf32>, vector<2048x32xf32>, vector<8x32xf32> -> vector<8x32xf32>
    %cst_91 = arith.constant dense<0.000000e+00> : vector<8x32xf32>
    %92 = tpu.matmul %87, %5, %cst_91 {dimension_numbers = #tpu.dot_dimension_numbers<[1], [0], [0], [1], [0, 0, 1, 1], [], []>} : vector<8x64xf32>, vector<64x32xf32>, vector<8x32xf32> -> vector<8x32xf32>
    %93 = arith.addf %91, %92 : vector<8x32xf32>
    %94 = vector.broadcast %6 : vector<1x32xf32> to vector<8x32xf32>
    %95 = arith.addf %93, %94 : vector<8x32xf32>
    %96 = math.tanh %95 : vector<8x32xf32>
    %c0_92 = arith.constant 0 : index
    %97 = memref.load %arg0[%c0_92] : memref<24xi32, #tpu.memory_space<smem>>
    %98 = vector.extract_strided_slice %96 {offsets = [0, 0], sizes = [1, 32], strides = [1, 1]} : vector<8x32xf32> to vector<1x32xf32>
    %99 = arith.index_cast %97 : i32 to index
    %c0_93 = arith.constant 0 : index
    %c0_94 = arith.constant 0 : index
    %100 = vector.load %arg12[%99, %c0_93, %c0_94] : memref<16x1x32xf32, #tpu.memory_space<vmem>>, vector<1x1x32xf32>
    %101 = vector.shape_cast %100 : vector<1x1x32xf32> to vector<1x32xf32>
    %102 = vector.shape_cast %98 : vector<1x32xf32> to vector<1x1x32xf32>
    tpu.vector_store %arg12[%99, %c0_93, %c0_94], %102 {strides = array<i32>} : memref<16x1x32xf32, #tpu.memory_space<vmem>>, vector<1x1x32xf32>,
    %c1_95 = arith.constant 1 : index
    %103 = memref.load %arg0[%c1_95] : memref<24xi32, #tpu.memory_space<smem>>
    %104 = vector.extract_strided_slice %96 {offsets = [1, 0], sizes = [1, 32], strides = [1, 1]} : vector<8x32xf32> to vector<1x32xf32>
    %105 = arith.index_cast %103 : i32 to index
    %c0_96 = arith.constant 0 : index
    %c0_97 = arith.constant 0 : index
    %106 = vector.load %arg12[%105, %c0_96, %c0_97] : memref<16x1x32xf32, #tpu.memory_space<vmem>>, vector<1x1x32xf32>
    %107 = vector.shape_cast %106 : vector<1x1x32xf32> to vector<1x32xf32>
    %108 = vector.shape_cast %104 : vector<1x32xf32> to vector<1x1x32xf32>
    tpu.vector_store %arg12[%105, %c0_96, %c0_97], %108 {strides = array<i32>} : memref<16x1x32xf32, #tpu.memory_space<vmem>>, vector<1x1x32xf32>,
    %c2_98 = arith.constant 2 : index
    %109 = memref.load %arg0[%c2_98] : memref<24xi32, #tpu.memory_space<smem>>
    %110 = vector.extract_strided_slice %96 {offsets = [2, 0], sizes = [1, 32], strides = [1, 1]} : vector<8x32xf32> to vector<1x32xf32>
    %111 = arith.index_cast %109 : i32 to index
    %c0_99 = arith.constant 0 : index
    %c0_100 = arith.constant 0 : index
    %112 = vector.load %arg12[%111, %c0_99, %c0_100] : memref<16x1x32xf32, #tpu.memory_space<vmem>>, vector<1x1x32xf32>
    %113 = vector.shape_cast %112 : vector<1x1x32xf32> to vector<1x32xf32>
    %114 = vector.shape_cast %110 : vector<1x32xf32> to vector<1x1x32xf32>
    tpu.vector_store %arg12[%111, %c0_99, %c0_100], %114 {strides = array<i32>} : memref<16x1x32xf32, #tpu.memory_space<vmem>>, vector<1x1x32xf32>,
    %c3_101 = arith.constant 3 : index
    %115 = memref.load %arg0[%c3_101] : memref<24xi32, #tpu.memory_space<smem>>
    %116 = vector.extract_strided_slice %96 {offsets = [3, 0], sizes = [1, 32], strides = [1, 1]} : vector<8x32xf32> to vector<1x32xf32>
    %117 = arith.index_cast %115 : i32 to index
    %c0_102 = arith.constant 0 : index
    %c0_103 = arith.constant 0 : index
    %118 = vector.load %arg12[%117, %c0_102, %c0_103] : memref<16x1x32xf32, #tpu.memory_space<vmem>>, vector<1x1x32xf32>
    %119 = vector.shape_cast %118 : vector<1x1x32xf32> to vector<1x32xf32>
    %120 = vector.shape_cast %116 : vector<1x32xf32> to vector<1x1x32xf32>
    tpu.vector_store %arg12[%117, %c0_102, %c0_103], %120 {strides = array<i32>} : memref<16x1x32xf32, #tpu.memory_space<vmem>>, vector<1x1x32xf32>,
    %c4_104 = arith.constant 4 : index
    %121 = memref.load %arg0[%c4_104] : memref<24xi32, #tpu.memory_space<smem>>
    %122 = vector.extract_strided_slice %96 {offsets = [4, 0], sizes = [1, 32], strides = [1, 1]} : vector<8x32xf32> to vector<1x32xf32>
    %123 = arith.index_cast %121 : i32 to index
    %c0_105 = arith.constant 0 : index
    %c0_106 = arith.constant 0 : index
    %124 = vector.load %arg12[%123, %c0_105, %c0_106] : memref<16x1x32xf32, #tpu.memory_space<vmem>>, vector<1x1x32xf32>
    %125 = vector.shape_cast %124 : vector<1x1x32xf32> to vector<1x32xf32>
    %126 = vector.shape_cast %122 : vector<1x32xf32> to vector<1x1x32xf32>
    tpu.vector_store %arg12[%123, %c0_105, %c0_106], %126 {strides = array<i32>} : memref<16x1x32xf32, #tpu.memory_space<vmem>>, vector<1x1x32xf32>,
    %c5_107 = arith.constant 5 : index
    %127 = memref.load %arg0[%c5_107] : memref<24xi32, #tpu.memory_space<smem>>
    %128 = vector.extract_strided_slice %96 {offsets = [5, 0], sizes = [1, 32], strides = [1, 1]} : vector<8x32xf32> to vector<1x32xf32>
    %129 = arith.index_cast %127 : i32 to index
    %c0_108 = arith.constant 0 : index
    %c0_109 = arith.constant 0 : index
    %130 = vector.load %arg12[%129, %c0_108, %c0_109] : memref<16x1x32xf32, #tpu.memory_space<vmem>>, vector<1x1x32xf32>
    %131 = vector.shape_cast %130 : vector<1x1x32xf32> to vector<1x32xf32>
    %132 = vector.shape_cast %128 : vector<1x32xf32> to vector<1x1x32xf32>
    tpu.vector_store %arg12[%129, %c0_108, %c0_109], %132 {strides = array<i32>} : memref<16x1x32xf32, #tpu.memory_space<vmem>>, vector<1x1x32xf32>,
    %c6_110 = arith.constant 6 : index
    %133 = memref.load %arg0[%c6_110] : memref<24xi32, #tpu.memory_space<smem>>
    %134 = vector.extract_strided_slice %96 {offsets = [6, 0], sizes = [1, 32], strides = [1, 1]} : vector<8x32xf32> to vector<1x32xf32>
    %135 = arith.index_cast %133 : i32 to index
    %c0_111 = arith.constant 0 : index
    %c0_112 = arith.constant 0 : index
    %136 = vector.load %arg12[%135, %c0_111, %c0_112] : memref<16x1x32xf32, #tpu.memory_space<vmem>>, vector<1x1x32xf32>
    %137 = vector.shape_cast %136 : vector<1x1x32xf32> to vector<1x32xf32>
    %138 = vector.shape_cast %134 : vector<1x32xf32> to vector<1x1x32xf32>
    tpu.vector_store %arg12[%135, %c0_111, %c0_112], %138 {strides = array<i32>} : memref<16x1x32xf32, #tpu.memory_space<vmem>>, vector<1x1x32xf32>,
    %c7_113 = arith.constant 7 : index
    %139 = memref.load %arg0[%c7_113] : memref<24xi32, #tpu.memory_space<smem>>
    %140 = vector.extract_strided_slice %96 {offsets = [7, 0], sizes = [1, 32], strides = [1, 1]} : vector<8x32xf32> to vector<1x32xf32>
    %141 = arith.index_cast %139 : i32 to index
    %c0_114 = arith.constant 0 : index
    %c0_115 = arith.constant 0 : index
    %142 = vector.load %arg12[%141, %c0_114, %c0_115] : memref<16x1x32xf32, #tpu.memory_space<vmem>>, vector<1x1x32xf32>
    %143 = vector.shape_cast %142 : vector<1x1x32xf32> to vector<1x32xf32>
    %144 = vector.shape_cast %140 : vector<1x32xf32> to vector<1x1x32xf32>
    tpu.vector_store %arg12[%141, %c0_114, %c0_115], %144 {strides = array<i32>} : memref<16x1x32xf32, #tpu.memory_space<vmem>>, vector<1x1x32xf32>,
    %c8 = arith.constant 8 : index
    %145 = memref.load %arg1[%c8] : memref<24xi32, #tpu.memory_space<smem>>
    %c8_116 = arith.constant 8 : index
    %146 = memref.load %arg2[%c8_116] : memref<24xi32, #tpu.memory_space<smem>>
    %147 = arith.index_cast %145 : i32 to index
    %c0_117 = arith.constant 0 : index
    %c0_118 = arith.constant 0 : index
    %148 = vector.load %arg12[%147, %c0_117, %c0_118] : memref<16x1x32xf32, #tpu.memory_space<vmem>>, vector<1x1x32xf32>
    %149 = vector.shape_cast %148 : vector<1x1x32xf32> to vector<1x32xf32>
    %c0_119 = arith.constant 0 : index
    %c0_120 = arith.constant 0 : index
    %150 = vector.load %arg13[%c0_119, %c0_120] : memref<8x64xf32, #tpu.memory_space<vmem>>, vector<1x32xf32>
    tpu.vector_store %arg13[%c0_119, %c0_120], %149 {strides = array<i32>} : memref<8x64xf32, #tpu.memory_space<vmem>>, vector<1x32xf32>,
    %151 = arith.index_cast %146 : i32 to index
    %c0_121 = arith.constant 0 : index
    %c0_122 = arith.constant 0 : index
    %152 = vector.load %arg12[%151, %c0_121, %c0_122] : memref<16x1x32xf32, #tpu.memory_space<vmem>>, vector<1x1x32xf32>
    %153 = vector.shape_cast %152 : vector<1x1x32xf32> to vector<1x32xf32>
    %c0_123 = arith.constant 0 : index
    %c32_124 = arith.constant 32 : index
    %154 = vector.load %arg13[%c0_123, %c32_124] : memref<8x64xf32, #tpu.memory_space<vmem>>, vector<1x32xf32>
    tpu.vector_store %arg13[%c0_123, %c32_124], %153 {strides = array<i32>} : memref<8x64xf32, #tpu.memory_space<vmem>>, vector<1x32xf32>,
    %c9 = arith.constant 9 : index
    %155 = memref.load %arg1[%c9] : memref<24xi32, #tpu.memory_space<smem>>
    %c9_125 = arith.constant 9 : index
    %156 = memref.load %arg2[%c9_125] : memref<24xi32, #tpu.memory_space<smem>>
    %157 = arith.index_cast %155 : i32 to index
    %c0_126 = arith.constant 0 : index
    %c0_127 = arith.constant 0 : index
    %158 = vector.load %arg12[%157, %c0_126, %c0_127] : memref<16x1x32xf32, #tpu.memory_space<vmem>>, vector<1x1x32xf32>
    %159 = vector.shape_cast %158 : vector<1x1x32xf32> to vector<1x32xf32>
    %c1_128 = arith.constant 1 : index
    %c0_129 = arith.constant 0 : index
    %160 = vector.load %arg13[%c1_128, %c0_129] : memref<8x64xf32, #tpu.memory_space<vmem>>, vector<1x32xf32>
    tpu.vector_store %arg13[%c1_128, %c0_129], %159 {strides = array<i32>} : memref<8x64xf32, #tpu.memory_space<vmem>>, vector<1x32xf32>,
    %161 = arith.index_cast %156 : i32 to index
    %c0_130 = arith.constant 0 : index
    %c0_131 = arith.constant 0 : index
    %162 = vector.load %arg12[%161, %c0_130, %c0_131] : memref<16x1x32xf32, #tpu.memory_space<vmem>>, vector<1x1x32xf32>
    %163 = vector.shape_cast %162 : vector<1x1x32xf32> to vector<1x32xf32>
    %c1_132 = arith.constant 1 : index
    %c32_133 = arith.constant 32 : index
    %164 = vector.load %arg13[%c1_132, %c32_133] : memref<8x64xf32, #tpu.memory_space<vmem>>, vector<1x32xf32>
    tpu.vector_store %arg13[%c1_132, %c32_133], %163 {strides = array<i32>} : memref<8x64xf32, #tpu.memory_space<vmem>>, vector<1x32xf32>,
    %c10 = arith.constant 10 : index
    %165 = memref.load %arg1[%c10] : memref<24xi32, #tpu.memory_space<smem>>
    %c10_134 = arith.constant 10 : index
    %166 = memref.load %arg2[%c10_134] : memref<24xi32, #tpu.memory_space<smem>>
    %167 = arith.index_cast %165 : i32 to index
    %c0_135 = arith.constant 0 : index
    %c0_136 = arith.constant 0 : index
    %168 = vector.load %arg12[%167, %c0_135, %c0_136] : memref<16x1x32xf32, #tpu.memory_space<vmem>>, vector<1x1x32xf32>
    %169 = vector.shape_cast %168 : vector<1x1x32xf32> to vector<1x32xf32>
    %c2_137 = arith.constant 2 : index
    %c0_138 = arith.constant 0 : index
    %170 = vector.load %arg13[%c2_137, %c0_138] : memref<8x64xf32, #tpu.memory_space<vmem>>, vector<1x32xf32>
    tpu.vector_store %arg13[%c2_137, %c0_138], %169 {strides = array<i32>} : memref<8x64xf32, #tpu.memory_space<vmem>>, vector<1x32xf32>,
    %171 = arith.index_cast %166 : i32 to index
    %c0_139 = arith.constant 0 : index
    %c0_140 = arith.constant 0 : index
    %172 = vector.load %arg12[%171, %c0_139, %c0_140] : memref<16x1x32xf32, #tpu.memory_space<vmem>>, vector<1x1x32xf32>
    %173 = vector.shape_cast %172 : vector<1x1x32xf32> to vector<1x32xf32>
    %c2_141 = arith.constant 2 : index
    %c32_142 = arith.constant 32 : index
    %174 = vector.load %arg13[%c2_141, %c32_142] : memref<8x64xf32, #tpu.memory_space<vmem>>, vector<1x32xf32>
    tpu.vector_store %arg13[%c2_141, %c32_142], %173 {strides = array<i32>} : memref<8x64xf32, #tpu.memory_space<vmem>>, vector<1x32xf32>,
    %c11 = arith.constant 11 : index
    %175 = memref.load %arg1[%c11] : memref<24xi32, #tpu.memory_space<smem>>
    %c11_143 = arith.constant 11 : index
    %176 = memref.load %arg2[%c11_143] : memref<24xi32, #tpu.memory_space<smem>>
    %177 = arith.index_cast %175 : i32 to index
    %c0_144 = arith.constant 0 : index
    %c0_145 = arith.constant 0 : index
    %178 = vector.load %arg12[%177, %c0_144, %c0_145] : memref<16x1x32xf32, #tpu.memory_space<vmem>>, vector<1x1x32xf32>
    %179 = vector.shape_cast %178 : vector<1x1x32xf32> to vector<1x32xf32>
    %c3_146 = arith.constant 3 : index
    %c0_147 = arith.constant 0 : index
    %180 = vector.load %arg13[%c3_146, %c0_147] : memref<8x64xf32, #tpu.memory_space<vmem>>, vector<1x32xf32>
    tpu.vector_store %arg13[%c3_146, %c0_147], %179 {strides = array<i32>} : memref<8x64xf32, #tpu.memory_space<vmem>>, vector<1x32xf32>,
    %181 = arith.index_cast %176 : i32 to index
    %c0_148 = arith.constant 0 : index
    %c0_149 = arith.constant 0 : index
    %182 = vector.load %arg12[%181, %c0_148, %c0_149] : memref<16x1x32xf32, #tpu.memory_space<vmem>>, vector<1x1x32xf32>
    %183 = vector.shape_cast %182 : vector<1x1x32xf32> to vector<1x32xf32>
    %c3_150 = arith.constant 3 : index
    %c32_151 = arith.constant 32 : index
    %184 = vector.load %arg13[%c3_150, %c32_151] : memref<8x64xf32, #tpu.memory_space<vmem>>, vector<1x32xf32>
    tpu.vector_store %arg13[%c3_150, %c32_151], %183 {strides = array<i32>} : memref<8x64xf32, #tpu.memory_space<vmem>>, vector<1x32xf32>,
    %c12 = arith.constant 12 : index
    %185 = memref.load %arg1[%c12] : memref<24xi32, #tpu.memory_space<smem>>
    %c12_152 = arith.constant 12 : index
    %186 = memref.load %arg2[%c12_152] : memref<24xi32, #tpu.memory_space<smem>>
    %187 = arith.index_cast %185 : i32 to index
    %c0_153 = arith.constant 0 : index
    %c0_154 = arith.constant 0 : index
    %188 = vector.load %arg12[%187, %c0_153, %c0_154] : memref<16x1x32xf32, #tpu.memory_space<vmem>>, vector<1x1x32xf32>
    %189 = vector.shape_cast %188 : vector<1x1x32xf32> to vector<1x32xf32>
    %c4_155 = arith.constant 4 : index
    %c0_156 = arith.constant 0 : index
    %190 = vector.load %arg13[%c4_155, %c0_156] : memref<8x64xf32, #tpu.memory_space<vmem>>, vector<1x32xf32>
    tpu.vector_store %arg13[%c4_155, %c0_156], %189 {strides = array<i32>} : memref<8x64xf32, #tpu.memory_space<vmem>>, vector<1x32xf32>,
    %191 = arith.index_cast %186 : i32 to index
    %c0_157 = arith.constant 0 : index
    %c0_158 = arith.constant 0 : index
    %192 = vector.load %arg12[%191, %c0_157, %c0_158] : memref<16x1x32xf32, #tpu.memory_space<vmem>>, vector<1x1x32xf32>
    %193 = vector.shape_cast %192 : vector<1x1x32xf32> to vector<1x32xf32>
    %c4_159 = arith.constant 4 : index
    %c32_160 = arith.constant 32 : index
    %194 = vector.load %arg13[%c4_159, %c32_160] : memref<8x64xf32, #tpu.memory_space<vmem>>, vector<1x32xf32>
    tpu.vector_store %arg13[%c4_159, %c32_160], %193 {strides = array<i32>} : memref<8x64xf32, #tpu.memory_space<vmem>>, vector<1x32xf32>,
    %c13 = arith.constant 13 : index
    %195 = memref.load %arg1[%c13] : memref<24xi32, #tpu.memory_space<smem>>
    %c13_161 = arith.constant 13 : index
    %196 = memref.load %arg2[%c13_161] : memref<24xi32, #tpu.memory_space<smem>>
    %197 = arith.index_cast %195 : i32 to index
    %c0_162 = arith.constant 0 : index
    %c0_163 = arith.constant 0 : index
    %198 = vector.load %arg12[%197, %c0_162, %c0_163] : memref<16x1x32xf32, #tpu.memory_space<vmem>>, vector<1x1x32xf32>
    %199 = vector.shape_cast %198 : vector<1x1x32xf32> to vector<1x32xf32>
    %c5_164 = arith.constant 5 : index
    %c0_165 = arith.constant 0 : index
    %200 = vector.load %arg13[%c5_164, %c0_165] : memref<8x64xf32, #tpu.memory_space<vmem>>, vector<1x32xf32>
    tpu.vector_store %arg13[%c5_164, %c0_165], %199 {strides = array<i32>} : memref<8x64xf32, #tpu.memory_space<vmem>>, vector<1x32xf32>,
    %201 = arith.index_cast %196 : i32 to index
    %c0_166 = arith.constant 0 : index
    %c0_167 = arith.constant 0 : index
    %202 = vector.load %arg12[%201, %c0_166, %c0_167] : memref<16x1x32xf32, #tpu.memory_space<vmem>>, vector<1x1x32xf32>
    %203 = vector.shape_cast %202 : vector<1x1x32xf32> to vector<1x32xf32>
    %c5_168 = arith.constant 5 : index
    %c32_169 = arith.constant 32 : index
    %204 = vector.load %arg13[%c5_168, %c32_169] : memref<8x64xf32, #tpu.memory_space<vmem>>, vector<1x32xf32>
    tpu.vector_store %arg13[%c5_168, %c32_169], %203 {strides = array<i32>} : memref<8x64xf32, #tpu.memory_space<vmem>>, vector<1x32xf32>,
    %c14 = arith.constant 14 : index
    %205 = memref.load %arg1[%c14] : memref<24xi32, #tpu.memory_space<smem>>
    %c14_170 = arith.constant 14 : index
    %206 = memref.load %arg2[%c14_170] : memref<24xi32, #tpu.memory_space<smem>>
    %207 = arith.index_cast %205 : i32 to index
    %c0_171 = arith.constant 0 : index
    %c0_172 = arith.constant 0 : index
    %208 = vector.load %arg12[%207, %c0_171, %c0_172] : memref<16x1x32xf32, #tpu.memory_space<vmem>>, vector<1x1x32xf32>
    %209 = vector.shape_cast %208 : vector<1x1x32xf32> to vector<1x32xf32>
    %c6_173 = arith.constant 6 : index
    %c0_174 = arith.constant 0 : index
    %210 = vector.load %arg13[%c6_173, %c0_174] : memref<8x64xf32, #tpu.memory_space<vmem>>, vector<1x32xf32>
    tpu.vector_store %arg13[%c6_173, %c0_174], %209 {strides = array<i32>} : memref<8x64xf32, #tpu.memory_space<vmem>>, vector<1x32xf32>,
    %211 = arith.index_cast %206 : i32 to index
    %c0_175 = arith.constant 0 : index
    %c0_176 = arith.constant 0 : index
    %212 = vector.load %arg12[%211, %c0_175, %c0_176] : memref<16x1x32xf32, #tpu.memory_space<vmem>>, vector<1x1x32xf32>
    %213 = vector.shape_cast %212 : vector<1x1x32xf32> to vector<1x32xf32>
    %c6_177 = arith.constant 6 : index
    %c32_178 = arith.constant 32 : index
    %214 = vector.load %arg13[%c6_177, %c32_178] : memref<8x64xf32, #tpu.memory_space<vmem>>, vector<1x32xf32>
    tpu.vector_store %arg13[%c6_177, %c32_178], %213 {strides = array<i32>} : memref<8x64xf32, #tpu.memory_space<vmem>>, vector<1x32xf32>,
    %c15 = arith.constant 15 : index
    %215 = memref.load %arg1[%c15] : memref<24xi32, #tpu.memory_space<smem>>
    %c15_179 = arith.constant 15 : index
    %216 = memref.load %arg2[%c15_179] : memref<24xi32, #tpu.memory_space<smem>>
    %217 = arith.index_cast %215 : i32 to index
    %c0_180 = arith.constant 0 : index
    %c0_181 = arith.constant 0 : index
    %218 = vector.load %arg12[%217, %c0_180, %c0_181] : memref<16x1x32xf32, #tpu.memory_space<vmem>>, vector<1x1x32xf32>
    %219 = vector.shape_cast %218 : vector<1x1x32xf32> to vector<1x32xf32>
    %c7_182 = arith.constant 7 : index
    %c0_183 = arith.constant 0 : index
    %220 = vector.load %arg13[%c7_182, %c0_183] : memref<8x64xf32, #tpu.memory_space<vmem>>, vector<1x32xf32>
    tpu.vector_store %arg13[%c7_182, %c0_183], %219 {strides = array<i32>} : memref<8x64xf32, #tpu.memory_space<vmem>>, vector<1x32xf32>,
    %221 = arith.index_cast %216 : i32 to index
    %c0_184 = arith.constant 0 : index
    %c0_185 = arith.constant 0 : index
    %222 = vector.load %arg12[%221, %c0_184, %c0_185] : memref<16x1x32xf32, #tpu.memory_space<vmem>>, vector<1x1x32xf32>
    %223 = vector.shape_cast %222 : vector<1x1x32xf32> to vector<1x32xf32>
    %c7_186 = arith.constant 7 : index
    %c32_187 = arith.constant 32 : index
    %224 = vector.load %arg13[%c7_186, %c32_187] : memref<8x64xf32, #tpu.memory_space<vmem>>, vector<1x32xf32>
    tpu.vector_store %arg13[%c7_186, %c32_187], %223 {strides = array<i32>} : memref<8x64xf32, #tpu.memory_space<vmem>>, vector<1x32xf32>,
    %c0_188 = arith.constant 0 : index
    %c0_189 = arith.constant 0 : index
    %225 = vector.load %arg13[%c0_188, %c0_189] : memref<8x64xf32, #tpu.memory_space<vmem>>, vector<8x64xf32>
    %cst_190 = arith.constant dense<0.000000e+00> : vector<8x2048xf32>
    %226 = tpu.matmul %225, %2, %cst_190 {dimension_numbers = #tpu.dot_dimension_numbers<[1], [0], [0], [1], [0, 0, 1, 1], [], []>} : vector<8x64xf32>, vector<64x2048xf32>, vector<8x2048xf32> -> vector<8x2048xf32>
    %cst_191 = arith.constant dense<0.000000e+00> : vector<8x2048xf32>
    %227 = tpu.matmul %225, %3, %cst_191 {dimension_numbers = #tpu.dot_dimension_numbers<[1], [0], [0], [1], [0, 0, 1, 1], [], []>} : vector<8x64xf32>, vector<64x2048xf32>, vector<8x2048xf32> -> vector<8x2048xf32>
    %228 = arith.mulf %226, %227 : vector<8x2048xf32>
    %cst_192 = arith.constant dense<0.000000e+00> : vector<8x32xf32>
    %229 = tpu.matmul %228, %4, %cst_192 {dimension_numbers = #tpu.dot_dimension_numbers<[1], [0], [0], [1], [0, 0, 1, 1], [], []>} : vector<8x2048xf32>, vector<2048x32xf32>, vector<8x32xf32> -> vector<8x32xf32>
    %cst_193 = arith.constant dense<0.000000e+00> : vector<8x32xf32>
    %230 = tpu.matmul %225, %5, %cst_193 {dimension_numbers = #tpu.dot_dimension_numbers<[1], [0], [0], [1], [0, 0, 1, 1], [], []>} : vector<8x64xf32>, vector<64x32xf32>, vector<8x32xf32> -> vector<8x32xf32>
    %231 = arith.addf %229, %230 : vector<8x32xf32>
    %232 = vector.broadcast %6 : vector<1x32xf32> to vector<8x32xf32>
    %233 = arith.addf %231, %232 : vector<8x32xf32>
    %234 = math.tanh %233 : vector<8x32xf32>
    %c8_194 = arith.constant 8 : index
    %235 = memref.load %arg0[%c8_194] : memref<24xi32, #tpu.memory_space<smem>>
    %236 = vector.extract_strided_slice %234 {offsets = [0, 0], sizes = [1, 32], strides = [1, 1]} : vector<8x32xf32> to vector<1x32xf32>
    %237 = arith.index_cast %235 : i32 to index
    %c0_195 = arith.constant 0 : index
    %c0_196 = arith.constant 0 : index
    %238 = vector.load %arg12[%237, %c0_195, %c0_196] : memref<16x1x32xf32, #tpu.memory_space<vmem>>, vector<1x1x32xf32>
    %239 = vector.shape_cast %238 : vector<1x1x32xf32> to vector<1x32xf32>
    %240 = vector.shape_cast %236 : vector<1x32xf32> to vector<1x1x32xf32>
    tpu.vector_store %arg12[%237, %c0_195, %c0_196], %240 {strides = array<i32>} : memref<16x1x32xf32, #tpu.memory_space<vmem>>, vector<1x1x32xf32>,
    %c9_197 = arith.constant 9 : index
    %241 = memref.load %arg0[%c9_197] : memref<24xi32, #tpu.memory_space<smem>>
    %242 = vector.extract_strided_slice %234 {offsets = [1, 0], sizes = [1, 32], strides = [1, 1]} : vector<8x32xf32> to vector<1x32xf32>
    %243 = arith.index_cast %241 : i32 to index
    %c0_198 = arith.constant 0 : index
    %c0_199 = arith.constant 0 : index
    %244 = vector.load %arg12[%243, %c0_198, %c0_199] : memref<16x1x32xf32, #tpu.memory_space<vmem>>, vector<1x1x32xf32>
    %245 = vector.shape_cast %244 : vector<1x1x32xf32> to vector<1x32xf32>
    %246 = vector.shape_cast %242 : vector<1x32xf32> to vector<1x1x32xf32>
    tpu.vector_store %arg12[%243, %c0_198, %c0_199], %246 {strides = array<i32>} : memref<16x1x32xf32, #tpu.memory_space<vmem>>, vector<1x1x32xf32>,
    %c10_200 = arith.constant 10 : index
    %247 = memref.load %arg0[%c10_200] : memref<24xi32, #tpu.memory_space<smem>>
    %248 = vector.extract_strided_slice %234 {offsets = [2, 0], sizes = [1, 32], strides = [1, 1]} : vector<8x32xf32> to vector<1x32xf32>
    %249 = arith.index_cast %247 : i32 to index
    %c0_201 = arith.constant 0 : index
    %c0_202 = arith.constant 0 : index
    %250 = vector.load %arg12[%249, %c0_201, %c0_202] : memref<16x1x32xf32, #tpu.memory_space<vmem>>, vector<1x1x32xf32>
    %251 = vector.shape_cast %250 : vector<1x1x32xf32> to vector<1x32xf32>
    %252 = vector.shape_cast %248 : vector<1x32xf32> to vector<1x1x32xf32>
    tpu.vector_store %arg12[%249, %c0_201, %c0_202], %252 {strides = array<i32>} : memref<16x1x32xf32, #tpu.memory_space<vmem>>, vector<1x1x32xf32>,
    %c11_203 = arith.constant 11 : index
    %253 = memref.load %arg0[%c11_203] : memref<24xi32, #tpu.memory_space<smem>>
    %254 = vector.extract_strided_slice %234 {offsets = [3, 0], sizes = [1, 32], strides = [1, 1]} : vector<8x32xf32> to vector<1x32xf32>
    %255 = arith.index_cast %253 : i32 to index
    %c0_204 = arith.constant 0 : index
    %c0_205 = arith.constant 0 : index
    %256 = vector.load %arg12[%255, %c0_204, %c0_205] : memref<16x1x32xf32, #tpu.memory_space<vmem>>, vector<1x1x32xf32>
    %257 = vector.shape_cast %256 : vector<1x1x32xf32> to vector<1x32xf32>
    %258 = vector.shape_cast %254 : vector<1x32xf32> to vector<1x1x32xf32>
    tpu.vector_store %arg12[%255, %c0_204, %c0_205], %258 {strides = array<i32>} : memref<16x1x32xf32, #tpu.memory_space<vmem>>, vector<1x1x32xf32>,
    %c12_206 = arith.constant 12 : index
    %259 = memref.load %arg0[%c12_206] : memref<24xi32, #tpu.memory_space<smem>>
    %260 = vector.extract_strided_slice %234 {offsets = [4, 0], sizes = [1, 32], strides = [1, 1]} : vector<8x32xf32> to vector<1x32xf32>
    %261 = arith.index_cast %259 : i32 to index
    %c0_207 = arith.constant 0 : index
    %c0_208 = arith.constant 0 : index
    %262 = vector.load %arg12[%261, %c0_207, %c0_208] : memref<16x1x32xf32, #tpu.memory_space<vmem>>, vector<1x1x32xf32>
    %263 = vector.shape_cast %262 : vector<1x1x32xf32> to vector<1x32xf32>
    %264 = vector.shape_cast %260 : vector<1x32xf32> to vector<1x1x32xf32>
    tpu.vector_store %arg12[%261, %c0_207, %c0_208], %264 {strides = array<i32>} : memref<16x1x32xf32, #tpu.memory_space<vmem>>, vector<1x1x32xf32>,
    %c13_209 = arith.constant 13 : index
    %265 = memref.load %arg0[%c13_209] : memref<24xi32, #tpu.memory_space<smem>>
    %266 = vector.extract_strided_slice %234 {offsets = [5, 0], sizes = [1, 32], strides = [1, 1]} : vector<8x32xf32> to vector<1x32xf32>
    %267 = arith.index_cast %265 : i32 to index
    %c0_210 = arith.constant 0 : index
    %c0_211 = arith.constant 0 : index
    %268 = vector.load %arg12[%267, %c0_210, %c0_211] : memref<16x1x32xf32, #tpu.memory_space<vmem>>, vector<1x1x32xf32>
    %269 = vector.shape_cast %268 : vector<1x1x32xf32> to vector<1x32xf32>
    %270 = vector.shape_cast %266 : vector<1x32xf32> to vector<1x1x32xf32>
    tpu.vector_store %arg12[%267, %c0_210, %c0_211], %270 {strides = array<i32>} : memref<16x1x32xf32, #tpu.memory_space<vmem>>, vector<1x1x32xf32>,
    %c14_212 = arith.constant 14 : index
    %271 = memref.load %arg0[%c14_212] : memref<24xi32, #tpu.memory_space<smem>>
    %272 = vector.extract_strided_slice %234 {offsets = [6, 0], sizes = [1, 32], strides = [1, 1]} : vector<8x32xf32> to vector<1x32xf32>
    %273 = arith.index_cast %271 : i32 to index
    %c0_213 = arith.constant 0 : index
    %c0_214 = arith.constant 0 : index
    %274 = vector.load %arg12[%273, %c0_213, %c0_214] : memref<16x1x32xf32, #tpu.memory_space<vmem>>, vector<1x1x32xf32>
    %275 = vector.shape_cast %274 : vector<1x1x32xf32> to vector<1x32xf32>
    %276 = vector.shape_cast %272 : vector<1x32xf32> to vector<1x1x32xf32>
    tpu.vector_store %arg12[%273, %c0_213, %c0_214], %276 {strides = array<i32>} : memref<16x1x32xf32, #tpu.memory_space<vmem>>, vector<1x1x32xf32>,
    %c15_215 = arith.constant 15 : index
    %277 = memref.load %arg0[%c15_215] : memref<24xi32, #tpu.memory_space<smem>>
    %278 = vector.extract_strided_slice %234 {offsets = [7, 0], sizes = [1, 32], strides = [1, 1]} : vector<8x32xf32> to vector<1x32xf32>
    %279 = arith.index_cast %277 : i32 to index
    %c0_216 = arith.constant 0 : index
    %c0_217 = arith.constant 0 : index
    %280 = vector.load %arg12[%279, %c0_216, %c0_217] : memref<16x1x32xf32, #tpu.memory_space<vmem>>, vector<1x1x32xf32>
    %281 = vector.shape_cast %280 : vector<1x1x32xf32> to vector<1x32xf32>
    %282 = vector.shape_cast %278 : vector<1x32xf32> to vector<1x1x32xf32>
    tpu.vector_store %arg12[%279, %c0_216, %c0_217], %282 {strides = array<i32>} : memref<16x1x32xf32, #tpu.memory_space<vmem>>, vector<1x1x32xf32>,
    %c16 = arith.constant 16 : index
    %283 = memref.load %arg1[%c16] : memref<24xi32, #tpu.memory_space<smem>>
    %c16_218 = arith.constant 16 : index
    %284 = memref.load %arg2[%c16_218] : memref<24xi32, #tpu.memory_space<smem>>
    %285 = arith.index_cast %283 : i32 to index
    %c0_219 = arith.constant 0 : index
    %c0_220 = arith.constant 0 : index
    %286 = vector.load %arg12[%285, %c0_219, %c0_220] : memref<16x1x32xf32, #tpu.memory_space<vmem>>, vector<1x1x32xf32>
    %287 = vector.shape_cast %286 : vector<1x1x32xf32> to vector<1x32xf32>
    %c0_221 = arith.constant 0 : index
    %c0_222 = arith.constant 0 : index
    %288 = vector.load %arg13[%c0_221, %c0_222] : memref<8x64xf32, #tpu.memory_space<vmem>>, vector<1x32xf32>
    tpu.vector_store %arg13[%c0_221, %c0_222], %287 {strides = array<i32>} : memref<8x64xf32, #tpu.memory_space<vmem>>, vector<1x32xf32>,
    %289 = arith.index_cast %284 : i32 to index
    %c0_223 = arith.constant 0 : index
    %c0_224 = arith.constant 0 : index
    %290 = vector.load %arg12[%289, %c0_223, %c0_224] : memref<16x1x32xf32, #tpu.memory_space<vmem>>, vector<1x1x32xf32>
    %291 = vector.shape_cast %290 : vector<1x1x32xf32> to vector<1x32xf32>
    %c0_225 = arith.constant 0 : index
    %c32_226 = arith.constant 32 : index
    %292 = vector.load %arg13[%c0_225, %c32_226] : memref<8x64xf32, #tpu.memory_space<vmem>>, vector<1x32xf32>
    tpu.vector_store %arg13[%c0_225, %c32_226], %291 {strides = array<i32>} : memref<8x64xf32, #tpu.memory_space<vmem>>, vector<1x32xf32>,
    %c17 = arith.constant 17 : index
    %293 = memref.load %arg1[%c17] : memref<24xi32, #tpu.memory_space<smem>>
    %c17_227 = arith.constant 17 : index
    %294 = memref.load %arg2[%c17_227] : memref<24xi32, #tpu.memory_space<smem>>
    %295 = arith.index_cast %293 : i32 to index
    %c0_228 = arith.constant 0 : index
    %c0_229 = arith.constant 0 : index
    %296 = vector.load %arg12[%295, %c0_228, %c0_229] : memref<16x1x32xf32, #tpu.memory_space<vmem>>, vector<1x1x32xf32>
    %297 = vector.shape_cast %296 : vector<1x1x32xf32> to vector<1x32xf32>
    %c1_230 = arith.constant 1 : index
    %c0_231 = arith.constant 0 : index
    %298 = vector.load %arg13[%c1_230, %c0_231] : memref<8x64xf32, #tpu.memory_space<vmem>>, vector<1x32xf32>
    tpu.vector_store %arg13[%c1_230, %c0_231], %297 {strides = array<i32>} : memref<8x64xf32, #tpu.memory_space<vmem>>, vector<1x32xf32>,
    %299 = arith.index_cast %294 : i32 to index
    %c0_232 = arith.constant 0 : index
    %c0_233 = arith.constant 0 : index
    %300 = vector.load %arg12[%299, %c0_232, %c0_233] : memref<16x1x32xf32, #tpu.memory_space<vmem>>, vector<1x1x32xf32>
    %301 = vector.shape_cast %300 : vector<1x1x32xf32> to vector<1x32xf32>
    %c1_234 = arith.constant 1 : index
    %c32_235 = arith.constant 32 : index
    %302 = vector.load %arg13[%c1_234, %c32_235] : memref<8x64xf32, #tpu.memory_space<vmem>>, vector<1x32xf32>
    tpu.vector_store %arg13[%c1_234, %c32_235], %301 {strides = array<i32>} : memref<8x64xf32, #tpu.memory_space<vmem>>, vector<1x32xf32>,
    %c18 = arith.constant 18 : index
    %303 = memref.load %arg1[%c18] : memref<24xi32, #tpu.memory_space<smem>>
    %c18_236 = arith.constant 18 : index
    %304 = memref.load %arg2[%c18_236] : memref<24xi32, #tpu.memory_space<smem>>
    %305 = arith.index_cast %303 : i32 to index
    %c0_237 = arith.constant 0 : index
    %c0_238 = arith.constant 0 : index
    %306 = vector.load %arg12[%305, %c0_237, %c0_238] : memref<16x1x32xf32, #tpu.memory_space<vmem>>, vector<1x1x32xf32>
    %307 = vector.shape_cast %306 : vector<1x1x32xf32> to vector<1x32xf32>
    %c2_239 = arith.constant 2 : index
    %c0_240 = arith.constant 0 : index
    %308 = vector.load %arg13[%c2_239, %c0_240] : memref<8x64xf32, #tpu.memory_space<vmem>>, vector<1x32xf32>
    tpu.vector_store %arg13[%c2_239, %c0_240], %307 {strides = array<i32>} : memref<8x64xf32, #tpu.memory_space<vmem>>, vector<1x32xf32>,
    %309 = arith.index_cast %304 : i32 to index
    %c0_241 = arith.constant 0 : index
    %c0_242 = arith.constant 0 : index
    %310 = vector.load %arg12[%309, %c0_241, %c0_242] : memref<16x1x32xf32, #tpu.memory_space<vmem>>, vector<1x1x32xf32>
    %311 = vector.shape_cast %310 : vector<1x1x32xf32> to vector<1x32xf32>
    %c2_243 = arith.constant 2 : index
    %c32_244 = arith.constant 32 : index
    %312 = vector.load %arg13[%c2_243, %c32_244] : memref<8x64xf32, #tpu.memory_space<vmem>>, vector<1x32xf32>
    tpu.vector_store %arg13[%c2_243, %c32_244], %311 {strides = array<i32>} : memref<8x64xf32, #tpu.memory_space<vmem>>, vector<1x32xf32>,
    %c19 = arith.constant 19 : index
    %313 = memref.load %arg1[%c19] : memref<24xi32, #tpu.memory_space<smem>>
    %c19_245 = arith.constant 19 : index
    %314 = memref.load %arg2[%c19_245] : memref<24xi32, #tpu.memory_space<smem>>
    %315 = arith.index_cast %313 : i32 to index
    %c0_246 = arith.constant 0 : index
    %c0_247 = arith.constant 0 : index
    %316 = vector.load %arg12[%315, %c0_246, %c0_247] : memref<16x1x32xf32, #tpu.memory_space<vmem>>, vector<1x1x32xf32>
    %317 = vector.shape_cast %316 : vector<1x1x32xf32> to vector<1x32xf32>
    %c3_248 = arith.constant 3 : index
    %c0_249 = arith.constant 0 : index
    %318 = vector.load %arg13[%c3_248, %c0_249] : memref<8x64xf32, #tpu.memory_space<vmem>>, vector<1x32xf32>
    tpu.vector_store %arg13[%c3_248, %c0_249], %317 {strides = array<i32>} : memref<8x64xf32, #tpu.memory_space<vmem>>, vector<1x32xf32>,
    %319 = arith.index_cast %314 : i32 to index
    %c0_250 = arith.constant 0 : index
    %c0_251 = arith.constant 0 : index
    %320 = vector.load %arg12[%319, %c0_250, %c0_251] : memref<16x1x32xf32, #tpu.memory_space<vmem>>, vector<1x1x32xf32>
    %321 = vector.shape_cast %320 : vector<1x1x32xf32> to vector<1x32xf32>
    %c3_252 = arith.constant 3 : index
    %c32_253 = arith.constant 32 : index
    %322 = vector.load %arg13[%c3_252, %c32_253] : memref<8x64xf32, #tpu.memory_space<vmem>>, vector<1x32xf32>
    tpu.vector_store %arg13[%c3_252, %c32_253], %321 {strides = array<i32>} : memref<8x64xf32, #tpu.memory_space<vmem>>, vector<1x32xf32>,
    %c20 = arith.constant 20 : index
    %323 = memref.load %arg1[%c20] : memref<24xi32, #tpu.memory_space<smem>>
    %c20_254 = arith.constant 20 : index
    %324 = memref.load %arg2[%c20_254] : memref<24xi32, #tpu.memory_space<smem>>
    %325 = arith.index_cast %323 : i32 to index
    %c0_255 = arith.constant 0 : index
    %c0_256 = arith.constant 0 : index
    %326 = vector.load %arg12[%325, %c0_255, %c0_256] : memref<16x1x32xf32, #tpu.memory_space<vmem>>, vector<1x1x32xf32>
    %327 = vector.shape_cast %326 : vector<1x1x32xf32> to vector<1x32xf32>
    %c4_257 = arith.constant 4 : index
    %c0_258 = arith.constant 0 : index
    %328 = vector.load %arg13[%c4_257, %c0_258] : memref<8x64xf32, #tpu.memory_space<vmem>>, vector<1x32xf32>
    tpu.vector_store %arg13[%c4_257, %c0_258], %327 {strides = array<i32>} : memref<8x64xf32, #tpu.memory_space<vmem>>, vector<1x32xf32>,
    %329 = arith.index_cast %324 : i32 to index
    %c0_259 = arith.constant 0 : index
    %c0_260 = arith.constant 0 : index
    %330 = vector.load %arg12[%329, %c0_259, %c0_260] : memref<16x1x32xf32, #tpu.memory_space<vmem>>, vector<1x1x32xf32>
    %331 = vector.shape_cast %330 : vector<1x1x32xf32> to vector<1x32xf32>
    %c4_261 = arith.constant 4 : index
    %c32_262 = arith.constant 32 : index
    %332 = vector.load %arg13[%c4_261, %c32_262] : memref<8x64xf32, #tpu.memory_space<vmem>>, vector<1x32xf32>
    tpu.vector_store %arg13[%c4_261, %c32_262], %331 {strides = array<i32>} : memref<8x64xf32, #tpu.memory_space<vmem>>, vector<1x32xf32>,
    %c21 = arith.constant 21 : index
    %333 = memref.load %arg1[%c21] : memref<24xi32, #tpu.memory_space<smem>>
    %c21_263 = arith.constant 21 : index
    %334 = memref.load %arg2[%c21_263] : memref<24xi32, #tpu.memory_space<smem>>
    %335 = arith.index_cast %333 : i32 to index
    %c0_264 = arith.constant 0 : index
    %c0_265 = arith.constant 0 : index
    %336 = vector.load %arg12[%335, %c0_264, %c0_265] : memref<16x1x32xf32, #tpu.memory_space<vmem>>, vector<1x1x32xf32>
    %337 = vector.shape_cast %336 : vector<1x1x32xf32> to vector<1x32xf32>
    %c5_266 = arith.constant 5 : index
    %c0_267 = arith.constant 0 : index
    %338 = vector.load %arg13[%c5_266, %c0_267] : memref<8x64xf32, #tpu.memory_space<vmem>>, vector<1x32xf32>
    tpu.vector_store %arg13[%c5_266, %c0_267], %337 {strides = array<i32>} : memref<8x64xf32, #tpu.memory_space<vmem>>, vector<1x32xf32>,
    %339 = arith.index_cast %334 : i32 to index
    %c0_268 = arith.constant 0 : index
    %c0_269 = arith.constant 0 : index
    %340 = vector.load %arg12[%339, %c0_268, %c0_269] : memref<16x1x32xf32, #tpu.memory_space<vmem>>, vector<1x1x32xf32>
    %341 = vector.shape_cast %340 : vector<1x1x32xf32> to vector<1x32xf32>
    %c5_270 = arith.constant 5 : index
    %c32_271 = arith.constant 32 : index
    %342 = vector.load %arg13[%c5_270, %c32_271] : memref<8x64xf32, #tpu.memory_space<vmem>>, vector<1x32xf32>
    tpu.vector_store %arg13[%c5_270, %c32_271], %341 {strides = array<i32>} : memref<8x64xf32, #tpu.memory_space<vmem>>, vector<1x32xf32>,
    %c22 = arith.constant 22 : index
    %343 = memref.load %arg1[%c22] : memref<24xi32, #tpu.memory_space<smem>>
    %c22_272 = arith.constant 22 : index
    %344 = memref.load %arg2[%c22_272] : memref<24xi32, #tpu.memory_space<smem>>
    %345 = arith.index_cast %343 : i32 to index
    %c0_273 = arith.constant 0 : index
    %c0_274 = arith.constant 0 : index
    %346 = vector.load %arg12[%345, %c0_273, %c0_274] : memref<16x1x32xf32, #tpu.memory_space<vmem>>, vector<1x1x32xf32>
    %347 = vector.shape_cast %346 : vector<1x1x32xf32> to vector<1x32xf32>
    %c6_275 = arith.constant 6 : index
    %c0_276 = arith.constant 0 : index
    %348 = vector.load %arg13[%c6_275, %c0_276] : memref<8x64xf32, #tpu.memory_space<vmem>>, vector<1x32xf32>
    tpu.vector_store %arg13[%c6_275, %c0_276], %347 {strides = array<i32>} : memref<8x64xf32, #tpu.memory_space<vmem>>, vector<1x32xf32>,
    %349 = arith.index_cast %344 : i32 to index
    %c0_277 = arith.constant 0 : index
    %c0_278 = arith.constant 0 : index
    %350 = vector.load %arg12[%349, %c0_277, %c0_278] : memref<16x1x32xf32, #tpu.memory_space<vmem>>, vector<1x1x32xf32>
    %351 = vector.shape_cast %350 : vector<1x1x32xf32> to vector<1x32xf32>
    %c6_279 = arith.constant 6 : index
    %c32_280 = arith.constant 32 : index
    %352 = vector.load %arg13[%c6_279, %c32_280] : memref<8x64xf32, #tpu.memory_space<vmem>>, vector<1x32xf32>
    tpu.vector_store %arg13[%c6_279, %c32_280], %351 {strides = array<i32>} : memref<8x64xf32, #tpu.memory_space<vmem>>, vector<1x32xf32>,
    %c23 = arith.constant 23 : index
    %353 = memref.load %arg1[%c23] : memref<24xi32, #tpu.memory_space<smem>>
    %c23_281 = arith.constant 23 : index
    %354 = memref.load %arg2[%c23_281] : memref<24xi32, #tpu.memory_space<smem>>
    %355 = arith.index_cast %353 : i32 to index
    %c0_282 = arith.constant 0 : index
    %c0_283 = arith.constant 0 : index
    %356 = vector.load %arg12[%355, %c0_282, %c0_283] : memref<16x1x32xf32, #tpu.memory_space<vmem>>, vector<1x1x32xf32>
    %357 = vector.shape_cast %356 : vector<1x1x32xf32> to vector<1x32xf32>
    %c7_284 = arith.constant 7 : index
    %c0_285 = arith.constant 0 : index
    %358 = vector.load %arg13[%c7_284, %c0_285] : memref<8x64xf32, #tpu.memory_space<vmem>>, vector<1x32xf32>
    tpu.vector_store %arg13[%c7_284, %c0_285], %357 {strides = array<i32>} : memref<8x64xf32, #tpu.memory_space<vmem>>, vector<1x32xf32>,
    %359 = arith.index_cast %354 : i32 to index
    %c0_286 = arith.constant 0 : index
    %c0_287 = arith.constant 0 : index
    %360 = vector.load %arg12[%359, %c0_286, %c0_287] : memref<16x1x32xf32, #tpu.memory_space<vmem>>, vector<1x1x32xf32>
    %361 = vector.shape_cast %360 : vector<1x1x32xf32> to vector<1x32xf32>
    %c7_288 = arith.constant 7 : index
    %c32_289 = arith.constant 32 : index
    %362 = vector.load %arg13[%c7_288, %c32_289] : memref<8x64xf32, #tpu.memory_space<vmem>>, vector<1x32xf32>
    tpu.vector_store %arg13[%c7_288, %c32_289], %361 {strides = array<i32>} : memref<8x64xf32, #tpu.memory_space<vmem>>, vector<1x32xf32>,
    %c0_290 = arith.constant 0 : index
    %c0_291 = arith.constant 0 : index
    %363 = vector.load %arg13[%c0_290, %c0_291] : memref<8x64xf32, #tpu.memory_space<vmem>>, vector<8x64xf32>
    %cst_292 = arith.constant dense<0.000000e+00> : vector<8x2048xf32>
    %364 = tpu.matmul %363, %2, %cst_292 {dimension_numbers = #tpu.dot_dimension_numbers<[1], [0], [0], [1], [0, 0, 1, 1], [], []>} : vector<8x64xf32>, vector<64x2048xf32>, vector<8x2048xf32> -> vector<8x2048xf32>
    %cst_293 = arith.constant dense<0.000000e+00> : vector<8x2048xf32>
    %365 = tpu.matmul %363, %3, %cst_293 {dimension_numbers = #tpu.dot_dimension_numbers<[1], [0], [0], [1], [0, 0, 1, 1], [], []>} : vector<8x64xf32>, vector<64x2048xf32>, vector<8x2048xf32> -> vector<8x2048xf32>
    %366 = arith.mulf %364, %365 : vector<8x2048xf32>
    %cst_294 = arith.constant dense<0.000000e+00> : vector<8x32xf32>
    %367 = tpu.matmul %366, %4, %cst_294 {dimension_numbers = #tpu.dot_dimension_numbers<[1], [0], [0], [1], [0, 0, 1, 1], [], []>} : vector<8x2048xf32>, vector<2048x32xf32>, vector<8x32xf32> -> vector<8x32xf32>
    %cst_295 = arith.constant dense<0.000000e+00> : vector<8x32xf32>
    %368 = tpu.matmul %363, %5, %cst_295 {dimension_numbers = #tpu.dot_dimension_numbers<[1], [0], [0], [1], [0, 0, 1, 1], [], []>} : vector<8x64xf32>, vector<64x32xf32>, vector<8x32xf32> -> vector<8x32xf32>
    %369 = arith.addf %367, %368 : vector<8x32xf32>
    %370 = vector.broadcast %6 : vector<1x32xf32> to vector<8x32xf32>
    %371 = arith.addf %369, %370 : vector<8x32xf32>
    %372 = math.tanh %371 : vector<8x32xf32>
    %c16_296 = arith.constant 16 : index
    %373 = memref.load %arg0[%c16_296] : memref<24xi32, #tpu.memory_space<smem>>
    %374 = vector.extract_strided_slice %372 {offsets = [0, 0], sizes = [1, 32], strides = [1, 1]} : vector<8x32xf32> to vector<1x32xf32>
    %375 = arith.index_cast %373 : i32 to index
    %c0_297 = arith.constant 0 : index
    %c0_298 = arith.constant 0 : index
    %376 = vector.load %arg12[%375, %c0_297, %c0_298] : memref<16x1x32xf32, #tpu.memory_space<vmem>>, vector<1x1x32xf32>
    %377 = vector.shape_cast %376 : vector<1x1x32xf32> to vector<1x32xf32>
    %378 = vector.shape_cast %374 : vector<1x32xf32> to vector<1x1x32xf32>
    tpu.vector_store %arg12[%375, %c0_297, %c0_298], %378 {strides = array<i32>} : memref<16x1x32xf32, #tpu.memory_space<vmem>>, vector<1x1x32xf32>,
    %c17_299 = arith.constant 17 : index
    %379 = memref.load %arg0[%c17_299] : memref<24xi32, #tpu.memory_space<smem>>
    %380 = vector.extract_strided_slice %372 {offsets = [1, 0], sizes = [1, 32], strides = [1, 1]} : vector<8x32xf32> to vector<1x32xf32>
    %381 = arith.index_cast %379 : i32 to index
    %c0_300 = arith.constant 0 : index
    %c0_301 = arith.constant 0 : index
    %382 = vector.load %arg12[%381, %c0_300, %c0_301] : memref<16x1x32xf32, #tpu.memory_space<vmem>>, vector<1x1x32xf32>
    %383 = vector.shape_cast %382 : vector<1x1x32xf32> to vector<1x32xf32>
    %384 = vector.shape_cast %380 : vector<1x32xf32> to vector<1x1x32xf32>
    tpu.vector_store %arg12[%381, %c0_300, %c0_301], %384 {strides = array<i32>} : memref<16x1x32xf32, #tpu.memory_space<vmem>>, vector<1x1x32xf32>,
    %c18_302 = arith.constant 18 : index
    %385 = memref.load %arg0[%c18_302] : memref<24xi32, #tpu.memory_space<smem>>
    %386 = vector.extract_strided_slice %372 {offsets = [2, 0], sizes = [1, 32], strides = [1, 1]} : vector<8x32xf32> to vector<1x32xf32>
    %387 = arith.index_cast %385 : i32 to index
    %c0_303 = arith.constant 0 : index
    %c0_304 = arith.constant 0 : index
    %388 = vector.load %arg12[%387, %c0_303, %c0_304] : memref<16x1x32xf32, #tpu.memory_space<vmem>>, vector<1x1x32xf32>
    %389 = vector.shape_cast %388 : vector<1x1x32xf32> to vector<1x32xf32>
    %390 = vector.shape_cast %386 : vector<1x32xf32> to vector<1x1x32xf32>
    tpu.vector_store %arg12[%387, %c0_303, %c0_304], %390 {strides = array<i32>} : memref<16x1x32xf32, #tpu.memory_space<vmem>>, vector<1x1x32xf32>,
    %c19_305 = arith.constant 19 : index
    %391 = memref.load %arg0[%c19_305] : memref<24xi32, #tpu.memory_space<smem>>
    %392 = vector.extract_strided_slice %372 {offsets = [3, 0], sizes = [1, 32], strides = [1, 1]} : vector<8x32xf32> to vector<1x32xf32>
    %393 = arith.index_cast %391 : i32 to index
    %c0_306 = arith.constant 0 : index
    %c0_307 = arith.constant 0 : index
    %394 = vector.load %arg12[%393, %c0_306, %c0_307] : memref<16x1x32xf32, #tpu.memory_space<vmem>>, vector<1x1x32xf32>
    %395 = vector.shape_cast %394 : vector<1x1x32xf32> to vector<1x32xf32>
    %396 = vector.shape_cast %392 : vector<1x32xf32> to vector<1x1x32xf32>
    tpu.vector_store %arg12[%393, %c0_306, %c0_307], %396 {strides = array<i32>} : memref<16x1x32xf32, #tpu.memory_space<vmem>>, vector<1x1x32xf32>,
    %c20_308 = arith.constant 20 : index
    %397 = memref.load %arg0[%c20_308] : memref<24xi32, #tpu.memory_space<smem>>
    %398 = vector.extract_strided_slice %372 {offsets = [4, 0], sizes = [1, 32], strides = [1, 1]} : vector<8x32xf32> to vector<1x32xf32>
    %399 = arith.index_cast %397 : i32 to index
    %c0_309 = arith.constant 0 : index
    %c0_310 = arith.constant 0 : index
    %400 = vector.load %arg12[%399, %c0_309, %c0_310] : memref<16x1x32xf32, #tpu.memory_space<vmem>>, vector<1x1x32xf32>
    %401 = vector.shape_cast %400 : vector<1x1x32xf32> to vector<1x32xf32>
    %402 = vector.shape_cast %398 : vector<1x32xf32> to vector<1x1x32xf32>
    tpu.vector_store %arg12[%399, %c0_309, %c0_310], %402 {strides = array<i32>} : memref<16x1x32xf32, #tpu.memory_space<vmem>>, vector<1x1x32xf32>,
    %c21_311 = arith.constant 21 : index
    %403 = memref.load %arg0[%c21_311] : memref<24xi32, #tpu.memory_space<smem>>
    %404 = vector.extract_strided_slice %372 {offsets = [5, 0], sizes = [1, 32], strides = [1, 1]} : vector<8x32xf32> to vector<1x32xf32>
    %405 = arith.index_cast %403 : i32 to index
    %c0_312 = arith.constant 0 : index
    %c0_313 = arith.constant 0 : index
    %406 = vector.load %arg12[%405, %c0_312, %c0_313] : memref<16x1x32xf32, #tpu.memory_space<vmem>>, vector<1x1x32xf32>
    %407 = vector.shape_cast %406 : vector<1x1x32xf32> to vector<1x32xf32>
    %408 = vector.shape_cast %404 : vector<1x32xf32> to vector<1x1x32xf32>
    tpu.vector_store %arg12[%405, %c0_312, %c0_313], %408 {strides = array<i32>} : memref<16x1x32xf32, #tpu.memory_space<vmem>>, vector<1x1x32xf32>,
    %c22_314 = arith.constant 22 : index
    %409 = memref.load %arg0[%c22_314] : memref<24xi32, #tpu.memory_space<smem>>
    %410 = vector.extract_strided_slice %372 {offsets = [6, 0], sizes = [1, 32], strides = [1, 1]} : vector<8x32xf32> to vector<1x32xf32>
    %411 = arith.index_cast %409 : i32 to index
    %c0_315 = arith.constant 0 : index
    %c0_316 = arith.constant 0 : index
    %412 = vector.load %arg12[%411, %c0_315, %c0_316] : memref<16x1x32xf32, #tpu.memory_space<vmem>>, vector<1x1x32xf32>
    %413 = vector.shape_cast %412 : vector<1x1x32xf32> to vector<1x32xf32>
    %414 = vector.shape_cast %410 : vector<1x32xf32> to vector<1x1x32xf32>
    tpu.vector_store %arg12[%411, %c0_315, %c0_316], %414 {strides = array<i32>} : memref<16x1x32xf32, #tpu.memory_space<vmem>>, vector<1x1x32xf32>,
    %c23_317 = arith.constant 23 : index
    %415 = memref.load %arg0[%c23_317] : memref<24xi32, #tpu.memory_space<smem>>
    %416 = vector.extract_strided_slice %372 {offsets = [7, 0], sizes = [1, 32], strides = [1, 1]} : vector<8x32xf32> to vector<1x32xf32>
    %417 = arith.index_cast %415 : i32 to index
    %c0_318 = arith.constant 0 : index
    %c0_319 = arith.constant 0 : index
    %418 = vector.load %arg12[%417, %c0_318, %c0_319] : memref<16x1x32xf32, #tpu.memory_space<vmem>>, vector<1x1x32xf32>
    %419 = vector.shape_cast %418 : vector<1x1x32xf32> to vector<1x32xf32>
    %420 = vector.shape_cast %416 : vector<1x32xf32> to vector<1x1x32xf32>
    tpu.vector_store %arg12[%417, %c0_318, %c0_319], %420 {strides = array<i32>} : memref<16x1x32xf32, #tpu.memory_space<vmem>>, vector<1x1x32xf32>,
    %c0_320 = arith.constant 0 : index
    %c0_321 = arith.constant 0 : index
    %c0_322 = arith.constant 0 : index
    %421 = vector.load %arg12[%c0_320, %c0_321, %c0_322] : memref<16x1x32xf32, #tpu.memory_space<vmem>>, vector<1x1x32xf32>
    %422 = vector.shape_cast %421 : vector<1x1x32xf32> to vector<1x32xf32>
    %c0_323 = arith.constant 0 : index
    %c0_324 = arith.constant 0 : index
    %423 = vector.load %arg14[%c0_323, %c0_324] : memref<16x32xf32, #tpu.memory_space<vmem>>, vector<1x32xf32>
    tpu.vector_store %arg14[%c0_323, %c0_324], %422 {strides = array<i32>} : memref<16x32xf32, #tpu.memory_space<vmem>>, vector<1x32xf32>,
    %c1_325 = arith.constant 1 : index
    %c0_326 = arith.constant 0 : index
    %c0_327 = arith.constant 0 : index
    %424 = vector.load %arg12[%c1_325, %c0_326, %c0_327] : memref<16x1x32xf32, #tpu.memory_space<vmem>>, vector<1x1x32xf32>
    %425 = vector.shape_cast %424 : vector<1x1x32xf32> to vector<1x32xf32>
    %c1_328 = arith.constant 1 : index
    %c0_329 = arith.constant 0 : index
    %426 = vector.load %arg14[%c1_328, %c0_329] : memref<16x32xf32, #tpu.memory_space<vmem>>, vector<1x32xf32>
    tpu.vector_store %arg14[%c1_328, %c0_329], %425 {strides = array<i32>} : memref<16x32xf32, #tpu.memory_space<vmem>>, vector<1x32xf32>,
    %c2_330 = arith.constant 2 : index
    %c0_331 = arith.constant 0 : index
    %c0_332 = arith.constant 0 : index
    %427 = vector.load %arg12[%c2_330, %c0_331, %c0_332] : memref<16x1x32xf32, #tpu.memory_space<vmem>>, vector<1x1x32xf32>
    %428 = vector.shape_cast %427 : vector<1x1x32xf32> to vector<1x32xf32>
    %c2_333 = arith.constant 2 : index
    %c0_334 = arith.constant 0 : index
    %429 = vector.load %arg14[%c2_333, %c0_334] : memref<16x32xf32, #tpu.memory_space<vmem>>, vector<1x32xf32>
    tpu.vector_store %arg14[%c2_333, %c0_334], %428 {strides = array<i32>} : memref<16x32xf32, #tpu.memory_space<vmem>>, vector<1x32xf32>,
    %c3_335 = arith.constant 3 : index
    %c0_336 = arith.constant 0 : index
    %c0_337 = arith.constant 0 : index
    %430 = vector.load %arg12[%c3_335, %c0_336, %c0_337] : memref<16x1x32xf32, #tpu.memory_space<vmem>>, vector<1x1x32xf32>
    %431 = vector.shape_cast %430 : vector<1x1x32xf32> to vector<1x32xf32>
    %c3_338 = arith.constant 3 : index
    %c0_339 = arith.constant 0 : index
    %432 = vector.load %arg14[%c3_338, %c0_339] : memref<16x32xf32, #tpu.memory_space<vmem>>, vector<1x32xf32>
    tpu.vector_store %arg14[%c3_338, %c0_339], %431 {strides = array<i32>} : memref<16x32xf32, #tpu.memory_space<vmem>>, vector<1x32xf32>,
    %c4_340 = arith.constant 4 : index
    %c0_341 = arith.constant 0 : index
    %c0_342 = arith.constant 0 : index
    %433 = vector.load %arg12[%c4_340, %c0_341, %c0_342] : memref<16x1x32xf32, #tpu.memory_space<vmem>>, vector<1x1x32xf32>
    %434 = vector.shape_cast %433 : vector<1x1x32xf32> to vector<1x32xf32>
    %c4_343 = arith.constant 4 : index
    %c0_344 = arith.constant 0 : index
    %435 = vector.load %arg14[%c4_343, %c0_344] : memref<16x32xf32, #tpu.memory_space<vmem>>, vector<1x32xf32>
    tpu.vector_store %arg14[%c4_343, %c0_344], %434 {strides = array<i32>} : memref<16x32xf32, #tpu.memory_space<vmem>>, vector<1x32xf32>,
    %c5_345 = arith.constant 5 : index
    %c0_346 = arith.constant 0 : index
    %c0_347 = arith.constant 0 : index
    %436 = vector.load %arg12[%c5_345, %c0_346, %c0_347] : memref<16x1x32xf32, #tpu.memory_space<vmem>>, vector<1x1x32xf32>
    %437 = vector.shape_cast %436 : vector<1x1x32xf32> to vector<1x32xf32>
    %c5_348 = arith.constant 5 : index
    %c0_349 = arith.constant 0 : index
    %438 = vector.load %arg14[%c5_348, %c0_349] : memref<16x32xf32, #tpu.memory_space<vmem>>, vector<1x32xf32>
    tpu.vector_store %arg14[%c5_348, %c0_349], %437 {strides = array<i32>} : memref<16x32xf32, #tpu.memory_space<vmem>>, vector<1x32xf32>,
    %c6_350 = arith.constant 6 : index
    %c0_351 = arith.constant 0 : index
    %c0_352 = arith.constant 0 : index
    %439 = vector.load %arg12[%c6_350, %c0_351, %c0_352] : memref<16x1x32xf32, #tpu.memory_space<vmem>>, vector<1x1x32xf32>
    %440 = vector.shape_cast %439 : vector<1x1x32xf32> to vector<1x32xf32>
    %c6_353 = arith.constant 6 : index
    %c0_354 = arith.constant 0 : index
    %441 = vector.load %arg14[%c6_353, %c0_354] : memref<16x32xf32, #tpu.memory_space<vmem>>, vector<1x32xf32>
    tpu.vector_store %arg14[%c6_353, %c0_354], %440 {strides = array<i32>} : memref<16x32xf32, #tpu.memory_space<vmem>>, vector<1x32xf32>,
    %c7_355 = arith.constant 7 : index
    %c0_356 = arith.constant 0 : index
    %c0_357 = arith.constant 0 : index
    %442 = vector.load %arg12[%c7_355, %c0_356, %c0_357] : memref<16x1x32xf32, #tpu.memory_space<vmem>>, vector<1x1x32xf32>
    %443 = vector.shape_cast %442 : vector<1x1x32xf32> to vector<1x32xf32>
    %c7_358 = arith.constant 7 : index
    %c0_359 = arith.constant 0 : index
    %444 = vector.load %arg14[%c7_358, %c0_359] : memref<16x32xf32, #tpu.memory_space<vmem>>, vector<1x32xf32>
    tpu.vector_store %arg14[%c7_358, %c0_359], %443 {strides = array<i32>} : memref<16x32xf32, #tpu.memory_space<vmem>>, vector<1x32xf32>,
    %c8_360 = arith.constant 8 : index
    %c0_361 = arith.constant 0 : index
    %c0_362 = arith.constant 0 : index
    %445 = vector.load %arg12[%c8_360, %c0_361, %c0_362] : memref<16x1x32xf32, #tpu.memory_space<vmem>>, vector<1x1x32xf32>
    %446 = vector.shape_cast %445 : vector<1x1x32xf32> to vector<1x32xf32>
    %c8_363 = arith.constant 8 : index
    %c0_364 = arith.constant 0 : index
    %447 = vector.load %arg14[%c8_363, %c0_364] : memref<16x32xf32, #tpu.memory_space<vmem>>, vector<1x32xf32>
    tpu.vector_store %arg14[%c8_363, %c0_364], %446 {strides = array<i32>} : memref<16x32xf32, #tpu.memory_space<vmem>>, vector<1x32xf32>,
    %c9_365 = arith.constant 9 : index
    %c0_366 = arith.constant 0 : index
    %c0_367 = arith.constant 0 : index
    %448 = vector.load %arg12[%c9_365, %c0_366, %c0_367] : memref<16x1x32xf32, #tpu.memory_space<vmem>>, vector<1x1x32xf32>
    %449 = vector.shape_cast %448 : vector<1x1x32xf32> to vector<1x32xf32>
    %c9_368 = arith.constant 9 : index
    %c0_369 = arith.constant 0 : index
    %450 = vector.load %arg14[%c9_368, %c0_369] : memref<16x32xf32, #tpu.memory_space<vmem>>, vector<1x32xf32>
    tpu.vector_store %arg14[%c9_368, %c0_369], %449 {strides = array<i32>} : memref<16x32xf32, #tpu.memory_space<vmem>>, vector<1x32xf32>,
    %c10_370 = arith.constant 10 : index
    %c0_371 = arith.constant 0 : index
    %c0_372 = arith.constant 0 : index
    %451 = vector.load %arg12[%c10_370, %c0_371, %c0_372] : memref<16x1x32xf32, #tpu.memory_space<vmem>>, vector<1x1x32xf32>
    %452 = vector.shape_cast %451 : vector<1x1x32xf32> to vector<1x32xf32>
    %c10_373 = arith.constant 10 : index
    %c0_374 = arith.constant 0 : index
    %453 = vector.load %arg14[%c10_373, %c0_374] : memref<16x32xf32, #tpu.memory_space<vmem>>, vector<1x32xf32>
    tpu.vector_store %arg14[%c10_373, %c0_374], %452 {strides = array<i32>} : memref<16x32xf32, #tpu.memory_space<vmem>>, vector<1x32xf32>,
    %c11_375 = arith.constant 11 : index
    %c0_376 = arith.constant 0 : index
    %c0_377 = arith.constant 0 : index
    %454 = vector.load %arg12[%c11_375, %c0_376, %c0_377] : memref<16x1x32xf32, #tpu.memory_space<vmem>>, vector<1x1x32xf32>
    %455 = vector.shape_cast %454 : vector<1x1x32xf32> to vector<1x32xf32>
    %c11_378 = arith.constant 11 : index
    %c0_379 = arith.constant 0 : index
    %456 = vector.load %arg14[%c11_378, %c0_379] : memref<16x32xf32, #tpu.memory_space<vmem>>, vector<1x32xf32>
    tpu.vector_store %arg14[%c11_378, %c0_379], %455 {strides = array<i32>} : memref<16x32xf32, #tpu.memory_space<vmem>>, vector<1x32xf32>,
    %c12_380 = arith.constant 12 : index
    %c0_381 = arith.constant 0 : index
    %c0_382 = arith.constant 0 : index
    %457 = vector.load %arg12[%c12_380, %c0_381, %c0_382] : memref<16x1x32xf32, #tpu.memory_space<vmem>>, vector<1x1x32xf32>
    %458 = vector.shape_cast %457 : vector<1x1x32xf32> to vector<1x32xf32>
    %c12_383 = arith.constant 12 : index
    %c0_384 = arith.constant 0 : index
    %459 = vector.load %arg14[%c12_383, %c0_384] : memref<16x32xf32, #tpu.memory_space<vmem>>, vector<1x32xf32>
    tpu.vector_store %arg14[%c12_383, %c0_384], %458 {strides = array<i32>} : memref<16x32xf32, #tpu.memory_space<vmem>>, vector<1x32xf32>,
    %c13_385 = arith.constant 13 : index
    %c0_386 = arith.constant 0 : index
    %c0_387 = arith.constant 0 : index
    %460 = vector.load %arg12[%c13_385, %c0_386, %c0_387] : memref<16x1x32xf32, #tpu.memory_space<vmem>>, vector<1x1x32xf32>
    %461 = vector.shape_cast %460 : vector<1x1x32xf32> to vector<1x32xf32>
    %c13_388 = arith.constant 13 : index
    %c0_389 = arith.constant 0 : index
    %462 = vector.load %arg14[%c13_388, %c0_389] : memref<16x32xf32, #tpu.memory_space<vmem>>, vector<1x32xf32>
    tpu.vector_store %arg14[%c13_388, %c0_389], %461 {strides = array<i32>} : memref<16x32xf32, #tpu.memory_space<vmem>>, vector<1x32xf32>,
    %c14_390 = arith.constant 14 : index
    %c0_391 = arith.constant 0 : index
    %c0_392 = arith.constant 0 : index
    %463 = vector.load %arg12[%c14_390, %c0_391, %c0_392] : memref<16x1x32xf32, #tpu.memory_space<vmem>>, vector<1x1x32xf32>
    %464 = vector.shape_cast %463 : vector<1x1x32xf32> to vector<1x32xf32>
    %c14_393 = arith.constant 14 : index
    %c0_394 = arith.constant 0 : index
    %465 = vector.load %arg14[%c14_393, %c0_394] : memref<16x32xf32, #tpu.memory_space<vmem>>, vector<1x32xf32>
    tpu.vector_store %arg14[%c14_393, %c0_394], %464 {strides = array<i32>} : memref<16x32xf32, #tpu.memory_space<vmem>>, vector<1x32xf32>,
    %c15_395 = arith.constant 15 : index
    %c0_396 = arith.constant 0 : index
    %c0_397 = arith.constant 0 : index
    %466 = vector.load %arg12[%c15_395, %c0_396, %c0_397] : memref<16x1x32xf32, #tpu.memory_space<vmem>>, vector<1x1x32xf32>
    %467 = vector.shape_cast %466 : vector<1x1x32xf32> to vector<1x32xf32>
    %c15_398 = arith.constant 15 : index
    %c0_399 = arith.constant 0 : index
    %468 = vector.load %arg14[%c15_398, %c0_399] : memref<16x32xf32, #tpu.memory_space<vmem>>, vector<1x32xf32>
    tpu.vector_store %arg14[%c15_398, %c0_399], %467 {strides = array<i32>} : memref<16x32xf32, #tpu.memory_space<vmem>>, vector<1x32xf32>,
    %c0_400 = arith.constant 0 : index
    %c0_401 = arith.constant 0 : index
    %469 = vector.load %arg14[%c0_400, %c0_401] : memref<16x32xf32, #tpu.memory_space<vmem>>, vector<16x32xf32>
    %c0_402 = arith.constant 0 : index
    %c0_403 = arith.constant 0 : index
    %470 = vector.load %arg9[%c0_402, %c0_403] : memref<32x128xf32, #tpu.memory_space<vmem>>, vector<32x128xf32>
    %cst_404 = arith.constant dense<0.000000e+00> : vector<16x128xf32>
    %471 = tpu.matmul %469, %470, %cst_404 {dimension_numbers = #tpu.dot_dimension_numbers<[1], [0], [0], [1], [0, 0, 1, 1], [], []>} : vector<16x32xf32>, vector<32x128xf32>, vector<16x128xf32> -> vector<16x128xf32>
    %c0_405 = arith.constant 0 : index
    %c0_406 = arith.constant 0 : index
    %472 = vector.load %arg10[%c0_405, %c0_406] : memref<1x128xf32, #tpu.memory_space<vmem>>, vector<1x128xf32>
    %473 = vector.broadcast %472 : vector<1x128xf32> to vector<16x128xf32>
    %474 = arith.addf %471, %473 : vector<16x128xf32>
    %cst_407 = arith.constant dense<0xFF800000> : vector<16xf32>
    %475 = vector.multi_reduction <maximumf>, %474, %cst_407 [1] : vector<16x128xf32> to vector<16xf32>
    %476 = vector.shape_cast %475 : vector<16xf32> to vector<16x1xf32>
    %477 = vector.broadcast %476 : vector<16x1xf32> to vector<16x128xf32>
    %478 = arith.subf %474, %477 : vector<16x128xf32>
    %479 = math.exp %478 : vector<16x128xf32>
    %cst_408 = arith.constant dense<0.000000e+00> : vector<16xf32>
    %480 = vector.multi_reduction <add>, %479, %cst_408 [1] : vector<16x128xf32> to vector<16xf32>
    %481 = vector.shape_cast %480 : vector<16xf32> to vector<16x1xf32>
    %482 = math.log %481 : vector<16x1xf32>
    %483 = vector.broadcast %482 : vector<16x1xf32> to vector<16x128xf32>
    %484 = arith.subf %478, %483 : vector<16x128xf32>
    %c0_409 = arith.constant 0 : index
    %c0_410 = arith.constant 0 : index
    %485 = vector.load %arg11[%c0_409, %c0_410] : memref<16x128xf32, #tpu.memory_space<vmem>>, vector<16x128xf32>
    tpu.vector_store %arg11[%c0_409, %c0_410], %484 {strides = array<i32>} : memref<16x128xf32, #tpu.memory_space<vmem>>, vector<16x128xf32>,
    return
  }
}

</mosaic_0001>

<bundles_post_ra>
// kernel: tpu_custom_call.1
= control target key start
LH: loop header
LB: loop body
LE: loop exit
PB: predicated region body
PF: predicated region fallthrough
CT: control target
= control target key end

     0   :  { %16 = vsyncpa [#allocation7], 0  ;;  %s13042_s0 = inlined_call_operand.vmem [shape: s32[24], index: 0, kind: input, shape index: {}]   ;;  %s13043_s1 = inlined_call_operand.vmem [shape: s32[24], index: 1, kind: input, shape index: {}]   ;;  %s13044_s2 = inlined_call_operand.vmem [shape: s32[24], index: 2, kind: input, shape index: {}]   ;;  %s13045_s3 = inlined_call_operand.vmem [shape: f32[16,1,32], index: 3, kind: input, shape index: {}]   ;;  %s13046_s4 = inlined_call_operand.vmem [shape: f32[64,2048], index: 4, kind: input, shape index: {}]   ;;  %s13047_s5 = inlined_call_operand.vmem [shape: f32[64,2048], index: 5, kind: input, shape index: {}]   ;;  %s13048_s6 = inlined_call_operand.vmem [shape: f32[2048,32], index: 6, kind: input, shape index: {}]   ;;  %s13049_s7 = inlined_call_operand.vmem [shape: f32[64,32], index: 7, kind: input, shape index: {}]   ;;  %s13050_s8 = inlined_call_operand.vmem [shape: f32[1,32], index: 8, kind: input, shape index: {}]   ;;  %s13051_s9 = inlined_call_operand.vmem [shape: f32[32,128], index: 9, kind: input, shape index: {}]   ;;  %s13052_s10 = inlined_call_operand.vmem [shape: f32[1,128], index: 10, kind: input, shape index: {}]   ;;  %s13053_s11 = inlined_call_operand.hbm [shape: f32[16,128], index: 11, kind: output, shape index: {}]  }
   0x1   :  { %17 = vsyncpa [#allocation9], 0  ;;  %s35_s19 = sshll.u32 %s13043_s1, 4  ;;  %s36_s19 = int_to_ptr.vmem [resolvable:$true] %s35_s19 }
   0x2   :  { %18 = vsyncpa [#allocation6], 0  ;;  %s25_s22 = sshll.u32 %s13042_s0, 4  ;;  %s9413_s23 = scalar_lea.vmem %s36_s19, 16  ;;  %s26_s22 = int_to_ptr.vmem [resolvable:$true] %s25_s22 }
   0x3   :  { %p9414_p0 = scmp.ne.s32.totalorder %s36_s19, %s9413_s23  ;;  %p9418_p1 = scmp.lt.s32.totalorder %s36_s19, %s36_s19 }
   0x4   :  { %p9419_p2 = scmp.lt.s32.totalorder %s9413_s23, %s9413_s23 }
   0x6   :  { %p9420_p3 = por %p9419_p2, %p9418_p1 }
   0x8   :  { %p9421_p4 = pnand %p9420_p3, %p9414_p0 }
   0xa   :  { %9424 = shalt.err (!%p9421_p4)
}
   0xb   :  { %s9477_s24 = smov [#allocation8]   ;;  %s9425_s25 = scalar_lea.vmem %s26_s22, 16 }
   0xc   :  { %38 = dma.vmem_to_smem %s36_s19, 16, %s9477_s24, [#allocation9]  }
   0xd   :  { %p9426_p5 = scmp.ne.s32.totalorder %s26_s22, %s9425_s25  ;;  %p9430_p6 = scmp.lt.s32.totalorder %s26_s22, %s26_s22 }
   0xe   :  { %p9431_p7 = scmp.lt.s32.totalorder %s9425_s25, %s9425_s25 }
  0x10   :  { %p9432_p8 = por %p9431_p7, %p9430_p6 }
  0x12   :  { %p9433_p9 = pnand %p9432_p8, %p9426_p5 }
  0x14   :  { %9436 = shalt.err (!%p9433_p9)
}
  0x15   :  { %s9478_s1 = smov [#allocation5]   ;;  %s45_s27 = sshll.u32 %s13044_s2, 4  ;;  %s46_s27 = int_to_ptr.vmem [resolvable:$true] %s45_s27 }
  0x16   :  { %28 = dma.vmem_to_smem %s26_s22, 16, %s9478_s1, [#allocation7]  }
  0x17   :  { %s9437_s28 = scalar_lea.vmem %s46_s27, 16  ;;  %p9442_p11 = scmp.lt.s32.totalorder %s46_s27, %s46_s27 }
  0x18   :  { %p9438_p10 = scmp.ne.s32.totalorder %s46_s27, %s9437_s28  ;;  %p9443_p12 = scmp.lt.s32.totalorder %s9437_s28, %s9437_s28 }
  0x1a   :  { %p9444_p13 = por %p9443_p12, %p9442_p11 }
  0x1c   :  { %p9445_p0 = pnand %p9444_p13, %p9438_p10 }
  0x1e   :  { %9448 = shalt.err (!%p9445_p0)
}
  0x1f   :  { %s9479_s29 = smov [#allocation10]  }
  0x20   :  { %48 = dma.vmem_to_smem %s46_s27, 16, %s9479_s29, [#allocation9]  }
  0x21   :  { %9471 = dma.done.wait [#allocation7], 16  }
  0x22   :  { %9472 = vsyncadd [#allocation7], 4294967280 }
  0x23   :  { %9473 = dma.done.wait [#allocation9], 32  }
  0x24   :  { %9474 = vsyncadd [#allocation9], 4294967264 }
  0x25   :  { %74 = sfence }
  0x26   :  { %v75_v0 = vld [vmem:[%s13045_s3] sm:$0x1]  ;;  %v76_v1 = vld [vmem:[%s13045_s3 + $0x1] sm:$0x1]  ;;  %v77_v2 = vld [vmem:[%s13045_s3 + $0x2] sm:$0x1] }
  0x27   :  { %v78_v3 = vld [vmem:[%s13045_s3 + $0x3] sm:$0x1]  ;;  %v79_v4 = vld [vmem:[%s13045_s3 + $0x4] sm:$0x1]  ;;  %v80_v5 = vld [vmem:[%s13045_s3 + $0x5] sm:$0x1] }
  0x28   :  { %v81_v6 = vld [vmem:[%s13045_s3 + $0x6] sm:$0x1]  ;;  %v82_v7 = vld [vmem:[%s13045_s3 + $0x7] sm:$0x1]  ;;  %v83_v8 = vld [vmem:[%s13045_s3 + $0x8] sm:$0x1] }
  0x29   :  { %v84_v9 = vld [vmem:[%s13045_s3 + $0x9] sm:$0x1]  ;;  %v85_v10 = vld [vmem:[%s13045_s3 + $0xa] sm:$0x1]  ;;  %v86_v11 = vld [vmem:[%s13045_s3 + $0xb] sm:$0x1] }
  0x2a   :  { %v87_v12 = vld [vmem:[%s13045_s3 + $0xc] sm:$0x1]  ;;  %v88_v13 = vld [vmem:[%s13045_s3 + $0xd] sm:$0x1]  ;;  %v89_v14 = vld [vmem:[%s13045_s3 + $0xe] sm:$0x1] }
  0x2b   :  { %v90_v15 = vld [vmem:[%s13045_s3 + $0xf] sm:$0x1]  ;;  %vm91_vm0 = vcmask 253952   ;;  %s9604_s20 = sld [smem:[#allocation10 + $0x2]]  ;;  %s9622_s3 = sld [smem:[#allocation10]]  ;;  %v111_v18 = vld [vmem:[%s13046_s4 + $0x18] sm:$0xff] }
  0x2c   :  { %92 = vst.msk [vmem:[#allocation2] sm:$0x1] %vm91_vm0, %v75_v0  ;;  %93 = vst.msk [vmem:[#allocation2 + $0x1] sm:$0x1] %vm91_vm0, %v76_v1  ;;  %s9624_s21 = sld [smem:[#allocation10 + $0x3]]  ;;  %v109_v16 = vld [vmem:[%s13046_s4 + $0x8] sm:$0xff] }
  0x2d   :  { %94 = vst.msk [vmem:[#allocation2 + $0x2] sm:$0x1] %vm91_vm0, %v77_v2  ;;  %95 = vst.msk [vmem:[#allocation2 + $0x3] sm:$0x1] %vm91_vm0, %v78_v3  ;;  %s9629_s24 = sld [smem:[#allocation10 + $0x1]]  ;;  %s9631_s25 = sld [smem:[#allocation10 + $0x5]] }
  0x2e   :  { %96 = vst.msk [vmem:[#allocation2 + $0x4] sm:$0x1] %vm91_vm0, %v79_v4  ;;  %97 = vst.msk [vmem:[#allocation2 + $0x5] sm:$0x1] %vm91_vm0, %v80_v5  ;;  %v125_v17 = vld [vmem:[%s13046_s4 + $0x88] sm:$0xff]  ;;  %s9639_s28 = sld [smem:[#allocation10 + $0x4]] }
  0x2f   :  { %98 = vst.msk [vmem:[#allocation2 + $0x6] sm:$0x1] %vm91_vm0, %v81_v6  ;;  %99 = vst.msk [vmem:[#allocation2 + $0x7] sm:$0x1] %vm91_vm0, %v82_v7  ;;  %v9641_v19 = vpack.c.bf16 %v125_v17, %v109_v16  ;;  %v127_v20 = vld [vmem:[%s13046_s4 + $0x98] sm:$0xff]  ;;  %v108_v21 = vld [vmem:[%s13046_s4] sm:$0xff] }
  0x30   :  { %100 = vst.msk [vmem:[#allocation2 + $0x8] sm:$0x1] %vm91_vm0, %v83_v8  ;;  %101 = vst.msk [vmem:[#allocation2 + $0x9] sm:$0x1] %vm91_vm0, %v84_v9  ;;  %s9649_s13 = sld [smem:[#allocation8 + $0x2]]  ;;  %v9651_v22 = vpack.c.bf16 %v127_v20, %v111_v18  ;;  %v124_v23 = vld [vmem:[%s13046_s4 + $0x80] sm:$0xff] }
  0x31   :  { %102 = vst.msk [vmem:[#allocation2 + $0xa] sm:$0x1] %vm91_vm0, %v85_v10  ;;  %103 = vst.msk [vmem:[#allocation2 + $0xb] sm:$0x1] %vm91_vm0, %v86_v11  ;;  %v110_v24 = vld [vmem:[%s13046_s4 + $0x10] sm:$0xff]  ;;  %s9659_s18 = sld [smem:[#allocation10 + $0x7]]  ;;  %7808 = vmatprep.subr.bf16.mxu0 %v9641_v19  ;;  %v9664_v25 = vpack.c.bf16 %v124_v23, %v108_v21 }
  0x32   :  { %104 = vst.msk [vmem:[#allocation2 + $0xc] sm:$0x1] %vm91_vm0, %v87_v12  ;;  %105 = vst.msk [vmem:[#allocation2 + $0xd] sm:$0x1] %vm91_vm0, %v88_v13  ;;  %s9661_s19 = sld [smem:[#allocation8]]  ;;  %v126_v26 = vld [vmem:[%s13046_s4 + $0x90] sm:$0xff]  ;;  %7824 = vmatprep.subr.bf16.mxu1 %v9651_v22 }
  0x33   :  { %106 = vst.msk [vmem:[#allocation2 + $0xe] sm:$0x1] %vm91_vm0, %v89_v14  ;;  %107 = vst.msk [vmem:[#allocation2 + $0xf] sm:$0x1] %vm91_vm0, %v90_v15  ;;  %v141_v27 = vld [vmem:[%s13046_s4 + $0x108] sm:$0xff]  ;;  %s9672_s26 = sld [smem:[#allocation10 + $0x6]]  ;;  %v9675_v28 = vpack.c.bf16 %v126_v26, %v110_v24  ;;  %7810 = vmatpush1.bf16.msra.mxu0 %v9664_v25 }
  0x34   :  { %v157_v29 = vld [vmem:[%s13046_s4 + $0x188] sm:$0xff]  ;;  %v143_v30 = vld [vmem:[%s13046_s4 + $0x118] sm:$0xff]  ;;  %v140_v34 = vld [vmem:[%s13046_s4 + $0x100] sm:$0xff]  ;;  %s667_s0 = scalar_lea.vmem [#allocation2], %s9604_s20  ;;  %s634_s27 = scalar_lea.vmem [#allocation2], %s9622_s3  ;;  %v13054_v17 = vmov 0.0  }
  0x35   :  { %v159_v31 = vld [vmem:[%s13046_s4 + $0x198] sm:$0xff]  ;;  %v9687_v32 = vpack.c.bf16 %v157_v29, %v141_v27  ;;  %v156_v35 = vld [vmem:[%s13046_s4 + $0x180] sm:$0xff]  ;;  %v142_v36 = vld [vmem:[%s13046_s4 + $0x110] sm:$0xff]  ;;  %7826 = vmatpush1.bf16.msra.mxu1 %v9675_v28  ;;  %s9480_s29 = smov 32   ;;  %s683_s2 = scalar_lea.vmem [#allocation2], %s9624_s21  ;;  %827 = vmatprep.mubr.f32.mxu0 %v13054_v17  ;;  %vm644_vm1 = vcmask 516352  }
  0x36   :  { %v9689_v33 = vpack.c.bf16 %v159_v31, %v143_v30  ;;  %v9703_v39 = vpack.c.bf16 %v156_v35, %v140_v34  ;;  %v158_v40 = vld [vmem:[%s13046_s4 + $0x190] sm:$0xff]  ;;  %s651_s20 = scalar_lea.vmem [#allocation2], %s9629_s24  ;;  %v173_v44 = vld [vmem:[%s13046_s4 + $0x208] sm:$0xff]  ;;  %s715_s15 = scalar_lea.vmem [#allocation2], %s9631_s25  ;;  %v175_v51 = vld [vmem:[%s13046_s4 + $0x218] sm:$0xff]  ;;  %898 = vmatprep.mubr.f32.mxu1 %v13054_v17  ;;  %vm759_vm2 = vcmask 523264  }
  0x37   :  { %13504 = vst [vmem:[#allocation15_spill] sm:$0xff] %v9687_v32  ;;  %7812 = vmatprep.subr.bf16.mxu0 %v9687_v32  ;;  %v9714_v43 = vpack.c.bf16 %v158_v40, %v142_v36  ;;  %s664_s21 = scalar_lea.vmem [#allocation2], %s9649_s13  ;;  %s9727_s16 = sld [smem:[#allocation8 + $0x3]]  ;;  %v189_v48 = vld [vmem:[%s13046_s4 + $0x288] sm:$0xff]  ;;  %v191_v52 = vld [vmem:[%s13046_s4 + $0x298] sm:$0xff]  ;;  %v172_v54 = vld [vmem:[%s13046_s4 + $0x200] sm:$0xff] }
  0x38   :  { %13505 = vst [vmem:[#allocation16_spill] sm:$0xff] %v9689_v33  ;;  %13506 = vst [vmem:[#allocation17_spill] sm:$0xff] %v9703_v39  ;;  %7828 = vmatprep.subr.bf16.mxu1 %v9689_v33  ;;  %7814 = vmatpush1.bf16.msra.mxu0 %v9703_v39  ;;  %s631_s24 = scalar_lea.vmem [#allocation2], %s9661_s19  ;;  %s699_s25 = scalar_lea.vmem [#allocation2], %s9639_s28  ;;  %v9736_v50 = vpack.c.bf16 %v189_v48, %v173_v44  ;;  %v9746_v53 = vpack.c.bf16 %v191_v52, %v175_v51  ;;  %v188_v55 = vld [vmem:[%s13046_s4 + $0x280] sm:$0xff]  ;;  %v174_v58 = vld [vmem:[%s13046_s4 + $0x210] sm:$0xff] }
  0x39   :  { %13507 = vst [vmem:[#allocation18_spill] sm:$0xff] %v9714_v43  ;;  %7830 = vmatpush1.bf16.msra.mxu1 %v9714_v43  ;;  %s9734_s13 = sld [smem:[#allocation8 + $0x1]]  ;;  %s9755_s3 = sld [smem:[#allocation8 + $0x4]]  ;;  %v9758_v57 = vpack.c.bf16 %v188_v55, %v172_v54  ;;  %v190_v59 = vld [vmem:[%s13046_s4 + $0x290] sm:$0xff]  ;;  %v205_v61 = vld [vmem:[%s13046_s4 + $0x308] sm:$0xff]  ;;  %v207_v1 = vld [vmem:[%s13046_s4 + $0x318] sm:$0xff] }
  0x3a   :  { %v6724_v37 = vld [vmem:[%s667_s0] ss:$0 sm:$0xff]  ;;  %13508 = vst [vmem:[#allocation19_spill] sm:$0xff] %v9736_v50  ;;  %13509 = vst [vmem:[#allocation20_spill] sm:$0xff] %v9746_v53  ;;  %7816 = vmatprep.subr.bf16.mxu0 %v9736_v50  ;;  %v9770_v60 = vpack.c.bf16 %v190_v59, %v174_v58  ;;  %v221_v62 = vld [vmem:[%s13046_s4 + $0x388] sm:$0xff]  ;;  %s731_s1 = scalar_lea.vmem [#allocation2], %s9672_s26  ;;  %7832 = vmatprep.subr.bf16.mxu1 %v9746_v53 }
  0x3b   :  { %v6718_v38 = vld [vmem:[%s634_s27] ss:$0 sm:$0xff]  ;;  %674 = vrot.lane.b32.xlu1 %v6724_v37, %s9480_s29  ;;  %s9744_s27 = sld [smem:[#allocation8 + $0x5]]  ;;  %13510 = vst [vmem:[#allocation21_spill] sm:$0xff] %v9758_v57  ;;  %s9780_s19 = sld [smem:[#allocation8 + $0x6]]  ;;  %v9783_v0 = vpack.c.bf16 %v221_v62, %v205_v61  ;;  %v223_v2 = vld [vmem:[%s13046_s4 + $0x398] sm:$0xff] }
  0x3c   :  { %641 = vrot.lane.b32.xlu0 %v6718_v38, %s9480_s29  ;;  %v6727_v41 = vld [vmem:[%s683_s2] ss:$0 sm:$0xff]  ;;  %13511 = vst [vmem:[#allocation22_spill] sm:$0xff] %v9770_v60  ;;  %7818 = vmatpush1.bf16.msra.mxu0 %v9758_v57  ;;  %v9792_v3 = vpack.c.bf16 %v223_v2, %v207_v1  ;;  %v206_v6 = vld [vmem:[%s13046_s4 + $0x310] sm:$0xff]  ;;  %v113_v12 = vld [vmem:[%s13046_s4 + $0x28] sm:$0xff]  ;;  %vm9483_vm3 = vmmov 0  }
  0x3d   :  { %v6721_v42 = vld [vmem:[%s651_s20] ss:$0 sm:$0xff]  ;;  %s747_s20 = scalar_lea.vmem [#allocation2], %s9659_s18  ;;  %s9768_s18 = sld [smem:[#allocation8 + $0x7]]  ;;  %13512 = vst [vmem:[#allocation23_spill] sm:$0xff] %v9783_v0  ;;  %7834 = vmatpush1.bf16.msra.mxu1 %v9770_v60  ;;  %7820 = vmatprep.subr.bf16.mxu0 %v9783_v0  ;;  %v222_v9 = vld [vmem:[%s13046_s4 + $0x390] sm:$0xff] }
  0x3e   :  { %v6733_v45 = vld [vmem:[%s715_s15] ss:$0 sm:$0xff]  ;;  %13513 = vst [vmem:[#allocation24_spill] sm:$0xff] %v9792_v3  ;;  %v9814_v11 = vpack.c.bf16 %v222_v9, %v206_v6  ;;  %7836 = vmatprep.subr.bf16.mxu1 %v9792_v3  ;;  %v129_v14 = vld [vmem:[%s13046_s4 + $0xa8] sm:$0xff]  ;;  %v115_v15 = vld [vmem:[%s13046_s4 + $0x38] sm:$0xff]  ;;  %s6759_s30 = sld [smem:[#allocation5 + $0x2]] }
  0x3f   :  { %v665_v46 = vld [vmem:[%s664_s21] sm:$0x1]  ;;  %690 = vrot.lane.b32.xlu1 %v6727_v41, %s9480_s29  ;;  %s696_s12 = scalar_lea.vmem [#allocation2], %s9755_s3  ;;  %v9833_v18 = vpack.c.bf16 %v129_v14, %v113_v12  ;;  %v131_v20 = vld [vmem:[%s13046_s4 + $0xb8] sm:$0xff]  ;;  %v114_v40 = vld [vmem:[%s13046_s4 + $0x30] sm:$0xff]  ;;  %s12179_s26 = sld [smem:[#allocation8 + $0xa]] }
  0x40   :  { %658 = vrot.lane.b32.xlu0 %v6721_v42, %s9480_s29  ;;  %666 = vst.msk [vmem:[#allocation3 + $0x2] sm:$0x1] %vm91_vm0, %v665_v46  ;;  %v632_v47 = vld [vmem:[%s631_s24] sm:$0x1]  ;;  %s680_s24 = scalar_lea.vmem [#allocation2], %s9727_s16  ;;  %13515 = vst [vmem:[#allocation26_spill] sm:$0xff] %v9814_v11  ;;  %v9841_v23 = vpack.c.bf16 %v131_v20, %v115_v15 }
  0x41   :  { %v6730_v49 = vld [vmem:[%s699_s25] ss:$0 sm:$0xff]  ;;  %633 = vst.msk [vmem:[#allocation3] sm:$0x1] %vm91_vm0, %v632_v47  ;;  %s648_s25 = scalar_lea.vmem [#allocation2], %s9734_s13  ;;  %7838 = vmatpush1.bf16.msra.mxu1 %v9814_v11  ;;  %13516 = vst [vmem:[#allocation27_spill] sm:$0xff] %v9833_v18 }
  0x42   :  { %v6739_v56 = vld [vmem:[%s747_s20] ss:$0 sm:$0xff]  ;;  %13517 = vst [vmem:[#allocation28_spill] sm:$0xff] %v9841_v23  ;;  %s728_s3 = scalar_lea.vmem [#allocation2], %s9780_s19  ;;  %7856 = vmatprep.subr.bf16.mxu1 %v9841_v23  ;;  %v130_v41 = vld [vmem:[%s13046_s4 + $0xb0] sm:$0xff]  ;;  %v145_v42 = vld [vmem:[%s13046_s4 + $0x128] sm:$0xff] }
  0x43   :  { %722 = vrot.lane.b32.xlu1 %v6733_v45, %s9480_s29  ;;  %v6736_v63 = vld [vmem:[%s731_s1] ss:$0 sm:$0xff]  ;;  %s712_s1 = scalar_lea.vmem [#allocation2], %s9744_s27  ;;  %s744_s2 = scalar_lea.vmem [#allocation2], %s9768_s18  ;;  %v161_v44 = vld [vmem:[%s13046_s4 + $0x1a8] sm:$0xff]  ;;  %v147_v45 = vld [vmem:[%s13046_s4 + $0x138] sm:$0xff]  ;;  %v9882_v48 = vpack.c.bf16 %v130_v41, %v114_v40 }
  0x44   :  { %706 = vrot.lane.b32.xlu0 %v6730_v49, %s9480_s29  ;;  %v204_v4 = vld [vmem:[%s13046_s4 + $0x300] sm:$0xff]  ;;  %v163_v46 = vld [vmem:[%s13046_s4 + $0x1b8] sm:$0xff]  ;;  %v146_v52 = vld [vmem:[%s13046_s4 + $0x130] sm:$0xff]  ;;  %v9893_v54 = vpack.c.bf16 %v161_v44, %v145_v42  ;;  %s2553_s13 = sld [smem:[#allocation5]]  ;;  %s12177_s27 = sld [smem:[#allocation5 + $0x5]]  ;;  %vm2558_vm4 = vcmask 254977  }
  0x45   :  { %v220_v5 = vld [vmem:[%s13046_s4 + $0x380] sm:$0xff]  ;;  %v9895_v55 = vpack.c.bf16 %v163_v46, %v147_v45  ;;  %v177_v58 = vld [vmem:[%s13046_s4 + $0x228] sm:$0xff]  ;;  %v179_v62 = vld [vmem:[%s13046_s4 + $0x238] sm:$0xff]  ;;  %s12185_s18 = sld [smem:[#allocation5 + $0x7]]  ;;  %s12187_s19 = sld [smem:[#allocation8 + $0xb]]  ;;  %vm2562_vm5 = vcmask 256002  }
  0x46   :  { %v681_v7 = vld [vmem:[%s680_s24] sm:$0x1]  ;;  %v9805_v8 = vpack.c.bf16 %v220_v5, %v204_v4  ;;  %v193_v59 = vld [vmem:[%s13046_s4 + $0x2a8] sm:$0xff]  ;;  %v178_v9 = vld [vmem:[%s13046_s4 + $0x230] sm:$0xff]  ;;  %s12189_s20 = sld [smem:[#allocation8 + $0x9]]  ;;  %s12191_s14 = sld [smem:[#allocation8 + $0xd]] }
  0x47   :  { %754 = vrot.lane.b32.xlu1 %v6739_v56, %s9480_s29  ;;  %682 = vst.msk [vmem:[#allocation3 + $0x3] sm:$0x1] %vm91_vm0, %v681_v7  ;;  %v649_v10 = vld [vmem:[%s648_s25] sm:$0x1]  ;;  %v162_v56 = vld [vmem:[%s13046_s4 + $0x1b0] sm:$0xff]  ;;  %v9932_v6 = vpack.c.bf16 %v193_v59, %v177_v58  ;;  %v209_v12 = vld [vmem:[%s13046_s4 + $0x328] sm:$0xff] }
  0x48   :  { %13514 = vst [vmem:[#allocation25_spill] sm:$0xff] %v9805_v8  ;;  %738 = vrot.lane.b32.xlu0 %v6736_v63, %s9480_s29  ;;  %650 = vst.msk [vmem:[#allocation3 + $0x1] sm:$0x1] %vm91_vm0, %v649_v10  ;;  %v713_v13 = vld [vmem:[%s712_s1] sm:$0x1]  ;;  %7822 = vmatpush1.bf16.msra.mxu0 %v9805_v8  ;;  %v195_v63 = vld [vmem:[%s13046_s4 + $0x2b8] sm:$0xff]  ;;  %v9922_v2 = vpack.c.bf16 %v162_v56, %v146_v52 }
  0x49   :  { %714 = vst.msk [vmem:[#allocation3 + $0x5] sm:$0x1] %vm91_vm0, %v713_v13  ;;  %v697_v16 = vld [vmem:[%s696_s12] sm:$0x1]  ;;  %7840 = vmatprep.subr.bf16.mxu0 %v9833_v18  ;;  %13518 = vst [vmem:[#allocation29_spill] sm:$0xff] %v9932_v6  ;;  %v9934_v7 = vpack.c.bf16 %v195_v63, %v179_v62  ;;  %v194_v10 = vld [vmem:[%s13046_s4 + $0x2b0] sm:$0xff] }
  0x4a   :  { %698 = vst.msk [vmem:[#allocation3 + $0x4] sm:$0x1] %vm91_vm0, %v697_v16  ;;  %v745_v21 = vld [vmem:[%s744_s2] sm:$0x1]  ;;  %v225_v13 = vld [vmem:[%s13046_s4 + $0x3a8] sm:$0xff]  ;;  %v211_v14 = vld [vmem:[%s13046_s4 + $0x338] sm:$0xff]  ;;  %v9960_v20 = vpack.c.bf16 %v194_v10, %v178_v9 }
  0x4b   :  { %746 = vst.msk [vmem:[#allocation3 + $0x7] sm:$0x1] %vm91_vm0, %v745_v21  ;;  %v729_v24 = vld [vmem:[%s728_s3] sm:$0x1]  ;;  %13519 = vst [vmem:[#allocation30_spill] sm:$0xff] %v9934_v7  ;;  %v227_v15 = vld [vmem:[%s13046_s4 + $0x3b8] sm:$0xff] }
  0x4c   :  { %730 = vst.msk [vmem:[#allocation3 + $0x6] sm:$0x1] %vm91_vm0, %v729_v24  ;;  %v112_v37 = vld [vmem:[%s13046_s4 + $0x20] sm:$0xff]  ;;  %13521 = vst [vmem:[#allocation32_spill] sm:$0xff] %v9960_v20  ;;  %v118_v45 = vld [vmem:[%s13046_s4 + $0x50] sm:$0xff]  ;;  %s12175_s12 = sld [smem:[#allocation5 + $0x4]] }
  0x4d   :  { %v128_v38 = vld [vmem:[%s13046_s4 + $0xa0] sm:$0xff]  ;;  %v134_v46 = vld [vmem:[%s13046_s4 + $0xd0] sm:$0xff]  ;;  %v151_v52 = vld [vmem:[%s13046_s4 + $0x158] sm:$0xff]  ;;  %s12181_s2 = sld [smem:[#allocation5 + $0x6]]  ;;  %s12183_s3 = sld [smem:[#allocation8 + $0x8]]  ;;  %vm2566_vm6 = vcmask 257027  }
  0x4e   :  { %v9880_v47 = vpack.c.bf16 %v128_v38, %v112_v37  ;;  %v144_v49 = vld [vmem:[%s13046_s4 + $0x120] sm:$0xff]  ;;  %v167_v56 = vld [vmem:[%s13046_s4 + $0x1d8] sm:$0xff]  ;;  %v10032_v59 = vpack.c.bf16 %v134_v46, %v118_v45  ;;  %v150_v9 = vld [vmem:[%s13046_s4 + $0x150] sm:$0xff]  ;;  %s12193_s15 = sld [smem:[#allocation8 + $0xc]]  ;;  %s2554_s21 = scalar_lea.vmem [#allocation2], %s2553_s13  ;;  %vm2570_vm7 = vcmask 258052  }
  0x4f   :  { %v160_v51 = vld [vmem:[%s13046_s4 + $0x1a0] sm:$0xff]  ;;  %v166_v10 = vld [vmem:[%s13046_s4 + $0x1d0] sm:$0xff]  ;;  %v215_v45 = vld [vmem:[%s13046_s4 + $0x358] sm:$0xff]  ;;  %s12196_s24 = sld [smem:[#allocation8 + $0xf]]  ;;  %s12199_s22 = sld [smem:[#allocation8 + $0xe]]  ;;  %vm2574_vm8 = vcmask 259077  }
  0x50   :  { %v9920_v1 = vpack.c.bf16 %v160_v51, %v144_v49  ;;  %v176_v4 = vld [vmem:[%s13046_s4 + $0x220] sm:$0xff]  ;;  %v149_v49 = vld [vmem:[%s13046_s4 + $0x148] sm:$0xff]  ;;  %13529 = vst [vmem:[#allocation40_spill] sm:$0xff] %v10032_v59  ;;  %v231_v46 = vld [vmem:[%s13046_s4 + $0x3d8] sm:$0xff]  ;;  %s2561_s25 = scalar_lea.vmem [#allocation2], %s6759_s30  ;;  %vm2578_vm9 = vcmask 260102  }
  0x51   :  { %v192_v5 = vld [vmem:[%s13046_s4 + $0x2a0] sm:$0xff]  ;;  %v165_v51 = vld [vmem:[%s13046_s4 + $0x1c8] sm:$0xff]  ;;  %s6769_s23 = sld [smem:[#allocation10 + $0x9]]  ;;  %vm2582_vm10 = vcmask 261127   ;;  %s2573_s0 = scalar_lea.vmem [#allocation2], %s12177_s27  ;;  %vm6524_vm11 = vcmask 261120  }
  0x52   :  { %v9958_v16 = vpack.c.bf16 %v192_v5, %v176_v4  ;;  %v208_v21 = vld [vmem:[%s13046_s4 + $0x320] sm:$0xff]  ;;  %v10042_v4 = vpack.c.bf16 %v165_v51, %v149_v49  ;;  %v10044_v5 = vpack.c.bf16 %v167_v56, %v151_v52  ;;  %s2569_s1 = scalar_lea.vmem [#allocation2], %s12175_s12  ;;  %s12207_s28 = sld [smem:[#allocation10 + $0x8]] }
  0x53   :  { %v224_v24 = vld [vmem:[%s13046_s4 + $0x3a0] sm:$0xff]  ;;  %s2581_s13 = scalar_lea.vmem [#allocation2], %s12185_s18  ;;  %s12217_s30 = sld [smem:[#allocation10 + $0xd]] }
  0x54   :  { %13520 = vst [vmem:[#allocation31_spill] sm:$0xff] %v9958_v16  ;;  %v9994_v37 = vpack.c.bf16 %v224_v24, %v208_v21  ;;  %v116_v40 = vld [vmem:[%s13046_s4 + $0x40] sm:$0xff]  ;;  %13530 = vst [vmem:[#allocation41_spill] sm:$0xff] %v10042_v4  ;;  %v10072_v24 = vpack.c.bf16 %v166_v10, %v150_v9  ;;  %v214_v9 = vld [vmem:[%s13046_s4 + $0x350] sm:$0xff]  ;;  %s12221_s12 = sld [smem:[#allocation10 + $0xf]]  ;;  %s2618_s18 = scalar_lea.vmem [#allocation2], %s12179_s26 }
  0x55   :  { %v132_v41 = vld [vmem:[%s13046_s4 + $0xc0] sm:$0xff]  ;;  %13531 = vst [vmem:[#allocation42_spill] sm:$0xff] %v10044_v5  ;;  %v230_v10 = vld [vmem:[%s13046_s4 + $0x3d0] sm:$0xff] }
  0x56   :  { %13524 = vst [vmem:[#allocation35_spill] sm:$0xff] %v9994_v37  ;;  %v10030_v58 = vpack.c.bf16 %v132_v41, %v116_v40  ;;  %v148_v62 = vld [vmem:[%s13046_s4 + $0x140] sm:$0xff]  ;;  %13533 = vst [vmem:[#allocation44_spill] sm:$0xff] %v10072_v24  ;;  %v213_v40 = vld [vmem:[%s13046_s4 + $0x348] sm:$0xff] }
  0x57   :  { %v164_v63 = vld [vmem:[%s13046_s4 + $0x1c0] sm:$0xff]  ;;  %v229_v41 = vld [vmem:[%s13046_s4 + $0x3c8] sm:$0xff]  ;;  %s2605_s27 = scalar_lea.vmem [#allocation2], %s6769_s23 }
  0x58   :  { %13528 = vst [vmem:[#allocation39_spill] sm:$0xff] %v10030_v58  ;;  %v10070_v21 = vpack.c.bf16 %v164_v63, %v148_v62  ;;  %v212_v52 = vld [vmem:[%s13046_s4 + $0x340] sm:$0xff]  ;;  %v10120_v62 = vpack.c.bf16 %v229_v41, %v213_v40  ;;  %v10122_v63 = vpack.c.bf16 %v231_v46, %v215_v45  ;;  %v122_v45 = vld [vmem:[%s13046_s4 + $0x70] sm:$0xff]  ;;  %s2589_s26 = scalar_lea.vmem [#allocation2], %s12207_s28 }
  0x59   :  { %v228_v56 = vld [vmem:[%s13046_s4 + $0x3c0] sm:$0xff]  ;;  %v138_v46 = vld [vmem:[%s13046_s4 + $0xf0] sm:$0xff] }
  0x5a   :  { %13532 = vst [vmem:[#allocation43_spill] sm:$0xff] %v10070_v21  ;;  %13538 = vst [vmem:[#allocation49_spill] sm:$0xff] %v10120_v62  ;;  %s2701_s23 = scalar_lea.vmem [#allocation2], %s12221_s12  ;;  %s12606_s12 = sld [smem:[#allocation8 + $0x11]] }
  0x5b   :  { %13539 = vst [vmem:[#allocation50_spill] sm:$0xff] %v10122_v63 }
  0xad   :  { %v675_v26 = vpop.permute.xlu1 %674 }
  0xae   :  { %v642_v27 = vpop.permute.xlu0 %641  ;;  %677 = vst.msk [vmem:[#allocation3 + $0x2] sm:$0x1] %vm644_vm1, %v675_v26  ;;  %v9970_v26 = vpack.c.bf16 %v225_v13, %v209_v12  ;;  %v181_v12 = vld [vmem:[%s13046_s4 + $0x248] sm:$0xff] }
  0xaf   :  { %645 = vst.msk [vmem:[#allocation3] sm:$0x1] %vm644_vm1, %v642_v27  ;;  %v9972_v27 = vpack.c.bf16 %v227_v15, %v211_v14  ;;  %v197_v13 = vld [vmem:[%s13046_s4 + $0x2c8] sm:$0xff]  ;;  %v183_v14 = vld [vmem:[%s13046_s4 + $0x258] sm:$0xff] }
  0xb0   :  { %13522 = vst [vmem:[#allocation33_spill] sm:$0xff] %v9970_v26  ;;  %v199_v15 = vld [vmem:[%s13046_s4 + $0x2d8] sm:$0xff] }
  0xb1   :  { %v691_v29 = vpop.permute.xlu1 %690  ;;  %13523 = vst [vmem:[#allocation34_spill] sm:$0xff] %v9972_v27 }
  0xb2   :  { %v659_v30 = vpop.permute.xlu0 %658  ;;  %693 = vst.msk [vmem:[#allocation3 + $0x3] sm:$0x1] %vm644_vm1, %v691_v29  ;;  %v210_v29 = vld [vmem:[%s13046_s4 + $0x330] sm:$0xff] }
  0xb3   :  { %661 = vst.msk [vmem:[#allocation3 + $0x1] sm:$0x1] %vm644_vm1, %v659_v30  ;;  %v226_v30 = vld [vmem:[%s13046_s4 + $0x3b0] sm:$0xff] }
  0xb4   :  { %v9996_v38 = vpack.c.bf16 %v226_v30, %v210_v29  ;;  %v180_v29 = vld [vmem:[%s13046_s4 + $0x240] sm:$0xff] }
  0xb5   :  { %v723_v31 = vpop.permute.xlu1 %722  ;;  %v196_v30 = vld [vmem:[%s13046_s4 + $0x2c0] sm:$0xff] }
  0xb6   :  { %v707_v34 = vpop.permute.xlu0 %706  ;;  %725 = vst.msk [vmem:[#allocation3 + $0x5] sm:$0x1] %vm644_vm1, %v723_v31  ;;  %v117_v31 = vld [vmem:[%s13046_s4 + $0x48] sm:$0xff]  ;;  %13525 = vst [vmem:[#allocation36_spill] sm:$0xff] %v9996_v38  ;;  %v10108_v49 = vpack.c.bf16 %v196_v30, %v180_v29  ;;  %v10144_v29 = vpack.c.bf16 %v228_v56, %v212_v52  ;;  %v10146_v30 = vpack.c.bf16 %v230_v10, %v214_v9  ;;  %v155_v9 = vld [vmem:[%s13046_s4 + $0x178] sm:$0xff] }
  0xb7   :  { %709 = vst.msk [vmem:[#allocation3 + $0x4] sm:$0x1] %vm644_vm1, %v707_v34  ;;  %v133_v34 = vld [vmem:[%s13046_s4 + $0xc8] sm:$0xff]  ;;  %v171_v10 = vld [vmem:[%s13046_s4 + $0x1f8] sm:$0xff] }
  0xb8   :  { %v10006_v42 = vpack.c.bf16 %v133_v34, %v117_v31  ;;  %v10082_v31 = vpack.c.bf16 %v197_v13, %v181_v12  ;;  %v10084_v34 = vpack.c.bf16 %v199_v15, %v183_v14  ;;  %13536 = vst [vmem:[#allocation47_spill] sm:$0xff] %v10108_v49  ;;  %v121_v12 = vld [vmem:[%s13046_s4 + $0x68] sm:$0xff]  ;;  %v123_v14 = vld [vmem:[%s13046_s4 + $0x78] sm:$0xff]  ;;  %13540 = vst [vmem:[#allocation51_spill] sm:$0xff] %v10144_v29 }
  0xb9   :  { %v755_v35 = vpop.permute.xlu1 %754  ;;  %v137_v13 = vld [vmem:[%s13046_s4 + $0xe8] sm:$0xff]  ;;  %v139_v15 = vld [vmem:[%s13046_s4 + $0xf8] sm:$0xff]  ;;  %13541 = vst [vmem:[#allocation52_spill] sm:$0xff] %v10146_v30 }
  0xba   :  { %v739_v36 = vpop.permute.xlu0 %738  ;;  %757 = vst.msk [vmem:[#allocation3 + $0x7] sm:$0x1] %vm644_vm1, %v755_v35  ;;  %v119_v35 = vld [vmem:[%s13046_s4 + $0x58] sm:$0xff]  ;;  %13526 = vst [vmem:[#allocation37_spill] sm:$0xff] %v10006_v42  ;;  %v10156_v40 = vpack.c.bf16 %v137_v13, %v121_v12  ;;  %v10158_v41 = vpack.c.bf16 %v139_v15, %v123_v14  ;;  %v153_v52 = vld [vmem:[%s13046_s4 + $0x168] sm:$0xff]  ;;  %v10182_v13 = vpack.c.bf16 %v138_v46, %v122_v45 }
  0xbb   :  { %741 = vst.msk [vmem:[#allocation3 + $0x6] sm:$0x1] %vm644_vm1, %v739_v36  ;;  %v135_v36 = vld [vmem:[%s13046_s4 + $0xd8] sm:$0xff]  ;;  %13534 = vst [vmem:[#allocation45_spill] sm:$0xff] %v10082_v31  ;;  %v169_v56 = vld [vmem:[%s13046_s4 + $0x1e8] sm:$0xff] }
  0xbc   :  { %v10008_v44 = vpack.c.bf16 %v135_v36, %v119_v35  ;;  %13535 = vst [vmem:[#allocation46_spill] sm:$0xff] %v10084_v34  ;;  %v182_v35 = vld [vmem:[%s13046_s4 + $0x250] sm:$0xff]  ;;  %13542 = vst [vmem:[#allocation53_spill] sm:$0xff] %v10156_v40  ;;  %v152_v14 = vld [vmem:[%s13046_s4 + $0x160] sm:$0xff] }
  0xbd   :  { %v198_v36 = vld [vmem:[%s13046_s4 + $0x2d0] sm:$0xff]  ;;  %13543 = vst [vmem:[#allocation54_spill] sm:$0xff] %v10158_v41  ;;  %13545 = vst [vmem:[#allocation56_spill] sm:$0xff] %v10182_v13  ;;  %v168_v15 = vld [vmem:[%s13046_s4 + $0x1e0] sm:$0xff] }
  0xbe   :  { %13527 = vst [vmem:[#allocation38_spill] sm:$0xff] %v10008_v44  ;;  %v10110_v51 = vpack.c.bf16 %v198_v36, %v182_v35  ;;  %v120_v35 = vld [vmem:[%s13046_s4 + $0x60] sm:$0xff]  ;;  %v185_v45 = vld [vmem:[%s13046_s4 + $0x268] sm:$0xff] }
  0xbf   :  { %v136_v36 = vld [vmem:[%s13046_s4 + $0xe0] sm:$0xff]  ;;  %v201_v46 = vld [vmem:[%s13046_s4 + $0x2e8] sm:$0xff] }
  0xc0   :  { %13537 = vst [vmem:[#allocation48_spill] sm:$0xff] %v10110_v51  ;;  %v10180_v12 = vpack.c.bf16 %v136_v36, %v120_v35  ;;  %v154_v35 = vld [vmem:[%s13046_s4 + $0x170] sm:$0xff] }
  0xc1   :  { %v170_v36 = vld [vmem:[%s13046_s4 + $0x1f0] sm:$0xff] }
  0xc2   :  { %v9906_v61 = vld [vmem:[#allocation3] sm:$0xff]  ;;  %13544 = vst [vmem:[#allocation55_spill] sm:$0xff] %v10180_v12 }
  0xc3   :  { %6740 = vmatmul.mubr.msk.f32.vlgmr.msra.gmra.mrb[0].mxu0 %vm759_vm2, %v9906_v61  ;;  %6741 = vmatmul.mubr.msk.f32.vlgmr.msra.gmra.mrb[0].mxu1 %vm759_vm2, %v9906_v61 }
  0xc4   :  { %7842 = vmatpush1.bf16.msra.mxu0 %v9880_v47  ;;  %7858 = vmatpush1.bf16.msra.mxu1 %v9882_v48 }
  0xc5   :  { %7844 = vmatprep.subr.bf16.mxu0 %v9893_v54  ;;  %7860 = vmatprep.subr.bf16.mxu1 %v9895_v55 }
  0xc6   :  { %969 = vmatprep.mubr.f32.mxu0 %v13054_v17  ;;  %1040 = vmatprep.mubr.f32.mxu1 %v13054_v17 }
  0xc8   :  { %7846 = vmatpush1.bf16.msra.mxu0 %v9920_v1  ;;  %7862 = vmatpush1.bf16.msra.mxu1 %v9922_v2 }
  0xc9   :  { %7848 = vmatprep.subr.bf16.mxu0 %v9932_v6  ;;  %7864 = vmatprep.subr.bf16.mxu1 %v9934_v7 }
  0xcc   :  { %7850 = vmatpush1.bf16.msra.mxu0 %v9958_v16  ;;  %7866 = vmatpush1.bf16.msra.mxu1 %v9960_v20  ;;  %v431_v20 = vld [vmem:[%s13048_s6 + $0x218] sm:$0xff] }
  0xcd   :  { %7852 = vmatprep.subr.bf16.mxu0 %v9970_v26  ;;  %7868 = vmatprep.subr.bf16.mxu1 %v9972_v27  ;;  %v430_v26 = vld [vmem:[%s13048_s6 + $0x210] sm:$0xff] }
  0xd0   :  { %7854 = vmatpush1.bf16.msra.mxu0 %v9994_v37  ;;  %7870 = vmatpush1.bf16.msra.mxu1 %v9996_v38 }
  0xd1   :  { %7872 = vmatprep.subr.bf16.mxu0 %v10006_v42  ;;  %7888 = vmatprep.subr.bf16.mxu1 %v10008_v44 }
  0xd3   :  { %6742 = vmatmul.mubr.msk.f32.vlgmr.msra.gmra.mrb[2].mxu0 %vm759_vm2, %v9906_v61  ;;  %6743 = vmatmul.mubr.msk.f32.vlgmr.msra.gmra.mrb[2].mxu1 %vm759_vm2, %v9906_v61 }
  0xd4   :  { %7874 = vmatpush1.bf16.msra.mxu0 %v10030_v58  ;;  %7890 = vmatpush1.bf16.msra.mxu1 %v10032_v59 }
  0xd5   :  { %7876 = vmatprep.subr.bf16.mxu0 %v10042_v4  ;;  %7892 = vmatprep.subr.bf16.mxu1 %v10044_v5  ;;  %v479_v5 = vld [vmem:[%s13048_s6 + $0x398] sm:$0xff] }
  0xd6   :  { %1111 = vmatprep.mubr.f32.mxu0 %v13054_v17  ;;  %1182 = vmatprep.mubr.f32.mxu1 %v13054_v17  ;;  %v10192_v17 = vpack.c.bf16 %v169_v56, %v153_v52  ;;  %v187_v52 = vld [vmem:[%s13046_s4 + $0x278] sm:$0xff] }
  0xd7   :  { %v203_v56 = vld [vmem:[%s13046_s4 + $0x2f8] sm:$0xff] }
  0xd8   :  { %7878 = vmatpush1.bf16.msra.mxu0 %v10070_v21  ;;  %7894 = vmatpush1.bf16.msra.mxu1 %v10072_v24  ;;  %13546 = vst [vmem:[#allocation57_spill] sm:$0xff] %v10192_v17  ;;  %v447_v24 = vld [vmem:[%s13048_s6 + $0x298] sm:$0xff]  ;;  %v478_v21 = vld [vmem:[%s13048_s6 + $0x390] sm:$0xff] }
  0xd9   :  { %7880 = vmatprep.subr.bf16.mxu0 %v10082_v31  ;;  %7896 = vmatprep.subr.bf16.mxu1 %v10084_v34 }
  0xdc   :  { %7882 = vmatpush1.bf16.msra.mxu0 %v10108_v49  ;;  %7898 = vmatpush1.bf16.msra.mxu1 %v10110_v51  ;;  %v461_v51 = vld [vmem:[%s13048_s6 + $0x308] sm:$0xff]  ;;  %v446_v49 = vld [vmem:[%s13048_s6 + $0x290] sm:$0xff] }
  0xdd   :  { %7884 = vmatprep.subr.bf16.mxu0 %v10120_v62  ;;  %7900 = vmatprep.subr.bf16.mxu1 %v10122_v63  ;;  %v460_v62 = vld [vmem:[%s13048_s6 + $0x300] sm:$0xff]  ;;  %v11301_v16 = vpack.c.bf16 %v447_v24, %v446_v49  ;;  %v449_v24 = vld [vmem:[%s13048_s6 + $0x2a8] sm:$0xff] }
  0xde   :  { %v11293_v27 = vpack.c.bf16 %v461_v51, %v460_v62  ;;  %v432_v49 = vld [vmem:[%s13048_s6 + $0x220] sm:$0xff]  ;;  %v433_v51 = vld [vmem:[%s13048_s6 + $0x228] sm:$0xff]  ;;  %v450_v62 = vld [vmem:[%s13048_s6 + $0x2b0] sm:$0xff] }
  0xe0   :  { %7886 = vmatpush1.bf16.msra.mxu0 %v10144_v29  ;;  %7902 = vmatpush1.bf16.msra.mxu1 %v10146_v30  ;;  %v10194_v29 = vpack.c.bf16 %v171_v10, %v155_v9  ;;  %v10220_v9 = vpack.c.bf16 %v168_v15, %v152_v14  ;;  %v10222_v10 = vpack.c.bf16 %v170_v36, %v154_v35  ;;  %v186_v14 = vld [vmem:[%s13046_s4 + $0x270] sm:$0xff]  ;;  %v217_v35 = vld [vmem:[%s13046_s4 + $0x368] sm:$0xff] }
  0xe1   :  { %7904 = vmatprep.subr.bf16.mxu0 %v10156_v40  ;;  %7920 = vmatprep.subr.bf16.mxu1 %v10158_v41  ;;  %v184_v41 = vld [vmem:[%s13046_s4 + $0x260] sm:$0xff]  ;;  %v10232_v30 = vpack.c.bf16 %v201_v46, %v185_v45  ;;  %v202_v15 = vld [vmem:[%s13046_s4 + $0x2f0] sm:$0xff]  ;;  %v233_v36 = vld [vmem:[%s13046_s4 + $0x3e8] sm:$0xff] }
  0xe2   :  { %13547 = vst [vmem:[#allocation58_spill] sm:$0xff] %v10194_v29  ;;  %13548 = vst [vmem:[#allocation59_spill] sm:$0xff] %v10220_v9  ;;  %v200_v40 = vld [vmem:[%s13046_s4 + $0x2e0] sm:$0xff]  ;;  %v219_v45 = vld [vmem:[%s13046_s4 + $0x378] sm:$0xff]  ;;  %v10270_v63 = vpack.c.bf16 %v233_v36, %v217_v35 }
  0xe3   :  { %6744 = vmatmul.mubr.msk.f32.vlgmr.msra.gmra.mrb[4].mxu0 %vm759_vm2, %v9906_v61  ;;  %6745 = vmatmul.mubr.msk.f32.vlgmr.msra.gmra.mrb[4].mxu1 %vm759_vm2, %v9906_v61  ;;  %13549 = vst [vmem:[#allocation60_spill] sm:$0xff] %v10222_v10  ;;  %13550 = vst [vmem:[#allocation61_spill] sm:$0xff] %v10232_v30  ;;  %v235_v46 = vld [vmem:[%s13046_s4 + $0x3f8] sm:$0xff] }
  0xe4   :  { %7906 = vmatpush1.bf16.msra.mxu0 %v10180_v12  ;;  %7922 = vmatpush1.bf16.msra.mxu1 %v10182_v13  ;;  %v10234_v12 = vpack.c.bf16 %v203_v56, %v187_v52  ;;  %v13552_v52 = vmov 0.0   ;;  %v10258_v56 = vpack.c.bf16 %v200_v40, %v184_v41  ;;  %v232_v13 = vld [vmem:[%s13046_s4 + $0x3e0] sm:$0xff]  ;;  %13555 = vst [vmem:[#allocation65_spill] sm:$0xff] %v10270_v63  ;;  %v218_v40 = vld [vmem:[%s13046_s4 + $0x370] sm:$0xff]  ;;  %v239_v35 = vld [vmem:[%s13047_s5 + $0x18] sm:$0xff] }
  0xe5   :  { %7908 = vmatprep.subr.bf16.mxu0 %v10192_v17  ;;  %7924 = vmatprep.subr.bf16.mxu1 %v10194_v29  ;;  %v10260_v29 = vpack.c.bf16 %v202_v15, %v186_v14  ;;  %v216_v17 = vld [vmem:[%s13046_s4 + $0x360] sm:$0xff]  ;;  %v234_v41 = vld [vmem:[%s13046_s4 + $0x3f0] sm:$0xff]  ;;  %v237_v14 = vld [vmem:[%s13047_s5 + $0x8] sm:$0xff]  ;;  %s6758_s4 = sld [smem:[#allocation5 + $0x1]] }
  0xe6   :  { %13551 = vst [vmem:[#allocation62_spill] sm:$0xff] %v10234_v12  ;;  %1253 = vmatprep.mubr.f32.mxu0 %v13552_v52  ;;  %1324 = vmatprep.mubr.f32.mxu1 %v13552_v52  ;;  %13553 = vst [vmem:[#allocation63_spill] sm:$0xff] %v10258_v56  ;;  %v253_v15 = vld [vmem:[%s13047_s5 + $0x88] sm:$0xff]  ;;  %v255_v36 = vld [vmem:[%s13047_s5 + $0x98] sm:$0xff] }
  0xe7   :  { %13554 = vst [vmem:[#allocation64_spill] sm:$0xff] %v10260_v29 }
  0xe8   :  { %7910 = vmatpush1.bf16.msra.mxu0 %v10220_v9  ;;  %7926 = vmatpush1.bf16.msra.mxu1 %v10222_v10  ;;  %v10272_v9 = vpack.c.bf16 %v235_v46, %v219_v45  ;;  %v10294_v45 = vpack.c.bf16 %v232_v13, %v216_v17  ;;  %v10296_v46 = vpack.c.bf16 %v234_v41, %v218_v40  ;;  %v238_v17 = vld [vmem:[%s13047_s5 + $0x10] sm:$0xff]  ;;  %v269_v40 = vld [vmem:[%s13047_s5 + $0x108] sm:$0xff] }
  0xe9   :  { %7912 = vmatprep.subr.bf16.mxu0 %v10232_v30  ;;  %7928 = vmatprep.subr.bf16.mxu1 %v10234_v12  ;;  %v236_v12 = vld [vmem:[%s13047_s5] sm:$0xff]  ;;  %v10306_v10 = vpack.c.bf16 %v253_v15, %v237_v14  ;;  %v254_v13 = vld [vmem:[%s13047_s5 + $0x90] sm:$0xff]  ;;  %v285_v41 = vld [vmem:[%s13047_s5 + $0x188] sm:$0xff] }
  0xea   :  { %13556 = vst [vmem:[#allocation66_spill] sm:$0xff] %v10272_v9  ;;  %13557 = vst [vmem:[#allocation67_spill] sm:$0xff] %v10294_v45  ;;  %v252_v30 = vld [vmem:[%s13047_s5 + $0x80] sm:$0xff]  ;;  %v271_v14 = vld [vmem:[%s13047_s5 + $0x118] sm:$0xff] }
  0xeb   :  { %13558 = vst [vmem:[#allocation68_spill] sm:$0xff] %v10296_v46  ;;  %13559 = vst [vmem:[#allocation69_spill] sm:$0xff] %v10306_v10  ;;  %v287_v15 = vld [vmem:[%s13047_s5 + $0x198] sm:$0xff]  ;;  %s2557_s17 = scalar_lea.vmem [#allocation2], %s6758_s4  ;;  %s12215_s4 = sld [smem:[#allocation10 + $0xa]] }
  0xec   :  { %7914 = vmatpush1.bf16.msra.mxu0 %v10258_v56  ;;  %7930 = vmatpush1.bf16.msra.mxu1 %v10260_v29  ;;  %v10308_v56 = vpack.c.bf16 %v255_v36, %v239_v35  ;;  %v10330_v35 = vpack.c.bf16 %v252_v30, %v236_v12  ;;  %v10332_v36 = vpack.c.bf16 %v254_v13, %v238_v17  ;;  %v270_v30 = vld [vmem:[%s13047_s5 + $0x110] sm:$0xff]  ;;  %v301_v17 = vld [vmem:[%s13047_s5 + $0x208] sm:$0xff] }
  0xed   :  { %7916 = vmatprep.subr.bf16.mxu0 %v10270_v63  ;;  %7932 = vmatprep.subr.bf16.mxu1 %v10272_v9  ;;  %v268_v9 = vld [vmem:[%s13047_s5 + $0x100] sm:$0xff]  ;;  %v10342_v29 = vpack.c.bf16 %v285_v41, %v269_v40  ;;  %v286_v12 = vld [vmem:[%s13047_s5 + $0x190] sm:$0xff]  ;;  %v317_v13 = vld [vmem:[%s13047_s5 + $0x288] sm:$0xff] }
  0xee   :  { %13560 = vst [vmem:[#allocation70_spill] sm:$0xff] %v10308_v56  ;;  %13561 = vst [vmem:[#allocation71_spill] sm:$0xff] %v10330_v35  ;;  %v284_v63 = vld [vmem:[%s13047_s5 + $0x180] sm:$0xff]  ;;  %v303_v40 = vld [vmem:[%s13047_s5 + $0x218] sm:$0xff] }
  0xef   :  { %13562 = vst [vmem:[#allocation72_spill] sm:$0xff] %v10332_v36  ;;  %13563 = vst [vmem:[#allocation73_spill] sm:$0xff] %v10342_v29  ;;  %v319_v41 = vld [vmem:[%s13047_s5 + $0x298] sm:$0xff] }
  0xf0   :  { %7918 = vmatpush1.bf16.msra.mxu0 %v10294_v45  ;;  %7934 = vmatpush1.bf16.msra.mxu1 %v10296_v46  ;;  %v10344_v45 = vpack.c.bf16 %v287_v15, %v271_v14  ;;  %v10370_v14 = vpack.c.bf16 %v284_v63, %v268_v9  ;;  %v10372_v15 = vpack.c.bf16 %v286_v12, %v270_v30  ;;  %v302_v63 = vld [vmem:[%s13047_s5 + $0x210] sm:$0xff]  ;;  %v333_v30 = vld [vmem:[%s13047_s5 + $0x308] sm:$0xff] }
  0xf1   :  { %7936 = vmatprep.subr.bf16.mxu0 %v10306_v10  ;;  %7952 = vmatprep.subr.bf16.mxu1 %v10308_v56  ;;  %v300_v56 = vld [vmem:[%s13047_s5 + $0x200] sm:$0xff]  ;;  %v10382_v46 = vpack.c.bf16 %v317_v13, %v301_v17  ;;  %v318_v9 = vld [vmem:[%s13047_s5 + $0x290] sm:$0xff]  ;;  %v349_v12 = vld [vmem:[%s13047_s5 + $0x388] sm:$0xff] }
  0xf2   :  { %13564 = vst [vmem:[#allocation74_spill] sm:$0xff] %v10344_v45  ;;  %13565 = vst [vmem:[#allocation75_spill] sm:$0xff] %v10370_v14  ;;  %v316_v10 = vld [vmem:[%s13047_s5 + $0x280] sm:$0xff]  ;;  %v335_v17 = vld [vmem:[%s13047_s5 + $0x318] sm:$0xff] }
  0xf3   :  { %6746 = vmatmul.mubr.msk.f32.vlgmr.msra.gmra.mrb[6].mxu0 %vm759_vm2, %v9906_v61  ;;  %6747 = vmatmul.mubr.msk.f32.vlgmr.msra.gmra.mrb[6].mxu1 %vm759_vm2, %v9906_v61  ;;  %13566 = vst [vmem:[#allocation76_spill] sm:$0xff] %v10372_v15  ;;  %13567 = vst [vmem:[#allocation77_spill] sm:$0xff] %v10382_v46  ;;  %v351_v13 = vld [vmem:[%s13047_s5 + $0x398] sm:$0xff] }
  0xf4   :  { %7938 = vmatpush1.bf16.msra.mxu0 %v10330_v35  ;;  %7954 = vmatpush1.bf16.msra.mxu1 %v10332_v36  ;;  %v10384_v35 = vpack.c.bf16 %v319_v41, %v303_v40  ;;  %v10408_v40 = vpack.c.bf16 %v316_v10, %v300_v56  ;;  %v10410_v41 = vpack.c.bf16 %v318_v9, %v302_v63  ;;  %v334_v10 = vld [vmem:[%s13047_s5 + $0x310] sm:$0xff]  ;;  %v241_v63 = vld [vmem:[%s13047_s5 + $0x28] sm:$0xff] }
  0xf5   :  { %7940 = vmatprep.subr.bf16.mxu0 %v10342_v29  ;;  %7956 = vmatprep.subr.bf16.mxu1 %v10344_v45  ;;  %v332_v45 = vld [vmem:[%s13047_s5 + $0x300] sm:$0xff]  ;;  %v10420_v36 = vpack.c.bf16 %v349_v12, %v333_v30  ;;  %v350_v56 = vld [vmem:[%s13047_s5 + $0x390] sm:$0xff]  ;;  %v257_v9 = vld [vmem:[%s13047_s5 + $0xa8] sm:$0xff] }
  0xf6   :  { %13568 = vst [vmem:[#allocation78_spill] sm:$0xff] %v10384_v35  ;;  %1395 = vmatprep.mubr.f32.mxu0 %v13552_v52  ;;  %1466 = vmatprep.mubr.f32.mxu1 %v13552_v52  ;;  %13569 = vst [vmem:[#allocation79_spill] sm:$0xff] %v10408_v40  ;;  %v348_v29 = vld [vmem:[%s13047_s5 + $0x380] sm:$0xff]  ;;  %v243_v30 = vld [vmem:[%s13047_s5 + $0x38] sm:$0xff] }
  0xf7   :  { %13570 = vst [vmem:[#allocation80_spill] sm:$0xff] %v10410_v41  ;;  %13571 = vst [vmem:[#allocation81_spill] sm:$0xff] %v10420_v36  ;;  %v259_v12 = vld [vmem:[%s13047_s5 + $0xb8] sm:$0xff] }
  0xf8   :  { %7942 = vmatpush1.bf16.msra.mxu0 %v10370_v14  ;;  %7958 = vmatpush1.bf16.msra.mxu1 %v10372_v15  ;;  %v10422_v14 = vpack.c.bf16 %v351_v13, %v335_v17  ;;  %v10444_v17 = vpack.c.bf16 %v348_v29, %v332_v45  ;;  %v10446_v13 = vpack.c.bf16 %v350_v56, %v334_v10  ;;  %v242_v29 = vld [vmem:[%s13047_s5 + $0x30] sm:$0xff]  ;;  %v273_v10 = vld [vmem:[%s13047_s5 + $0x128] sm:$0xff] }
  0xf9   :  { %7944 = vmatprep.subr.bf16.mxu0 %v10382_v46  ;;  %7960 = vmatprep.subr.bf16.mxu1 %v10384_v35  ;;  %v240_v35 = vld [vmem:[%s13047_s5 + $0x20] sm:$0xff]  ;;  %v10456_v15 = vpack.c.bf16 %v257_v9, %v241_v63  ;;  %v258_v45 = vld [vmem:[%s13047_s5 + $0xb0] sm:$0xff]  ;;  %v289_v56 = vld [vmem:[%s13047_s5 + $0x1a8] sm:$0xff] }
  0xfa   :  { %13572 = vst [vmem:[#allocation82_spill] sm:$0xff] %v10422_v14  ;;  %13573 = vst [vmem:[#allocation83_spill] sm:$0xff] %v10444_v17  ;;  %v256_v46 = vld [vmem:[%s13047_s5 + $0xa0] sm:$0xff]  ;;  %v275_v63 = vld [vmem:[%s13047_s5 + $0x138] sm:$0xff] }
  0xfb   :  { %13574 = vst [vmem:[#allocation84_spill] sm:$0xff] %v10446_v13  ;;  %13575 = vst [vmem:[#allocation85_spill] sm:$0xff] %v10456_v15  ;;  %v291_v9 = vld [vmem:[%s13047_s5 + $0x1b8] sm:$0xff] }
  0xfc   :  { %7946 = vmatpush1.bf16.msra.mxu0 %v10408_v40  ;;  %7962 = vmatpush1.bf16.msra.mxu1 %v10410_v41  ;;  %v10458_v40 = vpack.c.bf16 %v259_v12, %v243_v30  ;;  %v10480_v30 = vpack.c.bf16 %v256_v46, %v240_v35  ;;  %v10482_v12 = vpack.c.bf16 %v258_v45, %v242_v29  ;;  %v274_v46 = vld [vmem:[%s13047_s5 + $0x130] sm:$0xff]  ;;  %v305_v29 = vld [vmem:[%s13047_s5 + $0x228] sm:$0xff] }
  0xfd   :  { %7948 = vmatprep.subr.bf16.mxu0 %v10420_v36  ;;  %7964 = vmatprep.subr.bf16.mxu1 %v10422_v14  ;;  %v272_v14 = vld [vmem:[%s13047_s5 + $0x120] sm:$0xff]  ;;  %v10492_v41 = vpack.c.bf16 %v289_v56, %v273_v10  ;;  %v290_v35 = vld [vmem:[%s13047_s5 + $0x1b0] sm:$0xff]  ;;  %v321_v45 = vld [vmem:[%s13047_s5 + $0x2a8] sm:$0xff] }
  0xfe   :  { %13576 = vst [vmem:[#allocation86_spill] sm:$0xff] %v10458_v40  ;;  %13577 = vst [vmem:[#allocation87_spill] sm:$0xff] %v10480_v30  ;;  %v288_v36 = vld [vmem:[%s13047_s5 + $0x1a0] sm:$0xff]  ;;  %v307_v10 = vld [vmem:[%s13047_s5 + $0x238] sm:$0xff] }
  0xff   :  { %13578 = vst [vmem:[#allocation88_spill] sm:$0xff] %v10482_v12  ;;  %13579 = vst [vmem:[#allocation89_spill] sm:$0xff] %v10492_v41  ;;  %v323_v56 = vld [vmem:[%s13047_s5 + $0x2b8] sm:$0xff] }
 0x100   :  { %7950 = vmatpush1.bf16.msra.mxu0 %v10444_v17  ;;  %7966 = vmatpush1.bf16.msra.mxu1 %v10446_v13  ;;  %v10494_v17 = vpack.c.bf16 %v291_v9, %v275_v63  ;;  %v10520_v63 = vpack.c.bf16 %v288_v36, %v272_v14  ;;  %v10522_v9 = vpack.c.bf16 %v290_v35, %v274_v46  ;;  %v306_v36 = vld [vmem:[%s13047_s5 + $0x230] sm:$0xff]  ;;  %v337_v46 = vld [vmem:[%s13047_s5 + $0x328] sm:$0xff] }
 0x101   :  { %7968 = vmatprep.subr.bf16.mxu0 %v10456_v15  ;;  %7984 = vmatprep.subr.bf16.mxu1 %v10458_v40  ;;  %v304_v40 = vld [vmem:[%s13047_s5 + $0x220] sm:$0xff]  ;;  %v10532_v13 = vpack.c.bf16 %v321_v45, %v305_v29  ;;  %v322_v14 = vld [vmem:[%s13047_s5 + $0x2b0] sm:$0xff]  ;;  %v353_v35 = vld [vmem:[%s13047_s5 + $0x3a8] sm:$0xff] }
 0x102   :  { %13580 = vst [vmem:[#allocation90_spill] sm:$0xff] %v10494_v17  ;;  %13581 = vst [vmem:[#allocation91_spill] sm:$0xff] %v10520_v63  ;;  %v320_v15 = vld [vmem:[%s13047_s5 + $0x2a0] sm:$0xff]  ;;  %v339_v29 = vld [vmem:[%s13047_s5 + $0x338] sm:$0xff] }
 0x103   :  { %6748 = vmatmul.mubr.msk.f32.vlgmr.msra.gmra.mrb[8].mxu0 %vm759_vm2, %v9906_v61  ;;  %6749 = vmatmul.mubr.msk.f32.vlgmr.msra.gmra.mrb[8].mxu1 %vm759_vm2, %v9906_v61  ;;  %13582 = vst [vmem:[#allocation92_spill] sm:$0xff] %v10522_v9  ;;  %13583 = vst [vmem:[#allocation93_spill] sm:$0xff] %v10532_v13  ;;  %v355_v45 = vld [vmem:[%s13047_s5 + $0x3b8] sm:$0xff] }
 0x104   :  { %7970 = vmatpush1.bf16.msra.mxu0 %v10480_v30  ;;  %7986 = vmatpush1.bf16.msra.mxu1 %v10482_v12  ;;  %v10534_v30 = vpack.c.bf16 %v323_v56, %v307_v10  ;;  %v10558_v10 = vpack.c.bf16 %v320_v15, %v304_v40  ;;  %v10560_v56 = vpack.c.bf16 %v322_v14, %v306_v36  ;;  %v338_v15 = vld [vmem:[%s13047_s5 + $0x330] sm:$0xff]  ;;  %v245_v36 = vld [vmem:[%s13047_s5 + $0x48] sm:$0xff] }
 0x105   :  { %7972 = vmatprep.subr.bf16.mxu0 %v10492_v41  ;;  %7988 = vmatprep.subr.bf16.mxu1 %v10494_v17  ;;  %v336_v17 = vld [vmem:[%s13047_s5 + $0x320] sm:$0xff]  ;;  %v10570_v12 = vpack.c.bf16 %v353_v35, %v337_v46  ;;  %v354_v40 = vld [vmem:[%s13047_s5 + $0x3b0] sm:$0xff]  ;;  %v261_v14 = vld [vmem:[%s13047_s5 + $0xc8] sm:$0xff] }
 0x106   :  { %13584 = vst [vmem:[#allocation94_spill] sm:$0xff] %v10534_v30  ;;  %1537 = vmatprep.mubr.f32.mxu0 %v13552_v52  ;;  %1608 = vmatprep.mubr.f32.mxu1 %v13552_v52  ;;  %13585 = vst [vmem:[#allocation95_spill] sm:$0xff] %v10558_v10  ;;  %v352_v41 = vld [vmem:[%s13047_s5 + $0x3a0] sm:$0xff]  ;;  %v247_v46 = vld [vmem:[%s13047_s5 + $0x58] sm:$0xff] }
 0x107   :  { %13586 = vst [vmem:[#allocation96_spill] sm:$0xff] %v10560_v56  ;;  %13587 = vst [vmem:[#allocation97_spill] sm:$0xff] %v10570_v12  ;;  %v263_v35 = vld [vmem:[%s13047_s5 + $0xd8] sm:$0xff] }
 0x108   :  { %7974 = vmatpush1.bf16.msra.mxu0 %v10520_v63  ;;  %7990 = vmatpush1.bf16.msra.mxu1 %v10522_v9  ;;  %v10572_v63 = vpack.c.bf16 %v355_v45, %v339_v29  ;;  %v10594_v29 = vpack.c.bf16 %v352_v41, %v336_v17  ;;  %v10596_v45 = vpack.c.bf16 %v354_v40, %v338_v15  ;;  %v246_v41 = vld [vmem:[%s13047_s5 + $0x50] sm:$0xff]  ;;  %v277_v15 = vld [vmem:[%s13047_s5 + $0x148] sm:$0xff] }
 0x109   :  { %7976 = vmatprep.subr.bf16.mxu0 %v10532_v13  ;;  %7992 = vmatprep.subr.bf16.mxu1 %v10534_v30  ;;  %v244_v30 = vld [vmem:[%s13047_s5 + $0x40] sm:$0xff]  ;;  %v10606_v9 = vpack.c.bf16 %v261_v14, %v245_v36  ;;  %v262_v17 = vld [vmem:[%s13047_s5 + $0xd0] sm:$0xff]  ;;  %v293_v40 = vld [vmem:[%s13047_s5 + $0x1c8] sm:$0xff] }
 0x10a   :  { %13588 = vst [vmem:[#allocation98_spill] sm:$0xff] %v10572_v63  ;;  %13589 = vst [vmem:[#allocation99_spill] sm:$0xff] %v10594_v29  ;;  %v260_v13 = vld [vmem:[%s13047_s5 + $0xc0] sm:$0xff]  ;;  %v279_v36 = vld [vmem:[%s13047_s5 + $0x158] sm:$0xff] }
 0x10b   :  { %13590 = vst [vmem:[#allocation100_spill] sm:$0xff] %v10596_v45  ;;  %13591 = vst [vmem:[#allocation101_spill] sm:$0xff] %v10606_v9  ;;  %v295_v14 = vld [vmem:[%s13047_s5 + $0x1d8] sm:$0xff] }
 0x10c   :  { %7978 = vmatpush1.bf16.msra.mxu0 %v10558_v10  ;;  %7994 = vmatpush1.bf16.msra.mxu1 %v10560_v56  ;;  %v10608_v10 = vpack.c.bf16 %v263_v35, %v247_v46  ;;  %v10630_v46 = vpack.c.bf16 %v260_v13, %v244_v30  ;;  %v10632_v35 = vpack.c.bf16 %v262_v17, %v246_v41  ;;  %v278_v13 = vld [vmem:[%s13047_s5 + $0x150] sm:$0xff]  ;;  %v309_v41 = vld [vmem:[%s13047_s5 + $0x248] sm:$0xff] }
 0x10d   :  { %7980 = vmatprep.subr.bf16.mxu0 %v10570_v12  ;;  %7996 = vmatprep.subr.bf16.mxu1 %v10572_v63  ;;  %v276_v63 = vld [vmem:[%s13047_s5 + $0x140] sm:$0xff]  ;;  %v10642_v56 = vpack.c.bf16 %v293_v40, %v277_v15  ;;  %v294_v30 = vld [vmem:[%s13047_s5 + $0x1d0] sm:$0xff]  ;;  %v325_v17 = vld [vmem:[%s13047_s5 + $0x2c8] sm:$0xff] }
 0x10e   :  { %13592 = vst [vmem:[#allocation102_spill] sm:$0xff] %v10608_v10  ;;  %13593 = vst [vmem:[#allocation103_spill] sm:$0xff] %v10630_v46  ;;  %v292_v12 = vld [vmem:[%s13047_s5 + $0x1c0] sm:$0xff]  ;;  %v311_v15 = vld [vmem:[%s13047_s5 + $0x258] sm:$0xff] }
 0x10f   :  { %13594 = vst [vmem:[#allocation104_spill] sm:$0xff] %v10632_v35  ;;  %13595 = vst [vmem:[#allocation105_spill] sm:$0xff] %v10642_v56  ;;  %v327_v40 = vld [vmem:[%s13047_s5 + $0x2d8] sm:$0xff] }
 0x110   :  { %7982 = vmatpush1.bf16.msra.mxu0 %v10594_v29  ;;  %7998 = vmatpush1.bf16.msra.mxu1 %v10596_v45  ;;  %v10644_v29 = vpack.c.bf16 %v295_v14, %v279_v36  ;;  %v10670_v36 = vpack.c.bf16 %v292_v12, %v276_v63  ;;  %v10672_v14 = vpack.c.bf16 %v294_v30, %v278_v13  ;;  %v310_v12 = vld [vmem:[%s13047_s5 + $0x250] sm:$0xff]  ;;  %v341_v13 = vld [vmem:[%s13047_s5 + $0x348] sm:$0xff] }
 0x111   :  { %8000 = vmatprep.subr.bf16.mxu0 %v10606_v9  ;;  %8016 = vmatprep.subr.bf16.mxu1 %v10608_v10  ;;  %v308_v10 = vld [vmem:[%s13047_s5 + $0x240] sm:$0xff]  ;;  %v10682_v45 = vpack.c.bf16 %v325_v17, %v309_v41  ;;  %v326_v63 = vld [vmem:[%s13047_s5 + $0x2d0] sm:$0xff]  ;;  %v357_v30 = vld [vmem:[%s13047_s5 + $0x3c8] sm:$0xff] }
 0x112   :  { %13596 = vst [vmem:[#allocation106_spill] sm:$0xff] %v10644_v29  ;;  %13597 = vst [vmem:[#allocation107_spill] sm:$0xff] %v10670_v36  ;;  %v324_v9 = vld [vmem:[%s13047_s5 + $0x2c0] sm:$0xff]  ;;  %v343_v41 = vld [vmem:[%s13047_s5 + $0x358] sm:$0xff] }
 0x113   :  { %6750 = vmatmul.mubr.msk.f32.vlgmr.msra.gmra.mrb[10].mxu0 %vm759_vm2, %v9906_v61  ;;  %6751 = vmatmul.mubr.msk.f32.vlgmr.msra.gmra.mrb[10].mxu1 %vm759_vm2, %v9906_v61  ;;  %13598 = vst [vmem:[#allocation108_spill] sm:$0xff] %v10672_v14  ;;  %13599 = vst [vmem:[#allocation109_spill] sm:$0xff] %v10682_v45  ;;  %v359_v17 = vld [vmem:[%s13047_s5 + $0x3d8] sm:$0xff] }
 0x114   :  { %8002 = vmatpush1.bf16.msra.mxu0 %v10630_v46  ;;  %8018 = vmatpush1.bf16.msra.mxu1 %v10632_v35  ;;  %v10684_v46 = vpack.c.bf16 %v327_v40, %v311_v15  ;;  %v10708_v15 = vpack.c.bf16 %v324_v9, %v308_v10  ;;  %v10710_v40 = vpack.c.bf16 %v326_v63, %v310_v12  ;;  %v342_v9 = vld [vmem:[%s13047_s5 + $0x350] sm:$0xff]  ;;  %v249_v12 = vld [vmem:[%s13047_s5 + $0x68] sm:$0xff] }
 0x115   :  { %8004 = vmatprep.subr.bf16.mxu0 %v10642_v56  ;;  %8020 = vmatprep.subr.bf16.mxu1 %v10644_v29  ;;  %v340_v29 = vld [vmem:[%s13047_s5 + $0x340] sm:$0xff]  ;;  %v10720_v35 = vpack.c.bf16 %v357_v30, %v341_v13  ;;  %v358_v10 = vld [vmem:[%s13047_s5 + $0x3d0] sm:$0xff]  ;;  %v265_v63 = vld [vmem:[%s13047_s5 + $0xe8] sm:$0xff] }
 0x116   :  { %13600 = vst [vmem:[#allocation110_spill] sm:$0xff] %v10684_v46  ;;  %1679 = vmatprep.mubr.f32.mxu0 %v13552_v52  ;;  %1750 = vmatprep.mubr.f32.mxu1 %v13552_v52  ;;  %13601 = vst [vmem:[#allocation111_spill] sm:$0xff] %v10708_v15  ;;  %v356_v56 = vld [vmem:[%s13047_s5 + $0x3c0] sm:$0xff]  ;;  %v251_v13 = vld [vmem:[%s13047_s5 + $0x78] sm:$0xff] }
 0x117   :  { %13602 = vst [vmem:[#allocation112_spill] sm:$0xff] %v10710_v40  ;;  %13603 = vst [vmem:[#allocation113_spill] sm:$0xff] %v10720_v35  ;;  %v267_v30 = vld [vmem:[%s13047_s5 + $0xf8] sm:$0xff] }
 0x118   :  { %8006 = vmatpush1.bf16.msra.mxu0 %v10670_v36  ;;  %8022 = vmatpush1.bf16.msra.mxu1 %v10672_v14  ;;  %v10722_v36 = vpack.c.bf16 %v359_v17, %v343_v41  ;;  %v10744_v41 = vpack.c.bf16 %v356_v56, %v340_v29  ;;  %v10746_v17 = vpack.c.bf16 %v358_v10, %v342_v9  ;;  %v250_v56 = vld [vmem:[%s13047_s5 + $0x70] sm:$0xff]  ;;  %v281_v9 = vld [vmem:[%s13047_s5 + $0x168] sm:$0xff] }
 0x119   :  { %8008 = vmatprep.subr.bf16.mxu0 %v10682_v45  ;;  %8024 = vmatprep.subr.bf16.mxu1 %v10684_v46  ;;  %v248_v46 = vld [vmem:[%s13047_s5 + $0x60] sm:$0xff]  ;;  %v10756_v14 = vpack.c.bf16 %v265_v63, %v249_v12  ;;  %v266_v29 = vld [vmem:[%s13047_s5 + $0xf0] sm:$0xff]  ;;  %v297_v10 = vld [vmem:[%s13047_s5 + $0x1e8] sm:$0xff] }
 0x11a   :  { %13604 = vst [vmem:[#allocation114_spill] sm:$0xff] %v10722_v36  ;;  %13605 = vst [vmem:[#allocation115_spill] sm:$0xff] %v10744_v41  ;;  %v264_v45 = vld [vmem:[%s13047_s5 + $0xe0] sm:$0xff]  ;;  %v283_v12 = vld [vmem:[%s13047_s5 + $0x178] sm:$0xff] }
 0x11b   :  { %13606 = vst [vmem:[#allocation116_spill] sm:$0xff] %v10746_v17  ;;  %13607 = vst [vmem:[#allocation117_spill] sm:$0xff] %v10756_v14  ;;  %v299_v63 = vld [vmem:[%s13047_s5 + $0x1f8] sm:$0xff] }
 0x11c   :  { %8010 = vmatpush1.bf16.msra.mxu0 %v10708_v15  ;;  %8026 = vmatpush1.bf16.msra.mxu1 %v10710_v40  ;;  %v10758_v15 = vpack.c.bf16 %v267_v30, %v251_v13  ;;  %v10780_v13 = vpack.c.bf16 %v264_v45, %v248_v46  ;;  %v10782_v30 = vpack.c.bf16 %v266_v29, %v250_v56  ;;  %v282_v45 = vld [vmem:[%s13047_s5 + $0x170] sm:$0xff]  ;;  %v313_v56 = vld [vmem:[%s13047_s5 + $0x268] sm:$0xff] }
 0x11d   :  { %8012 = vmatprep.subr.bf16.mxu0 %v10720_v35  ;;  %8028 = vmatprep.subr.bf16.mxu1 %v10722_v36  ;;  %v280_v36 = vld [vmem:[%s13047_s5 + $0x160] sm:$0xff]  ;;  %v10792_v40 = vpack.c.bf16 %v297_v10, %v281_v9  ;;  %v298_v46 = vld [vmem:[%s13047_s5 + $0x1f0] sm:$0xff]  ;;  %v329_v29 = vld [vmem:[%s13047_s5 + $0x2e8] sm:$0xff] }
 0x11e   :  { %13608 = vst [vmem:[#allocation118_spill] sm:$0xff] %v10758_v15  ;;  %13609 = vst [vmem:[#allocation119_spill] sm:$0xff] %v10780_v13  ;;  %v296_v35 = vld [vmem:[%s13047_s5 + $0x1e0] sm:$0xff]  ;;  %v315_v9 = vld [vmem:[%s13047_s5 + $0x278] sm:$0xff] }
 0x11f   :  { %13610 = vst [vmem:[#allocation120_spill] sm:$0xff] %v10782_v30  ;;  %13611 = vst [vmem:[#allocation121_spill] sm:$0xff] %v10792_v40  ;;  %v331_v10 = vld [vmem:[%s13047_s5 + $0x2f8] sm:$0xff] }
 0x120   :  { %8014 = vmatpush1.bf16.msra.mxu0 %v10744_v41  ;;  %8030 = vmatpush1.bf16.msra.mxu1 %v10746_v17  ;;  %v10794_v41 = vpack.c.bf16 %v299_v63, %v283_v12  ;;  %v10820_v12 = vpack.c.bf16 %v296_v35, %v280_v36  ;;  %v10822_v63 = vpack.c.bf16 %v298_v46, %v282_v45  ;;  %v314_v35 = vld [vmem:[%s13047_s5 + $0x270] sm:$0xff]  ;;  %v345_v45 = vld [vmem:[%s13047_s5 + $0x368] sm:$0xff] }
 0x121   :  { %8032 = vmatprep.subr.bf16.mxu0 %v10756_v14  ;;  %8048 = vmatprep.subr.bf16.mxu1 %v10758_v15  ;;  %v312_v15 = vld [vmem:[%s13047_s5 + $0x260] sm:$0xff]  ;;  %v10832_v17 = vpack.c.bf16 %v329_v29, %v313_v56  ;;  %v330_v36 = vld [vmem:[%s13047_s5 + $0x2f0] sm:$0xff]  ;;  %v361_v46 = vld [vmem:[%s13047_s5 + $0x3e8] sm:$0xff] }
 0x122   :  { %13612 = vst [vmem:[#allocation122_spill] sm:$0xff] %v10794_v41  ;;  %13613 = vst [vmem:[#allocation123_spill] sm:$0xff] %v10820_v12  ;;  %v328_v14 = vld [vmem:[%s13047_s5 + $0x2e0] sm:$0xff]  ;;  %v347_v56 = vld [vmem:[%s13047_s5 + $0x378] sm:$0xff] }
 0x123   :  { %6752 = vmatmul.mubr.msk.f32.vlgmr.msra.gmra.mrb[12].mxu0 %vm759_vm2, %v9906_v61  ;;  %6753 = vmatmul.mubr.msk.f32.vlgmr.msra.gmra.mrb[12].mxu1 %vm759_vm2, %v9906_v61  ;;  %13614 = vst [vmem:[#allocation124_spill] sm:$0xff] %v10822_v63  ;;  %13615 = vst [vmem:[#allocation125_spill] sm:$0xff] %v10832_v17  ;;  %v363_v29 = vld [vmem:[%s13047_s5 + $0x3f8] sm:$0xff] }
 0x124   :  { %8034 = vmatpush1.bf16.msra.mxu0 %v10780_v13  ;;  %8050 = vmatpush1.bf16.msra.mxu1 %v10782_v30  ;;  %v10834_v13 = vpack.c.bf16 %v331_v10, %v315_v9  ;;  %v10858_v9 = vpack.c.bf16 %v328_v14, %v312_v15  ;;  %v10860_v10 = vpack.c.bf16 %v330_v36, %v314_v35  ;;  %v346_v14 = vld [vmem:[%s13047_s5 + $0x370] sm:$0xff] }
 0x125   :  { %8036 = vmatprep.subr.bf16.mxu0 %v10792_v40  ;;  %8052 = vmatprep.subr.bf16.mxu1 %v10794_v41  ;;  %v344_v41 = vld [vmem:[%s13047_s5 + $0x360] sm:$0xff]  ;;  %v10867_v40 = vpack.c.bf16 %v361_v46, %v345_v45  ;;  %v10869_v30 = vpack.c.bf16 %v363_v29, %v347_v56  ;;  %v362_v15 = vld [vmem:[%s13047_s5 + $0x3f0] sm:$0xff]  ;;  %v621_v46 = vld [vmem:[%s13049_s7 + $0x8] sm:$0xff] }
 0x126   :  { %13616 = vst [vmem:[#allocation126_spill] sm:$0xff] %v10834_v13  ;;  %1821 = vmatprep.mubr.f32.mxu0 %v13552_v52  ;;  %1892 = vmatprep.mubr.f32.mxu1 %v13552_v52  ;;  %13617 = vst [vmem:[#allocation127_spill] sm:$0xff] %v10858_v9  ;;  %v10884_v36 = vpack.c.bf16 %v362_v15, %v346_v14  ;;  %v620_v45 = vld [vmem:[%s13049_s7] sm:$0xff]  ;;  %v622_v56 = vld [vmem:[%s13049_s7 + $0x10] sm:$0xff] }
 0x127   :  { %13618 = vst [vmem:[#allocation128_spill] sm:$0xff] %v10860_v10  ;;  %13619 = vst [vmem:[#allocation129_spill] sm:$0xff] %v10867_v40  ;;  %v623_v29 = vld [vmem:[%s13049_s7 + $0x18] sm:$0xff]  ;;  %v624_v15 = vld [vmem:[%s13049_s7 + $0x20] sm:$0xff] }
 0x128   :  { %8038 = vmatpush1.bf16.msra.mxu0 %v10820_v12  ;;  %8054 = vmatpush1.bf16.msra.mxu1 %v10822_v63  ;;  %13620 = vst [vmem:[#allocation130_spill] sm:$0xff] %v10869_v30  ;;  %v360_v63 = vld [vmem:[%s13047_s5 + $0x3e0] sm:$0xff]  ;;  %13622 = vst [vmem:[#allocation132_spill] sm:$0xff] %v10884_v36  ;;  %v10910_v14 = vpack.c.bf16 %v623_v29, %v622_v56  ;;  %v429_v12 = vld [vmem:[%s13048_s6 + $0x208] sm:$0xff]  ;;  %s2577_s5 = scalar_lea.vmem [#allocation2], %s12181_s2  ;;  %s2586_s2 = scalar_lea.vmem [#allocation2], %s12183_s3 }
 0x129   :  { %8040 = vmatprep.subr.bf16.mxu0 %v10832_v17  ;;  %8056 = vmatprep.subr.bf16.mxu1 %v10834_v13  ;;  %v10882_v35 = vpack.c.bf16 %v360_v63, %v344_v41  ;;  %v10896_v41 = vpack.c.bf16 %v621_v46, %v620_v45  ;;  %v13204_v63 = vmov 0.0|0.0   ;;  %v625_v45 = vld [vmem:[%s13049_s7 + $0x28] sm:$0xff]  ;;  %v428_v17 = vld [vmem:[%s13048_s6 + $0x200] sm:$0xff]  ;;  %s2682_s3 = scalar_lea.vmem [#allocation2], %s12199_s22 }
 0x12a   :  { %13624 = vst [vmem:[#allocation134_spill] sm:$0xff] %v10910_v14  ;;  %v381_v46 = vld [vmem:[%s13048_s6 + $0x88] sm:$0xff]  ;;  %v10928_v56 = vpack.c.bf16 %v625_v45, %v624_v15  ;;  %v627_v15 = vld [vmem:[%s13049_s7 + $0x38] sm:$0xff]  ;;  %v11291_v37 = vpack.c.bf16 %v429_v12, %v428_v17  ;;  %v482_v12 = vld [vmem:[%s13048_s6 + $0x3b0] sm:$0xff] }
 0x12b   :  { %13621 = vst [vmem:[#allocation131_spill] sm:$0xff] %v10882_v35  ;;  %13623 = vst [vmem:[#allocation133_spill] sm:$0xff] %v10896_v41  ;;  %v451_v17 = vld [vmem:[%s13048_s6 + $0x2b8] sm:$0xff] }
 0x12c   :  { %8042 = vmatpush1.bf16.msra.mxu0 %v10858_v9  ;;  %8058 = vmatpush1.bf16.msra.mxu1 %v10860_v10  ;;  %13625 = vst [vmem:[#allocation135_spill] sm:$0xff] %v10928_v56 }
 0x12d   :  { %8044 = vmatprep.subr.bf16.mxu0 %v10867_v40  ;;  %8060 = vmatprep.subr.bf16.mxu1 %v10869_v30  ;;  %v383_v30 = vld [vmem:[%s13048_s6 + $0x98] sm:$0xff] }
 0x130   :  { %8046 = vmatpush1.bf16.msra.mxu0 %v10882_v35  ;;  %8062 = vmatpush1.bf16.msra.mxu1 %v10884_v36  ;;  %v13627_v36 = vmov 0.0|0.0   ;;  %v626_v35 = vld [vmem:[%s13049_s7 + $0x30] sm:$0xff]  ;;  %s6760_s7 = sld [smem:[#allocation5 + $0x3]] }
 0x131   :  { %8063 = vmatprep.subr.bf16.mxu0 %v13204_v63  ;;  %v10970_v40 = vpack.c.bf16 %v627_v15, %v626_v35  ;;  %v397_v35 = vld [vmem:[%s13048_s6 + $0x108] sm:$0xff]  ;;  %v368_v15 = vld [vmem:[%s13048_s6 + $0x20] sm:$0xff] }
 0x133   :  { %6754 = vmatmul.mubr.msk.f32.vlgmr.msra.gmra.mrb[14].mxu0 %vm759_vm2, %v9906_v61  ;;  %6755 = vmatmul.mubr.msk.f32.vlgmr.msra.gmra.mrb[14].mxu1 %vm759_vm2, %v9906_v61  ;;  %v380_v61 = vld [vmem:[%s13048_s6 + $0x80] sm:$0xff]  ;;  %13630 = vst [vmem:[#allocation139_spill] sm:$0xff] %v10970_v40 }
 0x134   :  { %8065 = vmatpush3.bf16.msra.mxu0 %v10896_v41  ;;  %7755 = vmatprep.mubr.msk.f32.mxu0 %vm9483_vm3, %v13552_v52  ;;  %v10930_v29 = vpack.c.bf16 %v381_v46, %v380_v61  ;;  %v365_v41 = vld [vmem:[%s13048_s6 + $0x8] sm:$0xff]  ;;  %v382_v61 = vld [vmem:[%s13048_s6 + $0x90] sm:$0xff]  ;;  %v412_v46 = vld [vmem:[%s13048_s6 + $0x180] sm:$0xff] }
 0x135   :  { %8066 = vmatprep.subr.bf16.mxu0 %v13204_v63  ;;  %v364_v63 = vld [vmem:[%s13048_s6] sm:$0xff] }
 0x136   :  { %13626 = vst [vmem:[#allocation136_spill] sm:$0xff] %v10930_v29  ;;  %v10945_v45 = vpack.c.bf16 %v365_v41, %v364_v63  ;;  %8076 = vmatprep.subr.bf16.mxu1 %v10930_v29  ;;  %v10961_v41 = vpack.c.bf16 %v383_v30, %v382_v61  ;;  %v366_v63 = vld [vmem:[%s13048_s6 + $0x10] sm:$0xff]  ;;  %v367_v29 = vld [vmem:[%s13048_s6 + $0x18] sm:$0xff]  ;;  %v385_v30 = vld [vmem:[%s13048_s6 + $0xa8] sm:$0xff]  ;;  %s2565_s16 = scalar_lea.vmem [#allocation2], %s6760_s7  ;;  %s12219_s7 = sld [smem:[#allocation10 + $0xc]] }
 0x137   :  { %v10972_v10 = vpack.c.bf16 %v367_v29, %v366_v63  ;;  %v369_v63 = vld [vmem:[%s13048_s6 + $0x28] sm:$0xff] }
 0x138   :  { %8068 = vmatpush3.bf16.msra.mxu0 %v10910_v14  ;;  %13628 = vst [vmem:[#allocation137_spill] sm:$0xff] %v10945_v45  ;;  %v413_v14 = vld [vmem:[%s13048_s6 + $0x188] sm:$0xff]  ;;  %8078 = vmatpush3.bf16.msra.mxu1 %v10945_v45  ;;  %13629 = vst [vmem:[#allocation138_spill] sm:$0xff] %v10961_v41  ;;  %v384_v45 = vld [vmem:[%s13048_s6 + $0xa0] sm:$0xff] }
 0x139   :  { %8069 = vmatprep.subr.bf16.mxu0 %v13627_v36  ;;  %13631 = vst [vmem:[#allocation140_spill] sm:$0xff] %v10972_v10  ;;  %v10981_v61 = vpack.c.bf16 %v413_v14, %v412_v46  ;;  %8080 = vmatprep.subr.bf16.mxu1 %v10961_v41  ;;  %v10990_v29 = vpack.c.bf16 %v385_v30, %v384_v45  ;;  %v414_v14 = vld [vmem:[%s13048_s6 + $0x190] sm:$0xff]  ;;  %v415_v46 = vld [vmem:[%s13048_s6 + $0x198] sm:$0xff] }
 0x13a   :  { %v11005_v45 = vpack.c.bf16 %v369_v63, %v368_v15  ;;  %v11012_v41 = vpack.c.bf16 %v415_v46, %v414_v14  ;;  %v416_v15 = vld [vmem:[%s13048_s6 + $0x1a0] sm:$0xff]  ;;  %v386_v14 = vld [vmem:[%s13048_s6 + $0xb0] sm:$0xff]  ;;  %v387_v46 = vld [vmem:[%s13048_s6 + $0xb8] sm:$0xff] }
 0x13b   :  { %13632 = vst [vmem:[#allocation141_spill] sm:$0xff] %v10981_v61  ;;  %13633 = vst [vmem:[#allocation142_spill] sm:$0xff] %v10990_v29 }
 0x13c   :  { %8071 = vmatpush3.bf16.msra.mxu0 %v10928_v56  ;;  %v396_v56 = vld [vmem:[%s13048_s6 + $0x100] sm:$0xff]  ;;  %8082 = vmatpush3.bf16.msra.mxu1 %v10972_v10  ;;  %13634 = vst [vmem:[#allocation143_spill] sm:$0xff] %v11005_v45  ;;  %13636 = vst [vmem:[#allocation145_spill] sm:$0xff] %v11012_v41  ;;  %v399_v10 = vld [vmem:[%s13048_s6 + $0x118] sm:$0xff]  ;;  %s2653_s22 = scalar_lea.vmem [#allocation2], %s12219_s7  ;;  %s6811_s7 = sld [smem:[#allocation5 + $0xd]] }
 0x13d   :  { %8072 = vmatprep.subr.bf16.mxu0 %v13627_v36  ;;  %v11008_v30 = vpack.c.bf16 %v397_v35, %v396_v56  ;;  %8084 = vmatprep.subr.bf16.mxu1 %v10990_v29  ;;  %v398_v36 = vld [vmem:[%s13048_s6 + $0x110] sm:$0xff]  ;;  %v417_v56 = vld [vmem:[%s13048_s6 + $0x1a8] sm:$0xff] }
 0x13e   :  { %v9411_v35 = vld [vmem:[#allocation3] sm:$0xff]  ;;  %v11035_v63 = vpack.c.bf16 %v399_v10, %v398_v36  ;;  %v401_v10 = vld [vmem:[%s13048_s6 + $0x128] sm:$0xff] }
 0x13f   :  { %13635 = vst [vmem:[#allocation144_spill] sm:$0xff] %v11008_v30 }
 0x140   :  { %8074 = vmatpush3.bf16.msra.mxu0 %v10970_v40  ;;  %8086 = vmatpush3.bf16.msra.mxu1 %v11005_v45  ;;  %13637 = vst [vmem:[#allocation146_spill] sm:$0xff] %v11035_v63  ;;  %v371_v40 = vld [vmem:[%s13048_s6 + $0x38] sm:$0xff]  ;;  %v11046_v45 = vpack.c.bf16 %v417_v56, %v416_v15  ;;  %v388_v56 = vld [vmem:[%s13048_s6 + $0xc0] sm:$0xff] }
 0x141   :  { %8108 = vmatprep.subr.bf16.mxu0 %v10981_v61  ;;  %v11037_v61 = vpack.c.bf16 %v387_v46, %v386_v14  ;;  %v418_v14 = vld [vmem:[%s13048_s6 + $0x1b0] sm:$0xff]  ;;  %v419_v15 = vld [vmem:[%s13048_s6 + $0x1b8] sm:$0xff] }
 0x142   :  { %13639 = vst [vmem:[#allocation148_spill] sm:$0xff] %v11046_v45 }
 0x143   :  { %7756 = vmatmul.mubr.msk.f32.vlgmr.msra.gmra.mrb[16].mxu0 %vm759_vm2, %v9411_v35  ;;  %13638 = vst [vmem:[#allocation147_spill] sm:$0xff] %v11037_v61  ;;  %v370_v35 = vld [vmem:[%s13048_s6 + $0x30] sm:$0xff]  ;;  %8088 = vmatprep.subr.bf16.mxu1 %v11037_v61  ;;  %v11082_v61 = vpack.c.bf16 %v419_v15, %v418_v14  ;;  %v420_v14 = vld [vmem:[%s13048_s6 + $0x1c0] sm:$0xff]  ;;  %v421_v15 = vld [vmem:[%s13048_s6 + $0x1c8] sm:$0xff] }
 0x144   :  { %8110 = vmatpush3.bf16.msra.mxu0 %v11008_v30  ;;  %v400_v30 = vld [vmem:[%s13048_s6 + $0x120] sm:$0xff]  ;;  %v11054_v36 = vpack.c.bf16 %v371_v40, %v370_v35  ;;  %v389_v40 = vld [vmem:[%s13048_s6 + $0xc8] sm:$0xff] }
 0x145   :  { %8112 = vmatprep.subr.bf16.mxu0 %v11012_v41  ;;  %v11071_v46 = vpack.c.bf16 %v401_v10, %v400_v30  ;;  %v11073_v35 = vpack.c.bf16 %v389_v40, %v388_v56  ;;  %v372_v41 = vld [vmem:[%s13048_s6 + $0x40] sm:$0xff]  ;;  %13643 = vst [vmem:[#allocation152_spill] sm:$0xff] %v11082_v61  ;;  %v403_v30 = vld [vmem:[%s13048_s6 + $0x138] sm:$0xff]  ;;  %v390_v56 = vld [vmem:[%s13048_s6 + $0xd0] sm:$0xff] }
 0x146   :  { %13640 = vst [vmem:[#allocation149_spill] sm:$0xff] %v11054_v36  ;;  %8090 = vmatpush3.bf16.msra.mxu1 %v11054_v36  ;;  %v373_v36 = vld [vmem:[%s13048_s6 + $0x48] sm:$0xff]  ;;  %v391_v40 = vld [vmem:[%s13048_s6 + $0xd8] sm:$0xff] }
 0x147   :  { %13641 = vst [vmem:[#allocation150_spill] sm:$0xff] %v11071_v46  ;;  %13642 = vst [vmem:[#allocation151_spill] sm:$0xff] %v11073_v35  ;;  %v11090_v10 = vpack.c.bf16 %v373_v36, %v372_v41  ;;  %8092 = vmatprep.subr.bf16.mxu1 %v11073_v35  ;;  %v11106_v41 = vpack.c.bf16 %v391_v40, %v390_v56  ;;  %v374_v36 = vld [vmem:[%s13048_s6 + $0x50] sm:$0xff]  ;;  %v393_v56 = vld [vmem:[%s13048_s6 + $0xe8] sm:$0xff]  ;;  %v11126_v40 = vpack.c.bf16 %v421_v15, %v420_v14 }
 0x148   :  { %8114 = vmatpush3.bf16.msra.mxu0 %v11035_v63  ;;  %v402_v63 = vld [vmem:[%s13048_s6 + $0x130] sm:$0xff]  ;;  %v423_v15 = vld [vmem:[%s13048_s6 + $0x1d8] sm:$0xff] }
 0x149   :  { %8116 = vmatprep.subr.bf16.mxu0 %v11046_v45  ;;  %13644 = vst [vmem:[#allocation153_spill] sm:$0xff] %v11090_v10  ;;  %13645 = vst [vmem:[#allocation154_spill] sm:$0xff] %v11106_v41  ;;  %v375_v45 = vld [vmem:[%s13048_s6 + $0x58] sm:$0xff]  ;;  %v11115_v35 = vpack.c.bf16 %v403_v30, %v402_v63  ;;  %v376_v30 = vld [vmem:[%s13048_s6 + $0x60] sm:$0xff] }
 0x14a   :  { %8094 = vmatpush3.bf16.msra.mxu1 %v11090_v10  ;;  %v11117_v29 = vpack.c.bf16 %v375_v45, %v374_v36  ;;  %v392_v10 = vld [vmem:[%s13048_s6 + $0xe0] sm:$0xff]  ;;  %13648 = vst [vmem:[#allocation157_spill] sm:$0xff] %v11126_v40  ;;  %v405_v45 = vld [vmem:[%s13048_s6 + $0x148] sm:$0xff]  ;;  %v422_v14 = vld [vmem:[%s13048_s6 + $0x1d0] sm:$0xff] }
 0x14b   :  { %13646 = vst [vmem:[#allocation155_spill] sm:$0xff] %v11115_v35  ;;  %8096 = vmatprep.subr.bf16.mxu1 %v11106_v41  ;;  %v11135_v63 = vpack.c.bf16 %v393_v56, %v392_v10  ;;  %v377_v36 = vld [vmem:[%s13048_s6 + $0x68] sm:$0xff]  ;;  %v406_v41 = vld [vmem:[%s13048_s6 + $0x150] sm:$0xff] }
 0x14c   :  { %8118 = vmatpush3.bf16.msra.mxu0 %v11071_v46  ;;  %13647 = vst [vmem:[#allocation156_spill] sm:$0xff] %v11117_v29  ;;  %v404_v46 = vld [vmem:[%s13048_s6 + $0x140] sm:$0xff]  ;;  %v11150_v10 = vpack.c.bf16 %v377_v36, %v376_v30 }
 0x14d   :  { %8120 = vmatprep.subr.bf16.mxu0 %v11082_v61  ;;  %13649 = vst [vmem:[#allocation158_spill] sm:$0xff] %v11135_v63  ;;  %v11153_v56 = vpack.c.bf16 %v405_v45, %v404_v46  ;;  %v11157_v61 = vpack.c.bf16 %v423_v15, %v422_v14  ;;  %v424_v30 = vld [vmem:[%s13048_s6 + $0x1e0] sm:$0xff]  ;;  %v425_v46 = vld [vmem:[%s13048_s6 + $0x1e8] sm:$0xff]  ;;  %v394_v45 = vld [vmem:[%s13048_s6 + $0xf0] sm:$0xff] }
 0x14e   :  { %8098 = vmatpush3.bf16.msra.mxu1 %v11117_v29  ;;  %13650 = vst [vmem:[#allocation159_spill] sm:$0xff] %v11150_v10  ;;  %v407_v29 = vld [vmem:[%s13048_s6 + $0x158] sm:$0xff] }
 0x14f   :  { %13651 = vst [vmem:[#allocation160_spill] sm:$0xff] %v11153_v56  ;;  %8100 = vmatprep.subr.bf16.mxu1 %v11135_v63  ;;  %13652 = vst [vmem:[#allocation161_spill] sm:$0xff] %v11157_v61  ;;  %v395_v14 = vld [vmem:[%s13048_s6 + $0xf8] sm:$0xff]  ;;  %v11179_v15 = vpack.c.bf16 %v407_v29, %v406_v41  ;;  %v409_v29 = vld [vmem:[%s13048_s6 + $0x168] sm:$0xff] }
 0x150   :  { %8122 = vmatpush3.bf16.msra.mxu0 %v11115_v35  ;;  %v11181_v36 = vpack.c.bf16 %v395_v14, %v394_v45  ;;  %v379_v35 = vld [vmem:[%s13048_s6 + $0x78] sm:$0xff]  ;;  %v426_v45 = vld [vmem:[%s13048_s6 + $0x1f0] sm:$0xff] }
 0x151   :  { %8124 = vmatprep.subr.bf16.mxu0 %v11126_v40  ;;  %13653 = vst [vmem:[#allocation162_spill] sm:$0xff] %v11179_v15  ;;  %v378_v40 = vld [vmem:[%s13048_s6 + $0x70] sm:$0xff] }
 0x152   :  { %8102 = vmatpush3.bf16.msra.mxu1 %v11150_v10  ;;  %13654 = vst [vmem:[#allocation163_spill] sm:$0xff] %v11181_v36  ;;  %v11190_v10 = vpack.c.bf16 %v425_v46, %v424_v30  ;;  %v11198_v41 = vpack.c.bf16 %v379_v35, %v378_v40  ;;  %v427_v30 = vld [vmem:[%s13048_s6 + $0x1f8] sm:$0xff]  ;;  %v444_v46 = vld [vmem:[%s13048_s6 + $0x280] sm:$0xff]  ;;  %v445_v35 = vld [vmem:[%s13048_s6 + $0x288] sm:$0xff] }
 0x153   :  { %8104 = vmatprep.subr.bf16.mxu1 %v11181_v36  ;;  %v11217_v14 = vpack.c.bf16 %v445_v35, %v444_v46  ;;  %v411_v36 = vld [vmem:[%s13048_s6 + $0x178] sm:$0xff] }
 0x154   :  { %8126 = vmatpush3.bf16.msra.mxu0 %v11153_v56  ;;  %13655 = vst [vmem:[#allocation164_spill] sm:$0xff] %v11190_v10  ;;  %v408_v56 = vld [vmem:[%s13048_s6 + $0x160] sm:$0xff]  ;;  %13656 = vst [vmem:[#allocation165_spill] sm:$0xff] %v11198_v41 }
 0x155   :  { %8128 = vmatprep.subr.bf16.mxu0 %v11157_v61  ;;  %v11215_v40 = vpack.c.bf16 %v409_v29, %v408_v56  ;;  %13658 = vst [vmem:[#allocation167_spill] sm:$0xff] %v11217_v14  ;;  %v11220_v61 = vpack.c.bf16 %v427_v30, %v426_v45  ;;  %v476_v56 = vld [vmem:[%s13048_s6 + $0x380] sm:$0xff]  ;;  %v477_v29 = vld [vmem:[%s13048_s6 + $0x388] sm:$0xff] }
 0x156   :  { %8106 = vmatpush3.bf16.msra.mxu1 %v11198_v41  ;;  %v410_v41 = vld [vmem:[%s13048_s6 + $0x170] sm:$0xff]  ;;  %v11239_v30 = vpack.c.bf16 %v477_v29, %v476_v56 }
 0x157   :  { %13657 = vst [vmem:[#allocation166_spill] sm:$0xff] %v11215_v40  ;;  %13659 = vst [vmem:[#allocation168_spill] sm:$0xff] %v11220_v61  ;;  %8140 = vmatprep.subr.bf16.mxu1 %v11217_v14  ;;  %v11236_v45 = vpack.c.bf16 %v411_v36, %v410_v41 }
 0x158   :  { %8130 = vmatpush3.bf16.msra.mxu0 %v11179_v15  ;;  %13661 = vst [vmem:[#allocation170_spill] sm:$0xff] %v11239_v30 }
 0x159   :  { %8132 = vmatprep.subr.bf16.mxu0 %v11190_v10  ;;  %13660 = vst [vmem:[#allocation169_spill] sm:$0xff] %v11236_v45 }
 0x15c   :  { %8134 = vmatpush3.bf16.msra.mxu0 %v11215_v40 }
 0x15d   :  { %8136 = vmatprep.subr.bf16.mxu0 %v11220_v61 }
 0x160   :  { %8138 = vmatpush3.bf16.msra.mxu0 %v11236_v45 }
 0x161   :  { %8172 = vmatprep.subr.bf16.mxu0 %v11239_v30 }
 0x196   :  { %v829_v46 = vpop.f32.mrb[0].mxu0  ;;  %v900_v35 = vpop.f32.mrb[0].mxu1 }
 0x197   :  { %v831_v10 = vpop.f32.mrb[1].mxu0  ;;  %v902_v15 = vpop.f32.mrb[1].mxu1 }
 0x1a6   :  { %v11243_v14 = vpop.f32.mrb[2].mxu0  ;;  %v11245_v63 = vpop.f32.mrb[2].mxu1 }
 0x1a7   :  { %v11247_v9 = vpop.f32.mrb[3].mxu0  ;;  %v11249_v36 = vpop.f32.mrb[3].mxu1 }
 0x1b6   :  { %v11251_v41 = vpop.f32.mrb[4].mxu0  ;;  %v11253_v56 = vpop.f32.mrb[4].mxu1 }
 0x1b7   :  { %v11255_v29 = vpop.f32.mrb[5].mxu0  ;;  %v11257_v45 = vpop.f32.mrb[5].mxu1 }
 0x1c6   :  { %v11259_v30 = vpop.f32.mrb[6].mxu0  ;;  %v11261_v61 = vpop.f32.mrb[6].mxu1 }
 0x1c7   :  { %v11263_v40 = vpop.f32.mrb[7].mxu0  ;;  %v11265_v13 = vpop.f32.mrb[7].mxu1 }
 0x1d6   :  { %v1397_v34 = vpop.f32.mrb[8].mxu0  ;;  %v1468_v31 = vpop.f32.mrb[8].mxu1 }
 0x1d7   :  { %v1899_v4 = vmul.f32 %v1397_v34, %v829_v46  ;;  %v1901_v59 = vmul.f32 %v1468_v31, %v900_v35  ;;  %v1399_v58 = vpop.f32.mrb[9].mxu0  ;;  %v1470_v44 = vpop.f32.mrb[9].mxu1  ;;  %v11303_v34 = vpack.c.bf16 %v479_v5, %v478_v21  ;;  %v448_v31 = vld [vmem:[%s13048_s6 + $0x2a0] sm:$0xff]  ;;  %v481_v21 = vld [vmem:[%s13048_s6 + $0x3a8] sm:$0xff]  ;;  %v434_v35 = vld [vmem:[%s13048_s6 + $0x230] sm:$0xff] }
 0x1d8   :  { %v1900_v42 = vmul.f32 %v1399_v58, %v831_v10  ;;  %v1902_v38 = vmul.f32 %v1470_v44, %v902_v15  ;;  %v462_v44 = vld [vmem:[%s13048_s6 + $0x310] sm:$0xff]  ;;  %v463_v58 = vld [vmem:[%s13048_s6 + $0x318] sm:$0xff]  ;;  %v480_v5 = vld [vmem:[%s13048_s6 + $0x3a0] sm:$0xff]  ;;  %v11361_v15 = vpack.c.bf16 %v433_v51, %v432_v49 }
 0x1d9   :  { %13662 = vst [vmem:[#allocation171_spill] sm:$0xff] %v11303_v34  ;;  %v483_v10 = vld [vmem:[%s13048_s6 + $0x3b8] sm:$0xff]  ;;  %v453_v49 = vld [vmem:[%s13048_s6 + $0x2c8] sm:$0xff]  ;;  %v484_v51 = vld [vmem:[%s13048_s6 + $0x3c0] sm:$0xff] }
 0x1da   :  { %2049 = vmatprep.mubr.f32.mxu1 %v1900_v42  ;;  %2119 = vmatprep.mubr.f32.mxu0 %v1902_v38  ;;  %v11325_v42 = vpack.c.bf16 %v431_v20, %v430_v26  ;;  %v11327_v38 = vpack.c.bf16 %v463_v58, %v462_v44  ;;  %v464_v20 = vld [vmem:[%s13048_s6 + $0x320] sm:$0xff]  ;;  %v465_v26 = vld [vmem:[%s13048_s6 + $0x328] sm:$0xff]  ;;  %13667 = vst [vmem:[#allocation176_spill] sm:$0xff] %v11361_v15  ;;  %v435_v44 = vld [vmem:[%s13048_s6 + $0x238] sm:$0xff] }
 0x1db   :  { %2050 = vmatmul.mubr.f32.vlgmr.msra.gmra.mrb[16].mxu1 %v1899_v4  ;;  %2120 = vmatmul.mubr.f32.vlgmr.msra.gmra.mrb[18].mxu0 %v1901_v59  ;;  %v11337_v59 = vpack.c.bf16 %v449_v24, %v448_v31  ;;  %v11339_v4 = vpack.c.bf16 %v481_v21, %v480_v5  ;;  %v11363_v46 = vpack.c.bf16 %v465_v26, %v464_v20  ;;  %v466_v24 = vld [vmem:[%s13048_s6 + $0x330] sm:$0xff]  ;;  %v467_v5 = vld [vmem:[%s13048_s6 + $0x338] sm:$0xff]  ;;  %v452_v21 = vld [vmem:[%s13048_s6 + $0x2c0] sm:$0xff] }
 0x1dc   :  { %8142 = vmatpush3.bf16.msra.mxu1 %v11291_v37  ;;  %8174 = vmatpush3.bf16.msra.mxu0 %v11293_v27  ;;  %13663 = vst [vmem:[#allocation172_spill] sm:$0xff] %v11325_v42  ;;  %13664 = vst [vmem:[#allocation173_spill] sm:$0xff] %v11327_v38  ;;  %v11373_v58 = vpack.c.bf16 %v451_v17, %v450_v62  ;;  %v11375_v31 = vpack.c.bf16 %v483_v10, %v482_v12  ;;  %v485_v20 = vld [vmem:[%s13048_s6 + $0x3c8] sm:$0xff]  ;;  %v436_v17 = vld [vmem:[%s13048_s6 + $0x240] sm:$0xff] }
 0x1dd   :  { %8144 = vmatprep.subr.bf16.mxu1 %v11301_v16  ;;  %8176 = vmatprep.subr.bf16.mxu0 %v11303_v34  ;;  %13665 = vst [vmem:[#allocation174_spill] sm:$0xff] %v11337_v59  ;;  %13666 = vst [vmem:[#allocation175_spill] sm:$0xff] %v11339_v4  ;;  %v11397_v26 = vpack.c.bf16 %v435_v44, %v434_v35  ;;  %v11399_v62 = vpack.c.bf16 %v467_v5, %v466_v24  ;;  %v437_v12 = vld [vmem:[%s13048_s6 + $0x248] sm:$0xff]  ;;  %v468_v35 = vld [vmem:[%s13048_s6 + $0x340] sm:$0xff] }
 0x1de   :  { %13668 = vst [vmem:[#allocation177_spill] sm:$0xff] %v11363_v46  ;;  %13669 = vst [vmem:[#allocation178_spill] sm:$0xff] %v11373_v58  ;;  %v11409_v10 = vpack.c.bf16 %v453_v49, %v452_v21  ;;  %v469_v44 = vld [vmem:[%s13048_s6 + $0x348] sm:$0xff]  ;;  %v454_v24 = vld [vmem:[%s13048_s6 + $0x2d0] sm:$0xff] }
 0x1df   :  { %13670 = vst [vmem:[#allocation179_spill] sm:$0xff] %v11375_v31  ;;  %v455_v21 = vld [vmem:[%s13048_s6 + $0x2d8] sm:$0xff]  ;;  %v486_v49 = vld [vmem:[%s13048_s6 + $0x3d0] sm:$0xff]  ;;  %v11443_v34 = vpack.c.bf16 %v469_v44, %v468_v35  ;;  %v489_v35 = vld [vmem:[%s13048_s6 + $0x3e8] sm:$0xff] }
 0x1e0   :  { %8146 = vmatpush3.bf16.msra.mxu1 %v11325_v42  ;;  %8178 = vmatpush3.bf16.msra.mxu0 %v11327_v38  ;;  %13671 = vst [vmem:[#allocation180_spill] sm:$0xff] %v11409_v10 }
 0x1e1   :  { %8148 = vmatprep.subr.bf16.mxu1 %v11337_v59  ;;  %8180 = vmatprep.subr.bf16.mxu0 %v11339_v4  ;;  %v11437_v59 = vpack.c.bf16 %v437_v12, %v436_v17  ;;  %13674 = vst [vmem:[#allocation183_spill] sm:$0xff] %v11443_v34  ;;  %v457_v17 = vld [vmem:[%s13048_s6 + $0x2e8] sm:$0xff]  ;;  %v488_v12 = vld [vmem:[%s13048_s6 + $0x3e0] sm:$0xff] }
 0x1e3   :  { %13673 = vst [vmem:[#allocation182_spill] sm:$0xff] %v11437_v59 }
 0x1e4   :  { %8150 = vmatpush3.bf16.msra.mxu1 %v11361_v15  ;;  %8182 = vmatpush3.bf16.msra.mxu0 %v11363_v46  ;;  %v11411_v15 = vpack.c.bf16 %v485_v20, %v484_v51  ;;  %v487_v51 = vld [vmem:[%s13048_s6 + $0x3d8] sm:$0xff] }
 0x1e5   :  { %8152 = vmatprep.subr.bf16.mxu1 %v11373_v58  ;;  %8184 = vmatprep.subr.bf16.mxu0 %v11375_v31 }
 0x1e6   :  { %13672 = vst [vmem:[#allocation181_spill] sm:$0xff] %v11411_v15  ;;  %v1539_v5 = vpop.f32.mrb[10].mxu0  ;;  %v1610_v58 = vpop.f32.mrb[10].mxu1 }
 0x1e7   :  { %v11432_v20 = vmul.f32 %v1539_v5, %v11243_v14  ;;  %v11435_v31 = vmul.f32 %v1610_v58, %v11245_v63  ;;  %v1541_v46 = vpop.f32.mrb[11].mxu0  ;;  %v1612_v4 = vpop.f32.mrb[11].mxu1  ;;  %v438_v14 = vld [vmem:[%s13048_s6 + $0x250] sm:$0xff]  ;;  %v439_v63 = vld [vmem:[%s13048_s6 + $0x258] sm:$0xff]  ;;  %v456_v58 = vld [vmem:[%s13048_s6 + $0x2e0] sm:$0xff] }
 0x1e8   :  { %v1904_v38 = vmul.f32 %v1541_v46, %v11247_v9  ;;  %v1906_v42 = vmul.f32 %v1612_v4, %v11249_v36  ;;  %8154 = vmatpush3.bf16.msra.mxu1 %v11397_v26  ;;  %8186 = vmatpush3.bf16.msra.mxu0 %v11399_v62  ;;  %v11453_v9 = vpack.c.bf16 %v455_v21, %v454_v24  ;;  %v470_v4 = vld [vmem:[%s13048_s6 + $0x350] sm:$0xff]  ;;  %v471_v46 = vld [vmem:[%s13048_s6 + $0x358] sm:$0xff]  ;;  %v441_v24 = vld [vmem:[%s13048_s6 + $0x268] sm:$0xff] }
 0x1e9   :  { %8156 = vmatprep.subr.bf16.mxu1 %v11409_v10  ;;  %8188 = vmatprep.subr.bf16.mxu0 %v11411_v15  ;;  %v11455_v36 = vpack.c.bf16 %v487_v51, %v486_v49  ;;  %v11477_v44 = vpack.c.bf16 %v439_v63, %v438_v14  ;;  %v11489_v5 = vpack.c.bf16 %v457_v17, %v456_v58  ;;  %v472_v49 = vld [vmem:[%s13048_s6 + $0x360] sm:$0xff]  ;;  %v473_v51 = vld [vmem:[%s13048_s6 + $0x368] sm:$0xff]  ;;  %v458_v14 = vld [vmem:[%s13048_s6 + $0x2f0] sm:$0xff] }
 0x1ea   :  { %13675 = vst [vmem:[#allocation184_spill] sm:$0xff] %v11453_v9  ;;  %2189 = vmatprep.mubr.f32.mxu1 %v1904_v38  ;;  %2259 = vmatprep.mubr.f32.mxu0 %v1906_v42  ;;  %v11479_v38 = vpack.c.bf16 %v471_v46, %v470_v4  ;;  %v440_v42 = vld [vmem:[%s13048_s6 + $0x260] sm:$0xff]  ;;  %v11491_v21 = vpack.c.bf16 %v489_v35, %v488_v12  ;;  %v459_v63 = vld [vmem:[%s13048_s6 + $0x2f8] sm:$0xff]  ;;  %v490_v4 = vld [vmem:[%s13048_s6 + $0x3f0] sm:$0xff] }
 0x1eb   :  { %13676 = vst [vmem:[#allocation185_spill] sm:$0xff] %v11455_v36  ;;  %13677 = vst [vmem:[#allocation186_spill] sm:$0xff] %v11477_v44  ;;  %v491_v46 = vld [vmem:[%s13048_s6 + $0x3f8] sm:$0xff]  ;;  %v11513_v58 = vpack.c.bf16 %v441_v24, %v440_v42  ;;  %v11515_v17 = vpack.c.bf16 %v473_v51, %v472_v49  ;;  %v442_v12 = vld [vmem:[%s13048_s6 + $0x270] sm:$0xff] }
 0x1ec   :  { %8158 = vmatpush3.bf16.msra.mxu1 %v11437_v59  ;;  %8190 = vmatpush3.bf16.msra.mxu0 %v11443_v34  ;;  %13678 = vst [vmem:[#allocation187_spill] sm:$0xff] %v11479_v38  ;;  %13679 = vst [vmem:[#allocation188_spill] sm:$0xff] %v11489_v5  ;;  %v443_v35 = vld [vmem:[%s13048_s6 + $0x278] sm:$0xff]  ;;  %v474_v42 = vld [vmem:[%s13048_s6 + $0x370] sm:$0xff] }
 0x1ed   :  { %8160 = vmatprep.subr.bf16.mxu1 %v11453_v9  ;;  %8192 = vmatprep.subr.bf16.mxu0 %v11455_v36  ;;  %13680 = vst [vmem:[#allocation189_spill] sm:$0xff] %v11491_v21  ;;  %13681 = vst [vmem:[#allocation190_spill] sm:$0xff] %v11513_v58  ;;  %v11525_v36 = vpack.c.bf16 %v459_v63, %v458_v14  ;;  %v475_v24 = vld [vmem:[%s13048_s6 + $0x378] sm:$0xff]  ;;  %v508_v49 = vld [vmem:[%s13048_s6 + $0x480] sm:$0xff] }
 0x1ee   :  { %13682 = vst [vmem:[#allocation191_spill] sm:$0xff] %v11515_v17  ;;  %v509_v51 = vld [vmem:[%s13048_s6 + $0x488] sm:$0xff]  ;;  %v540_v14 = vld [vmem:[%s13048_s6 + $0x580] sm:$0xff]  ;;  %v543_v9 = vld [vmem:[%s13048_s6 + $0x598] sm:$0xff] }
 0x1ef   :  { %13683 = vst [vmem:[#allocation192_spill] sm:$0xff] %v11525_v36  ;;  %v541_v63 = vld [vmem:[%s13048_s6 + $0x588] sm:$0xff]  ;;  %v494_v34 = vld [vmem:[%s13048_s6 + $0x410] sm:$0xff] }
 0x1f0   :  { %8162 = vmatpush3.bf16.msra.mxu1 %v11477_v44  ;;  %8194 = vmatpush3.bf16.msra.mxu0 %v11479_v38  ;;  %v11527_v44 = vpack.c.bf16 %v491_v46, %v490_v4  ;;  %v11549_v4 = vpack.c.bf16 %v443_v35, %v442_v12  ;;  %v11551_v46 = vpack.c.bf16 %v475_v24, %v474_v42  ;;  %v492_v38 = vld [vmem:[%s13048_s6 + $0x400] sm:$0xff]  ;;  %v525_v24 = vld [vmem:[%s13048_s6 + $0x508] sm:$0xff] }
 0x1f1   :  { %8164 = vmatprep.subr.bf16.mxu1 %v11489_v5  ;;  %8196 = vmatprep.subr.bf16.mxu0 %v11491_v21  ;;  %v11555_v21 = vpack.c.bf16 %v509_v51, %v508_v49  ;;  %v11557_v5 = vpack.c.bf16 %v541_v63, %v540_v14  ;;  %v524_v42 = vld [vmem:[%s13048_s6 + $0x500] sm:$0xff]  ;;  %v510_v49 = vld [vmem:[%s13048_s6 + $0x490] sm:$0xff] }
 0x1f2   :  { %13684 = vst [vmem:[#allocation193_spill] sm:$0xff] %v11527_v44 }
 0x1f3   :  { %13685 = vst [vmem:[#allocation194_spill] sm:$0xff] %v11557_v5 }
 0x1f4   :  { %8166 = vmatpush3.bf16.msra.mxu1 %v11513_v58  ;;  %8198 = vmatpush3.bf16.msra.mxu0 %v11515_v17  ;;  %v493_v17 = vld [vmem:[%s13048_s6 + $0x408] sm:$0xff]  ;;  %v542_v58 = vld [vmem:[%s13048_s6 + $0x590] sm:$0xff] }
 0x1f5   :  { %8168 = vmatprep.subr.bf16.mxu1 %v11525_v36  ;;  %8200 = vmatprep.subr.bf16.mxu0 %v11527_v44  ;;  %v511_v36 = vld [vmem:[%s13048_s6 + $0x498] sm:$0xff] }
 0x1f6   :  { %v1681_v12 = vpop.f32.mrb[12].mxu0  ;;  %v1752_v35 = vpop.f32.mrb[12].mxu1 }
 0x1f7   :  { %v11575_v51 = vmul.f32 %v1681_v12, %v11251_v41  ;;  %v11578_v14 = vmul.f32 %v1752_v35, %v11253_v56  ;;  %v1683_v63 = vpop.f32.mrb[13].mxu0  ;;  %v1754_v44 = vpop.f32.mrb[13].mxu1  ;;  %v11593_v56 = vpack.c.bf16 %v493_v17, %v492_v38  ;;  %v11597_v35 = vpack.c.bf16 %v525_v24, %v524_v42  ;;  %v527_v17 = vld [vmem:[%s13048_s6 + $0x518] sm:$0xff]  ;;  %v512_v42 = vld [vmem:[%s13048_s6 + $0x4a0] sm:$0xff]  ;;  %v513_v24 = vld [vmem:[%s13048_s6 + $0x4a8] sm:$0xff] }
 0x1f8   :  { %v1908_v41 = vmul.f32 %v1683_v63, %v11255_v29  ;;  %v1910_v12 = vmul.f32 %v1754_v44, %v11257_v45  ;;  %8170 = vmatpush3.bf16.msra.mxu1 %v11549_v4  ;;  %8202 = vmatpush3.bf16.msra.mxu0 %v11551_v46  ;;  %v495_v45 = vld [vmem:[%s13048_s6 + $0x418] sm:$0xff]  ;;  %v526_v29 = vld [vmem:[%s13048_s6 + $0x510] sm:$0xff]  ;;  %v11608_v44 = vpack.c.bf16 %v511_v36, %v510_v49  ;;  %v545_v36 = vld [vmem:[%s13048_s6 + $0x5a8] sm:$0xff] }
 0x1f9   :  { %13686 = vst [vmem:[#allocation195_spill] sm:$0xff] %v11593_v56  ;;  %8204 = vmatprep.subr.bf16.mxu1 %v11555_v21  ;;  %8236 = vmatprep.subr.bf16.mxu0 %v11557_v5  ;;  %13687 = vst [vmem:[#allocation196_spill] sm:$0xff] %v11597_v35  ;;  %v11610_v38 = vpack.c.bf16 %v543_v9, %v542_v58  ;;  %v544_v9 = vld [vmem:[%s13048_s6 + $0x5a0] sm:$0xff]  ;;  %v11630_v58 = vpack.c.bf16 %v495_v45, %v494_v34  ;;  %v497_v63 = vld [vmem:[%s13048_s6 + $0x428] sm:$0xff] }
 0x1fa   :  { %13688 = vst [vmem:[#allocation197_spill] sm:$0xff] %v11608_v44  ;;  %v11633_v49 = vpack.c.bf16 %v527_v17, %v526_v29  ;;  %v528_v34 = vld [vmem:[%s13048_s6 + $0x520] sm:$0xff]  ;;  %v514_v45 = vld [vmem:[%s13048_s6 + $0x4b0] sm:$0xff]  ;;  %v515_v29 = vld [vmem:[%s13048_s6 + $0x4b8] sm:$0xff] }
 0x1fb   :  { %13689 = vst [vmem:[#allocation198_spill] sm:$0xff] %v11610_v38  ;;  %2190 = vmatmul.mubr.f32.vlgmr.msra.gmra.mrb[18].mxu1 %v11432_v20  ;;  %2260 = vmatmul.mubr.f32.vlgmr.msra.gmra.mrb[20].mxu0 %v11435_v31  ;;  %13690 = vst [vmem:[#allocation199_spill] sm:$0xff] %v11630_v58  ;;  %v11635_v20 = vpack.c.bf16 %v513_v24, %v512_v42  ;;  %v496_v31 = vld [vmem:[%s13048_s6 + $0x420] sm:$0xff]  ;;  %v546_v17 = vld [vmem:[%s13048_s6 + $0x5b0] sm:$0xff] }
 0x1fc   :  { %8206 = vmatpush3.bf16.msra.mxu1 %v11593_v56  ;;  %2329 = vmatprep.mubr.f32.mxu1 %v1908_v41  ;;  %13691 = vst [vmem:[#allocation200_spill] sm:$0xff] %v11633_v49  ;;  %v11648_v41 = vpack.c.bf16 %v545_v36, %v544_v9  ;;  %v547_v42 = vld [vmem:[%s13048_s6 + $0x5b8] sm:$0xff]  ;;  %v11666_v24 = vpack.c.bf16 %v497_v63, %v496_v31  ;;  %v530_v31 = vld [vmem:[%s13048_s6 + $0x530] sm:$0xff] }
 0x1fd   :  { %8238 = vmatpush3.bf16.msra.mxu0 %v11597_v35  ;;  %2399 = vmatprep.mubr.f32.mxu0 %v1910_v12  ;;  %13692 = vst [vmem:[#allocation201_spill] sm:$0xff] %v11635_v20  ;;  %v529_v12 = vld [vmem:[%s13048_s6 + $0x528] sm:$0xff]  ;;  %v11672_v36 = vpack.c.bf16 %v515_v29, %v514_v45  ;;  %v11684_v63 = vpack.c.bf16 %v547_v42, %v546_v17  ;;  %v548_v29 = vld [vmem:[%s13048_s6 + $0x5c0] sm:$0xff]  ;;  %v551_v35 = vld [vmem:[%s13048_s6 + $0x5d8] sm:$0xff] }
 0x1fe   :  { %8208 = vmatprep.subr.bf16.mxu1 %v11608_v44  ;;  %8240 = vmatprep.subr.bf16.mxu0 %v11610_v38  ;;  %13693 = vst [vmem:[#allocation202_spill] sm:$0xff] %v11648_v41  ;;  %13694 = vst [vmem:[#allocation203_spill] sm:$0xff] %v11666_v24  ;;  %v11670_v9 = vpack.c.bf16 %v529_v12, %v528_v34  ;;  %v498_v38 = vld [vmem:[%s13048_s6 + $0x430] sm:$0xff]  ;;  %v499_v44 = vld [vmem:[%s13048_s6 + $0x438] sm:$0xff] }
 0x1ff   :  { %13696 = vst [vmem:[#allocation205_spill] sm:$0xff] %v11672_v36  ;;  %13697 = vst [vmem:[#allocation206_spill] sm:$0xff] %v11684_v63  ;;  %v531_v34 = vld [vmem:[%s13048_s6 + $0x538] sm:$0xff]  ;;  %v516_v12 = vld [vmem:[%s13048_s6 + $0x4c0] sm:$0xff]  ;;  %v11702_v42 = vpack.c.bf16 %v499_v44, %v498_v38 }
 0x200   :  { %8210 = vmatpush3.bf16.msra.mxu1 %v11630_v58  ;;  %13695 = vst [vmem:[#allocation204_spill] sm:$0xff] %v11670_v9  ;;  %v517_v45 = vld [vmem:[%s13048_s6 + $0x4c8] sm:$0xff]  ;;  %v532_v44 = vld [vmem:[%s13048_s6 + $0x540] sm:$0xff] }
 0x201   :  { %8242 = vmatpush3.bf16.msra.mxu0 %v11633_v49  ;;  %8212 = vmatprep.subr.bf16.mxu1 %v11635_v20  ;;  %v549_v17 = vld [vmem:[%s13048_s6 + $0x5c8] sm:$0xff]  ;;  %v11708_v20 = vpack.c.bf16 %v517_v45, %v516_v12  ;;  %v500_v49 = vld [vmem:[%s13048_s6 + $0x440] sm:$0xff]  ;;  %v518_v12 = vld [vmem:[%s13048_s6 + $0x4d0] sm:$0xff] }
 0x202   :  { %8244 = vmatprep.subr.bf16.mxu0 %v11648_v41  ;;  %v11706_v41 = vpack.c.bf16 %v531_v34, %v530_v31  ;;  %v501_v58 = vld [vmem:[%s13048_s6 + $0x448] sm:$0xff]  ;;  %v11720_v31 = vpack.c.bf16 %v549_v17, %v548_v29  ;;  %v519_v45 = vld [vmem:[%s13048_s6 + $0x4d8] sm:$0xff] }
 0x203   :  { %13698 = vst [vmem:[#allocation207_spill] sm:$0xff] %v11708_v20  ;;  %v533_v34 = vld [vmem:[%s13048_s6 + $0x548] sm:$0xff] }
 0x204   :  { %8214 = vmatpush3.bf16.msra.mxu1 %v11666_v24  ;;  %13699 = vst [vmem:[#allocation208_spill] sm:$0xff] %v11720_v31 }
 0x205   :  { %8246 = vmatpush3.bf16.msra.mxu0 %v11670_v9  ;;  %8216 = vmatprep.subr.bf16.mxu1 %v11672_v36 }
 0x206   :  { %v1823_v38 = vpop.f32.mrb[14].mxu0  ;;  %v1894_v9 = vpop.f32.mrb[14].mxu1  ;;  %8248 = vmatprep.subr.bf16.mxu0 %v11684_v63  ;;  %v550_v63 = vld [vmem:[%s13048_s6 + $0x5d0] sm:$0xff] }
 0x207   :  { %v11732_v36 = vmul.f32 %v1823_v38, %v11259_v30  ;;  %v11735_v24 = vmul.f32 %v1894_v9, %v11261_v61  ;;  %v1825_v29 = vpop.f32.mrb[15].mxu0  ;;  %v1896_v17 = vpop.f32.mrb[15].mxu1  ;;  %v11750_v61 = vpack.c.bf16 %v501_v58, %v500_v49  ;;  %v11754_v30 = vpack.c.bf16 %v533_v34, %v532_v44  ;;  %v534_v58 = vld [vmem:[%s13048_s6 + $0x550] sm:$0xff]  ;;  %v535_v44 = vld [vmem:[%s13048_s6 + $0x558] sm:$0xff]  ;;  %v520_v38 = vld [vmem:[%s13048_s6 + $0x4e0] sm:$0xff] }
 0x208   :  { %v11744_v56 = vmul.f32 %v1825_v29, %v11263_v40  ;;  %v11747_v5 = vmul.f32 %v1896_v17, %v11265_v13  ;;  %8218 = vmatpush3.bf16.msra.mxu1 %v11702_v42  ;;  %v11756_v9 = vpack.c.bf16 %v519_v45, %v518_v12  ;;  %v502_v40 = vld [vmem:[%s13048_s6 + $0x450] sm:$0xff]  ;;  %v503_v13 = vld [vmem:[%s13048_s6 + $0x458] sm:$0xff]  ;;  %v11768_v49 = vpack.c.bf16 %v551_v35, %v550_v63  ;;  %v521_v34 = vld [vmem:[%s13048_s6 + $0x4e8] sm:$0xff] }
 0x209   :  { %13700 = vst [vmem:[#allocation209_spill] sm:$0xff] %v11750_v61  ;;  %8250 = vmatpush3.bf16.msra.mxu0 %v11706_v41  ;;  %8220 = vmatprep.subr.bf16.mxu1 %v11708_v20  ;;  %13701 = vst [vmem:[#allocation210_spill] sm:$0xff] %v11754_v30  ;;  %v552_v12 = vld [vmem:[%s13048_s6 + $0x5e0] sm:$0xff]  ;;  %v553_v35 = vld [vmem:[%s13048_s6 + $0x5e8] sm:$0xff]  ;;  %v11786_v63 = vpack.c.bf16 %v503_v13, %v502_v40  ;;  %v11790_v45 = vpack.c.bf16 %v535_v44, %v534_v58 }
 0x20a   :  { %13702 = vst [vmem:[#allocation211_spill] sm:$0xff] %v11756_v9  ;;  %8252 = vmatprep.subr.bf16.mxu0 %v11720_v31  ;;  %13703 = vst [vmem:[#allocation212_spill] sm:$0xff] %v11768_v49  ;;  %v11792_v29 = vpack.c.bf16 %v521_v34, %v520_v38  ;;  %v504_v17 = vld [vmem:[%s13048_s6 + $0x460] sm:$0xff]  ;;  %v505_v31 = vld [vmem:[%s13048_s6 + $0x468] sm:$0xff]  ;;  %v11804_v13 = vpack.c.bf16 %v553_v35, %v552_v12 }
 0x20b   :  { %13704 = vst [vmem:[#allocation213_spill] sm:$0xff] %v11786_v63  ;;  %13705 = vst [vmem:[#allocation214_spill] sm:$0xff] %v11790_v45  ;;  %v536_v40 = vld [vmem:[%s13048_s6 + $0x560] sm:$0xff]  ;;  %v537_v58 = vld [vmem:[%s13048_s6 + $0x568] sm:$0xff]  ;;  %v11822_v35 = vpack.c.bf16 %v505_v31, %v504_v17 }
 0x20c   :  { %8222 = vmatpush3.bf16.msra.mxu1 %v11750_v61  ;;  %13706 = vst [vmem:[#allocation215_spill] sm:$0xff] %v11792_v29  ;;  %13707 = vst [vmem:[#allocation216_spill] sm:$0xff] %v11804_v13  ;;  %v522_v44 = vld [vmem:[%s13048_s6 + $0x4f0] sm:$0xff]  ;;  %v523_v38 = vld [vmem:[%s13048_s6 + $0x4f8] sm:$0xff] }
 0x20d   :  { %8254 = vmatpush3.bf16.msra.mxu0 %v11754_v30  ;;  %8224 = vmatprep.subr.bf16.mxu1 %v11756_v9  ;;  %v554_v34 = vld [vmem:[%s13048_s6 + $0x5f0] sm:$0xff]  ;;  %v555_v12 = vld [vmem:[%s13048_s6 + $0x5f8] sm:$0xff]  ;;  %v11828_v9 = vpack.c.bf16 %v523_v38, %v522_v44  ;;  %v573_v44 = vld [vmem:[%s13048_s6 + $0x688] sm:$0xff] }
 0x20e   :  { %8256 = vmatprep.subr.bf16.mxu0 %v11768_v49  ;;  %v11826_v49 = vpack.c.bf16 %v537_v58, %v536_v40  ;;  %v506_v30 = vld [vmem:[%s13048_s6 + $0x470] sm:$0xff]  ;;  %v507_v61 = vld [vmem:[%s13048_s6 + $0x478] sm:$0xff]  ;;  %v11840_v17 = vpack.c.bf16 %v555_v12, %v554_v34  ;;  %v572_v58 = vld [vmem:[%s13048_s6 + $0x680] sm:$0xff] }
 0x20f   :  { %13708 = vst [vmem:[#allocation217_spill] sm:$0xff] %v11828_v9  ;;  %v538_v31 = vld [vmem:[%s13048_s6 + $0x570] sm:$0xff]  ;;  %v539_v40 = vld [vmem:[%s13048_s6 + $0x578] sm:$0xff]  ;;  %v604_v38 = vld [vmem:[%s13048_s6 + $0x780] sm:$0xff]  ;;  %v11858_v12 = vpack.c.bf16 %v507_v61, %v506_v30 }
 0x210   :  { %8226 = vmatpush3.bf16.msra.mxu1 %v11786_v63  ;;  %13709 = vst [vmem:[#allocation218_spill] sm:$0xff] %v11840_v17  ;;  %v605_v34 = vld [vmem:[%s13048_s6 + $0x788] sm:$0xff]  ;;  %v588_v30 = vld [vmem:[%s13048_s6 + $0x700] sm:$0xff] }
 0x211   :  { %8258 = vmatpush3.bf16.msra.mxu0 %v11790_v45  ;;  %8228 = vmatprep.subr.bf16.mxu1 %v11792_v29  ;;  %13710 = vst [vmem:[#allocation219_spill] sm:$0xff] %v11858_v12  ;;  %v11864_v29 = vpack.c.bf16 %v573_v44, %v572_v58  ;;  %v556_v45 = vld [vmem:[%s13048_s6 + $0x600] sm:$0xff]  ;;  %v557_v63 = vld [vmem:[%s13048_s6 + $0x608] sm:$0xff]  ;;  %v11875_v61 = vpack.c.bf16 %v605_v34, %v604_v38  ;;  %v574_v58 = vld [vmem:[%s13048_s6 + $0x690] sm:$0xff] }
 0x212   :  { %8260 = vmatprep.subr.bf16.mxu0 %v11804_v13  ;;  %v11862_v13 = vpack.c.bf16 %v539_v40, %v538_v31  ;;  %v589_v31 = vld [vmem:[%s13048_s6 + $0x708] sm:$0xff]  ;;  %v575_v44 = vld [vmem:[%s13048_s6 + $0x698] sm:$0xff]  ;;  %v11890_v38 = vpack.c.bf16 %v557_v63, %v556_v45  ;;  %v606_v34 = vld [vmem:[%s13048_s6 + $0x790] sm:$0xff] }
 0x213   :  { %13712 = vst [vmem:[#allocation221_spill] sm:$0xff] %v11864_v29  ;;  %13713 = vst [vmem:[#allocation222_spill] sm:$0xff] %v11875_v61  ;;  %v559_v63 = vld [vmem:[%s13048_s6 + $0x618] sm:$0xff]  ;;  %v590_v45 = vld [vmem:[%s13048_s6 + $0x710] sm:$0xff] }
 0x214   :  { %8230 = vmatpush3.bf16.msra.mxu1 %v11822_v35  ;;  %13711 = vst [vmem:[#allocation220_spill] sm:$0xff] %v11862_v13 }
 0x215   :  { %8262 = vmatpush3.bf16.msra.mxu0 %v11826_v49  ;;  %8232 = vmatprep.subr.bf16.mxu1 %v11828_v9  ;;  %v11912_v9 = vpack.c.bf16 %v575_v44, %v574_v58  ;;  %v608_v58 = vld [vmem:[%s13048_s6 + $0x7a0] sm:$0xff]  ;;  %v609_v44 = vld [vmem:[%s13048_s6 + $0x7a8] sm:$0xff] }
 0x216   :  { %v11872_v20 = vpop.f32.mrb[16].mxu0  ;;  %8264 = vmatprep.subr.bf16.mxu0 %v11840_v17  ;;  %v11900_v17 = vpack.c.bf16 %v589_v31, %v588_v30  ;;  %v591_v30 = vld [vmem:[%s13048_s6 + $0x718] sm:$0xff]  ;;  %v576_v31 = vld [vmem:[%s13048_s6 + $0x6a0] sm:$0xff] }
 0x217   :  { %v7757_v40 = vpop.f32.mrb[17].mxu0  ;;  %13715 = vst [vmem:[#allocation224_spill] sm:$0xff] %v11912_v9 }
 0x218   :  { %8234 = vmatpush3.bf16.msra.mxu1 %v11858_v12  ;;  %v607_v40 = vld [vmem:[%s13048_s6 + $0x798] sm:$0xff]  ;;  %13714 = vst [vmem:[#allocation223_spill] sm:$0xff] %v11900_v17  ;;  %v558_v12 = vld [vmem:[%s13048_s6 + $0x610] sm:$0xff] }
 0x219   :  { %8266 = vmatpush3.bf16.msra.mxu0 %v11862_v13  ;;  %8268 = vmatprep.subr.bf16.mxu1 %v11864_v29  ;;  %v577_v29 = vld [vmem:[%s13048_s6 + $0x6a8] sm:$0xff]  ;;  %v11924_v13 = vpack.c.bf16 %v607_v40, %v606_v34  ;;  %v560_v40 = vld [vmem:[%s13048_s6 + $0x620] sm:$0xff] }
 0x21a   :  { %8300 = vmatprep.subr.bf16.mxu0 %v11875_v61  ;;  %v11934_v61 = vpack.c.bf16 %v559_v63, %v558_v12  ;;  %v11940_v34 = vpack.c.bf16 %v577_v29, %v576_v31  ;;  %v592_v12 = vld [vmem:[%s13048_s6 + $0x720] sm:$0xff]  ;;  %v593_v29 = vld [vmem:[%s13048_s6 + $0x728] sm:$0xff]  ;;  %v578_v63 = vld [vmem:[%s13048_s6 + $0x6b0] sm:$0xff] }
 0x21b   :  { %2330 = vmatmul.mubr.f32.vlgmr.msra.gmra.mrb[20].mxu1 %v11575_v51  ;;  %13716 = vst [vmem:[#allocation225_spill] sm:$0xff] %v11924_v13  ;;  %v11938_v51 = vpack.c.bf16 %v591_v30, %v590_v45  ;;  %v579_v45 = vld [vmem:[%s13048_s6 + $0x6b8] sm:$0xff] }
 0x21c   :  { %2400 = vmatmul.mubr.f32.vlgmr.msra.gmra.mrb[22].mxu0 %v11578_v14  ;;  %8270 = vmatpush3.bf16.msra.mxu1 %v11890_v38  ;;  %13717 = vst [vmem:[#allocation226_spill] sm:$0xff] %v11934_v61  ;;  %13719 = vst [vmem:[#allocation228_spill] sm:$0xff] %v11940_v34  ;;  %v561_v14 = vld [vmem:[%s13048_s6 + $0x628] sm:$0xff]  ;;  %v611_v30 = vld [vmem:[%s13048_s6 + $0x7b8] sm:$0xff] }
 0x21d   :  { %2469 = vmatprep.mubr.f32.mxu1 %v11744_v56  ;;  %8302 = vmatpush3.bf16.msra.mxu0 %v11900_v17  ;;  %13718 = vst [vmem:[#allocation227_spill] sm:$0xff] %v11938_v51  ;;  %v11953_v56 = vpack.c.bf16 %v609_v44, %v608_v58  ;;  %v11972_v31 = vpack.c.bf16 %v561_v14, %v560_v40  ;;  %v594_v40 = vld [vmem:[%s13048_s6 + $0x730] sm:$0xff] }
 0x21e   :  { %2539 = vmatprep.mubr.f32.mxu0 %v11747_v5  ;;  %8272 = vmatprep.subr.bf16.mxu1 %v11912_v9  ;;  %v610_v5 = vld [vmem:[%s13048_s6 + $0x7b0] sm:$0xff]  ;;  %v11976_v58 = vpack.c.bf16 %v593_v29, %v592_v12  ;;  %v11978_v44 = vpack.c.bf16 %v579_v45, %v578_v63  ;;  %v563_v9 = vld [vmem:[%s13048_s6 + $0x638] sm:$0xff]  ;;  %v580_v29 = vld [vmem:[%s13048_s6 + $0x6c0] sm:$0xff] }
 0x21f   :  { %13720 = vst [vmem:[#allocation229_spill] sm:$0xff] %v11953_v56  ;;  %8304 = vmatprep.subr.bf16.mxu0 %v11924_v13  ;;  %13721 = vst [vmem:[#allocation230_spill] sm:$0xff] %v11972_v31  ;;  %v562_v13 = vld [vmem:[%s13048_s6 + $0x630] sm:$0xff]  ;;  %v11990_v14 = vpack.c.bf16 %v611_v30, %v610_v5  ;;  %v595_v12 = vld [vmem:[%s13048_s6 + $0x738] sm:$0xff] }
 0x220   :  { %8274 = vmatpush3.bf16.msra.mxu1 %v11934_v61  ;;  %13722 = vst [vmem:[#allocation231_spill] sm:$0xff] %v11976_v58  ;;  %13723 = vst [vmem:[#allocation232_spill] sm:$0xff] %v11978_v44  ;;  %v581_v63 = vld [vmem:[%s13048_s6 + $0x6c8] sm:$0xff]  ;;  %v612_v45 = vld [vmem:[%s13048_s6 + $0x7c0] sm:$0xff]  ;;  %v12008_v30 = vpack.c.bf16 %v563_v9, %v562_v13 }
 0x221   :  { %8306 = vmatpush3.bf16.msra.mxu0 %v11938_v51  ;;  %8276 = vmatprep.subr.bf16.mxu1 %v11940_v34  ;;  %13724 = vst [vmem:[#allocation233_spill] sm:$0xff] %v11990_v14  ;;  %v613_v5 = vld [vmem:[%s13048_s6 + $0x7c8] sm:$0xff]  ;;  %v12014_v34 = vpack.c.bf16 %v581_v63, %v580_v29  ;;  %v564_v51 = vld [vmem:[%s13048_s6 + $0x640] sm:$0xff]  ;;  %v583_v29 = vld [vmem:[%s13048_s6 + $0x6d8] sm:$0xff] }
 0x222   :  { %8308 = vmatprep.subr.bf16.mxu0 %v11953_v56  ;;  %13725 = vst [vmem:[#allocation234_spill] sm:$0xff] %v12008_v30  ;;  %v12012_v56 = vpack.c.bf16 %v595_v12, %v594_v40  ;;  %v565_v61 = vld [vmem:[%s13048_s6 + $0x648] sm:$0xff]  ;;  %v596_v9 = vld [vmem:[%s13048_s6 + $0x740] sm:$0xff]  ;;  %v12026_v13 = vpack.c.bf16 %v613_v5, %v612_v45  ;;  %v582_v12 = vld [vmem:[%s13048_s6 + $0x6d0] sm:$0xff] }
 0x223   :  { %13727 = vst [vmem:[#allocation236_spill] sm:$0xff] %v12014_v34  ;;  %v597_v40 = vld [vmem:[%s13048_s6 + $0x748] sm:$0xff]  ;;  %v614_v63 = vld [vmem:[%s13048_s6 + $0x7d0] sm:$0xff]  ;;  %v615_v45 = vld [vmem:[%s13048_s6 + $0x7d8] sm:$0xff]  ;;  %v12044_v5 = vpack.c.bf16 %v565_v61, %v564_v51 }
 0x224   :  { %8278 = vmatpush3.bf16.msra.mxu1 %v11972_v31  ;;  %13726 = vst [vmem:[#allocation235_spill] sm:$0xff] %v12012_v56  ;;  %13728 = vst [vmem:[#allocation237_spill] sm:$0xff] %v12026_v13  ;;  %v567_v31 = vld [vmem:[%s13048_s6 + $0x658] sm:$0xff]  ;;  %v598_v61 = vld [vmem:[%s13048_s6 + $0x750] sm:$0xff]  ;;  %v12062_v51 = vpack.c.bf16 %v615_v45, %v614_v63 }
 0x225   :  { %8310 = vmatpush3.bf16.msra.mxu0 %v11976_v58  ;;  %8280 = vmatprep.subr.bf16.mxu1 %v11978_v44  ;;  %13729 = vst [vmem:[#allocation238_spill] sm:$0xff] %v12044_v5  ;;  %v12050_v44 = vpack.c.bf16 %v583_v29, %v582_v12  ;;  %v566_v58 = vld [vmem:[%s13048_s6 + $0x650] sm:$0xff]  ;;  %v585_v12 = vld [vmem:[%s13048_s6 + $0x6e8] sm:$0xff]  ;;  %v616_v29 = vld [vmem:[%s13048_s6 + $0x7e0] sm:$0xff] }
 0x226   :  { %8312 = vmatprep.subr.bf16.mxu0 %v11990_v14  ;;  %v12048_v14 = vpack.c.bf16 %v597_v40, %v596_v9  ;;  %13732 = vst [vmem:[#allocation241_spill] sm:$0xff] %v12062_v51  ;;  %v599_v9 = vld [vmem:[%s13048_s6 + $0x758] sm:$0xff]  ;;  %v584_v40 = vld [vmem:[%s13048_s6 + $0x6e0] sm:$0xff]  ;;  %v617_v63 = vld [vmem:[%s13048_s6 + $0x7e8] sm:$0xff]  ;;  %v12080_v45 = vpack.c.bf16 %v567_v31, %v566_v58 }
 0x227   :  { %13731 = vst [vmem:[#allocation240_spill] sm:$0xff] %v12050_v44  ;;  %v600_v31 = vld [vmem:[%s13048_s6 + $0x760] sm:$0xff]  ;;  %v12098_v58 = vpack.c.bf16 %v617_v63, %v616_v29  ;;  %v619_v29 = vld [vmem:[%s13048_s6 + $0x7f8] sm:$0xff] }
 0x228   :  { %8282 = vmatpush3.bf16.msra.mxu1 %v12008_v30  ;;  %13730 = vst [vmem:[#allocation239_spill] sm:$0xff] %v12048_v14  ;;  %13733 = vst [vmem:[#allocation242_spill] sm:$0xff] %v12080_v45  ;;  %v569_v30 = vld [vmem:[%s13048_s6 + $0x668] sm:$0xff] }
 0x229   :  { %8314 = vmatpush3.bf16.msra.mxu0 %v12012_v56  ;;  %8284 = vmatprep.subr.bf16.mxu1 %v12014_v34  ;;  %v12086_v34 = vpack.c.bf16 %v585_v12, %v584_v40  ;;  %v568_v56 = vld [vmem:[%s13048_s6 + $0x660] sm:$0xff]  ;;  %13736 = vst [vmem:[#allocation245_spill] sm:$0xff] %v12098_v58  ;;  %v587_v40 = vld [vmem:[%s13048_s6 + $0x6f8] sm:$0xff]  ;;  %v618_v12 = vld [vmem:[%s13048_s6 + $0x7f0] sm:$0xff] }
 0x22a   :  { %8316 = vmatprep.subr.bf16.mxu0 %v12026_v13  ;;  %v12084_v13 = vpack.c.bf16 %v599_v9, %v598_v61  ;;  %v601_v61 = vld [vmem:[%s13048_s6 + $0x768] sm:$0xff]  ;;  %v586_v9 = vld [vmem:[%s13048_s6 + $0x6f0] sm:$0xff]  ;;  %v12116_v63 = vpack.c.bf16 %v569_v30, %v568_v56  ;;  %v12131_v56 = vpack.c.bf16 %v619_v29, %v618_v12 }
 0x22b   :  { %13735 = vst [vmem:[#allocation244_spill] sm:$0xff] %v12086_v34  ;;  %v602_v30 = vld [vmem:[%s13048_s6 + $0x770] sm:$0xff] }
 0x22c   :  { %8286 = vmatpush3.bf16.msra.mxu1 %v12044_v5  ;;  %13734 = vst [vmem:[#allocation243_spill] sm:$0xff] %v12084_v13  ;;  %13737 = vst [vmem:[#allocation246_spill] sm:$0xff] %v12116_v63  ;;  %v571_v5 = vld [vmem:[%s13048_s6 + $0x678] sm:$0xff] }
 0x22d   :  { %8318 = vmatpush3.bf16.msra.mxu0 %v12048_v14  ;;  %8288 = vmatprep.subr.bf16.mxu1 %v12050_v44  ;;  %v12122_v44 = vpack.c.bf16 %v587_v40, %v586_v9  ;;  %v570_v14 = vld [vmem:[%s13048_s6 + $0x670] sm:$0xff]  ;;  %13740 = vst [vmem:[#allocation249_spill] sm:$0xff] %v12131_v56 }
 0x22e   :  { %8320 = vmatprep.subr.bf16.mxu0 %v12062_v51  ;;  %v12120_v51 = vpack.c.bf16 %v601_v61, %v600_v31  ;;  %v603_v31 = vld [vmem:[%s13048_s6 + $0x778] sm:$0xff]  ;;  %v12140_v61 = vpack.c.bf16 %v571_v5, %v570_v14  ;;  %s12209_s6 = sld [smem:[#allocation10 + $0xb]] }
 0x22f   :  { %13739 = vst [vmem:[#allocation248_spill] sm:$0xff] %v12122_v44  ;;  %v12144_v9 = vpack.c.bf16 %v603_v31, %v602_v30 }
 0x230   :  { %8290 = vmatpush3.bf16.msra.mxu1 %v12080_v45  ;;  %13738 = vst [vmem:[#allocation247_spill] sm:$0xff] %v12120_v51  ;;  %13741 = vst [vmem:[#allocation250_spill] sm:$0xff] %v12140_v61 }
 0x231   :  { %8322 = vmatpush3.bf16.msra.mxu0 %v12084_v13  ;;  %8292 = vmatprep.subr.bf16.mxu1 %v12086_v34  ;;  %13742 = vst [vmem:[#allocation251_spill] sm:$0xff] %v12144_v9 }
 0x232   :  { %8324 = vmatprep.subr.bf16.mxu0 %v12098_v58 }
 0x234   :  { %8294 = vmatpush3.bf16.msra.mxu1 %v12116_v63 }
 0x235   :  { %8326 = vmatpush3.bf16.msra.mxu0 %v12120_v51  ;;  %8296 = vmatprep.subr.bf16.mxu1 %v12122_v44 }
 0x236   :  { %8328 = vmatprep.subr.bf16.mxu0 %v12131_v56 }
 0x238   :  { %8298 = vmatpush3.bf16.msra.mxu1 %v12140_v61 }
 0x239   :  { %8330 = vmatpush3.bf16.msra.mxu0 %v12144_v9  ;;  %8332 = vmatprep.subr.bf16.mxu1 %v9641_v19 }
 0x23a   :  { %8348 = vmatprep.subr.bf16.mxu0 %v9651_v22 }
 0x23b   :  { %2470 = vmatmul.mubr.f32.vlgmr.msra.gmra.mrb[22].mxu1 %v11732_v36 }
 0x23c   :  { %2540 = vmatmul.mubr.f32.vlgmr.msra.gmra.mrb[24].mxu0 %v11735_v24  ;;  %8334 = vmatpush1.bf16.msra.mxu1 %v9664_v25 }
 0x23d   :  { %8350 = vmatpush1.bf16.msra.mxu0 %v9675_v28  ;;  %8336 = vmatprep.subr.bf16.mxu1 %v9687_v32 }
 0x23e   :  { %8352 = vmatprep.subr.bf16.mxu0 %v9689_v33  ;;  %2780 = vmatprep.mubr.f32.mxu1 %v13552_v52 }
 0x23f   :  { %2851 = vmatprep.mubr.f32.mxu0 %v13552_v52 }
 0x240   :  { %8338 = vmatpush1.bf16.msra.mxu1 %v9703_v39 }
 0x241   :  { %8354 = vmatpush1.bf16.msra.mxu0 %v9714_v43  ;;  %8340 = vmatprep.subr.bf16.mxu1 %v9736_v50 }
 0x242   :  { %8356 = vmatprep.subr.bf16.mxu0 %v9746_v53 }
 0x244   :  { %8342 = vmatpush1.bf16.msra.mxu1 %v9758_v57 }
 0x245   :  { %8358 = vmatpush1.bf16.msra.mxu0 %v9770_v60  ;;  %8344 = vmatprep.subr.bf16.mxu1 %v9783_v0 }
 0x246   :  { %8360 = vmatprep.subr.bf16.mxu0 %v9792_v3 }
 0x248   :  { %8346 = vmatpush1.bf16.msra.mxu1 %v9805_v8 }
 0x249   :  { %8362 = vmatpush1.bf16.msra.mxu0 %v9814_v11  ;;  %8364 = vmatprep.subr.bf16.mxu1 %v9833_v18 }
 0x24a   :  { %8380 = vmatprep.subr.bf16.mxu0 %v9841_v23 }
 0x2ae   :  { %v6907_v24 = vpop.f32.mrb[16].mxu1  ;;  %v6942_v36 = vpop.f32.mrb[18].mxu0 }
 0x2af   :  { %v6908_v14 = vpop.f32.mrb[17].mxu1  ;;  %v6943_v5 = vpop.f32.mrb[19].mxu0 }
 0x2b0   :  { %v6909_v40 = vadd.f32 %v6908_v14, %v6907_v24  ;;  %v6944_v12 = vadd.f32 %v6943_v5, %v6942_v36 }
 0x2b2   :  { %v2052_v29 = vadd.f32 %v6909_v40, %v11872_v20 }
 0x2b4   :  { %v2122_v30 = vadd.f32 %v6944_v12, %v2052_v29 }
 0x2ce   :  { %v6977_v31 = vpop.f32.mrb[18].mxu1  ;;  %v7012_v0 = vpop.f32.mrb[20].mxu0 }
 0x2cf   :  { %v6978_v3 = vpop.f32.mrb[19].mxu1  ;;  %v7013_v60 = vpop.f32.mrb[21].mxu0 }
 0x2d0   :  { %v6979_v8 = vadd.f32 %v6978_v3, %v6977_v31  ;;  %v7014_v57 = vadd.f32 %v7013_v60, %v7012_v0  ;;  %v6757_v60 = vld [vmem:[%s13050_s8] ss:$0 sm:$0xff] }
 0x2d2   :  { %v2192_v11 = vadd.f32 %v6979_v8, %v2122_v30 }
 0x2d4   :  { %v2262_v53 = vadd.f32 %v7014_v57, %v2192_v11 }
 0x2ee   :  { %v7047_v18 = vpop.f32.mrb[20].mxu1 }
 0x2ef   :  { %v7082_v50 = vpop.f32.mrb[22].mxu0  ;;  %v7048_v23 = vpop.f32.mrb[21].mxu1 }
 0x2f0   :  { %v7049_v43 = vadd.f32 %v7048_v23, %v7047_v18  ;;  %v7083_v39 = vpop.f32.mrb[23].mxu0 }
 0x2f1   :  { %v7084_v33 = vadd.f32 %v7083_v39, %v7082_v50 }
 0x2f2   :  { %v2332_v32 = vadd.f32 %v7049_v43, %v2262_v53 }
 0x2f4   :  { %v2402_v24 = vadd.f32 %v7084_v33, %v2332_v32 }
 0x30e   :  { %v7117_v36 = vpop.f32.mrb[22].mxu1 }
 0x30f   :  { %v7152_v14 = vpop.f32.mrb[24].mxu0  ;;  %v7118_v20 = vpop.f32.mrb[23].mxu1 }
 0x310   :  { %v7119_v5 = vadd.f32 %v7118_v20, %v7117_v36  ;;  %v7153_v40 = vpop.f32.mrb[25].mxu0 }
 0x311   :  { %v7154_v12 = vadd.f32 %v7153_v40, %v7152_v14 }
 0x312   :  { %v2472_v29 = vadd.f32 %v7119_v5, %v2402_v24 }
 0x314   :  { %v2542_v57 = vadd.f32 %v7154_v12, %v2472_v29 }
 0x316   :  { %v2551_v0 = vadd.f32 %v6757_v60, %v2542_v57 }
 0x318   :  { %9397 = vtanh.f32 %v2551_v0 }
 0x322   :  { %v9398_v32 = vpop.eup %9397 }
 0x323   :  { %2555 = vst.msk [vmem:[%s2554_s21] sm:$0x1] %vm91_vm0, %v9398_v32  ;;  %s2602_s21 = scalar_lea.vmem [#allocation2], %s12189_s20  ;;  %s2698_s20 = scalar_lea.vmem [#allocation2], %s12196_s24 }
 0x324   :  { %2559 = vst.msk [vmem:[%s2557_s17 - $0x1] sm:$0x2] %vm2558_vm4, %v9398_v32  ;;  %s2634_s17 = scalar_lea.vmem [#allocation2], %s12187_s19  ;;  %s2637_s19 = scalar_lea.vmem [#allocation2], %s12209_s6 }
 0x325   :  { %2563 = vst.msk [vmem:[%s2561_s25 - $0x2] sm:$0x4] %vm2562_vm5, %v9398_v32  ;;  %s2650_s25 = scalar_lea.vmem [#allocation2], %s12193_s15  ;;  %s2621_s15 = scalar_lea.vmem [#allocation2], %s12215_s4 }
 0x326   :  { %2567 = vst.msk [vmem:[%s2565_s16 - $0x3] sm:$0x8] %vm2566_vm6, %v9398_v32  ;;  %s2666_s16 = scalar_lea.vmem [#allocation2], %s12191_s14  ;;  %s6784_s14 = sld [smem:[#allocation10 + $0xe]] }
 0x327   :  { %2571 = vst.msk [vmem:[%s2569_s1 - $0x4] sm:$0x10] %vm2570_vm7, %v9398_v32  ;;  %s2669_s24 = scalar_lea.vmem [#allocation2], %s12217_s30  ;;  %s6806_s6 = sld [smem:[#allocation5 + $0x8]] }
 0x328   :  { %2575 = vst.msk [vmem:[%s2573_s0 - $0x5] sm:$0x20] %vm2574_vm8, %v9398_v32  ;;  %s6809_s4 = sld [smem:[#allocation5 + $0xb]]  ;;  %s6810_s30 = sld [smem:[#allocation5 + $0xc]] }
 0x329   :  { %2579 = vst.msk [vmem:[%s2577_s5 - $0x6] sm:$0x40] %vm2578_vm9, %v9398_v32  ;;  %s6807_s5 = sld [smem:[#allocation5 + $0x9]] }
 0x32a   :  { %2583 = vst.msk [vmem:[%s2581_s13 - $0x7] sm:$0x80] %vm2582_vm10, %v9398_v32  ;;  %s6808_s13 = sld [smem:[#allocation5 + $0xa]] }
 0x32c   :  { %s2685_s1 = scalar_lea.vmem [#allocation2], %s6784_s14 }
 0x32e   :  { %s4510_s14 = scalar_lea.vmem [#allocation2], %s6809_s4  ;;  %s12640_s4 = sld [smem:[#allocation10 + $0x17]] }
 0x331   :  { %v6770_v33 = vld [vmem:[%s2605_s27] ss:$0 sm:$0xff]  ;;  %s6812_s27 = sld [smem:[#allocation5 + $0xe]] }
 0x332   :  { %v2587_v39 = vld [vmem:[%s2586_s2] sm:$0x1]  ;;  %2612 = vrot.lane.b32.xlu1 %v6770_v33, %s9480_s29  ;;  %s12608_s2 = sld [smem:[#allocation8 + $0x10]] }
 0x333   :  { %v2603_v43 = vld [vmem:[%s2602_s21] sm:$0x1]  ;;  %2588 = vst.msk [vmem:[#allocation3] sm:$0x1] %vm91_vm0, %v2587_v39  ;;  %v13743_v39 = vld [vmem:[#allocation31_spill] sm:$0xff]  ;;  %s6813_s21 = sld [smem:[#allocation5 + $0xf]] }
 0x334   :  { %v2619_v50 = vld [vmem:[%s2618_s18] sm:$0x1]  ;;  %2604 = vst.msk [vmem:[#allocation3 + $0x1] sm:$0x1] %vm91_vm0, %v2603_v43  ;;  %s12610_s18 = sld [smem:[#allocation8 + $0x13]] }
 0x335   :  { %v2635_v53 = vld [vmem:[%s2634_s17] sm:$0x1]  ;;  %2620 = vst.msk [vmem:[#allocation3 + $0x2] sm:$0x1] %vm91_vm0, %v2619_v50  ;;  %v13745_v50 = vld [vmem:[#allocation33_spill] sm:$0xff]  ;;  %s12612_s17 = sld [smem:[#allocation8 + $0x12]] }
 0x336   :  { %v2651_v3 = vld [vmem:[%s2650_s25] sm:$0x1]  ;;  %2636 = vst.msk [vmem:[#allocation3 + $0x3] sm:$0x1] %vm91_vm0, %v2635_v53  ;;  %v13746_v53 = vld [vmem:[#allocation34_spill] sm:$0xff]  ;;  %s12616_s25 = sld [smem:[#allocation8 + $0x14]] }
 0x337   :  { %v2667_v8 = vld [vmem:[%s2666_s16] sm:$0x1]  ;;  %2652 = vst.msk [vmem:[#allocation3 + $0x4] sm:$0x1] %vm91_vm0, %v2651_v3  ;;  %v13747_v3 = vld [vmem:[#allocation35_spill] sm:$0xff]  ;;  %s4501_s16 = scalar_lea.vmem [#allocation2], %s6806_s6 }
 0x338   :  { %v2683_v11 = vld [vmem:[%s2682_s3] sm:$0x1]  ;;  %2668 = vst.msk [vmem:[#allocation3 + $0x5] sm:$0x1] %vm91_vm0, %v2667_v8  ;;  %s12619_s3 = sld [smem:[#allocation8 + $0x17]]  ;;  %s4519_s0 = scalar_lea.vmem [#allocation2], %s6812_s27 }
 0x339   :  { %v2699_v18 = vld [vmem:[%s2698_s20] sm:$0x1]  ;;  %2684 = vst.msk [vmem:[#allocation3 + $0x6] sm:$0x1] %vm91_vm0, %v2683_v11  ;;  %v13749_v11 = vld [vmem:[#allocation37_spill] sm:$0xff]  ;;  %s4504_s20 = scalar_lea.vmem [#allocation2], %s6807_s5 }
 0x33a   :  { %v6767_v23 = vld [vmem:[%s2589_s26] ss:$0 sm:$0xff]  ;;  %2700 = vst.msk [vmem:[#allocation3 + $0x7] sm:$0x1] %vm91_vm0, %v2699_v18  ;;  %v13750_v18 = vld [vmem:[#allocation38_spill] sm:$0xff]  ;;  %s12622_s26 = sld [smem:[#allocation8 + $0x16]] }
 0x33b   :  { %2596 = vrot.lane.b32.xlu0 %v6767_v23, %s9480_s29  ;;  %v6776_v30 = vld [vmem:[%s2637_s19] ss:$0 sm:$0xff]  ;;  %v13751_v23 = vld [vmem:[#allocation39_spill] sm:$0xff]  ;;  %s4507_s19 = scalar_lea.vmem [#allocation2], %s6808_s13  ;;  %s4522_s28 = scalar_lea.vmem [#allocation2], %s6813_s21 }
 0x33c   :  { %2644 = vrot.lane.b32.xlu1 %v6776_v30, %s9480_s29  ;;  %v6773_v31 = vld [vmem:[%s2621_s15] ss:$0 sm:$0xff]  ;;  %s6818_s15 = sld [smem:[#allocation10 + $0x11]]  ;;  %s12634_s6 = sld [smem:[#allocation10 + $0x12]] }
 0x33d   :  { %v6782_v24 = vld [vmem:[%s2669_s24] ss:$0 sm:$0xff]  ;;  %s4513_s24 = scalar_lea.vmem [#allocation2], %s6810_s30  ;;  %s12636_s5 = sld [smem:[#allocation10 + $0x15]] }
 0x33e   :  { %v6779_v36 = vld [vmem:[%s2653_s22] ss:$0 sm:$0xff]  ;;  %s4516_s22 = scalar_lea.vmem [#allocation2], %s6811_s7  ;;  %s12638_s13 = sld [smem:[#allocation10 + $0x14]] }
 0x33f   :  { %2628 = vrot.lane.b32.xlu0 %v6773_v31, %s9480_s29  ;;  %v6788_v14 = vld [vmem:[%s2701_s23] ss:$0 sm:$0xff]  ;;  %v13753_v31 = vld [vmem:[#allocation41_spill] sm:$0xff]  ;;  %s12628_s23 = sld [smem:[#allocation10 + $0x10]]  ;;  %s4526_s7 = scalar_lea.vmem [#allocation2], %s12608_s2 }
 0x340   :  { %2676 = vrot.lane.b32.xlu1 %v6782_v24, %s9480_s29  ;;  %v6785_v20 = vld [vmem:[%s2685_s1] ss:$0 sm:$0xff]  ;;  %v13754_v24 = vld [vmem:[#allocation42_spill] sm:$0xff]  ;;  %s12630_s1 = sld [smem:[#allocation10 + $0x13]]  ;;  %s4542_s27 = scalar_lea.vmem [#allocation2], %s12606_s12 }
 0x341   :  { %v13744_v43 = vld [vmem:[#allocation32_spill] sm:$0xff]  ;;  %s4558_s21 = scalar_lea.vmem [#allocation2], %s12612_s17  ;;  %s4622_s2 = scalar_lea.vmem [#allocation2], %s12622_s26 }
 0x342   :  { %v13748_v8 = vld [vmem:[#allocation36_spill] sm:$0xff]  ;;  %s4545_s30 = scalar_lea.vmem [#allocation2], %s6818_s15  ;;  %s4638_s12 = scalar_lea.vmem [#allocation2], %s12619_s3 }
 0x343   :  { %2660 = vrot.lane.b32.xlu0 %v6779_v36, %s9480_s29  ;;  %v13752_v30 = vld [vmem:[#allocation40_spill] sm:$0xff]  ;;  %v13755_v36 = vld [vmem:[#allocation43_spill] sm:$0xff]  ;;  %s4609_s3 = scalar_lea.vmem [#allocation2], %s12636_s5  ;;  %s6856_s5 = sld [smem:[#allocation5 + $0x11]] }
 0x344   :  { %2708 = vrot.lane.b32.xlu1 %v6788_v14, %s9480_s29  ;;  %v13756_v14 = vld [vmem:[#allocation44_spill] sm:$0xff]  ;;  %s4593_s26 = scalar_lea.vmem [#allocation2], %s12638_s13  ;;  %s6857_s13 = sld [smem:[#allocation5 + $0x12]] }
 0x346   :  { %s4577_s17 = scalar_lea.vmem [#allocation2], %s12630_s1 }
 0x347   :  { %2692 = vrot.lane.b32.xlu0 %v6785_v20, %s9480_s29  ;;  %v13757_v20 = vld [vmem:[#allocation45_spill] sm:$0xff] }
 0x3a4   :  { %v2613_v5 = vpop.permute.xlu1 %2612 }
 0x3a5   :  { %2615 = vst.msk [vmem:[#allocation3 + $0x1] sm:$0x1] %vm644_vm1, %v2613_v5  ;;  %v13758_v5 = vld [vmem:[#allocation46_spill] sm:$0xff] }
 0x3ad   :  { %v2597_v40 = vpop.permute.xlu0 %2596 }
 0x3ae   :  { %2599 = vst.msk [vmem:[#allocation3] sm:$0x1] %vm644_vm1, %v2597_v40  ;;  %v2645_v12 = vpop.permute.xlu1 %2644  ;;  %v13759_v40 = vld [vmem:[#allocation47_spill] sm:$0xff] }
 0x3af   :  { %2647 = vst.msk [vmem:[#allocation3 + $0x3] sm:$0x1] %vm644_vm1, %v2645_v12  ;;  %v13760_v12 = vld [vmem:[#allocation48_spill] sm:$0xff] }
 0x3b1   :  { %v2629_v29 = vpop.permute.xlu0 %2628 }
 0x3b2   :  { %2631 = vst.msk [vmem:[#allocation3 + $0x2] sm:$0x1] %vm644_vm1, %v2629_v29  ;;  %v2677_v60 = vpop.permute.xlu1 %2676  ;;  %v13761_v29 = vld [vmem:[#allocation49_spill] sm:$0xff] }
 0x3b3   :  { %2679 = vst.msk [vmem:[#allocation3 + $0x5] sm:$0x1] %vm644_vm1, %v2677_v60  ;;  %v13762_v60 = vld [vmem:[#allocation50_spill] sm:$0xff] }
 0x3b5   :  { %v2661_v57 = vpop.permute.xlu0 %2660 }
 0x3b6   :  { %2663 = vst.msk [vmem:[#allocation3 + $0x4] sm:$0x1] %vm644_vm1, %v2661_v57  ;;  %v2709_v0 = vpop.permute.xlu1 %2708  ;;  %v13763_v57 = vld [vmem:[#allocation51_spill] sm:$0xff] }
 0x3b7   :  { %2711 = vst.msk [vmem:[#allocation3 + $0x7] sm:$0x1] %vm644_vm1, %v2709_v0  ;;  %v13764_v0 = vld [vmem:[#allocation52_spill] sm:$0xff] }
 0x3b9   :  { %v2693_v32 = vpop.permute.xlu0 %2692 }
 0x3ba   :  { %2695 = vst.msk [vmem:[#allocation3 + $0x6] sm:$0x1] %vm644_vm1, %v2693_v32  ;;  %v13765_v32 = vld [vmem:[#allocation53_spill] sm:$0xff] }
 0x3c1   :  { %v12261_v33 = vld [vmem:[#allocation3] sm:$0xff] }
 0x3c2   :  { %6789 = vmatmul.mubr.msk.f32.vlgmr.msra.gmra.mrb[24].mxu1 %vm759_vm2, %v12261_v33  ;;  %6790 = vmatmul.mubr.msk.f32.vlgmr.msra.gmra.mrb[26].mxu0 %vm759_vm2, %v12261_v33 }
 0x3c3   :  { %8366 = vmatpush1.bf16.msra.mxu1 %v9880_v47  ;;  %8382 = vmatpush1.bf16.msra.mxu0 %v9882_v48 }
 0x3c4   :  { %8368 = vmatprep.subr.bf16.mxu1 %v9893_v54  ;;  %8384 = vmatprep.subr.bf16.mxu0 %v9895_v55 }
 0x3c5   :  { %2922 = vmatprep.mubr.f32.mxu1 %v13552_v52  ;;  %2993 = vmatprep.mubr.f32.mxu0 %v13552_v52 }
 0x3c7   :  { %8370 = vmatpush1.bf16.msra.mxu1 %v9920_v1  ;;  %8386 = vmatpush1.bf16.msra.mxu0 %v9922_v2 }
 0x3c8   :  { %8372 = vmatprep.subr.bf16.mxu1 %v9932_v6  ;;  %8388 = vmatprep.subr.bf16.mxu0 %v9934_v7  ;;  %v13884_v7 = vld [vmem:[#allocation171_spill] sm:$0xff]  ;;  %v13885_v6 = vld [vmem:[#allocation172_spill] sm:$0xff] }
 0x3cb   :  { %8374 = vmatpush1.bf16.msra.mxu1 %v13743_v39  ;;  %8390 = vmatpush1.bf16.msra.mxu0 %v13744_v43 }
 0x3cc   :  { %8376 = vmatprep.subr.bf16.mxu1 %v13745_v50  ;;  %8392 = vmatprep.subr.bf16.mxu0 %v13746_v53 }
 0x3cf   :  { %8378 = vmatpush1.bf16.msra.mxu1 %v13747_v3  ;;  %8394 = vmatpush1.bf16.msra.mxu0 %v13748_v8 }
 0x3d0   :  { %8396 = vmatprep.subr.bf16.mxu1 %v13749_v11  ;;  %8412 = vmatprep.subr.bf16.mxu0 %v13750_v18 }
 0x3d2   :  { %6791 = vmatmul.mubr.msk.f32.vlgmr.msra.gmra.mrb[26].mxu1 %vm759_vm2, %v12261_v33  ;;  %6792 = vmatmul.mubr.msk.f32.vlgmr.msra.gmra.mrb[28].mxu0 %vm759_vm2, %v12261_v33 }
 0x3d3   :  { %8398 = vmatpush1.bf16.msra.mxu1 %v13751_v23  ;;  %8414 = vmatpush1.bf16.msra.mxu0 %v13752_v30 }
 0x3d4   :  { %8400 = vmatprep.subr.bf16.mxu1 %v13753_v31  ;;  %8416 = vmatprep.subr.bf16.mxu0 %v13754_v24 }
 0x3d5   :  { %3064 = vmatprep.mubr.f32.mxu1 %v13552_v52  ;;  %3135 = vmatprep.mubr.f32.mxu0 %v13552_v52 }
 0x3d7   :  { %8402 = vmatpush1.bf16.msra.mxu1 %v13755_v36  ;;  %8418 = vmatpush1.bf16.msra.mxu0 %v13756_v14  ;;  %v13766_v36 = vld [vmem:[#allocation54_spill] sm:$0xff]  ;;  %v13781_v14 = vld [vmem:[#allocation69_spill] sm:$0xff] }
 0x3d8   :  { %8404 = vmatprep.subr.bf16.mxu1 %v13757_v20  ;;  %8420 = vmatprep.subr.bf16.mxu0 %v13758_v5  ;;  %v13775_v5 = vld [vmem:[#allocation63_spill] sm:$0xff]  ;;  %v13780_v20 = vld [vmem:[#allocation68_spill] sm:$0xff] }
 0x3db   :  { %8406 = vmatpush1.bf16.msra.mxu1 %v13759_v40  ;;  %8422 = vmatpush1.bf16.msra.mxu0 %v13760_v12  ;;  %v13767_v40 = vld [vmem:[#allocation55_spill] sm:$0xff]  ;;  %v13768_v12 = vld [vmem:[#allocation56_spill] sm:$0xff] }
 0x3dc   :  { %8408 = vmatprep.subr.bf16.mxu1 %v13761_v29  ;;  %8424 = vmatprep.subr.bf16.mxu0 %v13762_v60  ;;  %v13769_v29 = vld [vmem:[#allocation57_spill] sm:$0xff]  ;;  %v13770_v60 = vld [vmem:[#allocation58_spill] sm:$0xff] }
 0x3df   :  { %8410 = vmatpush1.bf16.msra.mxu1 %v13763_v57  ;;  %8426 = vmatpush1.bf16.msra.mxu0 %v13764_v0  ;;  %v13773_v0 = vld [vmem:[#allocation61_spill] sm:$0xff]  ;;  %v13774_v57 = vld [vmem:[#allocation62_spill] sm:$0xff] }
 0x3e0   :  { %8428 = vmatprep.subr.bf16.mxu1 %v13765_v32  ;;  %8444 = vmatprep.subr.bf16.mxu0 %v13766_v36  ;;  %v13771_v32 = vld [vmem:[#allocation59_spill] sm:$0xff]  ;;  %v13772_v36 = vld [vmem:[#allocation60_spill] sm:$0xff] }
 0x3e2   :  { %6793 = vmatmul.mubr.msk.f32.vlgmr.msra.gmra.mrb[28].mxu1 %vm759_vm2, %v12261_v33  ;;  %6794 = vmatmul.mubr.msk.f32.vlgmr.msra.gmra.mrb[30].mxu0 %vm759_vm2, %v12261_v33 }
 0x3e3   :  { %8430 = vmatpush1.bf16.msra.mxu1 %v13767_v40  ;;  %8446 = vmatpush1.bf16.msra.mxu0 %v13768_v12  ;;  %v13776_v40 = vld [vmem:[#allocation64_spill] sm:$0xff]  ;;  %v13777_v12 = vld [vmem:[#allocation65_spill] sm:$0xff] }
 0x3e4   :  { %8432 = vmatprep.subr.bf16.mxu1 %v13769_v29  ;;  %8448 = vmatprep.subr.bf16.mxu0 %v13770_v60  ;;  %v13778_v29 = vld [vmem:[#allocation66_spill] sm:$0xff]  ;;  %v13779_v60 = vld [vmem:[#allocation67_spill] sm:$0xff] }
 0x3e5   :  { %3206 = vmatprep.mubr.f32.mxu1 %v13552_v52  ;;  %3277 = vmatprep.mubr.f32.mxu0 %v13552_v52 }
 0x3e7   :  { %8434 = vmatpush1.bf16.msra.mxu1 %v13771_v32  ;;  %8450 = vmatpush1.bf16.msra.mxu0 %v13772_v36  ;;  %v13782_v32 = vld [vmem:[#allocation70_spill] sm:$0xff]  ;;  %v13797_v36 = vld [vmem:[#allocation85_spill] sm:$0xff] }
 0x3e8   :  { %8436 = vmatprep.subr.bf16.mxu1 %v13773_v0  ;;  %8452 = vmatprep.subr.bf16.mxu0 %v13774_v57  ;;  %v13791_v57 = vld [vmem:[#allocation79_spill] sm:$0xff]  ;;  %v13796_v0 = vld [vmem:[#allocation84_spill] sm:$0xff] }
 0x3eb   :  { %8438 = vmatpush1.bf16.msra.mxu1 %v13775_v5  ;;  %8454 = vmatpush1.bf16.msra.mxu0 %v13776_v40  ;;  %v13783_v5 = vld [vmem:[#allocation71_spill] sm:$0xff]  ;;  %v13784_v40 = vld [vmem:[#allocation72_spill] sm:$0xff] }
 0x3ec   :  { %8440 = vmatprep.subr.bf16.mxu1 %v13777_v12  ;;  %8456 = vmatprep.subr.bf16.mxu0 %v13778_v29  ;;  %v13785_v12 = vld [vmem:[#allocation73_spill] sm:$0xff]  ;;  %v13786_v29 = vld [vmem:[#allocation74_spill] sm:$0xff] }
 0x3ef   :  { %8442 = vmatpush1.bf16.msra.mxu1 %v13779_v60  ;;  %8458 = vmatpush1.bf16.msra.mxu0 %v13780_v20  ;;  %v13789_v20 = vld [vmem:[#allocation77_spill] sm:$0xff]  ;;  %v13790_v60 = vld [vmem:[#allocation78_spill] sm:$0xff] }
 0x3f0   :  { %8460 = vmatprep.subr.bf16.mxu1 %v13781_v14  ;;  %8476 = vmatprep.subr.bf16.mxu0 %v13782_v32  ;;  %v13787_v14 = vld [vmem:[#allocation75_spill] sm:$0xff]  ;;  %v13788_v32 = vld [vmem:[#allocation76_spill] sm:$0xff] }
 0x3f2   :  { %6795 = vmatmul.mubr.msk.f32.vlgmr.msra.gmra.mrb[30].mxu1 %vm759_vm2, %v12261_v33  ;;  %6796 = vmatmul.mubr.msk.f32.vlgmr.msra.gmra.mrb[32].mxu0 %vm759_vm2, %v12261_v33 }
 0x3f3   :  { %8462 = vmatpush1.bf16.msra.mxu1 %v13783_v5  ;;  %8478 = vmatpush1.bf16.msra.mxu0 %v13784_v40  ;;  %v13792_v5 = vld [vmem:[#allocation80_spill] sm:$0xff]  ;;  %v13793_v40 = vld [vmem:[#allocation81_spill] sm:$0xff] }
 0x3f4   :  { %8464 = vmatprep.subr.bf16.mxu1 %v13785_v12  ;;  %8480 = vmatprep.subr.bf16.mxu0 %v13786_v29  ;;  %v13794_v12 = vld [vmem:[#allocation82_spill] sm:$0xff]  ;;  %v13795_v29 = vld [vmem:[#allocation83_spill] sm:$0xff] }
 0x3f5   :  { %3348 = vmatprep.mubr.f32.mxu1 %v13552_v52  ;;  %3419 = vmatprep.mubr.f32.mxu0 %v13552_v52 }
 0x3f7   :  { %8466 = vmatpush1.bf16.msra.mxu1 %v13787_v14  ;;  %8482 = vmatpush1.bf16.msra.mxu0 %v13788_v32  ;;  %v13798_v14 = vld [vmem:[#allocation86_spill] sm:$0xff]  ;;  %v13813_v32 = vld [vmem:[#allocation101_spill] sm:$0xff] }
 0x3f8   :  { %8468 = vmatprep.subr.bf16.mxu1 %v13789_v20  ;;  %8484 = vmatprep.subr.bf16.mxu0 %v13790_v60  ;;  %v13807_v60 = vld [vmem:[#allocation95_spill] sm:$0xff]  ;;  %v13812_v20 = vld [vmem:[#allocation100_spill] sm:$0xff] }
 0x3fb   :  { %8470 = vmatpush1.bf16.msra.mxu1 %v13791_v57  ;;  %8486 = vmatpush1.bf16.msra.mxu0 %v13792_v5  ;;  %v13799_v57 = vld [vmem:[#allocation87_spill] sm:$0xff]  ;;  %v13800_v5 = vld [vmem:[#allocation88_spill] sm:$0xff] }
 0x3fc   :  { %8472 = vmatprep.subr.bf16.mxu1 %v13793_v40  ;;  %8488 = vmatprep.subr.bf16.mxu0 %v13794_v12  ;;  %v13801_v40 = vld [vmem:[#allocation89_spill] sm:$0xff]  ;;  %v13802_v12 = vld [vmem:[#allocation90_spill] sm:$0xff] }
 0x3ff   :  { %8474 = vmatpush1.bf16.msra.mxu1 %v13795_v29  ;;  %8490 = vmatpush1.bf16.msra.mxu0 %v13796_v0  ;;  %v13805_v0 = vld [vmem:[#allocation93_spill] sm:$0xff]  ;;  %v13806_v29 = vld [vmem:[#allocation94_spill] sm:$0xff] }
 0x400   :  { %8492 = vmatprep.subr.bf16.mxu1 %v13797_v36  ;;  %8508 = vmatprep.subr.bf16.mxu0 %v13798_v14  ;;  %v13803_v36 = vld [vmem:[#allocation91_spill] sm:$0xff]  ;;  %v13804_v14 = vld [vmem:[#allocation92_spill] sm:$0xff] }
 0x402   :  { %6797 = vmatmul.mubr.msk.f32.vlgmr.msra.gmra.mrb[32].mxu1 %vm759_vm2, %v12261_v33  ;;  %6798 = vmatmul.mubr.msk.f32.vlgmr.msra.gmra.mrb[34].mxu0 %vm759_vm2, %v12261_v33 }
 0x403   :  { %8494 = vmatpush1.bf16.msra.mxu1 %v13799_v57  ;;  %8510 = vmatpush1.bf16.msra.mxu0 %v13800_v5  ;;  %v13808_v57 = vld [vmem:[#allocation96_spill] sm:$0xff]  ;;  %v13809_v5 = vld [vmem:[#allocation97_spill] sm:$0xff] }
 0x404   :  { %8496 = vmatprep.subr.bf16.mxu1 %v13801_v40  ;;  %8512 = vmatprep.subr.bf16.mxu0 %v13802_v12  ;;  %v13810_v40 = vld [vmem:[#allocation98_spill] sm:$0xff]  ;;  %v13811_v12 = vld [vmem:[#allocation99_spill] sm:$0xff] }
 0x405   :  { %3490 = vmatprep.mubr.f32.mxu1 %v13552_v52  ;;  %3561 = vmatprep.mubr.f32.mxu0 %v13552_v52 }
 0x407   :  { %8498 = vmatpush1.bf16.msra.mxu1 %v13803_v36  ;;  %8514 = vmatpush1.bf16.msra.mxu0 %v13804_v14  ;;  %v13814_v36 = vld [vmem:[#allocation102_spill] sm:$0xff]  ;;  %v13829_v14 = vld [vmem:[#allocation117_spill] sm:$0xff] }
 0x408   :  { %8500 = vmatprep.subr.bf16.mxu1 %v13805_v0  ;;  %8516 = vmatprep.subr.bf16.mxu0 %v13806_v29  ;;  %v13823_v29 = vld [vmem:[#allocation111_spill] sm:$0xff]  ;;  %v13828_v0 = vld [vmem:[#allocation116_spill] sm:$0xff] }
 0x40b   :  { %8502 = vmatpush1.bf16.msra.mxu1 %v13807_v60  ;;  %8518 = vmatpush1.bf16.msra.mxu0 %v13808_v57  ;;  %v13815_v60 = vld [vmem:[#allocation103_spill] sm:$0xff]  ;;  %v13816_v57 = vld [vmem:[#allocation104_spill] sm:$0xff] }
 0x40c   :  { %8504 = vmatprep.subr.bf16.mxu1 %v13809_v5  ;;  %8520 = vmatprep.subr.bf16.mxu0 %v13810_v40  ;;  %v13817_v5 = vld [vmem:[#allocation105_spill] sm:$0xff]  ;;  %v13818_v40 = vld [vmem:[#allocation106_spill] sm:$0xff] }
 0x40f   :  { %8506 = vmatpush1.bf16.msra.mxu1 %v13811_v12  ;;  %8522 = vmatpush1.bf16.msra.mxu0 %v13812_v20  ;;  %v13821_v20 = vld [vmem:[#allocation109_spill] sm:$0xff]  ;;  %v13822_v12 = vld [vmem:[#allocation110_spill] sm:$0xff] }
 0x410   :  { %8524 = vmatprep.subr.bf16.mxu1 %v13813_v32  ;;  %8540 = vmatprep.subr.bf16.mxu0 %v13814_v36  ;;  %v13819_v32 = vld [vmem:[#allocation107_spill] sm:$0xff]  ;;  %v13820_v36 = vld [vmem:[#allocation108_spill] sm:$0xff] }
 0x412   :  { %6799 = vmatmul.mubr.msk.f32.vlgmr.msra.gmra.mrb[34].mxu1 %vm759_vm2, %v12261_v33  ;;  %6800 = vmatmul.mubr.msk.f32.vlgmr.msra.gmra.mrb[36].mxu0 %vm759_vm2, %v12261_v33 }
 0x413   :  { %8526 = vmatpush1.bf16.msra.mxu1 %v13815_v60  ;;  %8542 = vmatpush1.bf16.msra.mxu0 %v13816_v57  ;;  %v13824_v60 = vld [vmem:[#allocation112_spill] sm:$0xff]  ;;  %v13825_v57 = vld [vmem:[#allocation113_spill] sm:$0xff] }
 0x414   :  { %8528 = vmatprep.subr.bf16.mxu1 %v13817_v5  ;;  %8544 = vmatprep.subr.bf16.mxu0 %v13818_v40  ;;  %v13826_v5 = vld [vmem:[#allocation114_spill] sm:$0xff]  ;;  %v13827_v40 = vld [vmem:[#allocation115_spill] sm:$0xff] }
 0x415   :  { %3632 = vmatprep.mubr.f32.mxu1 %v13552_v52  ;;  %3703 = vmatprep.mubr.f32.mxu0 %v13552_v52 }
 0x417   :  { %8530 = vmatpush1.bf16.msra.mxu1 %v13819_v32  ;;  %8546 = vmatpush1.bf16.msra.mxu0 %v13820_v36  ;;  %v13830_v32 = vld [vmem:[#allocation118_spill] sm:$0xff]  ;;  %v13845_v36 = vmov 0.0|0.0  }
 0x418   :  { %8532 = vmatprep.subr.bf16.mxu1 %v13821_v20  ;;  %8548 = vmatprep.subr.bf16.mxu0 %v13822_v12  ;;  %v13839_v12 = vld [vmem:[#allocation127_spill] sm:$0xff]  ;;  %v13844_v20 = vld [vmem:[#allocation132_spill] sm:$0xff] }
 0x41b   :  { %8534 = vmatpush1.bf16.msra.mxu1 %v13823_v29  ;;  %8550 = vmatpush1.bf16.msra.mxu0 %v13824_v60  ;;  %v13831_v29 = vld [vmem:[#allocation119_spill] sm:$0xff]  ;;  %v13832_v60 = vld [vmem:[#allocation120_spill] sm:$0xff] }
 0x41c   :  { %8536 = vmatprep.subr.bf16.mxu1 %v13825_v57  ;;  %8552 = vmatprep.subr.bf16.mxu0 %v13826_v5  ;;  %v13833_v57 = vld [vmem:[#allocation121_spill] sm:$0xff]  ;;  %v13834_v5 = vld [vmem:[#allocation122_spill] sm:$0xff] }
 0x41f   :  { %8538 = vmatpush1.bf16.msra.mxu1 %v13827_v40  ;;  %8554 = vmatpush1.bf16.msra.mxu0 %v13828_v0  ;;  %v13837_v0 = vld [vmem:[#allocation125_spill] sm:$0xff]  ;;  %v13838_v40 = vld [vmem:[#allocation126_spill] sm:$0xff] }
 0x420   :  { %8556 = vmatprep.subr.bf16.mxu1 %v13829_v14  ;;  %8572 = vmatprep.subr.bf16.mxu0 %v13830_v32  ;;  %v13835_v14 = vld [vmem:[#allocation123_spill] sm:$0xff]  ;;  %v13836_v32 = vld [vmem:[#allocation124_spill] sm:$0xff] }
 0x422   :  { %6801 = vmatmul.mubr.msk.f32.vlgmr.msra.gmra.mrb[36].mxu1 %vm759_vm2, %v12261_v33  ;;  %6802 = vmatmul.mubr.msk.f32.vlgmr.msra.gmra.mrb[38].mxu0 %vm759_vm2, %v12261_v33 }
 0x423   :  { %8558 = vmatpush1.bf16.msra.mxu1 %v13831_v29  ;;  %8574 = vmatpush1.bf16.msra.mxu0 %v13832_v60  ;;  %v13840_v29 = vld [vmem:[#allocation128_spill] sm:$0xff]  ;;  %v13841_v60 = vld [vmem:[#allocation129_spill] sm:$0xff] }
 0x424   :  { %8560 = vmatprep.subr.bf16.mxu1 %v13833_v57  ;;  %8576 = vmatprep.subr.bf16.mxu0 %v13834_v5  ;;  %v13842_v57 = vld [vmem:[#allocation130_spill] sm:$0xff]  ;;  %v13843_v5 = vld [vmem:[#allocation131_spill] sm:$0xff] }
 0x425   :  { %3774 = vmatprep.mubr.f32.mxu1 %v13552_v52  ;;  %3845 = vmatprep.mubr.f32.mxu0 %v13552_v52 }
 0x427   :  { %8562 = vmatpush1.bf16.msra.mxu1 %v13835_v14  ;;  %8578 = vmatpush1.bf16.msra.mxu0 %v13836_v32  ;;  %v13846_v14 = vld [vmem:[#allocation136_spill] sm:$0xff] }
 0x428   :  { %8564 = vmatprep.subr.bf16.mxu1 %v13837_v0  ;;  %8580 = vmatprep.subr.bf16.mxu0 %v13838_v40  ;;  %v13855_v40 = vld [vmem:[#allocation147_spill] sm:$0xff] }
 0x429   :  { %v13856_v0 = vld [vmem:[#allocation139_spill] sm:$0xff] }
 0x42b   :  { %8566 = vmatpush1.bf16.msra.mxu1 %v13839_v12  ;;  %8582 = vmatpush1.bf16.msra.mxu0 %v13840_v29  ;;  %v13847_v12 = vld [vmem:[#allocation133_spill] sm:$0xff]  ;;  %v13853_v29 = vld [vmem:[#allocation135_spill] sm:$0xff] }
 0x42c   :  { %8568 = vmatprep.subr.bf16.mxu1 %v13841_v60  ;;  %8584 = vmatprep.subr.bf16.mxu0 %v13842_v57  ;;  %v13850_v57 = vld [vmem:[#allocation134_spill] sm:$0xff] }
 0x42d   :  { %v13852_v60 = vld [vmem:[#allocation142_spill] sm:$0xff] }
 0x42f   :  { %8570 = vmatpush1.bf16.msra.mxu1 %v13843_v5  ;;  %8586 = vmatpush1.bf16.msra.mxu0 %v13844_v20  ;;  %v13848_v5 = vld [vmem:[#allocation137_spill] sm:$0xff]  ;;  %v13849_v20 = vld [vmem:[#allocation138_spill] sm:$0xff] }
 0x430   :  { %8587 = vmatprep.subr.bf16.mxu1 %v13845_v36  ;;  %8600 = vmatprep.subr.bf16.mxu0 %v13846_v14  ;;  %v13851_v14 = vld [vmem:[#allocation140_spill] sm:$0xff] }
 0x432   :  { %6803 = vmatmul.mubr.msk.f32.vlgmr.msra.gmra.mrb[38].mxu1 %vm759_vm2, %v12261_v33  ;;  %6804 = vmatmul.mubr.msk.f32.vlgmr.msra.gmra.mrb[40].mxu0 %vm759_vm2, %v12261_v33 }
 0x433   :  { %8589 = vmatpush3.bf16.msra.mxu1 %v13847_v12  ;;  %7774 = vmatprep.mubr.msk.f32.mxu1 %vm9483_vm3, %v13552_v52  ;;  %v13854_v12 = vld [vmem:[#allocation143_spill] sm:$0xff] }
 0x434   :  { %8590 = vmatprep.subr.bf16.mxu1 %v13845_v36  ;;  %8602 = vmatpush3.bf16.msra.mxu0 %v13848_v5  ;;  %v13857_v5 = vld [vmem:[#allocation141_spill] sm:$0xff] }
 0x435   :  { %8604 = vmatprep.subr.bf16.mxu0 %v13849_v20  ;;  %v13858_v20 = vld [vmem:[#allocation149_spill] sm:$0xff] }
 0x437   :  { %8592 = vmatpush3.bf16.msra.mxu1 %v13850_v57  ;;  %v13859_v57 = vld [vmem:[#allocation151_spill] sm:$0xff] }
 0x438   :  { %8593 = vmatprep.subr.bf16.mxu1 %v13845_v36  ;;  %8606 = vmatpush3.bf16.msra.mxu0 %v13851_v14  ;;  %v13862_v14 = vld [vmem:[#allocation153_spill] sm:$0xff] }
 0x439   :  { %8608 = vmatprep.subr.bf16.mxu0 %v13852_v60  ;;  %v13860_v60 = vld [vmem:[#allocation144_spill] sm:$0xff] }
 0x43b   :  { %8595 = vmatpush3.bf16.msra.mxu1 %v13853_v29  ;;  %v13861_v29 = vld [vmem:[#allocation145_spill] sm:$0xff] }
 0x43c   :  { %8596 = vmatprep.subr.bf16.mxu1 %v13845_v36  ;;  %8610 = vmatpush3.bf16.msra.mxu0 %v13854_v12  ;;  %v13863_v12 = vld [vmem:[#allocation154_spill] sm:$0xff]  ;;  %v13869_v36 = vld [vmem:[#allocation152_spill] sm:$0xff] }
 0x43d   :  { %8612 = vmatprep.subr.bf16.mxu0 %v13855_v40  ;;  %v13864_v40 = vld [vmem:[#allocation146_spill] sm:$0xff] }
 0x43f   :  { %8598 = vmatpush3.bf16.msra.mxu1 %v13856_v0  ;;  %v13865_v0 = vld [vmem:[#allocation148_spill] sm:$0xff] }
 0x440   :  { %8632 = vmatprep.subr.bf16.mxu1 %v13857_v5  ;;  %8614 = vmatpush3.bf16.msra.mxu0 %v13858_v20  ;;  %v13866_v5 = vld [vmem:[#allocation156_spill] sm:$0xff]  ;;  %v13867_v20 = vld [vmem:[#allocation158_spill] sm:$0xff] }
 0x441   :  { %8616 = vmatprep.subr.bf16.mxu0 %v13859_v57  ;;  %v13868_v57 = vld [vmem:[#allocation150_spill] sm:$0xff] }
 0x442   :  { %7775 = vmatmul.mubr.msk.f32.vlgmr.msra.gmra.mrb[40].mxu1 %vm759_vm2, %v12261_v33  ;;  %v13870_v33 = vld [vmem:[#allocation159_spill] sm:$0xff] }
 0x443   :  { %8634 = vmatpush3.bf16.msra.mxu1 %v13860_v60  ;;  %v13871_v60 = vld [vmem:[#allocation163_spill] sm:$0xff] }
 0x444   :  { %8636 = vmatprep.subr.bf16.mxu1 %v13861_v29  ;;  %8618 = vmatpush3.bf16.msra.mxu0 %v13862_v14  ;;  %v13872_v29 = vld [vmem:[#allocation155_spill] sm:$0xff]  ;;  %v13873_v14 = vld [vmem:[#allocation157_spill] sm:$0xff] }
 0x445   :  { %8620 = vmatprep.subr.bf16.mxu0 %v13863_v12  ;;  %v13874_v12 = vld [vmem:[#allocation165_spill] sm:$0xff] }
 0x447   :  { %8638 = vmatpush3.bf16.msra.mxu1 %v13864_v40  ;;  %v13875_v40 = vld [vmem:[#allocation167_spill] sm:$0xff] }
 0x448   :  { %8640 = vmatprep.subr.bf16.mxu1 %v13865_v0  ;;  %8622 = vmatpush3.bf16.msra.mxu0 %v13866_v5  ;;  %v13876_v0 = vld [vmem:[#allocation160_spill] sm:$0xff]  ;;  %v13877_v5 = vld [vmem:[#allocation161_spill] sm:$0xff] }
 0x449   :  { %8624 = vmatprep.subr.bf16.mxu0 %v13867_v20  ;;  %v13878_v20 = vld [vmem:[#allocation162_spill] sm:$0xff] }
 0x44b   :  { %8642 = vmatpush3.bf16.msra.mxu1 %v13868_v57  ;;  %v13879_v57 = vld [vmem:[#allocation164_spill] sm:$0xff] }
 0x44c   :  { %8644 = vmatprep.subr.bf16.mxu1 %v13869_v36  ;;  %8626 = vmatpush3.bf16.msra.mxu0 %v13870_v33  ;;  %v13880_v36 = vld [vmem:[#allocation166_spill] sm:$0xff]  ;;  %v13881_v33 = vld [vmem:[#allocation168_spill] sm:$0xff] }
 0x44d   :  { %8628 = vmatprep.subr.bf16.mxu0 %v13871_v60  ;;  %v13882_v60 = vld [vmem:[#allocation169_spill] sm:$0xff] }
 0x44f   :  { %8646 = vmatpush3.bf16.msra.mxu1 %v13872_v29  ;;  %v13883_v29 = vld [vmem:[#allocation170_spill] sm:$0xff] }
 0x450   :  { %8648 = vmatprep.subr.bf16.mxu1 %v13873_v14  ;;  %8630 = vmatpush3.bf16.msra.mxu0 %v13874_v12 }
 0x451   :  { %8664 = vmatprep.subr.bf16.mxu0 %v13875_v40 }
 0x453   :  { %8650 = vmatpush3.bf16.msra.mxu1 %v13876_v0 }
 0x454   :  { %8652 = vmatprep.subr.bf16.mxu1 %v13877_v5 }
 0x457   :  { %8654 = vmatpush3.bf16.msra.mxu1 %v13878_v20 }
 0x458   :  { %8656 = vmatprep.subr.bf16.mxu1 %v13879_v57 }
 0x45b   :  { %8658 = vmatpush3.bf16.msra.mxu1 %v13880_v36 }
 0x45c   :  { %8660 = vmatprep.subr.bf16.mxu1 %v13881_v33 }
 0x45f   :  { %8662 = vmatpush3.bf16.msra.mxu1 %v13882_v60 }
 0x460   :  { %8696 = vmatprep.subr.bf16.mxu1 %v13883_v29 }
 0x495   :  { %v2782_v14 = vpop.f32.mrb[24].mxu1  ;;  %v2853_v12 = vpop.f32.mrb[26].mxu0 }
 0x496   :  { %v2784_v32 = vpop.f32.mrb[25].mxu1  ;;  %v2855_v40 = vpop.f32.mrb[27].mxu0 }
 0x4a5   :  { %v2924_v24 = vpop.f32.mrb[26].mxu1  ;;  %v2995_v0 = vpop.f32.mrb[28].mxu0 }
 0x4a6   :  { %v2926_v31 = vpop.f32.mrb[27].mxu1  ;;  %v2997_v5 = vpop.f32.mrb[29].mxu0 }
 0x4b5   :  { %v3066_v30 = vpop.f32.mrb[28].mxu1  ;;  %v3137_v20 = vpop.f32.mrb[30].mxu0 }
 0x4b6   :  { %v3068_v23 = vpop.f32.mrb[29].mxu1  ;;  %v3139_v57 = vpop.f32.mrb[31].mxu0 }
 0x4c5   :  { %v12465_v18 = vpop.f32.mrb[30].mxu1  ;;  %v12467_v36 = vpop.f32.mrb[32].mxu0 }
 0x4c6   :  { %v12469_v33 = vpop.f32.mrb[31].mxu1  ;;  %v12471_v60 = vpop.f32.mrb[33].mxu0 }
 0x4d5   :  { %v3350_v29 = vpop.f32.mrb[32].mxu1  ;;  %v3421_v11 = vpop.f32.mrb[34].mxu0 }
 0x4d6   :  { %v3852_v8 = vmul.f32 %v3350_v29, %v2782_v14  ;;  %v3854_v3 = vmul.f32 %v3421_v11, %v2853_v12  ;;  %v3352_v53 = vpop.f32.mrb[33].mxu1  ;;  %v3423_v50 = vpop.f32.mrb[35].mxu0  ;;  %v13886_v14 = vld [vmem:[#allocation173_spill] sm:$0xff]  ;;  %v13887_v11 = vld [vmem:[#allocation174_spill] sm:$0xff] }
 0x4d7   :  { %v3853_v43 = vmul.f32 %v3352_v53, %v2784_v32  ;;  %v3855_v39 = vmul.f32 %v3423_v50, %v2855_v40  ;;  %v13888_v53 = vld [vmem:[#allocation175_spill] sm:$0xff]  ;;  %v13891_v50 = vld [vmem:[#allocation178_spill] sm:$0xff] }
 0x4d9   :  { %4002 = vmatprep.mubr.f32.mxu0 %v3853_v43  ;;  %4072 = vmatprep.mubr.f32.mxu1 %v3855_v39  ;;  %v13889_v43 = vld [vmem:[#allocation176_spill] sm:$0xff]  ;;  %v13890_v39 = vld [vmem:[#allocation177_spill] sm:$0xff] }
 0x4da   :  { %4003 = vmatmul.mubr.f32.vlgmr.msra.gmra.mrb[42].mxu0 %v3852_v8  ;;  %4073 = vmatmul.mubr.f32.vlgmr.msra.gmra.mrb[42].mxu1 %v3854_v3  ;;  %v13892_v3 = vld [vmem:[#allocation179_spill] sm:$0xff] }
 0x4db   :  { %8666 = vmatpush3.bf16.msra.mxu0 %v11291_v37  ;;  %8698 = vmatpush3.bf16.msra.mxu1 %v11293_v27 }
 0x4dc   :  { %8668 = vmatprep.subr.bf16.mxu0 %v11301_v16  ;;  %8700 = vmatprep.subr.bf16.mxu1 %v13884_v7 }
 0x4df   :  { %8670 = vmatpush3.bf16.msra.mxu0 %v13885_v6  ;;  %8702 = vmatpush3.bf16.msra.mxu1 %v13886_v14 }
 0x4e0   :  { %8672 = vmatprep.subr.bf16.mxu0 %v13887_v11  ;;  %8704 = vmatprep.subr.bf16.mxu1 %v13888_v53 }
 0x4e3   :  { %8674 = vmatpush3.bf16.msra.mxu0 %v13889_v43  ;;  %8706 = vmatpush3.bf16.msra.mxu1 %v13890_v39 }
 0x4e4   :  { %8676 = vmatprep.subr.bf16.mxu0 %v13891_v50  ;;  %8708 = vmatprep.subr.bf16.mxu1 %v13892_v3  ;;  %v13893_v3 = vld [vmem:[#allocation183_spill] sm:$0xff] }
 0x4e5   :  { %v3492_v8 = vpop.f32.mrb[34].mxu1  ;;  %v3563_v40 = vpop.f32.mrb[36].mxu0 }
 0x4e6   :  { %v3856_v12 = vmul.f32 %v3492_v8, %v2924_v24  ;;  %v3858_v29 = vmul.f32 %v3563_v40, %v2995_v0  ;;  %v3494_v32 = vpop.f32.mrb[35].mxu1  ;;  %v3565_v6 = vpop.f32.mrb[37].mxu0  ;;  %v13894_v24 = vld [vmem:[#allocation184_spill] sm:$0xff]  ;;  %v13895_v0 = vld [vmem:[#allocation185_spill] sm:$0xff]  ;;  %v13900_v40 = vld [vmem:[#allocation190_spill] sm:$0xff] }
 0x4e7   :  { %v3857_v7 = vmul.f32 %v3494_v32, %v2926_v31  ;;  %v3859_v14 = vmul.f32 %v3565_v6, %v2997_v5  ;;  %8678 = vmatpush3.bf16.msra.mxu0 %v11397_v26  ;;  %8710 = vmatpush3.bf16.msra.mxu1 %v11399_v62  ;;  %v13896_v31 = vld [vmem:[#allocation186_spill] sm:$0xff]  ;;  %v13897_v6 = vld [vmem:[#allocation187_spill] sm:$0xff]  ;;  %v13898_v5 = vld [vmem:[#allocation188_spill] sm:$0xff] }
 0x4e8   :  { %8680 = vmatprep.subr.bf16.mxu0 %v11409_v10  ;;  %8712 = vmatprep.subr.bf16.mxu1 %v11411_v15  ;;  %v13899_v8 = vld [vmem:[#allocation189_spill] sm:$0xff] }
 0x4e9   :  { %4142 = vmatprep.mubr.f32.mxu0 %v3857_v7  ;;  %4212 = vmatprep.mubr.f32.mxu1 %v3859_v14  ;;  %v13901_v7 = vld [vmem:[#allocation191_spill] sm:$0xff]  ;;  %v13902_v14 = vld [vmem:[#allocation192_spill] sm:$0xff]  ;;  %v13903_v32 = vld [vmem:[#allocation193_spill] sm:$0xff] }
 0x4eb   :  { %8682 = vmatpush3.bf16.msra.mxu0 %v11437_v59  ;;  %8714 = vmatpush3.bf16.msra.mxu1 %v13893_v3 }
 0x4ec   :  { %8684 = vmatprep.subr.bf16.mxu0 %v13894_v24  ;;  %8716 = vmatprep.subr.bf16.mxu1 %v13895_v0 }
 0x4ef   :  { %8686 = vmatpush3.bf16.msra.mxu0 %v13896_v31  ;;  %8718 = vmatpush3.bf16.msra.mxu1 %v13897_v6 }
 0x4f0   :  { %8688 = vmatprep.subr.bf16.mxu0 %v13898_v5  ;;  %8720 = vmatprep.subr.bf16.mxu1 %v13899_v8 }
 0x4f3   :  { %8690 = vmatpush3.bf16.msra.mxu0 %v13900_v40  ;;  %8722 = vmatpush3.bf16.msra.mxu1 %v13901_v7  ;;  %v13904_v40 = vld [vmem:[#allocation194_spill] sm:$0xff] }
 0x4f4   :  { %8692 = vmatprep.subr.bf16.mxu0 %v13902_v14  ;;  %8724 = vmatprep.subr.bf16.mxu1 %v13903_v32  ;;  %v13905_v14 = vld [vmem:[#allocation195_spill] sm:$0xff]  ;;  %v13906_v32 = vld [vmem:[#allocation196_spill] sm:$0xff] }
 0x4f5   :  { %v3634_v3 = vpop.f32.mrb[36].mxu1  ;;  %v3705_v24 = vpop.f32.mrb[38].mxu0 }
 0x4f6   :  { %v3860_v59 = vmul.f32 %v3634_v3, %v3066_v30  ;;  %v3862_v0 = vmul.f32 %v3705_v24, %v3137_v20  ;;  %v3636_v15 = vpop.f32.mrb[37].mxu1  ;;  %v3707_v31 = vpop.f32.mrb[39].mxu0  ;;  %v13907_v30 = vld [vmem:[#allocation197_spill] sm:$0xff]  ;;  %v13910_v20 = vld [vmem:[#allocation200_spill] sm:$0xff]  ;;  %v13912_v3 = vld [vmem:[#allocation202_spill] sm:$0xff] }
 0x4f7   :  { %v3861_v10 = vmul.f32 %v3636_v15, %v3068_v23  ;;  %v3863_v6 = vmul.f32 %v3707_v31, %v3139_v57  ;;  %8694 = vmatpush3.bf16.msra.mxu0 %v11549_v4  ;;  %8726 = vmatpush3.bf16.msra.mxu1 %v11551_v46  ;;  %v13908_v15 = vld [vmem:[#allocation198_spill] sm:$0xff]  ;;  %v13909_v23 = vld [vmem:[#allocation199_spill] sm:$0xff]  ;;  %v13911_v57 = vld [vmem:[#allocation201_spill] sm:$0xff] }
 0x4f8   :  { %8728 = vmatprep.subr.bf16.mxu0 %v11555_v21  ;;  %8760 = vmatprep.subr.bf16.mxu1 %v13904_v40 }
 0x4fa   :  { %4143 = vmatmul.mubr.f32.vlgmr.msra.gmra.mrb[44].mxu0 %v3856_v12  ;;  %4213 = vmatmul.mubr.f32.vlgmr.msra.gmra.mrb[44].mxu1 %v3858_v29  ;;  %v13913_v12 = vld [vmem:[#allocation203_spill] sm:$0xff]  ;;  %v13914_v29 = vld [vmem:[#allocation204_spill] sm:$0xff] }
 0x4fb   :  { %8730 = vmatpush3.bf16.msra.mxu0 %v13905_v14  ;;  %4282 = vmatprep.mubr.f32.mxu0 %v3861_v10  ;;  %v13915_v10 = vld [vmem:[#allocation205_spill] sm:$0xff] }
 0x4fc   :  { %8762 = vmatpush3.bf16.msra.mxu1 %v13906_v32  ;;  %4352 = vmatprep.mubr.f32.mxu1 %v3863_v6  ;;  %v13916_v6 = vld [vmem:[#allocation206_spill] sm:$0xff] }
 0x4fd   :  { %8732 = vmatprep.subr.bf16.mxu0 %v13907_v30  ;;  %8764 = vmatprep.subr.bf16.mxu1 %v13908_v15 }
 0x4ff   :  { %8734 = vmatpush3.bf16.msra.mxu0 %v13909_v23 }
 0x500   :  { %8766 = vmatpush3.bf16.msra.mxu1 %v13910_v20  ;;  %8736 = vmatprep.subr.bf16.mxu0 %v13911_v57 }
 0x501   :  { %8768 = vmatprep.subr.bf16.mxu1 %v13912_v3 }
 0x503   :  { %8738 = vmatpush3.bf16.msra.mxu0 %v13913_v12 }
 0x504   :  { %8770 = vmatpush3.bf16.msra.mxu1 %v13914_v29  ;;  %8740 = vmatprep.subr.bf16.mxu0 %v13915_v10  ;;  %v13917_v10 = vld [vmem:[#allocation207_spill] sm:$0xff]  ;;  %v13918_v29 = vld [vmem:[#allocation208_spill] sm:$0xff] }
 0x505   :  { %v3776_v24 = vpop.f32.mrb[38].mxu1  ;;  %v3847_v31 = vpop.f32.mrb[40].mxu0  ;;  %8772 = vmatprep.subr.bf16.mxu1 %v13916_v6  ;;  %v13919_v6 = vld [vmem:[#allocation209_spill] sm:$0xff] }
 0x506   :  { %v12518_v15 = vmul.f32 %v3776_v24, %v12465_v18  ;;  %v12521_v23 = vmul.f32 %v3847_v31, %v12467_v36  ;;  %v3778_v20 = vpop.f32.mrb[39].mxu1  ;;  %v3849_v57 = vpop.f32.mrb[41].mxu0  ;;  %v13920_v18 = vld [vmem:[#allocation210_spill] sm:$0xff]  ;;  %v13921_v36 = vld [vmem:[#allocation211_spill] sm:$0xff]  ;;  %v13922_v24 = vld [vmem:[#allocation212_spill] sm:$0xff] }
 0x507   :  { %v3865_v3 = vmul.f32 %v3778_v20, %v12469_v33  ;;  %v3867_v12 = vmul.f32 %v3849_v57, %v12471_v60  ;;  %8742 = vmatpush3.bf16.msra.mxu0 %v11702_v42  ;;  %v13923_v31 = vld [vmem:[#allocation213_spill] sm:$0xff]  ;;  %v13924_v33 = vld [vmem:[#allocation214_spill] sm:$0xff]  ;;  %v13925_v60 = vld [vmem:[#allocation215_spill] sm:$0xff] }
 0x508   :  { %8774 = vmatpush3.bf16.msra.mxu1 %v11706_v41  ;;  %8744 = vmatprep.subr.bf16.mxu0 %v13917_v10  ;;  %v13926_v20 = vld [vmem:[#allocation216_spill] sm:$0xff]  ;;  %v13927_v57 = vld [vmem:[#allocation217_spill] sm:$0xff] }
 0x509   :  { %8776 = vmatprep.subr.bf16.mxu1 %v13918_v29 }
 0x50b   :  { %8746 = vmatpush3.bf16.msra.mxu0 %v13919_v6 }
 0x50c   :  { %8778 = vmatpush3.bf16.msra.mxu1 %v13920_v18  ;;  %8748 = vmatprep.subr.bf16.mxu0 %v13921_v36  ;;  %v13928_v18 = vld [vmem:[#allocation218_spill] sm:$0xff] }
 0x50d   :  { %8780 = vmatprep.subr.bf16.mxu1 %v13922_v24  ;;  %v13929_v24 = vld [vmem:[#allocation219_spill] sm:$0xff] }
 0x50f   :  { %8750 = vmatpush3.bf16.msra.mxu0 %v13923_v31  ;;  %v13930_v31 = vld [vmem:[#allocation220_spill] sm:$0xff] }
 0x510   :  { %8782 = vmatpush3.bf16.msra.mxu1 %v13924_v33  ;;  %8752 = vmatprep.subr.bf16.mxu0 %v13925_v60  ;;  %v13931_v33 = vld [vmem:[#allocation221_spill] sm:$0xff]  ;;  %v13932_v60 = vld [vmem:[#allocation222_spill] sm:$0xff] }
 0x511   :  { %8784 = vmatprep.subr.bf16.mxu1 %v13926_v20 }
 0x513   :  { %8754 = vmatpush3.bf16.msra.mxu0 %v11822_v35 }
 0x514   :  { %8786 = vmatpush3.bf16.msra.mxu1 %v11826_v49  ;;  %8756 = vmatprep.subr.bf16.mxu0 %v13927_v57  ;;  %v13933_v57 = vld [vmem:[#allocation224_spill] sm:$0xff] }
 0x515   :  { %v12540_v6 = vpop.f32.mrb[40].mxu1  ;;  %8788 = vmatprep.subr.bf16.mxu1 %v13928_v18  ;;  %v13934_v18 = vld [vmem:[#allocation225_spill] sm:$0xff] }
 0x516   :  { %v7776_v36 = vpop.f32.mrb[41].mxu1 }
 0x517   :  { %8758 = vmatpush3.bf16.msra.mxu0 %v13929_v24  ;;  %v13935_v36 = vld [vmem:[#allocation226_spill] sm:$0xff]  ;;  %v13936_v24 = vld [vmem:[#allocation227_spill] sm:$0xff] }
 0x518   :  { %8790 = vmatpush3.bf16.msra.mxu1 %v13930_v31  ;;  %8792 = vmatprep.subr.bf16.mxu0 %v13931_v33  ;;  %v13937_v31 = vld [vmem:[#allocation228_spill] sm:$0xff]  ;;  %v13938_v33 = vld [vmem:[#allocation229_spill] sm:$0xff] }
 0x519   :  { %8824 = vmatprep.subr.bf16.mxu1 %v13932_v60 }
 0x51a   :  { %4283 = vmatmul.mubr.f32.vlgmr.msra.gmra.mrb[46].mxu0 %v3860_v59  ;;  %v13939_v59 = vld [vmem:[#allocation230_spill] sm:$0xff] }
 0x51b   :  { %4353 = vmatmul.mubr.f32.vlgmr.msra.gmra.mrb[46].mxu1 %v3862_v0  ;;  %8794 = vmatpush3.bf16.msra.mxu0 %v11890_v38  ;;  %v13940_v0 = vld [vmem:[#allocation231_spill] sm:$0xff] }
 0x51c   :  { %4422 = vmatprep.mubr.f32.mxu0 %v3865_v3  ;;  %8826 = vmatpush3.bf16.msra.mxu1 %v11900_v17  ;;  %v13941_v3 = vld [vmem:[#allocation232_spill] sm:$0xff]  ;;  %v13942_v17 = vld [vmem:[#allocation233_spill] sm:$0xff] }
 0x51d   :  { %4492 = vmatprep.mubr.f32.mxu1 %v3867_v12  ;;  %8796 = vmatprep.subr.bf16.mxu0 %v13933_v57  ;;  %v13943_v12 = vld [vmem:[#allocation234_spill] sm:$0xff]  ;;  %v13944_v57 = vld [vmem:[#allocation235_spill] sm:$0xff] }
 0x51e   :  { %8828 = vmatprep.subr.bf16.mxu1 %v13934_v18  ;;  %v13945_v18 = vld [vmem:[#allocation236_spill] sm:$0xff] }
 0x51f   :  { %8798 = vmatpush3.bf16.msra.mxu0 %v13935_v36  ;;  %v13946_v36 = vld [vmem:[#allocation237_spill] sm:$0xff] }
 0x520   :  { %8830 = vmatpush3.bf16.msra.mxu1 %v13936_v24  ;;  %8800 = vmatprep.subr.bf16.mxu0 %v13937_v31  ;;  %v13947_v24 = vld [vmem:[#allocation238_spill] sm:$0xff]  ;;  %v13948_v31 = vld [vmem:[#allocation239_spill] sm:$0xff] }
 0x521   :  { %8832 = vmatprep.subr.bf16.mxu1 %v13938_v33  ;;  %v13949_v33 = vld [vmem:[#allocation240_spill] sm:$0xff] }
 0x523   :  { %8802 = vmatpush3.bf16.msra.mxu0 %v13939_v59  ;;  %v13950_v59 = vld [vmem:[#allocation241_spill] sm:$0xff] }
 0x524   :  { %8834 = vmatpush3.bf16.msra.mxu1 %v13940_v0  ;;  %8804 = vmatprep.subr.bf16.mxu0 %v13941_v3 }
 0x525   :  { %8836 = vmatprep.subr.bf16.mxu1 %v13942_v17 }
 0x527   :  { %8806 = vmatpush3.bf16.msra.mxu0 %v13943_v12 }
 0x528   :  { %8838 = vmatpush3.bf16.msra.mxu1 %v13944_v57  ;;  %8808 = vmatprep.subr.bf16.mxu0 %v13945_v18 }
 0x529   :  { %8840 = vmatprep.subr.bf16.mxu1 %v13946_v36 }
 0x52b   :  { %8810 = vmatpush3.bf16.msra.mxu0 %v13947_v24 }
 0x52c   :  { %8842 = vmatpush3.bf16.msra.mxu1 %v13948_v31  ;;  %8812 = vmatprep.subr.bf16.mxu0 %v13949_v33 }
 0x52d   :  { %8844 = vmatprep.subr.bf16.mxu1 %v13950_v59 }
 0x52f   :  { %8814 = vmatpush3.bf16.msra.mxu0 %v12080_v45 }
 0x530   :  { %8846 = vmatpush3.bf16.msra.mxu1 %v12084_v13  ;;  %8816 = vmatprep.subr.bf16.mxu0 %v12086_v34 }
 0x531   :  { %8848 = vmatprep.subr.bf16.mxu1 %v12098_v58 }
 0x533   :  { %8818 = vmatpush3.bf16.msra.mxu0 %v12116_v63 }
 0x534   :  { %8850 = vmatpush3.bf16.msra.mxu1 %v12120_v51  ;;  %8820 = vmatprep.subr.bf16.mxu0 %v12122_v44  ;;  %v13951_v51 = vld [vmem:[#allocation15_spill] sm:$0xff]  ;;  %v13952_v44 = vld [vmem:[#allocation16_spill] sm:$0xff] }
 0x535   :  { %8852 = vmatprep.subr.bf16.mxu1 %v12131_v56  ;;  %v13963_v56 = vld [vmem:[#allocation27_spill] sm:$0xff] }
 0x537   :  { %8822 = vmatpush3.bf16.msra.mxu0 %v12140_v61  ;;  %v13962_v61 = vld [vmem:[#allocation26_spill] sm:$0xff] }
 0x538   :  { %8854 = vmatpush3.bf16.msra.mxu1 %v12144_v9  ;;  %8856 = vmatprep.subr.bf16.mxu0 %v9641_v19  ;;  %v13953_v9 = vld [vmem:[#allocation17_spill] sm:$0xff]  ;;  %v13954_v19 = vld [vmem:[#allocation18_spill] sm:$0xff] }
 0x539   :  { %8872 = vmatprep.subr.bf16.mxu1 %v9651_v22  ;;  %v13955_v22 = vld [vmem:[#allocation19_spill] sm:$0xff] }
 0x53a   :  { %4423 = vmatmul.mubr.f32.vlgmr.msra.gmra.mrb[48].mxu0 %v12518_v15  ;;  %v13956_v15 = vld [vmem:[#allocation20_spill] sm:$0xff] }
 0x53b   :  { %4493 = vmatmul.mubr.f32.vlgmr.msra.gmra.mrb[48].mxu1 %v12521_v23  ;;  %8858 = vmatpush1.bf16.msra.mxu0 %v9664_v25  ;;  %v13957_v23 = vld [vmem:[#allocation21_spill] sm:$0xff]  ;;  %v13958_v25 = vld [vmem:[#allocation22_spill] sm:$0xff] }
 0x53c   :  { %8874 = vmatpush1.bf16.msra.mxu1 %v9675_v28  ;;  %8860 = vmatprep.subr.bf16.mxu0 %v13951_v51  ;;  %v13959_v28 = vld [vmem:[#allocation23_spill] sm:$0xff]  ;;  %v13960_v51 = vld [vmem:[#allocation24_spill] sm:$0xff] }
 0x53d   :  { %8876 = vmatprep.subr.bf16.mxu1 %v13952_v44  ;;  %4720 = vmatprep.mubr.f32.mxu0 %v13552_v52  ;;  %v13961_v44 = vld [vmem:[#allocation25_spill] sm:$0xff] }
 0x53e   :  { %4791 = vmatprep.mubr.f32.mxu1 %v13552_v52 }
 0x53f   :  { %8862 = vmatpush1.bf16.msra.mxu0 %v13953_v9  ;;  %v13964_v9 = vld [vmem:[#allocation28_spill] sm:$0xff] }
 0x540   :  { %8878 = vmatpush1.bf16.msra.mxu1 %v13954_v19  ;;  %8864 = vmatprep.subr.bf16.mxu0 %v13955_v22 }
 0x541   :  { %8880 = vmatprep.subr.bf16.mxu1 %v13956_v15 }
 0x543   :  { %8866 = vmatpush1.bf16.msra.mxu0 %v13957_v23 }
 0x544   :  { %8882 = vmatpush1.bf16.msra.mxu1 %v13958_v25  ;;  %8868 = vmatprep.subr.bf16.mxu0 %v13959_v28 }
 0x545   :  { %8884 = vmatprep.subr.bf16.mxu1 %v13960_v51 }
 0x547   :  { %8870 = vmatpush1.bf16.msra.mxu0 %v13961_v44 }
 0x548   :  { %8886 = vmatpush1.bf16.msra.mxu1 %v13962_v61  ;;  %8888 = vmatprep.subr.bf16.mxu0 %v13963_v56 }
 0x549   :  { %8904 = vmatprep.subr.bf16.mxu1 %v13964_v9 }
 0x5ad   :  { %v7196_v19 = vpop.f32.mrb[42].mxu0  ;;  %v7231_v22 = vpop.f32.mrb[42].mxu1 }
 0x5ae   :  { %v7197_v63 = vpop.f32.mrb[43].mxu0  ;;  %v7232_v15 = vpop.f32.mrb[43].mxu1 }
 0x5af   :  { %v7198_v58 = vadd.f32 %v7197_v63, %v7196_v19  ;;  %v7233_v23 = vadd.f32 %v7232_v15, %v7231_v22 }
 0x5b1   :  { %v4005_v25 = vadd.f32 %v7198_v58, %v12540_v6 }
 0x5b3   :  { %v4075_v34 = vadd.f32 %v7233_v23, %v4005_v25 }
 0x5cd   :  { %v7266_v28 = vpop.f32.mrb[44].mxu0  ;;  %v7301_v13 = vpop.f32.mrb[44].mxu1 }
 0x5ce   :  { %v7267_v51 = vpop.f32.mrb[45].mxu0  ;;  %v7302_v45 = vpop.f32.mrb[45].mxu1 }
 0x5cf   :  { %v7268_v44 = vadd.f32 %v7267_v51, %v7266_v28  ;;  %v7303_v59 = vadd.f32 %v7302_v45, %v7301_v13 }
 0x5d1   :  { %v4145_v61 = vadd.f32 %v7268_v44, %v4075_v34  ;;  %v12603_v34 = vld [vmem:[%s13050_s8] ss:$0 sm:$0xff]  ;;  %s12614_s8 = sld [smem:[#allocation8 + $0x15]] }
 0x5d3   :  { %v4215_v33 = vadd.f32 %v7303_v59, %v4145_v61 }
 0x5ed   :  { %v7336_v56 = vpop.f32.mrb[46].mxu0 }
 0x5ee   :  { %v7371_v31 = vpop.f32.mrb[46].mxu1  ;;  %v7337_v9 = vpop.f32.mrb[47].mxu0 }
 0x5ef   :  { %v7338_v24 = vadd.f32 %v7337_v9, %v7336_v56  ;;  %v7372_v36 = vpop.f32.mrb[47].mxu1 }
 0x5f0   :  { %v7373_v18 = vadd.f32 %v7372_v36, %v7371_v31 }
 0x5f1   :  { %v4285_v57 = vadd.f32 %v7338_v24, %v4215_v33 }
 0x5f3   :  { %v4355_v63 = vadd.f32 %v7373_v18, %v4285_v57 }
 0x60d   :  { %v7406_v19 = vpop.f32.mrb[48].mxu0 }
 0x60e   :  { %v7441_v22 = vpop.f32.mrb[48].mxu1  ;;  %v7407_v58 = vpop.f32.mrb[49].mxu0 }
 0x60f   :  { %v7408_v6 = vadd.f32 %v7407_v58, %v7406_v19  ;;  %v7442_v15 = vpop.f32.mrb[49].mxu1 }
 0x610   :  { %v7443_v23 = vadd.f32 %v7442_v15, %v7441_v22 }
 0x611   :  { %v4425_v25 = vadd.f32 %v7408_v6, %v4355_v63 }
 0x613   :  { %v4495_v12 = vadd.f32 %v7443_v23, %v4425_v25 }
 0x615   :  { %v4498_v13 = vadd.f32 %v12603_v34, %v4495_v12 }
 0x617   :  { %9399 = vtanh.f32 %v4498_v13 }
 0x621   :  { %v9400_v45 = vpop.eup %9399 }
 0x622   :  { %4502 = vst.msk [vmem:[%s4501_s16] sm:$0x1] %vm91_vm0, %v9400_v45  ;;  %s4574_s16 = scalar_lea.vmem [#allocation2], %s12610_s18  ;;  %s4529_s18 = scalar_lea.vmem [#allocation2], %s12628_s23 }
 0x623   :  { %4505 = vst.msk [vmem:[%s4504_s20 - $0x1] sm:$0x2] %vm2558_vm4, %v9400_v45  ;;  %s4590_s20 = scalar_lea.vmem [#allocation2], %s12616_s25  ;;  %s4561_s25 = scalar_lea.vmem [#allocation2], %s12634_s6 }
 0x624   :  { %4508 = vst.msk [vmem:[%s4507_s19 - $0x2] sm:$0x4] %vm2562_vm5, %v9400_v45  ;;  %s4606_s19 = scalar_lea.vmem [#allocation2], %s12614_s8  ;;  %s6833_s8 = sld [smem:[#allocation10 + $0x16]] }
 0x625   :  { %4511 = vst.msk [vmem:[%s4510_s14 - $0x3] sm:$0x8] %vm2566_vm6, %v9400_v45  ;;  %s4641_s14 = scalar_lea.vmem [#allocation2], %s12640_s4  ;;  %s6858_s4 = sld [smem:[#allocation5 + $0x13]] }
 0x626   :  { %4514 = vst.msk [vmem:[%s4513_s24 - $0x4] sm:$0x10] %vm2570_vm7, %v9400_v45 }
 0x627   :  { %4517 = vst.msk [vmem:[%s4516_s22 - $0x5] sm:$0x20] %vm2574_vm8, %v9400_v45 }
 0x628   :  { %4520 = vst.msk [vmem:[%s4519_s0 - $0x6] sm:$0x40] %vm2578_vm9, %v9400_v45 }
 0x629   :  { %4523 = vst.msk [vmem:[%s4522_s28 - $0x7] sm:$0x80] %vm2582_vm10, %v9400_v45 }
 0x62a   :  { %s4625_s15 = scalar_lea.vmem [#allocation2], %s6833_s8 }
 0x630   :  { %v6819_v18 = vld [vmem:[%s4545_s30] ss:$0 sm:$0xff]  ;;  %s6859_s30 = sld [smem:[#allocation5 + $0x14]] }
 0x631   :  { %v4527_v24 = vld [vmem:[%s4526_s7] sm:$0x1]  ;;  %4552 = vrot.lane.b32.xlu1 %v6819_v18, %s9480_s29  ;;  %s6860_s7 = sld [smem:[#allocation5 + $0x15]] }
 0x632   :  { %v4543_v31 = vld [vmem:[%s4542_s27] sm:$0x1]  ;;  %4528 = vst.msk [vmem:[#allocation3] sm:$0x1] %vm91_vm0, %v4527_v24  ;;  %v13965_v24 = vld [vmem:[#allocation29_spill] sm:$0xff]  ;;  %s6861_s27 = sld [smem:[#allocation5 + $0x16]] }
 0x633   :  { %v4559_v33 = vld [vmem:[%s4558_s21] sm:$0x1]  ;;  %4544 = vst.msk [vmem:[#allocation3 + $0x1] sm:$0x1] %vm91_vm0, %v4543_v31  ;;  %v13966_v31 = vld [vmem:[#allocation30_spill] sm:$0xff]  ;;  %s6862_s21 = sld [smem:[#allocation5 + $0x17]] }
 0x634   :  { %v4575_v57 = vld [vmem:[%s4574_s16] sm:$0x1]  ;;  %4560 = vst.msk [vmem:[#allocation3 + $0x2] sm:$0x1] %vm91_vm0, %v4559_v33  ;;  %v13967_v33 = vld [vmem:[#allocation31_spill] sm:$0xff] }
 0x635   :  { %v4591_v36 = vld [vmem:[%s4590_s20] sm:$0x1]  ;;  %4576 = vst.msk [vmem:[#allocation3 + $0x3] sm:$0x1] %vm91_vm0, %v4575_v57  ;;  %s6444_s20 = scalar_lea.vmem [#allocation2], %s6856_s5 }
 0x636   :  { %v4607_v59 = vld [vmem:[%s4606_s19] sm:$0x1]  ;;  %4592 = vst.msk [vmem:[#allocation3 + $0x4] sm:$0x1] %vm91_vm0, %v4591_v36  ;;  %v13973_v36 = vld [vmem:[#allocation37_spill] sm:$0xff]  ;;  %s6447_s19 = scalar_lea.vmem [#allocation2], %s6857_s13 }
 0x637   :  { %v4623_v12 = vld [vmem:[%s4622_s2] sm:$0x1]  ;;  %4608 = vst.msk [vmem:[#allocation3 + $0x5] sm:$0x1] %vm91_vm0, %v4607_v59  ;;  %s6450_s2 = scalar_lea.vmem [#allocation2], %s6858_s4 }
 0x638   :  { %v4639_v28 = vld [vmem:[%s4638_s12] sm:$0x1]  ;;  %4624 = vst.msk [vmem:[#allocation3 + $0x6] sm:$0x1] %vm91_vm0, %v4623_v12  ;;  %v13977_v12 = vld [vmem:[#allocation41_spill] sm:$0xff]  ;;  %s6453_s12 = scalar_lea.vmem [#allocation2], %s6859_s30 }
 0x639   :  { %v6816_v51 = vld [vmem:[%s4529_s18] ss:$0 sm:$0xff]  ;;  %4640 = vst.msk [vmem:[#allocation3 + $0x7] sm:$0x1] %vm91_vm0, %v4639_v28  ;;  %v13978_v28 = vld [vmem:[#allocation42_spill] sm:$0xff]  ;;  %s6456_s18 = scalar_lea.vmem [#allocation2], %s6860_s7 }
 0x63a   :  { %4536 = vrot.lane.b32.xlu0 %v6816_v51, %s9480_s29  ;;  %v6825_v44 = vld [vmem:[%s4577_s17] ss:$0 sm:$0xff]  ;;  %v13979_v51 = vld [vmem:[#allocation43_spill] sm:$0xff]  ;;  %s6459_s17 = scalar_lea.vmem [#allocation2], %s6861_s27  ;;  %s6462_s8 = scalar_lea.vmem [#allocation2], %s6862_s21 }
 0x63b   :  { %4584 = vrot.lane.b32.xlu1 %v6825_v44, %s9480_s29  ;;  %v6822_v61 = vld [vmem:[%s4561_s25] ss:$0 sm:$0xff] }
 0x63c   :  { %v6831_v56 = vld [vmem:[%s4609_s3] ss:$0 sm:$0xff] }
 0x63d   :  { %v6828_v9 = vld [vmem:[%s4593_s26] ss:$0 sm:$0xff] }
 0x63e   :  { %4568 = vrot.lane.b32.xlu0 %v6822_v61, %s9480_s29  ;;  %v6837_v63 = vld [vmem:[%s4641_s14] ss:$0 sm:$0xff]  ;;  %v13981_v61 = vld [vmem:[#allocation45_spill] sm:$0xff] }
 0x63f   :  { %4616 = vrot.lane.b32.xlu1 %v6831_v56, %s9480_s29  ;;  %v6834_v19 = vld [vmem:[%s4625_s15] ss:$0 sm:$0xff]  ;;  %v13982_v56 = vld [vmem:[#allocation46_spill] sm:$0xff] }
 0x640   :  { %v13972_v57 = vld [vmem:[#allocation36_spill] sm:$0xff] }
 0x641   :  { %v13976_v59 = vld [vmem:[#allocation40_spill] sm:$0xff] }
 0x642   :  { %4600 = vrot.lane.b32.xlu0 %v6828_v9, %s9480_s29  ;;  %v13980_v44 = vld [vmem:[#allocation44_spill] sm:$0xff]  ;;  %v13983_v9 = vld [vmem:[#allocation47_spill] sm:$0xff] }
 0x643   :  { %4648 = vrot.lane.b32.xlu1 %v6837_v63, %s9480_s29  ;;  %v13984_v63 = vld [vmem:[#allocation48_spill] sm:$0xff] }
 0x646   :  { %4632 = vrot.lane.b32.xlu0 %v6834_v19, %s9480_s29  ;;  %v13985_v19 = vld [vmem:[#allocation49_spill] sm:$0xff] }
 0x6a3   :  { %v4553_v22 = vpop.permute.xlu1 %4552 }
 0x6a4   :  { %4555 = vst.msk [vmem:[#allocation3 + $0x1] sm:$0x1] %vm644_vm1, %v4553_v22  ;;  %v13986_v22 = vld [vmem:[#allocation50_spill] sm:$0xff] }
 0x6ac   :  { %v4537_v58 = vpop.permute.xlu0 %4536 }
 0x6ad   :  { %4539 = vst.msk [vmem:[#allocation3] sm:$0x1] %vm644_vm1, %v4537_v58  ;;  %v4585_v6 = vpop.permute.xlu1 %4584  ;;  %v13987_v58 = vld [vmem:[#allocation51_spill] sm:$0xff] }
 0x6ae   :  { %4587 = vst.msk [vmem:[#allocation3 + $0x3] sm:$0x1] %vm644_vm1, %v4585_v6  ;;  %v13988_v6 = vld [vmem:[#allocation52_spill] sm:$0xff] }
 0x6b0   :  { %v4569_v15 = vpop.permute.xlu0 %4568 }
 0x6b1   :  { %4571 = vst.msk [vmem:[#allocation3 + $0x2] sm:$0x1] %vm644_vm1, %v4569_v15  ;;  %v4617_v23 = vpop.permute.xlu1 %4616  ;;  %v13989_v15 = vld [vmem:[#allocation53_spill] sm:$0xff] }
 0x6b2   :  { %4619 = vst.msk [vmem:[#allocation3 + $0x5] sm:$0x1] %vm644_vm1, %v4617_v23  ;;  %v13990_v23 = vld [vmem:[#allocation54_spill] sm:$0xff] }
 0x6b4   :  { %v4601_v25 = vpop.permute.xlu0 %4600 }
 0x6b5   :  { %4603 = vst.msk [vmem:[#allocation3 + $0x4] sm:$0x1] %vm644_vm1, %v4601_v25  ;;  %v4649_v13 = vpop.permute.xlu1 %4648  ;;  %v13991_v25 = vld [vmem:[#allocation55_spill] sm:$0xff] }
 0x6b6   :  { %4651 = vst.msk [vmem:[#allocation3 + $0x7] sm:$0x1] %vm644_vm1, %v4649_v13  ;;  %v13992_v13 = vld [vmem:[#allocation56_spill] sm:$0xff] }
 0x6b8   :  { %v4633_v45 = vpop.permute.xlu0 %4632 }
 0x6b9   :  { %4635 = vst.msk [vmem:[#allocation3 + $0x6] sm:$0x1] %vm644_vm1, %v4633_v45  ;;  %v13993_v45 = vld [vmem:[#allocation57_spill] sm:$0xff] }
 0x6c0   :  { %v12680_v18 = vld [vmem:[#allocation3] sm:$0xff] }
 0x6c1   :  { %6838 = vmatmul.mubr.msk.f32.vlgmr.msra.gmra.mrb[50].mxu0 %vm759_vm2, %v12680_v18  ;;  %6839 = vmatmul.mubr.msk.f32.vlgmr.msra.gmra.mrb[50].mxu1 %vm759_vm2, %v12680_v18 }
 0x6c2   :  { %8890 = vmatpush1.bf16.msra.mxu0 %v9880_v47  ;;  %8906 = vmatpush1.bf16.msra.mxu1 %v9882_v48  ;;  %v13968_v47 = vld [vmem:[#allocation32_spill] sm:$0xff]  ;;  %v13969_v48 = vld [vmem:[#allocation33_spill] sm:$0xff] }
 0x6c3   :  { %8892 = vmatprep.subr.bf16.mxu0 %v9893_v54  ;;  %8908 = vmatprep.subr.bf16.mxu1 %v9895_v55  ;;  %v13970_v54 = vld [vmem:[#allocation34_spill] sm:$0xff]  ;;  %v13971_v55 = vld [vmem:[#allocation35_spill] sm:$0xff] }
 0x6c4   :  { %4862 = vmatprep.mubr.f32.mxu0 %v13552_v52  ;;  %4933 = vmatprep.mubr.f32.mxu1 %v13552_v52 }
 0x6c6   :  { %8894 = vmatpush1.bf16.msra.mxu0 %v9920_v1  ;;  %8910 = vmatpush1.bf16.msra.mxu1 %v9922_v2  ;;  %v13974_v1 = vld [vmem:[#allocation38_spill] sm:$0xff]  ;;  %v13975_v2 = vld [vmem:[#allocation39_spill] sm:$0xff] }
 0x6c7   :  { %8896 = vmatprep.subr.bf16.mxu0 %v13965_v24  ;;  %8912 = vmatprep.subr.bf16.mxu1 %v13966_v31  ;;  %v13994_v24 = vld [vmem:[#allocation58_spill] sm:$0xff]  ;;  %v13995_v31 = vld [vmem:[#allocation59_spill] sm:$0xff] }
 0x6ca   :  { %8898 = vmatpush1.bf16.msra.mxu0 %v13967_v33  ;;  %8914 = vmatpush1.bf16.msra.mxu1 %v13968_v47  ;;  %v13996_v33 = vld [vmem:[#allocation60_spill] sm:$0xff]  ;;  %v13997_v47 = vld [vmem:[#allocation61_spill] sm:$0xff] }
 0x6cb   :  { %8900 = vmatprep.subr.bf16.mxu0 %v13969_v48  ;;  %8916 = vmatprep.subr.bf16.mxu1 %v13970_v54  ;;  %v13998_v48 = vld [vmem:[#allocation62_spill] sm:$0xff]  ;;  %v13999_v54 = vld [vmem:[#allocation63_spill] sm:$0xff] }
 0x6ce   :  { %8902 = vmatpush1.bf16.msra.mxu0 %v13971_v55  ;;  %8918 = vmatpush1.bf16.msra.mxu1 %v13972_v57  ;;  %v14000_v55 = vld [vmem:[#allocation64_spill] sm:$0xff]  ;;  %v14001_v57 = vld [vmem:[#allocation65_spill] sm:$0xff] }
 0x6cf   :  { %8920 = vmatprep.subr.bf16.mxu0 %v13973_v36  ;;  %8936 = vmatprep.subr.bf16.mxu1 %v13974_v1  ;;  %v14002_v36 = vld [vmem:[#allocation66_spill] sm:$0xff]  ;;  %v14003_v1 = vld [vmem:[#allocation67_spill] sm:$0xff] }
 0x6d1   :  { %6840 = vmatmul.mubr.msk.f32.vlgmr.msra.gmra.mrb[52].mxu0 %vm759_vm2, %v12680_v18  ;;  %6841 = vmatmul.mubr.msk.f32.vlgmr.msra.gmra.mrb[52].mxu1 %vm759_vm2, %v12680_v18 }
 0x6d2   :  { %8922 = vmatpush1.bf16.msra.mxu0 %v13975_v2  ;;  %8938 = vmatpush1.bf16.msra.mxu1 %v13976_v59  ;;  %v14004_v2 = vld [vmem:[#allocation68_spill] sm:$0xff]  ;;  %v14005_v59 = vld [vmem:[#allocation69_spill] sm:$0xff] }
 0x6d3   :  { %8924 = vmatprep.subr.bf16.mxu0 %v13977_v12  ;;  %8940 = vmatprep.subr.bf16.mxu1 %v13978_v28  ;;  %v14006_v12 = vld [vmem:[#allocation70_spill] sm:$0xff]  ;;  %v14007_v28 = vld [vmem:[#allocation71_spill] sm:$0xff] }
 0x6d4   :  { %5004 = vmatprep.mubr.f32.mxu0 %v13552_v52  ;;  %5075 = vmatprep.mubr.f32.mxu1 %v13552_v52 }
 0x6d6   :  { %8926 = vmatpush1.bf16.msra.mxu0 %v13979_v51  ;;  %8942 = vmatpush1.bf16.msra.mxu1 %v13980_v44  ;;  %v14008_v51 = vld [vmem:[#allocation72_spill] sm:$0xff]  ;;  %v14009_v44 = vld [vmem:[#allocation73_spill] sm:$0xff] }
 0x6d7   :  { %8928 = vmatprep.subr.bf16.mxu0 %v13981_v61  ;;  %8944 = vmatprep.subr.bf16.mxu1 %v13982_v56  ;;  %v14010_v61 = vld [vmem:[#allocation74_spill] sm:$0xff]  ;;  %v14011_v56 = vld [vmem:[#allocation75_spill] sm:$0xff] }
 0x6da   :  { %8930 = vmatpush1.bf16.msra.mxu0 %v13983_v9  ;;  %8946 = vmatpush1.bf16.msra.mxu1 %v13984_v63  ;;  %v14012_v9 = vld [vmem:[#allocation76_spill] sm:$0xff]  ;;  %v14013_v63 = vld [vmem:[#allocation77_spill] sm:$0xff] }
 0x6db   :  { %8932 = vmatprep.subr.bf16.mxu0 %v13985_v19  ;;  %8948 = vmatprep.subr.bf16.mxu1 %v13986_v22  ;;  %v14014_v19 = vld [vmem:[#allocation78_spill] sm:$0xff]  ;;  %v14015_v22 = vld [vmem:[#allocation79_spill] sm:$0xff] }
 0x6de   :  { %8934 = vmatpush1.bf16.msra.mxu0 %v13987_v58  ;;  %8950 = vmatpush1.bf16.msra.mxu1 %v13988_v6  ;;  %v14016_v58 = vld [vmem:[#allocation80_spill] sm:$0xff]  ;;  %v14017_v6 = vld [vmem:[#allocation81_spill] sm:$0xff] }
 0x6df   :  { %8952 = vmatprep.subr.bf16.mxu0 %v13989_v15  ;;  %8968 = vmatprep.subr.bf16.mxu1 %v13990_v23  ;;  %v14018_v15 = vld [vmem:[#allocation82_spill] sm:$0xff]  ;;  %v14019_v23 = vld [vmem:[#allocation83_spill] sm:$0xff] }
 0x6e1   :  { %6842 = vmatmul.mubr.msk.f32.vlgmr.msra.gmra.mrb[54].mxu0 %vm759_vm2, %v12680_v18  ;;  %6843 = vmatmul.mubr.msk.f32.vlgmr.msra.gmra.mrb[54].mxu1 %vm759_vm2, %v12680_v18 }
 0x6e2   :  { %8954 = vmatpush1.bf16.msra.mxu0 %v13991_v25  ;;  %8970 = vmatpush1.bf16.msra.mxu1 %v13992_v13  ;;  %v14020_v25 = vld [vmem:[#allocation84_spill] sm:$0xff]  ;;  %v14021_v13 = vld [vmem:[#allocation85_spill] sm:$0xff] }
 0x6e3   :  { %8956 = vmatprep.subr.bf16.mxu0 %v13993_v45  ;;  %8972 = vmatprep.subr.bf16.mxu1 %v13994_v24  ;;  %v14022_v45 = vld [vmem:[#allocation86_spill] sm:$0xff]  ;;  %v14023_v24 = vld [vmem:[#allocation87_spill] sm:$0xff] }
 0x6e4   :  { %5146 = vmatprep.mubr.f32.mxu0 %v13552_v52  ;;  %5217 = vmatprep.mubr.f32.mxu1 %v13552_v52 }
 0x6e6   :  { %8958 = vmatpush1.bf16.msra.mxu0 %v13995_v31  ;;  %8974 = vmatpush1.bf16.msra.mxu1 %v13996_v33  ;;  %v14024_v31 = vld [vmem:[#allocation88_spill] sm:$0xff]  ;;  %v14025_v33 = vld [vmem:[#allocation89_spill] sm:$0xff] }
 0x6e7   :  { %8960 = vmatprep.subr.bf16.mxu0 %v13997_v47  ;;  %8976 = vmatprep.subr.bf16.mxu1 %v13998_v48  ;;  %v14026_v47 = vld [vmem:[#allocation90_spill] sm:$0xff]  ;;  %v14027_v48 = vld [vmem:[#allocation91_spill] sm:$0xff] }
 0x6ea   :  { %8962 = vmatpush1.bf16.msra.mxu0 %v13999_v54  ;;  %8978 = vmatpush1.bf16.msra.mxu1 %v14000_v55  ;;  %v14028_v54 = vld [vmem:[#allocation92_spill] sm:$0xff]  ;;  %v14029_v55 = vld [vmem:[#allocation93_spill] sm:$0xff] }
 0x6eb   :  { %8964 = vmatprep.subr.bf16.mxu0 %v14001_v57  ;;  %8980 = vmatprep.subr.bf16.mxu1 %v14002_v36  ;;  %v14030_v57 = vld [vmem:[#allocation94_spill] sm:$0xff]  ;;  %v14031_v36 = vld [vmem:[#allocation95_spill] sm:$0xff] }
 0x6ee   :  { %8966 = vmatpush1.bf16.msra.mxu0 %v14003_v1  ;;  %8982 = vmatpush1.bf16.msra.mxu1 %v14004_v2  ;;  %v14032_v1 = vld [vmem:[#allocation96_spill] sm:$0xff]  ;;  %v14033_v2 = vld [vmem:[#allocation97_spill] sm:$0xff] }
 0x6ef   :  { %8984 = vmatprep.subr.bf16.mxu0 %v14005_v59  ;;  %9000 = vmatprep.subr.bf16.mxu1 %v14006_v12  ;;  %v14034_v59 = vld [vmem:[#allocation98_spill] sm:$0xff]  ;;  %v14035_v12 = vld [vmem:[#allocation99_spill] sm:$0xff] }
 0x6f1   :  { %6844 = vmatmul.mubr.msk.f32.vlgmr.msra.gmra.mrb[56].mxu0 %vm759_vm2, %v12680_v18  ;;  %6845 = vmatmul.mubr.msk.f32.vlgmr.msra.gmra.mrb[56].mxu1 %vm759_vm2, %v12680_v18 }
 0x6f2   :  { %8986 = vmatpush1.bf16.msra.mxu0 %v14007_v28  ;;  %9002 = vmatpush1.bf16.msra.mxu1 %v14008_v51  ;;  %v14036_v28 = vld [vmem:[#allocation100_spill] sm:$0xff]  ;;  %v14037_v51 = vld [vmem:[#allocation101_spill] sm:$0xff] }
 0x6f3   :  { %8988 = vmatprep.subr.bf16.mxu0 %v14009_v44  ;;  %9004 = vmatprep.subr.bf16.mxu1 %v14010_v61  ;;  %v14038_v44 = vld [vmem:[#allocation102_spill] sm:$0xff]  ;;  %v14039_v61 = vld [vmem:[#allocation103_spill] sm:$0xff] }
 0x6f4   :  { %5288 = vmatprep.mubr.f32.mxu0 %v13552_v52  ;;  %5359 = vmatprep.mubr.f32.mxu1 %v13552_v52 }
 0x6f6   :  { %8990 = vmatpush1.bf16.msra.mxu0 %v14011_v56  ;;  %9006 = vmatpush1.bf16.msra.mxu1 %v14012_v9  ;;  %v14040_v56 = vld [vmem:[#allocation104_spill] sm:$0xff]  ;;  %v14041_v9 = vld [vmem:[#allocation105_spill] sm:$0xff] }
 0x6f7   :  { %8992 = vmatprep.subr.bf16.mxu0 %v14013_v63  ;;  %9008 = vmatprep.subr.bf16.mxu1 %v14014_v19  ;;  %v14042_v63 = vld [vmem:[#allocation106_spill] sm:$0xff]  ;;  %v14043_v19 = vld [vmem:[#allocation107_spill] sm:$0xff] }
 0x6fa   :  { %8994 = vmatpush1.bf16.msra.mxu0 %v14015_v22  ;;  %9010 = vmatpush1.bf16.msra.mxu1 %v14016_v58  ;;  %v14044_v22 = vld [vmem:[#allocation108_spill] sm:$0xff]  ;;  %v14045_v58 = vld [vmem:[#allocation109_spill] sm:$0xff] }
 0x6fb   :  { %8996 = vmatprep.subr.bf16.mxu0 %v14017_v6  ;;  %9012 = vmatprep.subr.bf16.mxu1 %v14018_v15  ;;  %v14046_v6 = vld [vmem:[#allocation110_spill] sm:$0xff]  ;;  %v14047_v15 = vld [vmem:[#allocation111_spill] sm:$0xff] }
 0x6fe   :  { %8998 = vmatpush1.bf16.msra.mxu0 %v14019_v23  ;;  %9014 = vmatpush1.bf16.msra.mxu1 %v14020_v25  ;;  %v14048_v23 = vld [vmem:[#allocation112_spill] sm:$0xff]  ;;  %v14049_v25 = vld [vmem:[#allocation113_spill] sm:$0xff] }
 0x6ff   :  { %9016 = vmatprep.subr.bf16.mxu0 %v14021_v13  ;;  %9032 = vmatprep.subr.bf16.mxu1 %v14022_v45  ;;  %v14050_v13 = vld [vmem:[#allocation114_spill] sm:$0xff]  ;;  %v14051_v45 = vld [vmem:[#allocation115_spill] sm:$0xff] }
 0x701   :  { %6846 = vmatmul.mubr.msk.f32.vlgmr.msra.gmra.mrb[58].mxu0 %vm759_vm2, %v12680_v18  ;;  %6847 = vmatmul.mubr.msk.f32.vlgmr.msra.gmra.mrb[58].mxu1 %vm759_vm2, %v12680_v18 }
 0x702   :  { %9018 = vmatpush1.bf16.msra.mxu0 %v14023_v24  ;;  %9034 = vmatpush1.bf16.msra.mxu1 %v14024_v31  ;;  %v14052_v24 = vld [vmem:[#allocation116_spill] sm:$0xff]  ;;  %v14053_v31 = vld [vmem:[#allocation117_spill] sm:$0xff] }
 0x703   :  { %9020 = vmatprep.subr.bf16.mxu0 %v14025_v33  ;;  %9036 = vmatprep.subr.bf16.mxu1 %v14026_v47  ;;  %v14054_v33 = vld [vmem:[#allocation118_spill] sm:$0xff]  ;;  %v14055_v47 = vld [vmem:[#allocation119_spill] sm:$0xff] }
 0x704   :  { %5430 = vmatprep.mubr.f32.mxu0 %v13552_v52  ;;  %5501 = vmatprep.mubr.f32.mxu1 %v13552_v52 }
 0x706   :  { %9022 = vmatpush1.bf16.msra.mxu0 %v14027_v48  ;;  %9038 = vmatpush1.bf16.msra.mxu1 %v14028_v54  ;;  %v14056_v48 = vld [vmem:[#allocation120_spill] sm:$0xff]  ;;  %v14057_v54 = vld [vmem:[#allocation121_spill] sm:$0xff] }
 0x707   :  { %9024 = vmatprep.subr.bf16.mxu0 %v14029_v55  ;;  %9040 = vmatprep.subr.bf16.mxu1 %v14030_v57  ;;  %v14058_v55 = vld [vmem:[#allocation122_spill] sm:$0xff]  ;;  %v14059_v57 = vld [vmem:[#allocation123_spill] sm:$0xff] }
 0x70a   :  { %9026 = vmatpush1.bf16.msra.mxu0 %v14031_v36  ;;  %9042 = vmatpush1.bf16.msra.mxu1 %v14032_v1  ;;  %v14060_v36 = vld [vmem:[#allocation124_spill] sm:$0xff]  ;;  %v14061_v1 = vld [vmem:[#allocation125_spill] sm:$0xff] }
 0x70b   :  { %9028 = vmatprep.subr.bf16.mxu0 %v14033_v2  ;;  %9044 = vmatprep.subr.bf16.mxu1 %v14034_v59  ;;  %v14062_v2 = vld [vmem:[#allocation126_spill] sm:$0xff]  ;;  %v14063_v59 = vld [vmem:[#allocation127_spill] sm:$0xff] }
 0x70e   :  { %9030 = vmatpush1.bf16.msra.mxu0 %v14035_v12  ;;  %9046 = vmatpush1.bf16.msra.mxu1 %v14036_v28  ;;  %v14064_v12 = vld [vmem:[#allocation128_spill] sm:$0xff]  ;;  %v14065_v28 = vld [vmem:[#allocation129_spill] sm:$0xff] }
 0x70f   :  { %9048 = vmatprep.subr.bf16.mxu0 %v14037_v51  ;;  %9064 = vmatprep.subr.bf16.mxu1 %v14038_v44  ;;  %v14066_v51 = vld [vmem:[#allocation130_spill] sm:$0xff]  ;;  %v14067_v44 = vld [vmem:[#allocation131_spill] sm:$0xff] }
 0x711   :  { %6848 = vmatmul.mubr.msk.f32.vlgmr.msra.gmra.mrb[60].mxu0 %vm759_vm2, %v12680_v18  ;;  %6849 = vmatmul.mubr.msk.f32.vlgmr.msra.gmra.mrb[60].mxu1 %vm759_vm2, %v12680_v18 }
 0x712   :  { %9050 = vmatpush1.bf16.msra.mxu0 %v14039_v61  ;;  %9066 = vmatpush1.bf16.msra.mxu1 %v14040_v56  ;;  %v14068_v61 = vld [vmem:[#allocation132_spill] sm:$0xff]  ;;  %v14069_v56 = vmov 0.0|0.0  }
 0x713   :  { %9052 = vmatprep.subr.bf16.mxu0 %v14041_v9  ;;  %9068 = vmatprep.subr.bf16.mxu1 %v14042_v63  ;;  %v14070_v9 = vld [vmem:[#allocation136_spill] sm:$0xff]  ;;  %v14071_v63 = vld [vmem:[#allocation133_spill] sm:$0xff] }
 0x714   :  { %5572 = vmatprep.mubr.f32.mxu0 %v13552_v52  ;;  %5643 = vmatprep.mubr.f32.mxu1 %v13552_v52 }
 0x716   :  { %9054 = vmatpush1.bf16.msra.mxu0 %v14043_v19  ;;  %9070 = vmatpush1.bf16.msra.mxu1 %v14044_v22  ;;  %v14072_v19 = vld [vmem:[#allocation137_spill] sm:$0xff]  ;;  %v14073_v22 = vld [vmem:[#allocation138_spill] sm:$0xff] }
 0x717   :  { %9056 = vmatprep.subr.bf16.mxu0 %v14045_v58  ;;  %9072 = vmatprep.subr.bf16.mxu1 %v14046_v6  ;;  %v14074_v58 = vld [vmem:[#allocation134_spill] sm:$0xff]  ;;  %v14075_v6 = vld [vmem:[#allocation140_spill] sm:$0xff] }
 0x71a   :  { %9058 = vmatpush1.bf16.msra.mxu0 %v14047_v15  ;;  %9074 = vmatpush1.bf16.msra.mxu1 %v14048_v23  ;;  %v14076_v15 = vld [vmem:[#allocation142_spill] sm:$0xff]  ;;  %v14077_v23 = vld [vmem:[#allocation135_spill] sm:$0xff] }
 0x71b   :  { %9060 = vmatprep.subr.bf16.mxu0 %v14049_v25  ;;  %9076 = vmatprep.subr.bf16.mxu1 %v14050_v13  ;;  %v14078_v25 = vld [vmem:[#allocation143_spill] sm:$0xff] }
 0x71c   :  { %v14080_v13 = vld [vmem:[#allocation139_spill] sm:$0xff] }
 0x71e   :  { %9062 = vmatpush1.bf16.msra.mxu0 %v14051_v45  ;;  %9078 = vmatpush1.bf16.msra.mxu1 %v14052_v24  ;;  %v14081_v45 = vld [vmem:[#allocation141_spill] sm:$0xff] }
 0x71f   :  { %9080 = vmatprep.subr.bf16.mxu0 %v14053_v31  ;;  %9096 = vmatprep.subr.bf16.mxu1 %v14054_v33  ;;  %v14082_v24 = vld [vmem:[#allocation149_spill] sm:$0xff]  ;;  %v14083_v31 = vld [vmem:[#allocation151_spill] sm:$0xff]  ;;  %v14084_v33 = vld [vmem:[#allocation144_spill] sm:$0xff] }
 0x721   :  { %6850 = vmatmul.mubr.msk.f32.vlgmr.msra.gmra.mrb[62].mxu0 %vm759_vm2, %v12680_v18  ;;  %6851 = vmatmul.mubr.msk.f32.vlgmr.msra.gmra.mrb[62].mxu1 %vm759_vm2, %v12680_v18 }
 0x722   :  { %9082 = vmatpush1.bf16.msra.mxu0 %v14055_v47  ;;  %9098 = vmatpush1.bf16.msra.mxu1 %v14056_v48  ;;  %v14085_v47 = vld [vmem:[#allocation145_spill] sm:$0xff] }
 0x723   :  { %9084 = vmatprep.subr.bf16.mxu0 %v14057_v54  ;;  %9100 = vmatprep.subr.bf16.mxu1 %v14058_v55  ;;  %v14086_v48 = vld [vmem:[#allocation153_spill] sm:$0xff]  ;;  %v14087_v54 = vld [vmem:[#allocation154_spill] sm:$0xff] }
 0x724   :  { %5714 = vmatprep.mubr.f32.mxu0 %v13552_v52  ;;  %5785 = vmatprep.mubr.f32.mxu1 %v13552_v52  ;;  %v14088_v55 = vld [vmem:[#allocation146_spill] sm:$0xff] }
 0x726   :  { %9086 = vmatpush1.bf16.msra.mxu0 %v14059_v57  ;;  %9102 = vmatpush1.bf16.msra.mxu1 %v14060_v36  ;;  %v14089_v57 = vld [vmem:[#allocation148_spill] sm:$0xff] }
 0x727   :  { %9088 = vmatprep.subr.bf16.mxu0 %v14061_v1  ;;  %9104 = vmatprep.subr.bf16.mxu1 %v14062_v2  ;;  %v14090_v36 = vld [vmem:[#allocation156_spill] sm:$0xff]  ;;  %v14091_v1 = vld [vmem:[#allocation158_spill] sm:$0xff] }
 0x728   :  { %v14092_v2 = vld [vmem:[#allocation150_spill] sm:$0xff] }
 0x72a   :  { %9090 = vmatpush1.bf16.msra.mxu0 %v14063_v59  ;;  %9106 = vmatpush1.bf16.msra.mxu1 %v14064_v12  ;;  %v14093_v59 = vld [vmem:[#allocation152_spill] sm:$0xff]  ;;  %v14095_v12 = vld [vmem:[#allocation163_spill] sm:$0xff] }
 0x72b   :  { %9092 = vmatprep.subr.bf16.mxu0 %v14065_v28  ;;  %9108 = vmatprep.subr.bf16.mxu1 %v14066_v51  ;;  %v14096_v28 = vld [vmem:[#allocation155_spill] sm:$0xff]  ;;  %v14097_v51 = vld [vmem:[#allocation157_spill] sm:$0xff] }
 0x72e   :  { %9094 = vmatpush1.bf16.msra.mxu0 %v14067_v44  ;;  %9110 = vmatpush1.bf16.msra.mxu1 %v14068_v61  ;;  %v14098_v44 = vld [vmem:[#allocation165_spill] sm:$0xff]  ;;  %v14099_v61 = vld [vmem:[#allocation167_spill] sm:$0xff] }
 0x72f   :  { %9111 = vmatprep.subr.bf16.mxu0 %v14069_v56  ;;  %9124 = vmatprep.subr.bf16.mxu1 %v14070_v9  ;;  %v14101_v9 = vld [vmem:[#allocation161_spill] sm:$0xff] }
 0x731   :  { %6852 = vmatmul.mubr.msk.f32.vlgmr.msra.gmra.mrb[64].mxu0 %vm759_vm2, %v12680_v18  ;;  %6853 = vmatmul.mubr.msk.f32.vlgmr.msra.gmra.mrb[64].mxu1 %vm759_vm2, %v12680_v18 }
 0x732   :  { %9113 = vmatpush3.bf16.msra.mxu0 %v14071_v63  ;;  %7793 = vmatprep.mubr.msk.f32.mxu0 %vm9483_vm3, %v13552_v52  ;;  %v14079_v52 = vld [vmem:[#allocation147_spill] sm:$0xff]  ;;  %v14102_v63 = vld [vmem:[#allocation162_spill] sm:$0xff] }
 0x733   :  { %9114 = vmatprep.subr.bf16.mxu0 %v14069_v56  ;;  %9126 = vmatpush3.bf16.msra.mxu1 %v14072_v19  ;;  %v14103_v19 = vld [vmem:[#allocation164_spill] sm:$0xff] }
 0x734   :  { %9128 = vmatprep.subr.bf16.mxu1 %v14073_v22  ;;  %v14104_v22 = vld [vmem:[#allocation166_spill] sm:$0xff] }
 0x736   :  { %9116 = vmatpush3.bf16.msra.mxu0 %v14074_v58  ;;  %v14105_v58 = vld [vmem:[#allocation168_spill] sm:$0xff] }
 0x737   :  { %9117 = vmatprep.subr.bf16.mxu0 %v14069_v56  ;;  %9130 = vmatpush3.bf16.msra.mxu1 %v14075_v6  ;;  %v14106_v6 = vld [vmem:[#allocation169_spill] sm:$0xff] }
 0x738   :  { %9132 = vmatprep.subr.bf16.mxu1 %v14076_v15  ;;  %v14107_v15 = vld [vmem:[#allocation170_spill] sm:$0xff] }
 0x73a   :  { %9119 = vmatpush3.bf16.msra.mxu0 %v14077_v23 }
 0x73b   :  { %9120 = vmatprep.subr.bf16.mxu0 %v14069_v56  ;;  %9134 = vmatpush3.bf16.msra.mxu1 %v14078_v25  ;;  %v14100_v56 = vld [vmem:[#allocation160_spill] sm:$0xff] }
 0x73c   :  { %9136 = vmatprep.subr.bf16.mxu1 %v14079_v52 }
 0x73e   :  { %9122 = vmatpush3.bf16.msra.mxu0 %v14080_v13 }
 0x73f   :  { %9156 = vmatprep.subr.bf16.mxu0 %v14081_v45  ;;  %9138 = vmatpush3.bf16.msra.mxu1 %v14082_v24 }
 0x740   :  { %9140 = vmatprep.subr.bf16.mxu1 %v14083_v31 }
 0x741   :  { %7794 = vmatmul.mubr.msk.f32.vlgmr.msra.gmra.mrb[66].mxu0 %vm759_vm2, %v12680_v18  ;;  %v14094_v18 = vld [vmem:[#allocation159_spill] sm:$0xff] }
 0x742   :  { %9158 = vmatpush3.bf16.msra.mxu0 %v14084_v33 }
 0x743   :  { %9160 = vmatprep.subr.bf16.mxu0 %v14085_v47  ;;  %9142 = vmatpush3.bf16.msra.mxu1 %v14086_v48 }
 0x744   :  { %9144 = vmatprep.subr.bf16.mxu1 %v14087_v54 }
 0x746   :  { %9162 = vmatpush3.bf16.msra.mxu0 %v14088_v55 }
 0x747   :  { %9164 = vmatprep.subr.bf16.mxu0 %v14089_v57  ;;  %9146 = vmatpush3.bf16.msra.mxu1 %v14090_v36 }
 0x748   :  { %9148 = vmatprep.subr.bf16.mxu1 %v14091_v1 }
 0x74a   :  { %9166 = vmatpush3.bf16.msra.mxu0 %v14092_v2 }
 0x74b   :  { %9168 = vmatprep.subr.bf16.mxu0 %v14093_v59  ;;  %9150 = vmatpush3.bf16.msra.mxu1 %v14094_v18 }
 0x74c   :  { %9152 = vmatprep.subr.bf16.mxu1 %v14095_v12 }
 0x74e   :  { %9170 = vmatpush3.bf16.msra.mxu0 %v14096_v28 }
 0x74f   :  { %9172 = vmatprep.subr.bf16.mxu0 %v14097_v51  ;;  %9154 = vmatpush3.bf16.msra.mxu1 %v14098_v44 }
 0x750   :  { %9188 = vmatprep.subr.bf16.mxu1 %v14099_v61 }
 0x752   :  { %9174 = vmatpush3.bf16.msra.mxu0 %v14100_v56 }
 0x753   :  { %9176 = vmatprep.subr.bf16.mxu0 %v14101_v9  ;;  %v14108_v9 = vld [vmem:[#allocation171_spill] sm:$0xff] }
 0x756   :  { %9178 = vmatpush3.bf16.msra.mxu0 %v14102_v63  ;;  %v14109_v63 = vld [vmem:[#allocation172_spill] sm:$0xff] }
 0x757   :  { %9180 = vmatprep.subr.bf16.mxu0 %v14103_v19  ;;  %v14110_v19 = vld [vmem:[#allocation173_spill] sm:$0xff] }
 0x75a   :  { %9182 = vmatpush3.bf16.msra.mxu0 %v14104_v22 }
 0x75b   :  { %9184 = vmatprep.subr.bf16.mxu0 %v14105_v58 }
 0x75e   :  { %9186 = vmatpush3.bf16.msra.mxu0 %v14106_v6 }
 0x75f   :  { %9220 = vmatprep.subr.bf16.mxu0 %v14107_v15 }
 0x794   :  { %v4722_v23 = vpop.f32.mrb[50].mxu0  ;;  %v4793_v25 = vpop.f32.mrb[50].mxu1 }
 0x795   :  { %v4724_v52 = vpop.f32.mrb[51].mxu0  ;;  %v4795_v13 = vpop.f32.mrb[51].mxu1 }
 0x7a4   :  { %v4864_v45 = vpop.f32.mrb[52].mxu0  ;;  %v4935_v24 = vpop.f32.mrb[52].mxu1 }
 0x7a5   :  { %v4866_v31 = vpop.f32.mrb[53].mxu0  ;;  %v4937_v33 = vpop.f32.mrb[53].mxu1 }
 0x7b4   :  { %v5006_v47 = vpop.f32.mrb[54].mxu0  ;;  %v5077_v48 = vpop.f32.mrb[54].mxu1 }
 0x7b5   :  { %v5008_v54 = vpop.f32.mrb[55].mxu0  ;;  %v5079_v55 = vpop.f32.mrb[55].mxu1 }
 0x7c4   :  { %v12884_v57 = vpop.f32.mrb[56].mxu0  ;;  %v12886_v36 = vpop.f32.mrb[56].mxu1 }
 0x7c5   :  { %v12888_v1 = vpop.f32.mrb[57].mxu0  ;;  %v12890_v2 = vpop.f32.mrb[57].mxu1 }
 0x7d4   :  { %v5290_v59 = vpop.f32.mrb[58].mxu0  ;;  %v5361_v18 = vpop.f32.mrb[58].mxu1 }
 0x7d5   :  { %v5792_v12 = vmul.f32 %v5290_v59, %v4722_v23  ;;  %v5794_v28 = vmul.f32 %v5361_v18, %v4793_v25  ;;  %v5292_v51 = vpop.f32.mrb[59].mxu0  ;;  %v5363_v44 = vpop.f32.mrb[59].mxu1 }
 0x7d6   :  { %v5793_v61 = vmul.f32 %v5292_v51, %v4724_v52  ;;  %v5795_v56 = vmul.f32 %v5363_v44, %v4795_v13  ;;  %v14117_v52 = vld [vmem:[#allocation185_spill] sm:$0xff]  ;;  %v14118_v13 = vld [vmem:[#allocation186_spill] sm:$0xff] }
 0x7d8   :  { %5942 = vmatprep.mubr.f32.mxu1 %v5793_v61  ;;  %6012 = vmatprep.mubr.f32.mxu0 %v5795_v56 }
 0x7d9   :  { %5943 = vmatmul.mubr.f32.vlgmr.msra.gmra.mrb[66].mxu1 %v5792_v12  ;;  %6013 = vmatmul.mubr.f32.vlgmr.msra.gmra.mrb[68].mxu0 %v5794_v28 }
 0x7da   :  { %9190 = vmatpush3.bf16.msra.mxu1 %v11291_v37  ;;  %9222 = vmatpush3.bf16.msra.mxu0 %v11293_v27  ;;  %v14111_v37 = vld [vmem:[#allocation179_spill] sm:$0xff] }
 0x7db   :  { %9192 = vmatprep.subr.bf16.mxu1 %v11301_v16  ;;  %9224 = vmatprep.subr.bf16.mxu0 %v14108_v9 }
 0x7de   :  { %9194 = vmatpush3.bf16.msra.mxu1 %v14109_v63  ;;  %9226 = vmatpush3.bf16.msra.mxu0 %v14110_v19  ;;  %v14132_v63 = vld [vmem:[#allocation209_spill] sm:$0xff]  ;;  %v14133_v19 = vld [vmem:[#allocation210_spill] sm:$0xff] }
 0x7df   :  { %9196 = vmatprep.subr.bf16.mxu1 %v13887_v11  ;;  %9228 = vmatprep.subr.bf16.mxu0 %v13888_v53  ;;  %v14112_v11 = vld [vmem:[#allocation180_spill] sm:$0xff]  ;;  %v14113_v53 = vld [vmem:[#allocation181_spill] sm:$0xff] }
 0x7e2   :  { %9198 = vmatpush3.bf16.msra.mxu1 %v13889_v43  ;;  %9230 = vmatpush3.bf16.msra.mxu0 %v13890_v39  ;;  %v14114_v43 = vld [vmem:[#allocation182_spill] sm:$0xff]  ;;  %v14115_v39 = vld [vmem:[#allocation183_spill] sm:$0xff] }
 0x7e3   :  { %9200 = vmatprep.subr.bf16.mxu1 %v13891_v50  ;;  %9232 = vmatprep.subr.bf16.mxu0 %v14111_v37  ;;  %v14116_v50 = vld [vmem:[#allocation184_spill] sm:$0xff]  ;;  %v14136_v37 = vld [vmem:[#allocation213_spill] sm:$0xff] }
 0x7e4   :  { %v5432_v27 = vpop.f32.mrb[60].mxu0  ;;  %v5503_v16 = vpop.f32.mrb[60].mxu1 }
 0x7e5   :  { %v5796_v22 = vmul.f32 %v5432_v27, %v4864_v45  ;;  %v5798_v58 = vmul.f32 %v5503_v16, %v4935_v24  ;;  %v5434_v6 = vpop.f32.mrb[61].mxu0  ;;  %v5505_v15 = vpop.f32.mrb[61].mxu1  ;;  %v14119_v45 = vld [vmem:[#allocation187_spill] sm:$0xff]  ;;  %v14122_v24 = vld [vmem:[#allocation193_spill] sm:$0xff]  ;;  %v14142_v16 = vld [vmem:[#allocation220_spill] sm:$0xff] }
 0x7e6   :  { %v5797_v23 = vmul.f32 %v5434_v6, %v4866_v31  ;;  %v5799_v25 = vmul.f32 %v5505_v15, %v4937_v33  ;;  %9202 = vmatpush3.bf16.msra.mxu1 %v11397_v26  ;;  %9234 = vmatpush3.bf16.msra.mxu0 %v11399_v62  ;;  %v14120_v26 = vld [vmem:[#allocation190_spill] sm:$0xff]  ;;  %v14121_v62 = vld [vmem:[#allocation192_spill] sm:$0xff]  ;;  %v14141_v27 = vld [vmem:[#allocation219_spill] sm:$0xff] }
 0x7e7   :  { %9204 = vmatprep.subr.bf16.mxu1 %v14112_v11  ;;  %9236 = vmatprep.subr.bf16.mxu0 %v14113_v53  ;;  %v14148_v6 = vld [vmem:[#allocation227_spill] sm:$0xff]  ;;  %v14149_v15 = vld [vmem:[#allocation228_spill] sm:$0xff]  ;;  %v14155_v53 = vld [vmem:[#allocation237_spill] sm:$0xff] }
 0x7e8   :  { %6082 = vmatprep.mubr.f32.mxu1 %v5797_v23  ;;  %6152 = vmatprep.mubr.f32.mxu0 %v5799_v25  ;;  %v14150_v23 = vld [vmem:[#allocation229_spill] sm:$0xff]  ;;  %v14153_v25 = vld [vmem:[#allocation235_spill] sm:$0xff]  ;;  %v14154_v11 = vld [vmem:[#allocation236_spill] sm:$0xff] }
 0x7ea   :  { %9206 = vmatpush3.bf16.msra.mxu1 %v14114_v43  ;;  %9238 = vmatpush3.bf16.msra.mxu0 %v14115_v39  ;;  %v14156_v43 = vld [vmem:[#allocation238_spill] sm:$0xff]  ;;  %v14157_v39 = vld [vmem:[#allocation239_spill] sm:$0xff] }
 0x7eb   :  { %9208 = vmatprep.subr.bf16.mxu1 %v14116_v50  ;;  %9240 = vmatprep.subr.bf16.mxu0 %v14117_v52  ;;  %v14158_v50 = vld [vmem:[#allocation240_spill] sm:$0xff]  ;;  %v14159_v52 = vld [vmem:[#allocation241_spill] sm:$0xff] }
 0x7ee   :  { %9210 = vmatpush3.bf16.msra.mxu1 %v14118_v13  ;;  %9242 = vmatpush3.bf16.msra.mxu0 %v14119_v45  ;;  %v14163_v13 = vld [vmem:[#allocation245_spill] sm:$0xff]  ;;  %v14164_v45 = vld [vmem:[#allocation246_spill] sm:$0xff] }
 0x7ef   :  { %9212 = vmatprep.subr.bf16.mxu1 %v13898_v5  ;;  %9244 = vmatprep.subr.bf16.mxu0 %v13899_v8  ;;  %v14123_v5 = vld [vmem:[#allocation198_spill] sm:$0xff]  ;;  %v14124_v8 = vld [vmem:[#allocation199_spill] sm:$0xff] }
 0x7f2   :  { %9214 = vmatpush3.bf16.msra.mxu1 %v14120_v26  ;;  %9246 = vmatpush3.bf16.msra.mxu0 %v13901_v7  ;;  %v14129_v7 = vld [vmem:[#allocation204_spill] sm:$0xff]  ;;  %v14165_v26 = vld [vmem:[#allocation247_spill] sm:$0xff] }
 0x7f3   :  { %9216 = vmatprep.subr.bf16.mxu1 %v14121_v62  ;;  %9248 = vmatprep.subr.bf16.mxu0 %v14122_v24  ;;  %v14166_v62 = vld [vmem:[#allocation248_spill] sm:$0xff]  ;;  %v14167_v24 = vld [vmem:[#allocation249_spill] sm:$0xff] }
 0x7f4   :  { %v5574_v31 = vpop.f32.mrb[62].mxu0  ;;  %v5645_v33 = vpop.f32.mrb[62].mxu1 }
 0x7f5   :  { %v5800_v59 = vmul.f32 %v5574_v31, %v5006_v47  ;;  %v5802_v18 = vmul.f32 %v5645_v33, %v5077_v48  ;;  %v5576_v12 = vpop.f32.mrb[63].mxu0  ;;  %v5647_v28 = vpop.f32.mrb[63].mxu1  ;;  %v14131_v48 = vld [vmem:[#allocation206_spill] sm:$0xff]  ;;  %v14169_v33 = vld [vmem:[#allocation251_spill] sm:$0xff] }
 0x7f6   :  { %v5801_v51 = vmul.f32 %v5576_v12, %v5008_v54  ;;  %v5803_v44 = vmul.f32 %v5647_v28, %v5079_v55  ;;  %9218 = vmatpush3.bf16.msra.mxu1 %v11549_v4  ;;  %9250 = vmatpush3.bf16.msra.mxu0 %v11551_v46  ;;  %v14125_v4 = vld [vmem:[#allocation200_spill] sm:$0xff]  ;;  %v14126_v46 = vld [vmem:[#allocation201_spill] sm:$0xff]  ;;  %v14168_v31 = vld [vmem:[#allocation250_spill] sm:$0xff] }
 0x7f7   :  { %9252 = vmatprep.subr.bf16.mxu1 %v11555_v21  ;;  %9284 = vmatprep.subr.bf16.mxu0 %v13904_v40  ;;  %v14127_v21 = vld [vmem:[#allocation202_spill] sm:$0xff]  ;;  %v14128_v40 = vld [vmem:[#allocation203_spill] sm:$0xff] }
 0x7f8   :  { %v6515_v12 = vld [vmem:[%s13051_s9 + $0x10] sm:$0xff] }
 0x7f9   :  { %6083 = vmatmul.mubr.f32.vlgmr.msra.gmra.mrb[68].mxu1 %v5796_v22  ;;  %6153 = vmatmul.mubr.f32.vlgmr.msra.gmra.mrb[70].mxu0 %v5798_v58  ;;  %v14143_v22 = vld [vmem:[#allocation221_spill] sm:$0xff]  ;;  %v14147_v58 = vld [vmem:[#allocation226_spill] sm:$0xff] }
 0x7fa   :  { %9254 = vmatpush3.bf16.msra.mxu1 %v13905_v14  ;;  %6222 = vmatprep.mubr.f32.mxu1 %v5801_v51  ;;  %v14130_v14 = vld [vmem:[#allocation205_spill] sm:$0xff]  ;;  %v6516_v51 = vld [vmem:[%s13051_s9 + $0x18] sm:$0xff] }
 0x7fb   :  { %9286 = vmatpush3.bf16.msra.mxu0 %v13906_v32  ;;  %6292 = vmatprep.mubr.f32.mxu0 %v5803_v44  ;;  %v9383_v44 = vpack.c.bf16 %v6516_v51, %v6515_v12 }
 0x7fc   :  { %9256 = vmatprep.subr.bf16.mxu1 %v13907_v30  ;;  %9288 = vmatprep.subr.bf16.mxu0 %v14123_v5 }
 0x7fe   :  { %9258 = vmatpush3.bf16.msra.mxu1 %v14124_v8 }
 0x7ff   :  { %9290 = vmatpush3.bf16.msra.mxu0 %v14125_v4  ;;  %9260 = vmatprep.subr.bf16.mxu1 %v14126_v46 }
 0x800   :  { %9292 = vmatprep.subr.bf16.mxu0 %v14127_v21 }
 0x802   :  { %9262 = vmatpush3.bf16.msra.mxu1 %v14128_v40 }
 0x803   :  { %9294 = vmatpush3.bf16.msra.mxu0 %v14129_v7  ;;  %9264 = vmatprep.subr.bf16.mxu1 %v14130_v14 }
 0x804   :  { %v5716_v32 = vpop.f32.mrb[64].mxu0  ;;  %v5787_v47 = vpop.f32.mrb[64].mxu1  ;;  %9296 = vmatprep.subr.bf16.mxu0 %v14131_v48 }
 0x805   :  { %v5804_v30 = vmul.f32 %v5716_v32, %v12884_v57  ;;  %v5806_v54 = vmul.f32 %v5787_v47, %v12886_v36  ;;  %v5718_v55 = vpop.f32.mrb[65].mxu0  ;;  %v5789_v61 = vpop.f32.mrb[65].mxu1  ;;  %v14134_v57 = vld [vmem:[#allocation211_spill] sm:$0xff]  ;;  %v14135_v36 = vld [vmem:[#allocation212_spill] sm:$0xff] }
 0x806   :  { %v5805_v56 = vmul.f32 %v5718_v55, %v12888_v1  ;;  %v5807_v9 = vmul.f32 %v5789_v61, %v12890_v2  ;;  %9266 = vmatpush3.bf16.msra.mxu1 %v11702_v42  ;;  %v14137_v1 = vld [vmem:[#allocation214_spill] sm:$0xff]  ;;  %v14138_v2 = vld [vmem:[#allocation215_spill] sm:$0xff] }
 0x807   :  { %9298 = vmatpush3.bf16.msra.mxu0 %v11706_v41  ;;  %9268 = vmatprep.subr.bf16.mxu1 %v13917_v10  ;;  %v14139_v41 = vld [vmem:[#allocation217_spill] sm:$0xff] }
 0x808   :  { %9300 = vmatprep.subr.bf16.mxu0 %v13918_v29  ;;  %v14140_v29 = vld [vmem:[#allocation218_spill] sm:$0xff] }
 0x80a   :  { %9270 = vmatpush3.bf16.msra.mxu1 %v14132_v63 }
 0x80b   :  { %9302 = vmatpush3.bf16.msra.mxu0 %v14133_v19  ;;  %9272 = vmatprep.subr.bf16.mxu1 %v14134_v57 }
 0x80c   :  { %9304 = vmatprep.subr.bf16.mxu0 %v14135_v36 }
 0x80e   :  { %9274 = vmatpush3.bf16.msra.mxu1 %v14136_v37 }
 0x80f   :  { %9306 = vmatpush3.bf16.msra.mxu0 %v14137_v1  ;;  %9276 = vmatprep.subr.bf16.mxu1 %v14138_v2 }
 0x810   :  { %9308 = vmatprep.subr.bf16.mxu0 %v13926_v20  ;;  %v14146_v20 = vld [vmem:[#allocation225_spill] sm:$0xff] }
 0x812   :  { %9278 = vmatpush3.bf16.msra.mxu1 %v11822_v35  ;;  %v14145_v35 = vld [vmem:[#allocation224_spill] sm:$0xff] }
 0x813   :  { %9310 = vmatpush3.bf16.msra.mxu0 %v11826_v49  ;;  %9280 = vmatprep.subr.bf16.mxu1 %v14139_v41  ;;  %v14144_v49 = vld [vmem:[#allocation223_spill] sm:$0xff] }
 0x814   :  { %v5874_v42 = vpop.f32.mrb[66].mxu0  ;;  %9312 = vmatprep.subr.bf16.mxu0 %v14140_v29 }
 0x815   :  { %v7795_v10 = vpop.f32.mrb[67].mxu0 }
 0x816   :  { %9282 = vmatpush3.bf16.msra.mxu1 %v14141_v27 }
 0x817   :  { %9314 = vmatpush3.bf16.msra.mxu0 %v14142_v16  ;;  %9316 = vmatprep.subr.bf16.mxu1 %v14143_v22 }
 0x818   :  { %9348 = vmatprep.subr.bf16.mxu0 %v13932_v60  ;;  %v14151_v60 = vld [vmem:[#allocation230_spill] sm:$0xff] }
 0x819   :  { %6223 = vmatmul.mubr.f32.vlgmr.msra.gmra.mrb[70].mxu1 %v5800_v59  ;;  %v6513_v59 = vld [vmem:[%s13051_s9] sm:$0xff] }
 0x81a   :  { %6293 = vmatmul.mubr.f32.vlgmr.msra.gmra.mrb[72].mxu0 %v5802_v18  ;;  %9318 = vmatpush3.bf16.msra.mxu1 %v11890_v38  ;;  %v14152_v38 = vld [vmem:[#allocation234_spill] sm:$0xff]  ;;  %v6514_v18 = vld [vmem:[%s13051_s9 + $0x8] sm:$0xff]  ;;  %s6855_s9 = sld [smem:[#allocation5 + $0x10]] }
 0x81b   :  { %6362 = vmatprep.mubr.f32.mxu1 %v5805_v56  ;;  %9350 = vmatpush3.bf16.msra.mxu0 %v14144_v49  ;;  %v9379_v28 = vpack.c.bf16 %v6514_v18, %v6513_v59 }
 0x81c   :  { %6432 = vmatprep.mubr.f32.mxu0 %v5807_v9  ;;  %9320 = vmatprep.subr.bf16.mxu1 %v14145_v35 }
 0x81d   :  { %9352 = vmatprep.subr.bf16.mxu0 %v14146_v20 }
 0x81e   :  { %9322 = vmatpush3.bf16.msra.mxu1 %v14147_v58 }
 0x81f   :  { %9354 = vmatpush3.bf16.msra.mxu0 %v14148_v6  ;;  %9324 = vmatprep.subr.bf16.mxu1 %v14149_v15 }
 0x820   :  { %9356 = vmatprep.subr.bf16.mxu0 %v14150_v23  ;;  %s6441_s16 = scalar_lea.vmem [#allocation2], %s6855_s9 }
 0x822   :  { %9326 = vmatpush3.bf16.msra.mxu1 %v14151_v60 }
 0x823   :  { %9358 = vmatpush3.bf16.msra.mxu0 %v13940_v0  ;;  %9328 = vmatprep.subr.bf16.mxu1 %v13941_v3  ;;  %v14160_v0 = vld [vmem:[#allocation242_spill] sm:$0xff]  ;;  %v14161_v3 = vld [vmem:[#allocation243_spill] sm:$0xff] }
 0x824   :  { %9360 = vmatprep.subr.bf16.mxu0 %v13942_v17  ;;  %v14162_v17 = vld [vmem:[#allocation244_spill] sm:$0xff] }
 0x826   :  { %9330 = vmatpush3.bf16.msra.mxu1 %v14152_v38 }
 0x827   :  { %9362 = vmatpush3.bf16.msra.mxu0 %v14153_v25  ;;  %9332 = vmatprep.subr.bf16.mxu1 %v14154_v11 }
 0x828   :  { %9364 = vmatprep.subr.bf16.mxu0 %v14155_v53 }
 0x82a   :  { %9334 = vmatpush3.bf16.msra.mxu1 %v14156_v43 }
 0x82b   :  { %9366 = vmatpush3.bf16.msra.mxu0 %v14157_v39  ;;  %9336 = vmatprep.subr.bf16.mxu1 %v14158_v50 }
 0x82c   :  { %9368 = vmatprep.subr.bf16.mxu0 %v14159_v52 }
 0x82e   :  { %9338 = vmatpush3.bf16.msra.mxu1 %v14160_v0 }
 0x82f   :  { %9370 = vmatpush3.bf16.msra.mxu0 %v14161_v3  ;;  %9340 = vmatprep.subr.bf16.mxu1 %v14162_v17 }
 0x830   :  { %9372 = vmatprep.subr.bf16.mxu0 %v14163_v13 }
 0x832   :  { %9342 = vmatpush3.bf16.msra.mxu1 %v14164_v45  ;;  %v6863_v45 = vld [vmem:[%s13052_s10] ss:$0 sm:$0xff]  ;;  %s9484_s10 = smov [#allocation11]  }
 0x833   :  { %9374 = vmatpush3.bf16.msra.mxu0 %v14165_v26  ;;  %9344 = vmatprep.subr.bf16.mxu1 %v14166_v62  ;;  %s6633_s26 = sshll.u32 %s9484_s10, 4  ;;  %s6634_s26 = int_to_ptr.vmem [resolvable:$true] %s6633_s26 }
 0x834   :  { %9376 = vmatprep.subr.bf16.mxu0 %v14167_v24  ;;  %s9449_s14 = scalar_lea.vmem %s6634_s26, 256  ;;  %p9454_p2 = scmp.lt.s32.totalorder %s6634_s26, %s6634_s26 }
 0x835   :  { %p9450_p1 = scmp.ne.s32.totalorder %s6634_s26, %s9449_s14  ;;  %p9455_p3 = scmp.lt.s32.totalorder %s9449_s14, %s9449_s14 }
 0x836   :  { %9346 = vmatpush3.bf16.msra.mxu1 %v14168_v31 }
 0x837   :  { %9378 = vmatpush3.bf16.msra.mxu0 %v14169_v33  ;;  %9380 = vmatprep.subr.bf16.mxu1 %v9379_v28  ;;  %p9456_p4 = por %p9455_p3, %p9454_p2 }
 0x839   :  { %6363 = vmatmul.mubr.f32.vlgmr.msra.gmra.mrb[72].mxu1 %v5804_v30  ;;  %p9457_p5 = pnand %p9456_p4, %p9450_p1 }
 0x83a   :  { %6433 = vmatmul.mubr.f32.vlgmr.msra.gmra.mrb[74].mxu0 %v5806_v54  ;;  %9382 = vmatpush3.bf16.msra.mxu1 %v9379_v28 }
 0x83b   :  { %9384 = vmatprep.subr.bf16.mxu1 %v9383_v44 }
 0x83e   :  { %9386 = vmatpush3.bf16.msra.mxu1 %v9383_v44 }
 0x8ac   :  { %v7485_v5 = vpop.f32.mrb[66].mxu1  ;;  %v7520_v8 = vpop.f32.mrb[68].mxu0 }
 0x8ad   :  { %v7486_v4 = vpop.f32.mrb[67].mxu1  ;;  %v7521_v46 = vpop.f32.mrb[69].mxu0 }
 0x8ae   :  { %v7487_v21 = vadd.f32 %v7486_v4, %v7485_v5  ;;  %v7522_v40 = vadd.f32 %v7521_v46, %v7520_v8 }
 0x8b0   :  { %v5945_v7 = vadd.f32 %v7487_v21, %v5874_v42 }
 0x8b2   :  { %v6015_v14 = vadd.f32 %v7522_v40, %v5945_v7 }
 0x8cc   :  { %v7555_v32 = vpop.f32.mrb[68].mxu1  ;;  %v7590_v47 = vpop.f32.mrb[70].mxu0 }
 0x8cd   :  { %v7556_v48 = vpop.f32.mrb[69].mxu1  ;;  %v7591_v30 = vpop.f32.mrb[71].mxu0 }
 0x8ce   :  { %v7557_v54 = vadd.f32 %v7556_v48, %v7555_v32  ;;  %v7592_v55 = vadd.f32 %v7591_v30, %v7590_v47 }
 0x8d0   :  { %v6085_v61 = vadd.f32 %v7557_v54, %v6015_v14 }
 0x8d2   :  { %v6155_v56 = vadd.f32 %v7592_v55, %v6085_v61 }
 0x8ec   :  { %v7625_v9 = vpop.f32.mrb[70].mxu1 }
 0x8ed   :  { %v7660_v63 = vpop.f32.mrb[72].mxu0  ;;  %v7626_v19 = vpop.f32.mrb[71].mxu1 }
 0x8ee   :  { %v7627_v57 = vadd.f32 %v7626_v19, %v7625_v9  ;;  %v7661_v36 = vpop.f32.mrb[73].mxu0 }
 0x8ef   :  { %v7662_v37 = vadd.f32 %v7661_v36, %v7660_v63 }
 0x8f0   :  { %v6225_v1 = vadd.f32 %v7627_v57, %v6155_v56 }
 0x8f2   :  { %v6295_v2 = vadd.f32 %v7662_v37, %v6225_v1 }
 0x90c   :  { %v7695_v41 = vpop.f32.mrb[72].mxu1 }
 0x90d   :  { %v7730_v29 = vpop.f32.mrb[74].mxu0  ;;  %v7696_v42 = vpop.f32.mrb[73].mxu1 }
 0x90e   :  { %v7697_v10 = vadd.f32 %v7696_v42, %v7695_v41  ;;  %v7731_v27 = vpop.f32.mrb[75].mxu0 }
 0x90f   :  { %v7732_v16 = vadd.f32 %v7731_v27, %v7730_v29 }
 0x910   :  { %v6365_v22 = vadd.f32 %v7697_v10, %v6295_v2 }
 0x912   :  { %v6435_v49 = vadd.f32 %v7732_v16, %v6365_v22 }
 0x914   :  { %v6438_v35 = vadd.f32 %v12603_v34, %v6435_v49 }
 0x916   :  { %9401 = vtanh.f32 %v6438_v35 }
 0x920   :  { %v9402_v20 = vpop.eup %9401 }
 0x921   :  { %6442 = vst.msk [vmem:[%s6441_s16] sm:$0x1] %vm91_vm0, %v9402_v20 }
 0x922   :  { %6445 = vst.msk [vmem:[%s6444_s20 - $0x1] sm:$0x2] %vm2558_vm4, %v9402_v20 }
 0x923   :  { %6448 = vst.msk [vmem:[%s6447_s19 - $0x2] sm:$0x4] %vm2562_vm5, %v9402_v20 }
 0x924   :  { %6451 = vst.msk [vmem:[%s6450_s2 - $0x3] sm:$0x8] %vm2566_vm6, %v9402_v20 }
 0x925   :  { %6454 = vst.msk [vmem:[%s6453_s12 - $0x4] sm:$0x10] %vm2570_vm7, %v9402_v20 }
 0x926   :  { %6457 = vst.msk [vmem:[%s6456_s18 - $0x5] sm:$0x20] %vm2574_vm8, %v9402_v20 }
 0x927   :  { %6460 = vst.msk [vmem:[%s6459_s17 - $0x6] sm:$0x40] %vm2578_vm9, %v9402_v20 }
 0x928   :  { %6463 = vst.msk [vmem:[%s6462_s8 - $0x7] sm:$0x80] %vm2582_vm10, %v9402_v20 }
 0x92f   :  { %v6464_v34 = vld [vmem:[#allocation2] sm:$0x1]  ;;  %v6467_v58 = vld [vmem:[#allocation2 + $0x1] sm:$0x1]  ;;  %v6470_v6 = vld [vmem:[#allocation2 + $0x2] sm:$0x1] }
 0x930   :  { %6465 = vst.msk [vmem:[#allocation4] sm:$0x1] %vm91_vm0, %v6464_v34  ;;  %6468 = vst.msk [vmem:[#allocation4 + $0x1] sm:$0x1] %vm91_vm0, %v6467_v58  ;;  %v6473_v15 = vld [vmem:[#allocation2 + $0x3] sm:$0x1] }
 0x931   :  { %6471 = vst.msk [vmem:[#allocation4 + $0x2] sm:$0x1] %vm91_vm0, %v6470_v6  ;;  %v6476_v23 = vld [vmem:[#allocation2 + $0x4] sm:$0x1]  ;;  %v6479_v60 = vld [vmem:[#allocation2 + $0x5] sm:$0x1] }
 0x932   :  { %6474 = vst.msk [vmem:[#allocation4 + $0x3] sm:$0x1] %vm91_vm0, %v6473_v15  ;;  %6477 = vst.msk [vmem:[#allocation4 + $0x4] sm:$0x1] %vm91_vm0, %v6476_v23  ;;  %v6482_v38 = vld [vmem:[#allocation2 + $0x6] sm:$0x1] }
 0x933   :  { %6480 = vst.msk [vmem:[#allocation4 + $0x5] sm:$0x1] %vm91_vm0, %v6479_v60  ;;  %v6485_v25 = vld [vmem:[#allocation2 + $0x7] sm:$0x1]  ;;  %v6488_v11 = vld [vmem:[#allocation2 + $0x8] sm:$0x1] }
 0x934   :  { %6483 = vst.msk [vmem:[#allocation4 + $0x6] sm:$0x1] %vm91_vm0, %v6482_v38  ;;  %6486 = vst.msk [vmem:[#allocation4 + $0x7] sm:$0x1] %vm91_vm0, %v6485_v25  ;;  %v6491_v53 = vld [vmem:[#allocation2 + $0x9] sm:$0x1] }
 0x935   :  { %6489 = vst.msk [vmem:[#allocation4 + $0x8] sm:$0x1] %vm91_vm0, %v6488_v11  ;;  %v6494_v43 = vld [vmem:[#allocation2 + $0xa] sm:$0x1]  ;;  %v6497_v39 = vld [vmem:[#allocation2 + $0xb] sm:$0x1] }
 0x936   :  { %6492 = vst.msk [vmem:[#allocation4 + $0x9] sm:$0x1] %vm91_vm0, %v6491_v53  ;;  %6495 = vst.msk [vmem:[#allocation4 + $0xa] sm:$0x1] %vm91_vm0, %v6494_v43  ;;  %v6500_v50 = vld [vmem:[#allocation2 + $0xc] sm:$0x1] }
 0x937   :  { %6498 = vst.msk [vmem:[#allocation4 + $0xb] sm:$0x1] %vm91_vm0, %v6497_v39  ;;  %v6503_v52 = vld [vmem:[#allocation2 + $0xd] sm:$0x1]  ;;  %v6506_v0 = vld [vmem:[#allocation2 + $0xe] sm:$0x1] }
 0x938   :  { %6501 = vst.msk [vmem:[#allocation4 + $0xc] sm:$0x1] %vm91_vm0, %v6500_v50  ;;  %6504 = vst.msk [vmem:[#allocation4 + $0xd] sm:$0x1] %vm91_vm0, %v6503_v52  ;;  %v6509_v3 = vld [vmem:[#allocation2 + $0xf] sm:$0x1] }
 0x939   :  { %6507 = vst.msk [vmem:[#allocation4 + $0xe] sm:$0x1] %vm91_vm0, %v6506_v0  ;;  %6510 = vst.msk [vmem:[#allocation4 + $0xf] sm:$0x1] %vm91_vm0, %v6509_v3 }
 0x93b   :  { %v6511_v17 = vld [vmem:[#allocation4] sm:$0xff] }
 0x93c   :  { %7804 = vmatprep.mubr.msk.f32.mxu1 %vm6524_vm11, %v6511_v17 }
 0x940   :  { %v6512_v13 = vld [vmem:[#allocation4 + $0x8] sm:$0xff] }
 0x941   :  { %7805 = vmatmul.mubr.msk.f32.vlgmr.msra.gmra.mrb[74].mxu1 %vm6524_vm11, %v6512_v13 }
 0xa14   :  { %v7806_v26 = vpop.f32.mrb[74].mxu1 }
 0xa15   :  { %v6603_v62 = vadd.f32 %v7806_v26, %v6863_v45  ;;  %v6597_v24 = vpop.f32.mrb[75].mxu1 }
 0xa16   :  { %v6598_v31 = vadd.f32 %v6863_v45, %v6597_v24 }
 0xa17   :  { %6608 = vmax.xlane.f32.xlu1 %v6603_v62 }
 0xa18   :  { %6606 = vmax.xlane.f32.xlu0 %v6598_v31 }
 0xaa4   :  { %v6609_v33 = vpop.xlane.xlu1 %6608 }
 0xaa5   :  { %v6607_v59 = vpop.xlane.xlu0 %6606  ;;  %v6611_v18 = vsub.f32 %v6603_v62, %v6609_v33 }
 0xaa6   :  { %v6610_v12 = vsub.f32 %v6598_v31, %v6607_v59 }
 0xaa7   :  { %v6614_v51 = vmul.f32 1.442695, %v6611_v18 }
 0xaa8   :  { %v6612_v28 = vmul.f32 1.442695, %v6610_v12 }
 0xaaa   :  { %9403 = vpow2.f32 %v6612_v28 }
 0xaab   :  { %9405 = vpow2.f32 %v6614_v51 }
 0xab4   :  { %v9404_v44 = vpop.eup %9403 }
 0xab5   :  { %6616 = vadd.xlane.f32.xlu0 %v9404_v44  ;;  %v9406_v5 = vpop.eup %9405 }
 0xab9   :  { %6618 = vadd.xlane.f32.xlu0 %v9406_v5 }
 0xb42   :  { %v6617_v8 = vpop.xlane.xlu0 %6616 }
 0xb43   :  { %9407 = vlog2.f32 %v6617_v8 }
 0xb46   :  { %v6619_v4 = vpop.xlane.xlu0 %6618 }
 0xb47   :  { %9409 = vlog2.f32 %v6619_v4 }
 0xb4d   :  { %v9408_v46 = vpop.eup %9407 }
 0xb4e   :  { %v6621_v21 = vmul.f32 0.6931472, %v9408_v46 }
 0xb50   :  { %v6624_v40 = vsub.f32 %v6610_v12, %v6621_v21 }
 0xb51   :  { %v9410_v7 = vpop.eup %9409 }
 0xb52   :  { %6626 = vst [vmem:[#allocation11] sm:$0xff] %v6624_v40  ;;  %v6623_v14 = vmul.f32 0.6931472, %v9410_v7 }
 0xb54   :  { %v6625_v32 = vsub.f32 %v6611_v18, %v6623_v14 }
 0xb56   :  { %6627 = vst [vmem:[#allocation11 + $0x8] sm:$0xff] %v6625_v32 }
 0xb57   :  { %9460 = shalt.err (!%p9457_p5)
}
 0xb58   :  { %s9461_s24 = scalar_lea.hbm %s13053_s11, 256 }
 0xb59   :  { %p9462_p6 = scmp.ne.s32.totalorder %s13053_s11, %s9461_s24  ;;  %p9465_p7 = scmp.lt.u32.totalorder %s9461_s24, %s13053_s11 }
 0xb5b   :  { %p9467_p8 = pnand %p9465_p7, %p9462_p6 }
 0xb5d   :  { %9470 = shalt.err (!%p9467_p8)
}
 0xb5e   :  { %s9485_s28 = smov 128   ;;  %s9486_s6 = smov 8  }
 0xb5f   :  { %6639 = dma.vmem_to_hbm [thread:$0]  %s6634_s26, 256, %s13053_s11, [#allocation6], %s9485_s28, %s9485_s28, %s9486_s6  }
 0xb60   :  { %9475 = dma.done.wait [#allocation6], 256  }
 0xb61   :  { %9476 = vsyncadd [#allocation6], 4294967040 }
 0xb62   :  { %6643 = vsyncpa [#allocation6], 1 }
 0xb63   :  { %6644 = vsyncpa [#allocation7], 1 }
 0xb64   :  { %6645 = vsyncpa [#allocation9], 1 }

</bundles_post_ra>
